<compile_context>
chip_gen: v7x
topology: tpu7x:2x2x1
jax: 0.10.0
libtpu: 0.0.40
codegen_flags: <defaults>
</compile_context>

<pallas_src>
import functools

import numpy as np
import jax
import jax.numpy as jnp
from jax import lax
from jax.experimental import pallas as pl
from jax.experimental.pallas import tpu as pltpu

BN_EPS = 1e-5


# --------------------------------------------------------------------------
# Trace-time helpers (2-D only: slices, axis-0 concat, lane-broadcast masks).
# --------------------------------------------------------------------------
def _shift_rows(a, s):
    """b[i] = a[i + s] (static s), zero-filled outside [0, a.shape[0])."""
    n, c = a.shape
    if s == 0:
        return a
    if abs(s) >= n:
        return jnp.zeros_like(a)
    z = jnp.zeros((abs(s), c), a.dtype)
    if s > 0:
        return jnp.concatenate([a[s:], z], axis=0)
    return jnp.concatenate([z, a[:n + s]], axis=0)


def _conv_tap_2d(a, dh, dw, W, w_idx):
    """Tap of a flat (H*W, C) channels-last activation, shifted by (dh, dw)
    in the (h, w) plane with zero padding: tap[h*W + w] = a[(h+dh)*W + (w+dw)].
    Row shift handles the h boundary; a lane-broadcast mask handles the w
    boundary (rows whose w + dw falls outside [0, W))."""
    t = _shift_rows(a, dh * W + dw)
    if dw != 0:
        wp = w_idx + dw
        mask = ((wp >= 0) & (wp < W)).astype(a.dtype)          # (HW, 1)
        t = t * mask                                           # lane-broadcast
    return t


# --------------------------------------------------------------------------
# StripPooling kernel: one batch element per grid step.
# --------------------------------------------------------------------------
def strip_pooling_kernel(x_ref, w1_ref, b1_ref, w2_ref, b2_ref, w3_ref, b3_ref,
                         w4_ref, b4_ref, w5_ref, b5_ref, o_ref, *, H, W):
    f32 = jnp.float32
    HW = H * W
    Cm = w1_ref.shape[1]
    x = x_ref[0]                                               # (HW, C)

    # conv1 (1x1) + BN + ReLU
    x1 = jnp.maximum(
        jnp.dot(x, w1_ref[...], preferred_element_type=f32) + b1_ref[...], 0.0)

    # strip pools as plain reductions (no pooling matrices)
    acc = x1[0:W, :]
    for h in range(1, H):
        acc = acc + x1[h * W:(h + 1) * W, :]
    p1 = acc * (1.0 / H)                                       # (W, Cm) mean over H
    p2 = jnp.concatenate(
        [jnp.sum(x1[h * W:(h + 1) * W, :], axis=0, keepdims=True)
         for h in range(H)], axis=0) * (1.0 / W)               # (H, Cm) mean over W

    # conv2: (1,3) along W + BN  -> 3 taps fused into ONE matmul (K = 3*Cm)
    t2 = jnp.concatenate(
        [_shift_rows(p1, -1), p1, _shift_rows(p1, 1)], axis=1)  # (W, 3*Cm)
    y2 = jnp.dot(t2, w2_ref[...], preferred_element_type=f32) + b2_ref[...]

    # conv3: (3,1) along H + BN
    t3 = jnp.concatenate(
        [_shift_rows(p2, -1), p2, _shift_rows(p2, 1)], axis=1)  # (H, 3*Cm)
    y3 = jnp.dot(t3, w3_ref[...], preferred_element_type=f32) + b3_ref[...]

    # bilinear upsample (align_corners=True) from a 1-row / 1-col strip is an
    # exact broadcast -> VPU broadcasts, no matmuls.
    x2 = jnp.concatenate([y2] * H, axis=0)                      # row r -> y2[r % W]
    x3 = jnp.concatenate(
        [jnp.broadcast_to(y3[h:h + 1, :], (W, Cm)) for h in range(H)],
        axis=0)                                                 # row r -> y3[r // W]
    b_act = jnp.maximum(x2 + x3, 0.0)                           # (HW, Cm)

    # conv4: 3x3 pad 1 + BN + ReLU -> 9 shifted taps fused into ONE matmul
    w_idx = lax.broadcasted_iota(jnp.int32, (HW, 1), 0) % W
    taps = jnp.concatenate(
        [_conv_tap_2d(b_act, dh, dw, W, w_idx)
         for dh in (-1, 0, 1) for dw in (-1, 0, 1)], axis=1)    # (HW, 9*Cm)
    x4 = jnp.maximum(
        jnp.dot(taps, w4_ref[...], preferred_element_type=f32) + b4_ref[...], 0.0)

    # conv5 (1x1) + BN, residual add, final ReLU
    out = jnp.dot(x4, w5_ref[...], preferred_element_type=f32) + b5_ref[...]
    o_ref[0] = jnp.maximum(x + out, 0.0)


# --------------------------------------------------------------------------
# _DenseASPPConv kernel: 1x1 conv+BN+ReLU -> dilated 3x3 conv+BN+ReLU.
# --------------------------------------------------------------------------
def dense_aspp_conv_kernel(x_ref, wa_ref, ba_ref, wb_ref, bb_ref, o_ref,
                           *, H, W, rate):
    f32 = jnp.float32
    HW = H * W
    x = x_ref[0]                                               # (HW, Cin)

    # conv1 (1x1, bias) + BN + ReLU
    h1 = jnp.maximum(
        jnp.dot(x, wa_ref[...], preferred_element_type=f32) + ba_ref[...], 0.0)

    # conv2 (3x3, dilation=rate, padding=rate, bias) + BN + ReLU
    w_idx = lax.broadcasted_iota(jnp.int32, (HW, 1), 0) % W
    taps = jnp.concatenate(
        [_conv_tap_2d(h1, dh, dw, W, w_idx)
         for dh in (-rate, 0, rate) for dw in (-rate, 0, rate)],
        axis=1)                                                # (HW, 9*C1)
    y = jnp.maximum(
        jnp.dot(taps, wb_ref[...], preferred_element_type=f32) + bb_ref[...], 0.0)
    # TODO(synk): dropout (p=0.1) is identity in eval mode; not applied.
    o_ref[0] = y


# --------------------------------------------------------------------------
# Wrappers: fold BN, stack tap weights along K, call pallas_call.
# --------------------------------------------------------------------------
def _fold_conv_bn(w, b, bn):
    gamma, beta, mean, var = bn
    s = gamma / jnp.sqrt(var + BN_EPS)
    w_f = w * s[:, None, None, None]
    b_f = beta - mean * s
    if b is not None:
        b_f = b_f + b * s
    return w_f, b_f


def _const_spec(shape):
    zeros = (0,) * len(shape)
    return pl.BlockSpec(shape, lambda n, _z=zeros: _z)


def strip_pooling_pallas(x_flat, sp, H, W):
    """x_flat: (N, H*W, C) channels-last, row index = h*W + w."""
    N, HW, C = x_flat.shape
    Cm = C // 4

    w1f, b1f = _fold_conv_bn(sp['w1'], None, sp['bn1'])
    w2f, b2f = _fold_conv_bn(sp['w2'], None, sp['bn2'])
    w3f, b3f = _fold_conv_bn(sp['w3'], None, sp['bn3'])
    w4f, b4f = _fold_conv_bn(sp['w4'], None, sp['bn4'])
    w5f, b5f = _fold_conv_bn(sp['w5'], None, sp['bn5'])

    # matmul-form weights; taps stacked along the K dimension.
    w1m = w1f[:, :, 0, 0].T                                              # (C, Cm)
    w2m = jnp.concatenate([w2f[:, :, 0, k].T for k in range(3)], axis=0)  # (3Cm, Cm)
    w3m = jnp.concatenate([w3f[:, :, k, 0].T for k in range(3)], axis=0)  # (3Cm, Cm)
    w4m = jnp.concatenate([w4f[:, :, i, j].T
                           for i in range(3) for j in range(3)], axis=0)  # (9Cm, Cm)
    w5m = w5f[:, :, 0, 0].T                                              # (Cm, C)

    kernel = functools.partial(strip_pooling_kernel, H=H, W=W)
    return pl.pallas_call(
        kernel,
        out_shape=jax.ShapeDtypeStruct((N, HW, C), jnp.float32),
        grid=(N,),
        in_specs=[
            pl.BlockSpec((1, HW, C), lambda n: (n, 0, 0)),
            _const_spec((C, Cm)), _const_spec((1, Cm)),
            _const_spec((3 * Cm, Cm)), _const_spec((1, Cm)),
            _const_spec((3 * Cm, Cm)), _const_spec((1, Cm)),
            _const_spec((9 * Cm, Cm)), _const_spec((1, Cm)),
            _const_spec((Cm, C)), _const_spec((1, C)),
        ],
        out_specs=pl.BlockSpec((1, HW, C), lambda n: (n, 0, 0)),
        compiler_params=pltpu.CompilerParams(
            dimension_semantics=("parallel",)),
    )(x_flat, w1m, b1f.reshape(1, Cm), w2m, b2f.reshape(1, Cm),
      w3m, b3f.reshape(1, Cm), w4m, b4f.reshape(1, Cm),
      w5m, b5f.reshape(1, C))


def dense_aspp_conv_pallas(x_flat, p, H, W):
    N, HW, Cin = x_flat.shape
    C1 = p['w1'].shape[0]
    C2 = p['w2'].shape[0]
    rate = p['rate']

    waf, baf = _fold_conv_bn(p['w1'], p['b1'], p['bn1'])
    wbf, bbf = _fold_conv_bn(p['w2'], p['b2'], p['bn2'])
    wam = waf[:, :, 0, 0].T                                              # (Cin, C1)
    wbm = jnp.concatenate([wbf[:, :, i, j].T
                           for i in range(3) for j in range(3)], axis=0)  # (9C1, C2)

    kernel = functools.partial(dense_aspp_conv_kernel, H=H, W=W, rate=rate)
    return pl.pallas_call(
        kernel,
        out_shape=jax.ShapeDtypeStruct((N, HW, C2), jnp.float32),
        grid=(N,),
        in_specs=[
            pl.BlockSpec((1, HW, Cin), lambda n: (n, 0, 0)),
            _const_spec((Cin, C1)), _const_spec((1, C1)),
            _const_spec((9 * C1, C2)), _const_spec((1, C2)),
        ],
        out_specs=pl.BlockSpec((1, HW, C2), lambda n: (n, 0, 0)),
        compiler_params=pltpu.CompilerParams(
            dimension_semantics=("parallel",)),
    )(x_flat, wam, baf.reshape(1, C1), wbm, bbf.reshape(1, C2))


def dense_aspp_block_pallas(x_nchw, params):
    N, C, H, W = x_nchw.shape
    x_flat = jnp.transpose(x_nchw, (0, 2, 3, 1)).reshape(N, H * W, C)
    x_flat = x_flat.astype(jnp.float32)

    x1_sp = strip_pooling_pallas(x_flat, params['sp'], H, W)     # (N, HW, C)

    feats = x_flat
    for name in ('aspp3', 'aspp6', 'aspp12', 'aspp18', 'aspp24'):
        a = dense_aspp_conv_pallas(feats, params[name], H, W)    # (N, HW, C2)
        feats = jnp.concatenate([a, feats], axis=-1)
    out = jnp.concatenate([feats, x1_sp], axis=-1)
    Cout = out.shape[-1]
    return jnp.transpose(out.reshape(N, H, W, Cout), (0, 3, 1, 2))


# --------------------------------------------------------------------------
# Pure-JAX NCHW reference (for correctness check).
# --------------------------------------------------------------------------
def _conv_bn_ref(x, w, b, bn, pad, dilation=(1, 1), relu=True):
    y = lax.conv_general_dilated(
        x, w, window_strides=(1, 1),
        padding=[(pad[0], pad[0]), (pad[1], pad[1])],
        rhs_dilation=dilation,
        dimension_numbers=('NCHW', 'OIHW', 'NCHW'))
    if b is not None:
        y = y + b[None, :, None, None]
    gamma, beta, mean, var = bn
    s = gamma / jnp.sqrt(var + BN_EPS)
    y = y * s[None, :, None, None] + (beta - mean * s)[None, :, None, None]
    return jnp.maximum(y, 0.0) if relu else y


def _strip_pooling_ref(x, sp):
    x1 = _conv_bn_ref(x, sp['w1'], None, sp['bn1'], (0, 0), relu=True)
    p1 = jnp.mean(x1, axis=2, keepdims=True)                     # (N, Cm, 1, W)
    y2 = _conv_bn_ref(p1, sp['w2'], None, sp['bn2'], (0, 1), relu=False)
    x2 = jnp.broadcast_to(y2, x1.shape)      # align_corners=True upsample from H=1
    p2 = jnp.mean(x1, axis=3, keepdims=True)                     # (N, Cm, H, 1)
    y3 = _conv_bn_ref(p2, sp['w3'], None, sp['bn3'], (1, 0), relu=False)
    x3 = jnp.broadcast_to(y3, x1.shape)
    b = jnp.maximum(x2 + x3, 0.0)
    x4 = _conv_bn_ref(b, sp['w4'], None, sp['bn4'], (1, 1), relu=True)
    out = _conv_bn_ref(x4, sp['w5'], None, sp['bn5'], (0, 0), relu=False)
    return jnp.maximum(x + out, 0.0)


def _dense_aspp_conv_ref(x, p):
    r = p['rate']
    h = _conv_bn_ref(x, p['w1'], p['b1'], p['bn1'], (0, 0), relu=True)
    return _conv_bn_ref(h, p['w2'], p['b2'], p['bn2'], (r, r),
                        dilation=(r, r), relu=True)


def dense_aspp_block_ref(x, params):
    x1 = _strip_pooling_ref(x, params['sp'])
    feats = x
    for name in ('aspp3', 'aspp6', 'aspp12', 'aspp18', 'aspp24'):
        a = _dense_aspp_conv_ref(feats, params[name])
        feats = jnp.concatenate([a, feats], axis=1)
    return jnp.concatenate([feats, x1], axis=1)


# --------------------------------------------------------------------------
# Deterministic parameter init (shapes follow _DenseASPPBlock.__init__).
# --------------------------------------------------------------------------
def init_params(key, C, C1, C2):
    Cm = C // 4
    keys = iter(jax.random.split(key, 64))

    def bn_params(ch):
        k1, k2, k3, k4 = jax.random.split(next(keys), 4)
        gamma = (1.0 + 0.1 * jax.random.normal(k1, (ch,))).astype(jnp.float32)
        beta = (0.1 * jax.random.normal(k2, (ch,))).astype(jnp.float32)
        mean = (0.1 * jax.random.normal(k3, (ch,))).astype(jnp.float32)
        var = jax.random.uniform(k4, (ch,), minval=0.5, maxval=1.5).astype(jnp.float32)
        return (gamma, beta, mean, var)

    def conv_w(shape):
        fan_in = shape[1] * shape[2] * shape[3]
        return (jax.random.normal(next(keys), shape, jnp.float32)
                / np.sqrt(float(fan_in)))

    def conv_b(ch):
        return 0.1 * jax.random.normal(next(keys), (ch,), jnp.float32)

    sp = {
        'w1': conv_w((Cm, C, 1, 1)), 'bn1': bn_params(Cm),
        'w2': conv_w((Cm, Cm, 1, 3)), 'bn2': bn_params(Cm),
        'w3': conv_w((Cm, Cm, 3, 1)), 'bn3': bn_params(Cm),
        'w4': conv_w((Cm, Cm, 3, 3)), 'bn4': bn_params(Cm),
        'w5': conv_w((C, Cm, 1, 1)), 'bn5': bn_params(C),
    }
    params = {'sp': sp}
    rates = (('aspp3', 3), ('aspp6', 6), ('aspp12', 12),
             ('aspp18', 18), ('aspp24', 24))
    for i, (name, r) in enumerate(rates):
        cin = C + i * C2
        params[name] = {
            'rate': r,
            'w1': conv_w((C1, cin, 1, 1)), 'b1': conv_b(C1), 'bn1': bn_params(C1),
            'w2': conv_w((C2, C1, 3, 3)), 'b2': conv_b(C2), 'bn2': bn_params(C2),
        }
    return params


if __name__ == "__main__":
    key = jax.random.PRNGKey(0)
    kx, kp = jax.random.split(key)
    # The module hard-codes StripPooling(320), so the input must have 320
    # channels; spatial dims kept small and H != W to catch axis swaps.
    N, C, H, W = 2, 320, 16, 24
    C1, C2 = 32, 16                       # inter_channels1, inter_channels2

    x = jax.random.normal(kx, (N, C, H, W), jnp.float32)
    params = init_params(kp, C, C1, C2)

    y = dense_aspp_block_pallas(x, params)
    y = jax.block_until_ready(y)
    assert y.shape == (N, C + 5 * C2 + 320, H, W), y.shape

    y_ref = dense_aspp_block_ref(x, params)
    np.testing.assert_allclose(np.asarray(y), np.asarray(y_ref),
                               rtol=3e-2, atol=3e-2)
    print("KERNEL_OK")
</pallas_src>

<mosaic_0001>
module attributes {stable_mosaic.version = 11 : i64} {
  func.func @strip_pooling_kernel(%arg0: i32, %arg1: memref<1x384x320xf32, #tpu.memory_space<vmem>>, %arg2: memref<320x80xf32, #tpu.memory_space<vmem>>, %arg3: memref<1x80xf32, #tpu.memory_space<vmem>>, %arg4: memref<240x80xf32, #tpu.memory_space<vmem>>, %arg5: memref<1x80xf32, #tpu.memory_space<vmem>>, %arg6: memref<240x80xf32, #tpu.memory_space<vmem>>, %arg7: memref<1x80xf32, #tpu.memory_space<vmem>>, %arg8: memref<720x80xf32, #tpu.memory_space<vmem>>, %arg9: memref<1x80xf32, #tpu.memory_space<vmem>>, %arg10: memref<80x320xf32, #tpu.memory_space<vmem>>, %arg11: memref<1x320xf32, #tpu.memory_space<vmem>>, %arg12: memref<1x384x320xf32, #tpu.memory_space<vmem>>) attributes {dimension_semantics = [#tpu.dimension_semantics<parallel>], iteration_bounds = array<i64: 2>, scalar_prefetch = 0 : i64, scratch_operands = 0 : i64, tpu.core_type = #tpu.core_type<tc>, window_params = [{transform_indices = @transform_0, window_bounds = array<i64: 1, 384, 320>}, {pipeline_mode = #tpu.pipeline_mode<synchronous>, transform_indices = @transform_1, window_bounds = array<i64: 320, 80>}, {pipeline_mode = #tpu.pipeline_mode<synchronous>, transform_indices = @transform_2, window_bounds = array<i64: 1, 80>}, {pipeline_mode = #tpu.pipeline_mode<synchronous>, transform_indices = @transform_3, window_bounds = array<i64: 240, 80>}, {pipeline_mode = #tpu.pipeline_mode<synchronous>, transform_indices = @transform_4, window_bounds = array<i64: 1, 80>}, {pipeline_mode = #tpu.pipeline_mode<synchronous>, transform_indices = @transform_5, window_bounds = array<i64: 240, 80>}, {pipeline_mode = #tpu.pipeline_mode<synchronous>, transform_indices = @transform_6, window_bounds = array<i64: 1, 80>}, {pipeline_mode = #tpu.pipeline_mode<synchronous>, transform_indices = @transform_7, window_bounds = array<i64: 720, 80>}, {pipeline_mode = #tpu.pipeline_mode<synchronous>, transform_indices = @transform_8, window_bounds = array<i64: 1, 80>}, {pipeline_mode = #tpu.pipeline_mode<synchronous>, transform_indices = @transform_9, window_bounds = array<i64: 80, 320>}, {pipeline_mode = #tpu.pipeline_mode<synchronous>, transform_indices = @transform_10, window_bounds = array<i64: 1, 320>}, {transform_indices = @transform_11, window_bounds = array<i64: 1, 384, 320>}]} {
    %c0 = arith.constant 0 : index
    %c0_0 = arith.constant 0 : index
    %c0_1 = arith.constant 0 : index
    %0 = vector.load %arg1[%c0, %c0_0, %c0_1] : memref<1x384x320xf32, #tpu.memory_space<vmem>>, vector<1x384x320xf32>
    %1 = vector.shape_cast %0 : vector<1x384x320xf32> to vector<384x320xf32>
    %c0_2 = arith.constant 0 : index
    %c0_3 = arith.constant 0 : index
    %2 = vector.load %arg2[%c0_2, %c0_3] : memref<320x80xf32, #tpu.memory_space<vmem>>, vector<320x80xf32>
    %cst = arith.constant dense<0.000000e+00> : vector<384x80xf32>
    %3 = tpu.matmul %1, %2, %cst {dimension_numbers = #tpu.dot_dimension_numbers<[1], [0], [0], [1], [0, 0, 1, 1], [], []>} : vector<384x320xf32>, vector<320x80xf32>, vector<384x80xf32> -> vector<384x80xf32>
    %c0_4 = arith.constant 0 : index
    %c0_5 = arith.constant 0 : index
    %4 = vector.load %arg3[%c0_4, %c0_5] : memref<1x80xf32, #tpu.memory_space<vmem>>, vector<1x80xf32>
    %5 = vector.broadcast %4 : vector<1x80xf32> to vector<384x80xf32>
    %6 = arith.addf %3, %5 : vector<384x80xf32>
    %cst_6 = arith.constant 0.000000e+00 : f32
    %7 = vector.broadcast %cst_6 : f32 to vector<384x80xf32>
    %8 = arith.maximumf %6, %7 : vector<384x80xf32>
    %9 = vector.extract_strided_slice %8 {offsets = [0, 0], sizes = [24, 80], strides = [1, 1]} : vector<384x80xf32> to vector<24x80xf32>
    %10 = vector.extract_strided_slice %8 {offsets = [24, 0], sizes = [24, 80], strides = [1, 1]} : vector<384x80xf32> to vector<24x80xf32>
    %11 = arith.addf %9, %10 : vector<24x80xf32>
    %12 = vector.extract_strided_slice %8 {offsets = [48, 0], sizes = [24, 80], strides = [1, 1]} : vector<384x80xf32> to vector<24x80xf32>
    %13 = arith.addf %11, %12 : vector<24x80xf32>
    %14 = vector.extract_strided_slice %8 {offsets = [72, 0], sizes = [24, 80], strides = [1, 1]} : vector<384x80xf32> to vector<24x80xf32>
    %15 = arith.addf %13, %14 : vector<24x80xf32>
    %16 = vector.extract_strided_slice %8 {offsets = [96, 0], sizes = [24, 80], strides = [1, 1]} : vector<384x80xf32> to vector<24x80xf32>
    %17 = arith.addf %15, %16 : vector<24x80xf32>
    %18 = vector.extract_strided_slice %8 {offsets = [120, 0], sizes = [24, 80], strides = [1, 1]} : vector<384x80xf32> to vector<24x80xf32>
    %19 = arith.addf %17, %18 : vector<24x80xf32>
    %20 = vector.extract_strided_slice %8 {offsets = [144, 0], sizes = [24, 80], strides = [1, 1]} : vector<384x80xf32> to vector<24x80xf32>
    %21 = arith.addf %19, %20 : vector<24x80xf32>
    %22 = vector.extract_strided_slice %8 {offsets = [168, 0], sizes = [24, 80], strides = [1, 1]} : vector<384x80xf32> to vector<24x80xf32>
    %23 = arith.addf %21, %22 : vector<24x80xf32>
    %24 = vector.extract_strided_slice %8 {offsets = [192, 0], sizes = [24, 80], strides = [1, 1]} : vector<384x80xf32> to vector<24x80xf32>
    %25 = arith.addf %23, %24 : vector<24x80xf32>
    %26 = vector.extract_strided_slice %8 {offsets = [216, 0], sizes = [24, 80], strides = [1, 1]} : vector<384x80xf32> to vector<24x80xf32>
    %27 = arith.addf %25, %26 : vector<24x80xf32>
    %28 = vector.extract_strided_slice %8 {offsets = [240, 0], sizes = [24, 80], strides = [1, 1]} : vector<384x80xf32> to vector<24x80xf32>
    %29 = arith.addf %27, %28 : vector<24x80xf32>
    %30 = vector.extract_strided_slice %8 {offsets = [264, 0], sizes = [24, 80], strides = [1, 1]} : vector<384x80xf32> to vector<24x80xf32>
    %31 = arith.addf %29, %30 : vector<24x80xf32>
    %32 = vector.extract_strided_slice %8 {offsets = [288, 0], sizes = [24, 80], strides = [1, 1]} : vector<384x80xf32> to vector<24x80xf32>
    %33 = arith.addf %31, %32 : vector<24x80xf32>
    %34 = vector.extract_strided_slice %8 {offsets = [312, 0], sizes = [24, 80], strides = [1, 1]} : vector<384x80xf32> to vector<24x80xf32>
    %35 = arith.addf %33, %34 : vector<24x80xf32>
    %36 = vector.extract_strided_slice %8 {offsets = [336, 0], sizes = [24, 80], strides = [1, 1]} : vector<384x80xf32> to vector<24x80xf32>
    %37 = arith.addf %35, %36 : vector<24x80xf32>
    %38 = vector.extract_strided_slice %8 {offsets = [360, 0], sizes = [24, 80], strides = [1, 1]} : vector<384x80xf32> to vector<24x80xf32>
    %39 = arith.addf %37, %38 : vector<24x80xf32>
    %cst_7 = arith.constant 6.250000e-02 : f32
    %40 = vector.broadcast %cst_7 : f32 to vector<24x80xf32>
    %41 = arith.mulf %39, %40 : vector<24x80xf32>
    %42 = vector.extract_strided_slice %8 {offsets = [0, 0], sizes = [24, 80], strides = [1, 1]} : vector<384x80xf32> to vector<24x80xf32>
    %cst_8 = arith.constant dense<0.000000e+00> : vector<80xf32>
    %43 = vector.multi_reduction <add>, %42, %cst_8 [0] : vector<24x80xf32> to vector<80xf32>
    %44 = vector.shape_cast %43 : vector<80xf32> to vector<1x80xf32>
    %45 = vector.extract_strided_slice %8 {offsets = [24, 0], sizes = [24, 80], strides = [1, 1]} : vector<384x80xf32> to vector<24x80xf32>
    %cst_9 = arith.constant dense<0.000000e+00> : vector<80xf32>
    %46 = vector.multi_reduction <add>, %45, %cst_9 [0] : vector<24x80xf32> to vector<80xf32>
    %47 = vector.shape_cast %46 : vector<80xf32> to vector<1x80xf32>
    %48 = vector.extract_strided_slice %8 {offsets = [48, 0], sizes = [24, 80], strides = [1, 1]} : vector<384x80xf32> to vector<24x80xf32>
    %cst_10 = arith.constant dense<0.000000e+00> : vector<80xf32>
    %49 = vector.multi_reduction <add>, %48, %cst_10 [0] : vector<24x80xf32> to vector<80xf32>
    %50 = vector.shape_cast %49 : vector<80xf32> to vector<1x80xf32>
    %51 = vector.extract_strided_slice %8 {offsets = [72, 0], sizes = [24, 80], strides = [1, 1]} : vector<384x80xf32> to vector<24x80xf32>
    %cst_11 = arith.constant dense<0.000000e+00> : vector<80xf32>
    %52 = vector.multi_reduction <add>, %51, %cst_11 [0] : vector<24x80xf32> to vector<80xf32>
    %53 = vector.shape_cast %52 : vector<80xf32> to vector<1x80xf32>
    %54 = vector.extract_strided_slice %8 {offsets = [96, 0], sizes = [24, 80], strides = [1, 1]} : vector<384x80xf32> to vector<24x80xf32>
    %cst_12 = arith.constant dense<0.000000e+00> : vector<80xf32>
    %55 = vector.multi_reduction <add>, %54, %cst_12 [0] : vector<24x80xf32> to vector<80xf32>
    %56 = vector.shape_cast %55 : vector<80xf32> to vector<1x80xf32>
    %57 = vector.extract_strided_slice %8 {offsets = [120, 0], sizes = [24, 80], strides = [1, 1]} : vector<384x80xf32> to vector<24x80xf32>
    %cst_13 = arith.constant dense<0.000000e+00> : vector<80xf32>
    %58 = vector.multi_reduction <add>, %57, %cst_13 [0] : vector<24x80xf32> to vector<80xf32>
    %59 = vector.shape_cast %58 : vector<80xf32> to vector<1x80xf32>
    %60 = vector.extract_strided_slice %8 {offsets = [144, 0], sizes = [24, 80], strides = [1, 1]} : vector<384x80xf32> to vector<24x80xf32>
    %cst_14 = arith.constant dense<0.000000e+00> : vector<80xf32>
    %61 = vector.multi_reduction <add>, %60, %cst_14 [0] : vector<24x80xf32> to vector<80xf32>
    %62 = vector.shape_cast %61 : vector<80xf32> to vector<1x80xf32>
    %63 = vector.extract_strided_slice %8 {offsets = [168, 0], sizes = [24, 80], strides = [1, 1]} : vector<384x80xf32> to vector<24x80xf32>
    %cst_15 = arith.constant dense<0.000000e+00> : vector<80xf32>
    %64 = vector.multi_reduction <add>, %63, %cst_15 [0] : vector<24x80xf32> to vector<80xf32>
    %65 = vector.shape_cast %64 : vector<80xf32> to vector<1x80xf32>
    %66 = vector.extract_strided_slice %8 {offsets = [192, 0], sizes = [24, 80], strides = [1, 1]} : vector<384x80xf32> to vector<24x80xf32>
    %cst_16 = arith.constant dense<0.000000e+00> : vector<80xf32>
    %67 = vector.multi_reduction <add>, %66, %cst_16 [0] : vector<24x80xf32> to vector<80xf32>
    %68 = vector.shape_cast %67 : vector<80xf32> to vector<1x80xf32>
    %69 = vector.extract_strided_slice %8 {offsets = [216, 0], sizes = [24, 80], strides = [1, 1]} : vector<384x80xf32> to vector<24x80xf32>
    %cst_17 = arith.constant dense<0.000000e+00> : vector<80xf32>
    %70 = vector.multi_reduction <add>, %69, %cst_17 [0] : vector<24x80xf32> to vector<80xf32>
    %71 = vector.shape_cast %70 : vector<80xf32> to vector<1x80xf32>
    %72 = vector.extract_strided_slice %8 {offsets = [240, 0], sizes = [24, 80], strides = [1, 1]} : vector<384x80xf32> to vector<24x80xf32>
    %cst_18 = arith.constant dense<0.000000e+00> : vector<80xf32>
    %73 = vector.multi_reduction <add>, %72, %cst_18 [0] : vector<24x80xf32> to vector<80xf32>
    %74 = vector.shape_cast %73 : vector<80xf32> to vector<1x80xf32>
    %75 = vector.extract_strided_slice %8 {offsets = [264, 0], sizes = [24, 80], strides = [1, 1]} : vector<384x80xf32> to vector<24x80xf32>
    %cst_19 = arith.constant dense<0.000000e+00> : vector<80xf32>
    %76 = vector.multi_reduction <add>, %75, %cst_19 [0] : vector<24x80xf32> to vector<80xf32>
    %77 = vector.shape_cast %76 : vector<80xf32> to vector<1x80xf32>
    %78 = vector.extract_strided_slice %8 {offsets = [288, 0], sizes = [24, 80], strides = [1, 1]} : vector<384x80xf32> to vector<24x80xf32>
    %cst_20 = arith.constant dense<0.000000e+00> : vector<80xf32>
    %79 = vector.multi_reduction <add>, %78, %cst_20 [0] : vector<24x80xf32> to vector<80xf32>
    %80 = vector.shape_cast %79 : vector<80xf32> to vector<1x80xf32>
    %81 = vector.extract_strided_slice %8 {offsets = [312, 0], sizes = [24, 80], strides = [1, 1]} : vector<384x80xf32> to vector<24x80xf32>
    %cst_21 = arith.constant dense<0.000000e+00> : vector<80xf32>
    %82 = vector.multi_reduction <add>, %81, %cst_21 [0] : vector<24x80xf32> to vector<80xf32>
    %83 = vector.shape_cast %82 : vector<80xf32> to vector<1x80xf32>
    %84 = vector.extract_strided_slice %8 {offsets = [336, 0], sizes = [24, 80], strides = [1, 1]} : vector<384x80xf32> to vector<24x80xf32>
    %cst_22 = arith.constant dense<0.000000e+00> : vector<80xf32>
    %85 = vector.multi_reduction <add>, %84, %cst_22 [0] : vector<24x80xf32> to vector<80xf32>
    %86 = vector.shape_cast %85 : vector<80xf32> to vector<1x80xf32>
    %87 = vector.extract_strided_slice %8 {offsets = [360, 0], sizes = [24, 80], strides = [1, 1]} : vector<384x80xf32> to vector<24x80xf32>
    %cst_23 = arith.constant dense<0.000000e+00> : vector<80xf32>
    %88 = vector.multi_reduction <add>, %87, %cst_23 [0] : vector<24x80xf32> to vector<80xf32>
    %89 = vector.shape_cast %88 : vector<80xf32> to vector<1x80xf32>
    %90 = tpu.concatenate %44, %47, %50, %53, %56, %59, %62, %65, %68, %71, %74, %77, %80, %83, %86, %89 in 0 : vector<1x80xf32>, vector<1x80xf32>, vector<1x80xf32>, vector<1x80xf32>, vector<1x80xf32>, vector<1x80xf32>, vector<1x80xf32>, vector<1x80xf32>, vector<1x80xf32>, vector<1x80xf32>, vector<1x80xf32>, vector<1x80xf32>, vector<1x80xf32>, vector<1x80xf32>, vector<1x80xf32>, vector<1x80xf32> -> vector<16x80xf32>
    %cst_24 = arith.constant 0.0416666679 : f32
    %91 = vector.broadcast %cst_24 : f32 to vector<16x80xf32>
    %92 = arith.mulf %90, %91 : vector<16x80xf32>
    %cst_25 = arith.constant 0.000000e+00 : f32
    %93 = vector.broadcast %cst_25 : f32 to vector<1x80xf32>
    %94 = vector.extract_strided_slice %41 {offsets = [0, 0], sizes = [23, 80], strides = [1, 1]} : vector<24x80xf32> to vector<23x80xf32>
    %95 = tpu.concatenate %93, %94 in 0 : vector<1x80xf32>, vector<23x80xf32> -> vector<24x80xf32>
    %cst_26 = arith.constant 0.000000e+00 : f32
    %96 = vector.broadcast %cst_26 : f32 to vector<1x80xf32>
    %97 = vector.extract_strided_slice %41 {offsets = [1, 0], sizes = [23, 80], strides = [1, 1]} : vector<24x80xf32> to vector<23x80xf32>
    %98 = tpu.concatenate %97, %96 in 0 : vector<23x80xf32>, vector<1x80xf32> -> vector<24x80xf32>
    %99 = tpu.concatenate %95, %41, %98 in 1 : vector<24x80xf32>, vector<24x80xf32>, vector<24x80xf32> -> vector<24x240xf32>
    %c0_27 = arith.constant 0 : index
    %c0_28 = arith.constant 0 : index
    %100 = vector.load %arg4[%c0_27, %c0_28] : memref<240x80xf32, #tpu.memory_space<vmem>>, vector<240x80xf32>
    %cst_29 = arith.constant dense<0.000000e+00> : vector<24x80xf32>
    %101 = tpu.matmul %99, %100, %cst_29 {dimension_numbers = #tpu.dot_dimension_numbers<[1], [0], [0], [1], [0, 0, 1, 1], [], []>} : vector<24x240xf32>, vector<240x80xf32>, vector<24x80xf32> -> vector<24x80xf32>
    %c0_30 = arith.constant 0 : index
    %c0_31 = arith.constant 0 : index
    %102 = vector.load %arg5[%c0_30, %c0_31] : memref<1x80xf32, #tpu.memory_space<vmem>>, vector<1x80xf32>
    %103 = vector.broadcast %102 : vector<1x80xf32> to vector<24x80xf32>
    %104 = arith.addf %101, %103 : vector<24x80xf32>
    %cst_32 = arith.constant 0.000000e+00 : f32
    %105 = vector.broadcast %cst_32 : f32 to vector<1x80xf32>
    %106 = vector.extract_strided_slice %92 {offsets = [0, 0], sizes = [15, 80], strides = [1, 1]} : vector<16x80xf32> to vector<15x80xf32>
    %107 = tpu.concatenate %105, %106 in 0 : vector<1x80xf32>, vector<15x80xf32> -> vector<16x80xf32>
    %cst_33 = arith.constant 0.000000e+00 : f32
    %108 = vector.broadcast %cst_33 : f32 to vector<1x80xf32>
    %109 = vector.extract_strided_slice %92 {offsets = [1, 0], sizes = [15, 80], strides = [1, 1]} : vector<16x80xf32> to vector<15x80xf32>
    %110 = tpu.concatenate %109, %108 in 0 : vector<15x80xf32>, vector<1x80xf32> -> vector<16x80xf32>
    %111 = tpu.concatenate %107, %92, %110 in 1 : vector<16x80xf32>, vector<16x80xf32>, vector<16x80xf32> -> vector<16x240xf32>
    %c0_34 = arith.constant 0 : index
    %c0_35 = arith.constant 0 : index
    %112 = vector.load %arg6[%c0_34, %c0_35] : memref<240x80xf32, #tpu.memory_space<vmem>>, vector<240x80xf32>
    %cst_36 = arith.constant dense<0.000000e+00> : vector<16x80xf32>
    %113 = tpu.matmul %111, %112, %cst_36 {dimension_numbers = #tpu.dot_dimension_numbers<[1], [0], [0], [1], [0, 0, 1, 1], [], []>} : vector<16x240xf32>, vector<240x80xf32>, vector<16x80xf32> -> vector<16x80xf32>
    %c0_37 = arith.constant 0 : index
    %c0_38 = arith.constant 0 : index
    %114 = vector.load %arg7[%c0_37, %c0_38] : memref<1x80xf32, #tpu.memory_space<vmem>>, vector<1x80xf32>
    %115 = vector.broadcast %114 : vector<1x80xf32> to vector<16x80xf32>
    %116 = arith.addf %113, %115 : vector<16x80xf32>
    %117 = tpu.concatenate %104, %104, %104, %104, %104, %104, %104, %104, %104, %104, %104, %104, %104, %104, %104, %104 in 0 : vector<24x80xf32>, vector<24x80xf32>, vector<24x80xf32>, vector<24x80xf32>, vector<24x80xf32>, vector<24x80xf32>, vector<24x80xf32>, vector<24x80xf32>, vector<24x80xf32>, vector<24x80xf32>, vector<24x80xf32>, vector<24x80xf32>, vector<24x80xf32>, vector<24x80xf32>, vector<24x80xf32>, vector<24x80xf32> -> vector<384x80xf32>
    %118 = vector.extract_strided_slice %116 {offsets = [0, 0], sizes = [1, 80], strides = [1, 1]} : vector<16x80xf32> to vector<1x80xf32>
    %119 = vector.shape_cast %118 : vector<1x80xf32> to vector<1x80xf32>
    %120 = vector.broadcast %119 : vector<1x80xf32> to vector<24x80xf32>
    %121 = vector.extract_strided_slice %116 {offsets = [1, 0], sizes = [1, 80], strides = [1, 1]} : vector<16x80xf32> to vector<1x80xf32>
    %122 = vector.shape_cast %121 : vector<1x80xf32> to vector<1x80xf32>
    %123 = vector.broadcast %122 : vector<1x80xf32> to vector<24x80xf32>
    %124 = vector.extract_strided_slice %116 {offsets = [2, 0], sizes = [1, 80], strides = [1, 1]} : vector<16x80xf32> to vector<1x80xf32>
    %125 = vector.shape_cast %124 : vector<1x80xf32> to vector<1x80xf32>
    %126 = vector.broadcast %125 : vector<1x80xf32> to vector<24x80xf32>
    %127 = vector.extract_strided_slice %116 {offsets = [3, 0], sizes = [1, 80], strides = [1, 1]} : vector<16x80xf32> to vector<1x80xf32>
    %128 = vector.shape_cast %127 : vector<1x80xf32> to vector<1x80xf32>
    %129 = vector.broadcast %128 : vector<1x80xf32> to vector<24x80xf32>
    %130 = vector.extract_strided_slice %116 {offsets = [4, 0], sizes = [1, 80], strides = [1, 1]} : vector<16x80xf32> to vector<1x80xf32>
    %131 = vector.shape_cast %130 : vector<1x80xf32> to vector<1x80xf32>
    %132 = vector.broadcast %131 : vector<1x80xf32> to vector<24x80xf32>
    %133 = vector.extract_strided_slice %116 {offsets = [5, 0], sizes = [1, 80], strides = [1, 1]} : vector<16x80xf32> to vector<1x80xf32>
    %134 = vector.shape_cast %133 : vector<1x80xf32> to vector<1x80xf32>
    %135 = vector.broadcast %134 : vector<1x80xf32> to vector<24x80xf32>
    %136 = vector.extract_strided_slice %116 {offsets = [6, 0], sizes = [1, 80], strides = [1, 1]} : vector<16x80xf32> to vector<1x80xf32>
    %137 = vector.shape_cast %136 : vector<1x80xf32> to vector<1x80xf32>
    %138 = vector.broadcast %137 : vector<1x80xf32> to vector<24x80xf32>
    %139 = vector.extract_strided_slice %116 {offsets = [7, 0], sizes = [1, 80], strides = [1, 1]} : vector<16x80xf32> to vector<1x80xf32>
    %140 = vector.shape_cast %139 : vector<1x80xf32> to vector<1x80xf32>
    %141 = vector.broadcast %140 : vector<1x80xf32> to vector<24x80xf32>
    %142 = vector.extract_strided_slice %116 {offsets = [8, 0], sizes = [1, 80], strides = [1, 1]} : vector<16x80xf32> to vector<1x80xf32>
    %143 = vector.shape_cast %142 : vector<1x80xf32> to vector<1x80xf32>
    %144 = vector.broadcast %143 : vector<1x80xf32> to vector<24x80xf32>
    %145 = vector.extract_strided_slice %116 {offsets = [9, 0], sizes = [1, 80], strides = [1, 1]} : vector<16x80xf32> to vector<1x80xf32>
    %146 = vector.shape_cast %145 : vector<1x80xf32> to vector<1x80xf32>
    %147 = vector.broadcast %146 : vector<1x80xf32> to vector<24x80xf32>
    %148 = vector.extract_strided_slice %116 {offsets = [10, 0], sizes = [1, 80], strides = [1, 1]} : vector<16x80xf32> to vector<1x80xf32>
    %149 = vector.shape_cast %148 : vector<1x80xf32> to vector<1x80xf32>
    %150 = vector.broadcast %149 : vector<1x80xf32> to vector<24x80xf32>
    %151 = vector.extract_strided_slice %116 {offsets = [11, 0], sizes = [1, 80], strides = [1, 1]} : vector<16x80xf32> to vector<1x80xf32>
    %152 = vector.shape_cast %151 : vector<1x80xf32> to vector<1x80xf32>
    %153 = vector.broadcast %152 : vector<1x80xf32> to vector<24x80xf32>
    %154 = vector.extract_strided_slice %116 {offsets = [12, 0], sizes = [1, 80], strides = [1, 1]} : vector<16x80xf32> to vector<1x80xf32>
    %155 = vector.shape_cast %154 : vector<1x80xf32> to vector<1x80xf32>
    %156 = vector.broadcast %155 : vector<1x80xf32> to vector<24x80xf32>
    %157 = vector.extract_strided_slice %116 {offsets = [13, 0], sizes = [1, 80], strides = [1, 1]} : vector<16x80xf32> to vector<1x80xf32>
    %158 = vector.shape_cast %157 : vector<1x80xf32> to vector<1x80xf32>
    %159 = vector.broadcast %158 : vector<1x80xf32> to vector<24x80xf32>
    %160 = vector.extract_strided_slice %116 {offsets = [14, 0], sizes = [1, 80], strides = [1, 1]} : vector<16x80xf32> to vector<1x80xf32>
    %161 = vector.shape_cast %160 : vector<1x80xf32> to vector<1x80xf32>
    %162 = vector.broadcast %161 : vector<1x80xf32> to vector<24x80xf32>
    %163 = vector.extract_strided_slice %116 {offsets = [15, 0], sizes = [1, 80], strides = [1, 1]} : vector<16x80xf32> to vector<1x80xf32>
    %164 = vector.shape_cast %163 : vector<1x80xf32> to vector<1x80xf32>
    %165 = vector.broadcast %164 : vector<1x80xf32> to vector<24x80xf32>
    %166 = tpu.concatenate %120, %123, %126, %129, %132, %135, %138, %141, %144, %147, %150, %153, %156, %159, %162, %165 in 0 : vector<24x80xf32>, vector<24x80xf32>, vector<24x80xf32>, vector<24x80xf32>, vector<24x80xf32>, vector<24x80xf32>, vector<24x80xf32>, vector<24x80xf32>, vector<24x80xf32>, vector<24x80xf32>, vector<24x80xf32>, vector<24x80xf32>, vector<24x80xf32>, vector<24x80xf32>, vector<24x80xf32>, vector<24x80xf32> -> vector<384x80xf32>
    %167 = arith.addf %117, %166 : vector<384x80xf32>
    %cst_39 = arith.constant 0.000000e+00 : f32
    %168 = vector.broadcast %cst_39 : f32 to vector<384x80xf32>
    %169 = arith.maximumf %167, %168 : vector<384x80xf32>
    %170 = tpu.iota {dimensions = array<i32: 0>} : vector<384x1xi32>
    %c24_i32 = arith.constant 24 : i32
    %c0_i32 = arith.constant 0 : i32
    %171 = arith.cmpi eq, %c24_i32, %c0_i32 : i32
    %c1_i32 = arith.constant 1 : i32
    %172 = arith.select %171, %c1_i32, %c24_i32 : i32
    %173 = vector.broadcast %172 : i32 to vector<384x1xi32>
    %174 = arith.remsi %170, %173 : vector<384x1xi32>
    %c0_i32_40 = arith.constant 0 : i32
    %175 = vector.broadcast %c0_i32_40 : i32 to vector<384x1xi32>
    %176 = arith.cmpi ne, %174, %175 : vector<384x1xi32>
    %c0_i32_41 = arith.constant 0 : i32
    %177 = vector.broadcast %c0_i32_41 : i32 to vector<384x1xi32>
    %178 = arith.cmpi slt, %174, %177 : vector<384x1xi32>
    %c0_i32_42 = arith.constant 0 : i32
    %179 = arith.cmpi slt, %172, %c0_i32_42 : i32
    %180 = vector.broadcast %179 : i1 to vector<384x1xi1>
    %181 = vector.broadcast %180 : vector<384x1xi1> to vector<384x1xi1>
    %182 = arith.xori %178, %181 : vector<384x1xi1>
    %183 = arith.andi %182, %176 : vector<384x1xi1>
    %184 = vector.broadcast %172 : i32 to vector<384x1xi32>
    %185 = arith.addi %174, %184 : vector<384x1xi32>
    %186 = arith.select %183, %185, %174 : vector<384x1xi1>, vector<384x1xi32>
    %cst_43 = arith.constant 0.000000e+00 : f32
    %187 = vector.broadcast %cst_43 : f32 to vector<25x80xf32>
    %188 = vector.extract_strided_slice %169 {offsets = [0, 0], sizes = [359, 80], strides = [1, 1]} : vector<384x80xf32> to vector<359x80xf32>
    %189 = tpu.concatenate %187, %188 in 0 : vector<25x80xf32>, vector<359x80xf32> -> vector<384x80xf32>
    %c-1_i32 = arith.constant -1 : i32
    %190 = vector.broadcast %c-1_i32 : i32 to vector<384x1xi32>
    %191 = arith.addi %186, %190 : vector<384x1xi32>
    %c0_i32_44 = arith.constant 0 : i32
    %192 = vector.broadcast %c0_i32_44 : i32 to vector<384x1xi32>
    %193 = arith.cmpi sge, %191, %192 : vector<384x1xi32>
    %c24_i32_45 = arith.constant 24 : i32
    %194 = vector.broadcast %c24_i32_45 : i32 to vector<384x1xi32>
    %195 = arith.cmpi slt, %191, %194 : vector<384x1xi32>
    %196 = arith.andi %193, %195 : vector<384x1xi1>
    %197 = arith.extui %196 : vector<384x1xi1> to vector<384x1xi32>
    %198 = arith.sitofp %197 : vector<384x1xi32> to vector<384x1xf32>
    %199 = vector.broadcast %198 : vector<384x1xf32> to vector<384x80xf32>
    %200 = arith.mulf %189, %199 : vector<384x80xf32>
    %cst_46 = arith.constant 0.000000e+00 : f32
    %201 = vector.broadcast %cst_46 : f32 to vector<24x80xf32>
    %202 = vector.extract_strided_slice %169 {offsets = [0, 0], sizes = [360, 80], strides = [1, 1]} : vector<384x80xf32> to vector<360x80xf32>
    %203 = tpu.concatenate %201, %202 in 0 : vector<24x80xf32>, vector<360x80xf32> -> vector<384x80xf32>
    %cst_47 = arith.constant 0.000000e+00 : f32
    %204 = vector.broadcast %cst_47 : f32 to vector<23x80xf32>
    %205 = vector.extract_strided_slice %169 {offsets = [0, 0], sizes = [361, 80], strides = [1, 1]} : vector<384x80xf32> to vector<361x80xf32>
    %206 = tpu.concatenate %204, %205 in 0 : vector<23x80xf32>, vector<361x80xf32> -> vector<384x80xf32>
    %c1_i32_48 = arith.constant 1 : i32
    %207 = vector.broadcast %c1_i32_48 : i32 to vector<384x1xi32>
    %208 = arith.addi %186, %207 : vector<384x1xi32>
    %c0_i32_49 = arith.constant 0 : i32
    %209 = vector.broadcast %c0_i32_49 : i32 to vector<384x1xi32>
    %210 = arith.cmpi sge, %208, %209 : vector<384x1xi32>
    %c24_i32_50 = arith.constant 24 : i32
    %211 = vector.broadcast %c24_i32_50 : i32 to vector<384x1xi32>
    %212 = arith.cmpi slt, %208, %211 : vector<384x1xi32>
    %213 = arith.andi %210, %212 : vector<384x1xi1>
    %214 = arith.extui %213 : vector<384x1xi1> to vector<384x1xi32>
    %215 = arith.sitofp %214 : vector<384x1xi32> to vector<384x1xf32>
    %216 = vector.broadcast %215 : vector<384x1xf32> to vector<384x80xf32>
    %217 = arith.mulf %206, %216 : vector<384x80xf32>
    %cst_51 = arith.constant 0.000000e+00 : f32
    %218 = vector.broadcast %cst_51 : f32 to vector<1x80xf32>
    %219 = vector.extract_strided_slice %169 {offsets = [0, 0], sizes = [383, 80], strides = [1, 1]} : vector<384x80xf32> to vector<383x80xf32>
    %220 = tpu.concatenate %218, %219 in 0 : vector<1x80xf32>, vector<383x80xf32> -> vector<384x80xf32>
    %c-1_i32_52 = arith.constant -1 : i32
    %221 = vector.broadcast %c-1_i32_52 : i32 to vector<384x1xi32>
    %222 = arith.addi %186, %221 : vector<384x1xi32>
    %c0_i32_53 = arith.constant 0 : i32
    %223 = vector.broadcast %c0_i32_53 : i32 to vector<384x1xi32>
    %224 = arith.cmpi sge, %222, %223 : vector<384x1xi32>
    %c24_i32_54 = arith.constant 24 : i32
    %225 = vector.broadcast %c24_i32_54 : i32 to vector<384x1xi32>
    %226 = arith.cmpi slt, %222, %225 : vector<384x1xi32>
    %227 = arith.andi %224, %226 : vector<384x1xi1>
    %228 = arith.extui %227 : vector<384x1xi1> to vector<384x1xi32>
    %229 = arith.sitofp %228 : vector<384x1xi32> to vector<384x1xf32>
    %230 = vector.broadcast %229 : vector<384x1xf32> to vector<384x80xf32>
    %231 = arith.mulf %220, %230 : vector<384x80xf32>
    %cst_55 = arith.constant 0.000000e+00 : f32
    %232 = vector.broadcast %cst_55 : f32 to vector<1x80xf32>
    %233 = vector.extract_strided_slice %169 {offsets = [1, 0], sizes = [383, 80], strides = [1, 1]} : vector<384x80xf32> to vector<383x80xf32>
    %234 = tpu.concatenate %233, %232 in 0 : vector<383x80xf32>, vector<1x80xf32> -> vector<384x80xf32>
    %c1_i32_56 = arith.constant 1 : i32
    %235 = vector.broadcast %c1_i32_56 : i32 to vector<384x1xi32>
    %236 = arith.addi %186, %235 : vector<384x1xi32>
    %c0_i32_57 = arith.constant 0 : i32
    %237 = vector.broadcast %c0_i32_57 : i32 to vector<384x1xi32>
    %238 = arith.cmpi sge, %236, %237 : vector<384x1xi32>
    %c24_i32_58 = arith.constant 24 : i32
    %239 = vector.broadcast %c24_i32_58 : i32 to vector<384x1xi32>
    %240 = arith.cmpi slt, %236, %239 : vector<384x1xi32>
    %241 = arith.andi %238, %240 : vector<384x1xi1>
    %242 = arith.extui %241 : vector<384x1xi1> to vector<384x1xi32>
    %243 = arith.sitofp %242 : vector<384x1xi32> to vector<384x1xf32>
    %244 = vector.broadcast %243 : vector<384x1xf32> to vector<384x80xf32>
    %245 = arith.mulf %234, %244 : vector<384x80xf32>
    %cst_59 = arith.constant 0.000000e+00 : f32
    %246 = vector.broadcast %cst_59 : f32 to vector<23x80xf32>
    %247 = vector.extract_strided_slice %169 {offsets = [23, 0], sizes = [361, 80], strides = [1, 1]} : vector<384x80xf32> to vector<361x80xf32>
    %248 = tpu.concatenate %247, %246 in 0 : vector<361x80xf32>, vector<23x80xf32> -> vector<384x80xf32>
    %c-1_i32_60 = arith.constant -1 : i32
    %249 = vector.broadcast %c-1_i32_60 : i32 to vector<384x1xi32>
    %250 = arith.addi %186, %249 : vector<384x1xi32>
    %c0_i32_61 = arith.constant 0 : i32
    %251 = vector.broadcast %c0_i32_61 : i32 to vector<384x1xi32>
    %252 = arith.cmpi sge, %250, %251 : vector<384x1xi32>
    %c24_i32_62 = arith.constant 24 : i32
    %253 = vector.broadcast %c24_i32_62 : i32 to vector<384x1xi32>
    %254 = arith.cmpi slt, %250, %253 : vector<384x1xi32>
    %255 = arith.andi %252, %254 : vector<384x1xi1>
    %256 = arith.extui %255 : vector<384x1xi1> to vector<384x1xi32>
    %257 = arith.sitofp %256 : vector<384x1xi32> to vector<384x1xf32>
    %258 = vector.broadcast %257 : vector<384x1xf32> to vector<384x80xf32>
    %259 = arith.mulf %248, %258 : vector<384x80xf32>
    %cst_63 = arith.constant 0.000000e+00 : f32
    %260 = vector.broadcast %cst_63 : f32 to vector<24x80xf32>
    %261 = vector.extract_strided_slice %169 {offsets = [24, 0], sizes = [360, 80], strides = [1, 1]} : vector<384x80xf32> to vector<360x80xf32>
    %262 = tpu.concatenate %261, %260 in 0 : vector<360x80xf32>, vector<24x80xf32> -> vector<384x80xf32>
    %cst_64 = arith.constant 0.000000e+00 : f32
    %263 = vector.broadcast %cst_64 : f32 to vector<25x80xf32>
    %264 = vector.extract_strided_slice %169 {offsets = [25, 0], sizes = [359, 80], strides = [1, 1]} : vector<384x80xf32> to vector<359x80xf32>
    %265 = tpu.concatenate %264, %263 in 0 : vector<359x80xf32>, vector<25x80xf32> -> vector<384x80xf32>
    %c1_i32_65 = arith.constant 1 : i32
    %266 = vector.broadcast %c1_i32_65 : i32 to vector<384x1xi32>
    %267 = arith.addi %186, %266 : vector<384x1xi32>
    %c0_i32_66 = arith.constant 0 : i32
    %268 = vector.broadcast %c0_i32_66 : i32 to vector<384x1xi32>
    %269 = arith.cmpi sge, %267, %268 : vector<384x1xi32>
    %c24_i32_67 = arith.constant 24 : i32
    %270 = vector.broadcast %c24_i32_67 : i32 to vector<384x1xi32>
    %271 = arith.cmpi slt, %267, %270 : vector<384x1xi32>
    %272 = arith.andi %269, %271 : vector<384x1xi1>
    %273 = arith.extui %272 : vector<384x1xi1> to vector<384x1xi32>
    %274 = arith.sitofp %273 : vector<384x1xi32> to vector<384x1xf32>
    %275 = vector.broadcast %274 : vector<384x1xf32> to vector<384x80xf32>
    %276 = arith.mulf %265, %275 : vector<384x80xf32>
    %277 = tpu.concatenate %200, %203, %217, %231, %169, %245, %259, %262, %276 in 1 : vector<384x80xf32>, vector<384x80xf32>, vector<384x80xf32>, vector<384x80xf32>, vector<384x80xf32>, vector<384x80xf32>, vector<384x80xf32>, vector<384x80xf32>, vector<384x80xf32> -> vector<384x720xf32>
    %c0_68 = arith.constant 0 : index
    %c0_69 = arith.constant 0 : index
    %278 = vector.load %arg8[%c0_68, %c0_69] : memref<720x80xf32, #tpu.memory_space<vmem>>, vector<720x80xf32>
    %cst_70 = arith.constant dense<0.000000e+00> : vector<384x80xf32>
    %279 = tpu.matmul %277, %278, %cst_70 {dimension_numbers = #tpu.dot_dimension_numbers<[1], [0], [0], [1], [0, 0, 1, 1], [], []>} : vector<384x720xf32>, vector<720x80xf32>, vector<384x80xf32> -> vector<384x80xf32>
    %c0_71 = arith.constant 0 : index
    %c0_72 = arith.constant 0 : index
    %280 = vector.load %arg9[%c0_71, %c0_72] : memref<1x80xf32, #tpu.memory_space<vmem>>, vector<1x80xf32>
    %281 = vector.broadcast %280 : vector<1x80xf32> to vector<384x80xf32>
    %282 = arith.addf %279, %281 : vector<384x80xf32>
    %cst_73 = arith.constant 0.000000e+00 : f32
    %283 = vector.broadcast %cst_73 : f32 to vector<384x80xf32>
    %284 = arith.maximumf %282, %283 : vector<384x80xf32>
    %c0_74 = arith.constant 0 : index
    %c0_75 = arith.constant 0 : index
    %285 = vector.load %arg10[%c0_74, %c0_75] : memref<80x320xf32, #tpu.memory_space<vmem>>, vector<80x320xf32>
    %cst_76 = arith.constant dense<0.000000e+00> : vector<384x320xf32>
    %286 = tpu.matmul %284, %285, %cst_76 {dimension_numbers = #tpu.dot_dimension_numbers<[1], [0], [0], [1], [0, 0, 1, 1], [], []>} : vector<384x80xf32>, vector<80x320xf32>, vector<384x320xf32> -> vector<384x320xf32>
    %c0_77 = arith.constant 0 : index
    %c0_78 = arith.constant 0 : index
    %287 = vector.load %arg11[%c0_77, %c0_78] : memref<1x320xf32, #tpu.memory_space<vmem>>, vector<1x320xf32>
    %288 = vector.broadcast %287 : vector<1x320xf32> to vector<384x320xf32>
    %289 = arith.addf %286, %288 : vector<384x320xf32>
    %290 = arith.addf %1, %289 : vector<384x320xf32>
    %cst_79 = arith.constant 0.000000e+00 : f32
    %291 = vector.broadcast %cst_79 : f32 to vector<384x320xf32>
    %292 = arith.maximumf %290, %291 : vector<384x320xf32>
    %c0_80 = arith.constant 0 : index
    %c0_81 = arith.constant 0 : index
    %c0_82 = arith.constant 0 : index
    %293 = vector.load %arg12[%c0_80, %c0_81, %c0_82] : memref<1x384x320xf32, #tpu.memory_space<vmem>>, vector<1x384x320xf32>
    %294 = vector.shape_cast %293 : vector<1x384x320xf32> to vector<384x320xf32>
    %295 = vector.shape_cast %292 : vector<384x320xf32> to vector<1x384x320xf32>
    tpu.vector_store %arg12[%c0_80, %c0_81, %c0_82], %295 {strides = array<i32>} : memref<1x384x320xf32, #tpu.memory_space<vmem>>, vector<1x384x320xf32>,
    return
  }
  func.func @transform_0(%arg0: i32) -> (i32, i32, i32) {
    %c0_i32 = arith.constant 0 : i32
    %c0_i32_0 = arith.constant 0 : i32
    %c0_i32_1 = arith.constant 0 : i32
    return %arg0, %c0_i32, %c0_i32_0 : i32, i32, i32
  }
  func.func @transform_1(%arg0: i32) -> (i32, i32) {
    %c0_i32 = arith.constant 0 : i32
    %c0_i32_0 = arith.constant 0 : i32
    %c0_i32_1 = arith.constant 0 : i32
    return %c0_i32, %c0_i32_0 : i32, i32
  }
  func.func @transform_2(%arg0: i32) -> (i32, i32) {
    %c0_i32 = arith.constant 0 : i32
    %c0_i32_0 = arith.constant 0 : i32
    %c0_i32_1 = arith.constant 0 : i32
    return %c0_i32, %c0_i32_0 : i32, i32
  }
  func.func @transform_3(%arg0: i32) -> (i32, i32) {
    %c0_i32 = arith.constant 0 : i32
    %c0_i32_0 = arith.constant 0 : i32
    %c0_i32_1 = arith.constant 0 : i32
    return %c0_i32, %c0_i32_0 : i32, i32
  }
  func.func @transform_4(%arg0: i32) -> (i32, i32) {
    %c0_i32 = arith.constant 0 : i32
    %c0_i32_0 = arith.constant 0 : i32
    %c0_i32_1 = arith.constant 0 : i32
    return %c0_i32, %c0_i32_0 : i32, i32
  }
  func.func @transform_5(%arg0: i32) -> (i32, i32) {
    %c0_i32 = arith.constant 0 : i32
    %c0_i32_0 = arith.constant 0 : i32
    %c0_i32_1 = arith.constant 0 : i32
    return %c0_i32, %c0_i32_0 : i32, i32
  }
  func.func @transform_6(%arg0: i32) -> (i32, i32) {
    %c0_i32 = arith.constant 0 : i32
    %c0_i32_0 = arith.constant 0 : i32
    %c0_i32_1 = arith.constant 0 : i32
    return %c0_i32, %c0_i32_0 : i32, i32
  }
  func.func @transform_7(%arg0: i32) -> (i32, i32) {
    %c0_i32 = arith.constant 0 : i32
    %c0_i32_0 = arith.constant 0 : i32
    %c0_i32_1 = arith.constant 0 : i32
    return %c0_i32, %c0_i32_0 : i32, i32
  }
  func.func @transform_8(%arg0: i32) -> (i32, i32) {
    %c0_i32 = arith.constant 0 : i32
    %c0_i32_0 = arith.constant 0 : i32
    %c0_i32_1 = arith.constant 0 : i32
    return %c0_i32, %c0_i32_0 : i32, i32
  }
  func.func @transform_9(%arg0: i32) -> (i32, i32) {
    %c0_i32 = arith.constant 0 : i32
    %c0_i32_0 = arith.constant 0 : i32
    %c0_i32_1 = arith.constant 0 : i32
    return %c0_i32, %c0_i32_0 : i32, i32
  }
  func.func @transform_10(%arg0: i32) -> (i32, i32) {
    %c0_i32 = arith.constant 0 : i32
    %c0_i32_0 = arith.constant 0 : i32
    %c0_i32_1 = arith.constant 0 : i32
    return %c0_i32, %c0_i32_0 : i32, i32
  }
  func.func @transform_11(%arg0: i32) -> (i32, i32, i32) {
    %c0_i32 = arith.constant 0 : i32
    %c0_i32_0 = arith.constant 0 : i32
    %c0_i32_1 = arith.constant 0 : i32
    return %arg0, %c0_i32, %c0_i32_0 : i32, i32, i32
  }
}

</mosaic_0001>

<bundles_post_ra>
// kernel: tpu_custom_call.1
= control target key start
LH: loop header
LB: loop body
LE: loop exit
PB: predicated region body
PF: predicated region fallthrough
CT: control target
= control target key end

     0   :  { %s10454_s17 = smov 0   ;;  %s16990_s0 = inlined_call_operand.vmem [shape: f32[2,384,320], index: 0, kind: input, shape index: {}]   ;;  %s16991_s1 = inlined_call_operand.vmem [shape: f32[320,80], index: 1, kind: input, shape index: {}]   ;;  %s16992_s2 = inlined_call_operand.vmem [shape: f32[1,80], index: 2, kind: input, shape index: {}]   ;;  %s16993_s3 = inlined_call_operand.vmem [shape: f32[240,80], index: 3, kind: input, shape index: {}]   ;;  %s16994_s4 = inlined_call_operand.vmem [shape: f32[1,80], index: 4, kind: input, shape index: {}]   ;;  %s16995_s5 = inlined_call_operand.vmem [shape: f32[240,80], index: 5, kind: input, shape index: {}]   ;;  %s16996_s6 = inlined_call_operand.vmem [shape: f32[1,80], index: 6, kind: input, shape index: {}]   ;;  %s16997_s7 = inlined_call_operand.vmem [shape: f32[720,80], index: 7, kind: input, shape index: {}]   ;;  %s16998_s8 = inlined_call_operand.vmem [shape: f32[1,80], index: 8, kind: input, shape index: {}]   ;;  %s16999_s9 = inlined_call_operand.vmem [shape: f32[80,320], index: 9, kind: input, shape index: {}]   ;;  %s17000_s10 = inlined_call_operand.vmem [shape: f32[1,320], index: 10, kind: input, shape index: {}]   ;;  %s17001_s11 = inlined_call_operand.vmem [shape: f32[2,384,320], index: 11, kind: output, shape index: {}]  }
   0x1 LB: > { %s8198_s18 = sadd.s32 4294967295, %s10383_s17   ;;  %p8202_p0 = scmp.ge.s32.totalorder %s10383_s17, 1  ;;  %s10383_s17 = sphi %s10454_s17, %s21_s17  }
   0x2   : > { %p337_p1 = scmp.lt.s32.totalorder %s10383_s17, 3 }
   0x4   : > { %p338_p2 = pnand %p8202_p0, %p337_p1 }
   0x6   : > { %341 = sbr.rel (%p338_p2) target bundleno = 2068 (0x814), region = 64 }
   0xd   : > { %v531_v0 = vld [vmem:[%s16991_s1] sm:$0xff]  ;;  %v532_v1 = vld [vmem:[%s16991_s1 + $0x8] sm:$0xff]  ;;  %v533_v2 = vld [vmem:[%s16991_s1 + $0x10] sm:$0xff]  ;;  %p377_p3 = scmp.lt.s32.totalorder %s8198_s18, 1  ;;  %v17010_v3 = vmov 0.0|0.0   ;;  %vm17002_vm0 = vcmask 523264  }
   0xe   : > { %8798 = vmatprep.subr.bf16.mxu0 %v17010_v3  ;;  %v8799_v4 = vpack.c.bf16 %v532_v1, %v531_v0  ;;  %v534_v5 = vld [vmem:[%s16991_s1 + $0x18] sm:$0xff]  ;;  %v535_v7 = vld [vmem:[%s16991_s1 + $0x20] sm:$0xff]  ;;  %v536_v8 = vld [vmem:[%s16991_s1 + $0x28] sm:$0xff]  ;;  %vm17003_vm1 = vcmask 654336   ;;  %vm17006_vm2 = vcmask 1040384   ;;  %vm1608_vm3 = vcmask 1041408  }
   0xf   : > { %s18986_s18 = smov (!%p377_p3, %s8198_s18), 1  ;;  %v8802_v6 = vpack.c.bf16 %v534_v5, %v533_v2  ;;  %v8805_v9 = vpack.c.bf16 %v536_v8, %v535_v7  ;;  %v537_v10 = vld [vmem:[%s16991_s1 + $0x30] sm:$0xff]  ;;  %v538_v11 = vld [vmem:[%s16991_s1 + $0x38] sm:$0xff]  ;;  %v563_v12 = vld [vmem:[%s16991_s1 + $0x100] sm:$0xff]  ;;  %vm1610_vm4 = vcmask 1042432   ;;  %vm1612_vm5 = vcmask 1043456  }
  0x10   : > { %8800 = vmatpush1.bf16.msra.mxu0 %v8799_v4  ;;  %s9333_s12 = smul.u32 1152, %s18986_s18  ;;  %v564_v13 = vld [vmem:[%s16991_s1 + $0x108] sm:$0xff]  ;;  %v565_v15 = vld [vmem:[%s16991_s1 + $0x110] sm:$0xff]  ;;  %v566_v16 = vld [vmem:[%s16991_s1 + $0x118] sm:$0xff]  ;;  %v8808_v17 = vpack.c.bf16 %v538_v11, %v537_v10  ;;  %vm1614_vm6 = vcmask 1044480   ;;  %vm1616_vm7 = vcmask 1045504  }
  0x11   : > { %8801 = vmatprep.subr.bf16.mxu0 %v17010_v3  ;;  %v8846_v14 = vpack.c.bf16 %v564_v13, %v563_v12  ;;  %v8850_v18 = vpack.c.bf16 %v566_v16, %v565_v15  ;;  %v567_v19 = vld [vmem:[%s16991_s1 + $0x120] sm:$0xff]  ;;  %v568_v20 = vld [vmem:[%s16991_s1 + $0x128] sm:$0xff]  ;;  %v569_v27 = vld [vmem:[%s16991_s1 + $0x130] sm:$0xff]  ;;  %vm17007_vm8 = vcmask 1046528   ;;  %s10386_s30 = smov 80   ;;  %s10387_s13 = smov 32  }
  0x12   : > { %s10509_s29 = scalar_lea.vmem %s16990_s0, %s9333_s12  ;;  %v539_v21 = vld [vmem:[%s16991_s1 + $0x40] sm:$0xff]  ;;  %v540_v22 = vld [vmem:[%s16991_s1 + $0x48] sm:$0xff]  ;;  %v8854_v24 = vpack.c.bf16 %v568_v20, %v567_v19  ;;  %v570_v28 = vld [vmem:[%s16991_s1 + $0x138] sm:$0xff]  ;;  %vm17005_vm9 = vcmask 261120   ;;  %vm17004_vm10 = vcmask 916480   ;;  %s10389_s14 = smov 112  }
  0x13   : > { %8847 = vmatprep.subr.bf16.mxu1 %v8846_v14  ;;  %v388_v23 = vld [vmem:[%s10509_s29 + $0x8] sm:$0xff]  ;;  %v389_v25 = vld [vmem:[%s10509_s29 + $0x10] sm:$0xff]  ;;  %v8811_v26 = vpack.c.bf16 %v540_v22, %v539_v21  ;;  %v542_v30 = vld [vmem:[%s16991_s1 + $0x58] sm:$0xff]  ;;  %v8858_v31 = vpack.c.bf16 %v570_v28, %v569_v27  ;;  %s10392_s28 = smov 96   ;;  %s16399_s26 = scalar_lea.vmem %s17001_s11, %s9333_s12 }
  0x14   : > { %8803 = vmatpush1.bf16.msra.mxu0 %v8802_v6  ;;  %8849 = vmatpush3.bf16.msra.mxu1 %v8846_v14  ;;  %v541_v29 = vld [vmem:[%s16991_s1 + $0x50] sm:$0xff]  ;;  %v543_v33 = vld [vmem:[%s16991_s1 + $0x60] sm:$0xff]  ;;  %v544_v34 = vld [vmem:[%s16991_s1 + $0x68] sm:$0xff] }
  0x15   : > { %8804 = vmatprep.subr.bf16.mxu0 %v17010_v3  ;;  %8851 = vmatprep.subr.bf16.mxu1 %v8850_v18  ;;  %v8814_v32 = vpack.c.bf16 %v542_v30, %v541_v29  ;;  %v8817_v35 = vpack.c.bf16 %v544_v34, %v543_v33  ;;  %v545_v36 = vld [vmem:[%s16991_s1 + $0x70] sm:$0xff]  ;;  %v546_v37 = vld [vmem:[%s16991_s1 + $0x78] sm:$0xff]  ;;  %v392_v38 = vld [vmem:[%s10509_s29 + $0x28] sm:$0xff] }
  0x16   : > { %787 = vmatprep.mubr.f32.mxu0 %v388_v23  ;;  %8634 = vmatprep.mubr.msk.f32.mxu1 %vm17002_vm0, %v389_v25  ;;  %v395_v39 = vld [vmem:[%s10509_s29 + $0x40] sm:$0xff]  ;;  %v8820_v40 = vpack.c.bf16 %v546_v37, %v545_v36  ;;  %v548_v42 = vld [vmem:[%s16991_s1 + $0x88] sm:$0xff]  ;;  %v398_v43 = vld [vmem:[%s10509_s29 + $0x58] sm:$0xff] }
  0x17   : > { %v547_v41 = vld [vmem:[%s16991_s1 + $0x80] sm:$0xff]  ;;  %v401_v44 = vld [vmem:[%s10509_s29 + $0x70] sm:$0xff]  ;;  %v550_v47 = vld [vmem:[%s16991_s1 + $0x98] sm:$0xff] }
  0x18   : > { %8806 = vmatpush1.bf16.msra.mxu0 %v8805_v9  ;;  %8853 = vmatpush3.bf16.msra.mxu1 %v8850_v18  ;;  %v8823_v45 = vpack.c.bf16 %v548_v42, %v547_v41  ;;  %v549_v46 = vld [vmem:[%s16991_s1 + $0x90] sm:$0xff]  ;;  %v404_v48 = vld [vmem:[%s10509_s29 + $0x88] sm:$0xff]  ;;  %v407_v49 = vld [vmem:[%s10509_s29 + $0xa0] sm:$0xff] }
  0x19   : > { %8807 = vmatprep.subr.bf16.mxu0 %v17010_v3  ;;  %8855 = vmatprep.subr.bf16.mxu1 %v8854_v24  ;;  %v8826_v50 = vpack.c.bf16 %v550_v47, %v549_v46  ;;  %v551_v51 = vld [vmem:[%s16991_s1 + $0xa0] sm:$0xff]  ;;  %v552_v52 = vld [vmem:[%s16991_s1 + $0xa8] sm:$0xff]  ;;  %v410_v53 = vld [vmem:[%s10509_s29 + $0xb8] sm:$0xff] }
  0x1a   : > { %v413_v54 = vld [vmem:[%s10509_s29 + $0xd0] sm:$0xff]  ;;  %v8829_v55 = vpack.c.bf16 %v552_v52, %v551_v51  ;;  %v554_v57 = vld [vmem:[%s16991_s1 + $0xb8] sm:$0xff]  ;;  %v416_v58 = vld [vmem:[%s10509_s29 + $0xe8] sm:$0xff] }
  0x1b   : > { %v553_v56 = vld [vmem:[%s16991_s1 + $0xb0] sm:$0xff]  ;;  %v419_v59 = vld [vmem:[%s10509_s29 + $0x100] sm:$0xff]  ;;  %v556_v62 = vld [vmem:[%s16991_s1 + $0xc8] sm:$0xff] }
  0x1c   : > { %8809 = vmatpush1.bf16.msra.mxu0 %v8808_v17  ;;  %8857 = vmatpush3.bf16.msra.mxu1 %v8854_v24  ;;  %v8832_v60 = vpack.c.bf16 %v554_v57, %v553_v56  ;;  %v555_v61 = vld [vmem:[%s16991_s1 + $0xc0] sm:$0xff]  ;;  %v422_v63 = vld [vmem:[%s10509_s29 + $0x118] sm:$0xff]  ;;  %v425_v0 = vld [vmem:[%s10509_s29 + $0x130] sm:$0xff] }
  0x1d   : > { %8810 = vmatprep.subr.bf16.mxu0 %v17010_v3  ;;  %8859 = vmatprep.subr.bf16.mxu1 %v8858_v31  ;;  %v8835_v1 = vpack.c.bf16 %v556_v62, %v555_v61  ;;  %v557_v2 = vld [vmem:[%s16991_s1 + $0xd0] sm:$0xff]  ;;  %v558_v4 = vld [vmem:[%s16991_s1 + $0xd8] sm:$0xff]  ;;  %v428_v5 = vld [vmem:[%s10509_s29 + $0x148] sm:$0xff] }
  0x1e   : > { %v431_v6 = vld [vmem:[%s10509_s29 + $0x160] sm:$0xff]  ;;  %v8838_v7 = vpack.c.bf16 %v558_v4, %v557_v2  ;;  %v560_v9 = vld [vmem:[%s16991_s1 + $0xe8] sm:$0xff]  ;;  %v434_v10 = vld [vmem:[%s10509_s29 + $0x178] sm:$0xff] }
  0x1f   : > { %v559_v8 = vld [vmem:[%s16991_s1 + $0xe0] sm:$0xff]  ;;  %v437_v11 = vld [vmem:[%s10509_s29 + $0x190] sm:$0xff]  ;;  %v562_v14 = vld [vmem:[%s16991_s1 + $0xf8] sm:$0xff] }
  0x20   : > { %8812 = vmatpush1.bf16.msra.mxu0 %v8811_v26  ;;  %8861 = vmatpush3.bf16.msra.mxu1 %v8858_v31  ;;  %v8841_v12 = vpack.c.bf16 %v560_v9, %v559_v8  ;;  %v561_v13 = vld [vmem:[%s16991_s1 + $0xf0] sm:$0xff]  ;;  %v440_v15 = vld [vmem:[%s10509_s29 + $0x1a8] sm:$0xff]  ;;  %v443_v16 = vld [vmem:[%s10509_s29 + $0x1c0] sm:$0xff] }
  0x21   : > { %8813 = vmatprep.subr.bf16.mxu0 %v17010_v3  ;;  %8862 = vmatprep.subr.bf16.mxu1 %v17010_v3  ;;  %v8844_v17 = vpack.c.bf16 %v562_v14, %v561_v13  ;;  %v446_v18 = vld [vmem:[%s10509_s29 + $0x1d8] sm:$0xff]  ;;  %v449_v19 = vld [vmem:[%s10509_s29 + $0x1f0] sm:$0xff]  ;;  %v387_v20 = vld [vmem:[%s10509_s29] sm:$0xff] }
  0x22   : > { %v391_v21 = vld [vmem:[%s10509_s29 + $0x20] sm:$0xff]  ;;  %v452_v22 = vld [vmem:[%s10509_s29 + $0x208] sm:$0xff]  ;;  %v390_v24 = vld [vmem:[%s10509_s29 + $0x18] sm:$0xff] }
  0x23   : > { %8635 = vmatmul.mubr.msk.f32.vlgmr.msra.gmra.mrb[0].mxu1 %vm17002_vm0, %v392_v38  ;;  %v455_v23 = vld [vmem:[%s10509_s29 + $0x220] sm:$0xff]  ;;  %v394_v25 = vld [vmem:[%s10509_s29 + $0x38] sm:$0xff]  ;;  %v461_v27 = vld [vmem:[%s10509_s29 + $0x250] sm:$0xff] }
  0x24   : > { %8815 = vmatpush1.bf16.msra.mxu0 %v8814_v32  ;;  %8637 = vmatprep.mubr.msk.f32.mxu1 %vm17002_vm0, %v395_v39  ;;  %v458_v26 = vld [vmem:[%s10509_s29 + $0x238] sm:$0xff]  ;;  %v393_v28 = vld [vmem:[%s10509_s29 + $0x30] sm:$0xff]  ;;  %v464_v30 = vld [vmem:[%s10509_s29 + $0x268] sm:$0xff] }
  0x25   : > { %8816 = vmatprep.subr.bf16.mxu0 %v17010_v3  ;;  %v397_v29 = vld [vmem:[%s10509_s29 + $0x50] sm:$0xff]  ;;  %v467_v31 = vld [vmem:[%s10509_s29 + $0x280] sm:$0xff]  ;;  %v396_v32 = vld [vmem:[%s10509_s29 + $0x48] sm:$0xff] }
  0x26   : > { %v400_v33 = vld [vmem:[%s10509_s29 + $0x68] sm:$0xff]  ;;  %v470_v34 = vld [vmem:[%s10509_s29 + $0x298] sm:$0xff]  ;;  %v399_v36 = vld [vmem:[%s10509_s29 + $0x60] sm:$0xff] }
  0x27   : > { %8638 = vmatmul.mubr.msk.f32.gmra.mrb[2].mxu1 %vm17002_vm0, %v398_v43  ;;  %v403_v37 = vld [vmem:[%s10509_s29 + $0x80] sm:$0xff]  ;;  %v476_v38 = vld [vmem:[%s10509_s29 + $0x2c8] sm:$0xff]  ;;  %v406_v41 = vld [vmem:[%s10509_s29 + $0x98] sm:$0xff] }
  0x28   : > { %8818 = vmatpush1.bf16.msra.mxu0 %v8817_v35  ;;  %8640 = vmatprep.mubr.msk.f32.mxu1 %vm17002_vm0, %v401_v44  ;;  %v473_v35 = vld [vmem:[%s10509_s29 + $0x2b0] sm:$0xff]  ;;  %v479_v39 = vld [vmem:[%s10509_s29 + $0x2e0] sm:$0xff]  ;;  %v482_v42 = vld [vmem:[%s10509_s29 + $0x2f8] sm:$0xff] }
  0x29   : > { %8819 = vmatprep.subr.bf16.mxu0 %v17010_v3  ;;  %v485_v43 = vld [vmem:[%s10509_s29 + $0x310] sm:$0xff]  ;;  %v488_v46 = vld [vmem:[%s10509_s29 + $0x328] sm:$0xff]  ;;  %v491_v47 = vld [vmem:[%s10509_s29 + $0x340] sm:$0xff] }
  0x2a   : > { %v405_v44 = vld [vmem:[%s10509_s29 + $0x90] sm:$0xff]  ;;  %v411_v52 = vld [vmem:[%s10509_s29 + $0xc0] sm:$0xff]  ;;  %v414_v56 = vld [vmem:[%s10509_s29 + $0xd8] sm:$0xff] }
  0x2b   : > { %8641 = vmatmul.mubr.msk.f32.gmra.mrb[4].mxu1 %vm17002_vm0, %v404_v48  ;;  %v408_v48 = vld [vmem:[%s10509_s29 + $0xa8] sm:$0xff]  ;;  %v497_v51 = vld [vmem:[%s10509_s29 + $0x370] sm:$0xff]  ;;  %v418_v57 = vld [vmem:[%s10509_s29 + $0xf8] sm:$0xff] }
  0x2c   : > { %8821 = vmatpush1.bf16.msra.mxu0 %v8820_v40  ;;  %8643 = vmatprep.mubr.msk.f32.mxu1 %vm17002_vm0, %v407_v49  ;;  %v402_v40 = vld [vmem:[%s10509_s29 + $0x78] sm:$0xff]  ;;  %v412_v49 = vld [vmem:[%s10509_s29 + $0xc8] sm:$0xff]  ;;  %v421_v61 = vld [vmem:[%s10509_s29 + $0x110] sm:$0xff] }
  0x2d   : > { %8822 = vmatprep.subr.bf16.mxu0 %v17010_v3  ;;  %v512_v62 = vld [vmem:[%s10509_s29 + $0x3e8] sm:$0xff]  ;;  %v518_v2 = vld [vmem:[%s10509_s29 + $0x418] sm:$0xff]  ;;  %v423_v4 = vld [vmem:[%s10509_s29 + $0x120] sm:$0xff] }
  0x2e   : > { %v426_v8 = vld [vmem:[%s10509_s29 + $0x138] sm:$0xff]  ;;  %v432_v14 = vld [vmem:[%s10509_s29 + $0x168] sm:$0xff] }
  0x2f   : > { %8644 = vmatmul.mubr.msk.f32.gmra.mrb[6].mxu1 %vm17002_vm0, %v410_v53  ;;  %v415_v53 = vld [vmem:[%s10509_s29 + $0xe0] sm:$0xff]  ;;  %v430_v9 = vld [vmem:[%s10509_s29 + $0x158] sm:$0xff] }
  0x30   : > { %8824 = vmatpush1.bf16.msra.mxu0 %v8823_v45  ;;  %8646 = vmatprep.mubr.msk.f32.mxu1 %vm17002_vm0, %v413_v54  ;;  %v409_v45 = vld [vmem:[%s10509_s29 + $0xb0] sm:$0xff]  ;;  %v500_v54 = vld [vmem:[%s10509_s29 + $0x388] sm:$0xff]  ;;  %v530_v13 = vld [vmem:[%s10509_s29 + $0x478] sm:$0xff] }
  0x31   : > { %8825 = vmatprep.subr.bf16.mxu0 %v17010_v3 }
  0x33   : > { %8647 = vmatmul.mubr.msk.f32.gmra.mrb[8].mxu1 %vm17002_vm0, %v416_v58  ;;  %v506_v58 = vld [vmem:[%s10509_s29 + $0x3b8] sm:$0xff] }
  0x34   : > { %8827 = vmatpush1.bf16.msra.mxu0 %v8826_v50  ;;  %8649 = vmatprep.mubr.msk.f32.mxu1 %vm17002_vm0, %v419_v59  ;;  %v494_v50 = vld [vmem:[%s10509_s29 + $0x358] sm:$0xff]  ;;  %v509_v59 = vld [vmem:[%s10509_s29 + $0x3d0] sm:$0xff] }
  0x35   : > { %8828 = vmatprep.subr.bf16.mxu0 %v17010_v3 }
  0x37   : > { %8650 = vmatmul.mubr.msk.f32.gmra.mrb[10].mxu1 %vm17002_vm0, %v422_v63  ;;  %v515_v63 = vld [vmem:[%s10509_s29 + $0x400] sm:$0xff] }
  0x38   : > { %8830 = vmatpush1.bf16.msra.mxu0 %v8829_v55  ;;  %8652 = vmatprep.mubr.msk.f32.mxu1 %vm17002_vm0, %v425_v0  ;;  %v503_v55 = vld [vmem:[%s10509_s29 + $0x3a0] sm:$0xff]  ;;  %v420_v0 = vld [vmem:[%s10509_s29 + $0x108] sm:$0xff] }
  0x39   : > { %8831 = vmatprep.subr.bf16.mxu0 %v17010_v3 }
  0x3b   : > { %8653 = vmatmul.mubr.msk.f32.gmra.mrb[12].mxu1 %vm17002_vm0, %v428_v5  ;;  %v427_v5 = vld [vmem:[%s10509_s29 + $0x140] sm:$0xff] }
  0x3c   : > { %8833 = vmatpush1.bf16.msra.mxu0 %v8832_v60  ;;  %8655 = vmatprep.mubr.msk.f32.mxu1 %vm17002_vm0, %v431_v6  ;;  %v417_v60 = vld [vmem:[%s10509_s29 + $0xf0] sm:$0xff] }
  0x3d   : > { %8834 = vmatprep.subr.bf16.mxu0 %v17010_v3  ;;  %v521_v6 = vld [vmem:[%s10509_s29 + $0x430] sm:$0xff] }
  0x3f   : > { %8656 = vmatmul.mubr.msk.f32.gmra.mrb[14].mxu1 %vm17002_vm0, %v434_v10  ;;  %v429_v10 = vld [vmem:[%s10509_s29 + $0x150] sm:$0xff] }
  0x40   : > { %8836 = vmatpush1.bf16.msra.mxu0 %v8835_v1  ;;  %8658 = vmatprep.mubr.msk.f32.mxu1 %vm17002_vm0, %v437_v11  ;;  %v424_v1 = vld [vmem:[%s10509_s29 + $0x128] sm:$0xff]  ;;  %v527_v11 = vld [vmem:[%s10509_s29 + $0x460] sm:$0xff] }
  0x41   : > { %8837 = vmatprep.subr.bf16.mxu0 %v17010_v3 }
  0x43   : > { %8659 = vmatmul.mubr.msk.f32.gmra.mrb[16].mxu1 %vm17002_vm0, %v440_v15  ;;  %v436_v15 = vld [vmem:[%s10509_s29 + $0x188] sm:$0xff] }
  0x44   : > { %8839 = vmatpush1.bf16.msra.mxu0 %v8838_v7  ;;  %8661 = vmatprep.mubr.msk.f32.mxu1 %vm17002_vm0, %v443_v16  ;;  %v524_v7 = vld [vmem:[%s10509_s29 + $0x448] sm:$0xff]  ;;  %v435_v16 = vld [vmem:[%s10509_s29 + $0x180] sm:$0xff] }
  0x45   : > { %8840 = vmatprep.subr.bf16.mxu0 %v17010_v3 }
  0x47   : > { %8662 = vmatmul.mubr.msk.f32.gmra.mrb[18].mxu1 %vm17002_vm0, %v446_v18  ;;  %v438_v18 = vld [vmem:[%s10509_s29 + $0x198] sm:$0xff] }
  0x48   : > { %8842 = vmatpush1.bf16.msra.mxu0 %v8841_v12  ;;  %8664 = vmatprep.mubr.msk.f32.mxu1 %vm17002_vm0, %v449_v19  ;;  %v433_v12 = vld [vmem:[%s10509_s29 + $0x170] sm:$0xff]  ;;  %v442_v19 = vld [vmem:[%s10509_s29 + $0x1b8] sm:$0xff] }
  0x49   : > { %8843 = vmatprep.subr.bf16.mxu0 %v17010_v3 }
  0x4b   : > { %8665 = vmatmul.mubr.msk.f32.gmra.mrb[20].mxu1 %vm17002_vm0, %v452_v22  ;;  %v444_v22 = vld [vmem:[%s10509_s29 + $0x1c8] sm:$0xff] }
  0x4c   : > { %8845 = vmatpush1.bf16.msra.mxu0 %v8844_v17  ;;  %8667 = vmatprep.mubr.msk.f32.mxu1 %vm17002_vm0, %v455_v23  ;;  %v439_v17 = vld [vmem:[%s10509_s29 + $0x1a0] sm:$0xff]  ;;  %v448_v23 = vld [vmem:[%s10509_s29 + $0x1e8] sm:$0xff] }
  0x4d   : > { %9000 = vmatprep.subr.bf16.mxu0 %v17010_v3 }
  0x4f   : > { %788 = vmatmul.mubr.f32.vlgmr.msra.gmra.mrb[0].mxu0 %v387_v20  ;;  %8668 = vmatmul.mubr.msk.f32.gmra.mrb[22].mxu1 %vm17002_vm0, %v458_v26  ;;  %v441_v20 = vld [vmem:[%s10509_s29 + $0x1b0] sm:$0xff]  ;;  %v450_v26 = vld [vmem:[%s10509_s29 + $0x1f8] sm:$0xff] }
  0x50   : > { %792 = vmatprep.mubr.f32.mxu0 %v391_v21  ;;  %8670 = vmatprep.mubr.msk.f32.mxu1 %vm17002_vm0, %v461_v27  ;;  %v445_v21 = vld [vmem:[%s10509_s29 + $0x1d0] sm:$0xff]  ;;  %v454_v27 = vld [vmem:[%s10509_s29 + $0x218] sm:$0xff] }
  0x53   : > { %793 = vmatmul.mubr.f32.gmra.mrb[2].mxu0 %v390_v24  ;;  %8671 = vmatmul.mubr.msk.f32.gmra.mrb[24].mxu1 %vm17002_vm0, %v464_v30  ;;  %v447_v24 = vld [vmem:[%s10509_s29 + $0x1e0] sm:$0xff]  ;;  %v456_v30 = vld [vmem:[%s10509_s29 + $0x228] sm:$0xff] }
  0x54   : > { %797 = vmatprep.mubr.f32.mxu0 %v394_v25  ;;  %8673 = vmatprep.mubr.msk.f32.mxu1 %vm17002_vm0, %v467_v31  ;;  %v451_v25 = vld [vmem:[%s10509_s29 + $0x200] sm:$0xff]  ;;  %v460_v31 = vld [vmem:[%s10509_s29 + $0x248] sm:$0xff] }
  0x57   : > { %798 = vmatmul.mubr.f32.gmra.mrb[4].mxu0 %v393_v28  ;;  %8674 = vmatmul.mubr.msk.f32.gmra.mrb[26].mxu1 %vm17002_vm0, %v470_v34  ;;  %v453_v28 = vld [vmem:[%s10509_s29 + $0x210] sm:$0xff]  ;;  %v462_v34 = vld [vmem:[%s10509_s29 + $0x258] sm:$0xff] }
  0x58   : > { %802 = vmatprep.mubr.f32.mxu0 %v397_v29  ;;  %8676 = vmatprep.mubr.msk.f32.mxu1 %vm17002_vm0, %v473_v35  ;;  %v457_v29 = vld [vmem:[%s10509_s29 + $0x230] sm:$0xff]  ;;  %v466_v35 = vld [vmem:[%s10509_s29 + $0x278] sm:$0xff] }
  0x5b   : > { %803 = vmatmul.mubr.f32.gmra.mrb[6].mxu0 %v396_v32  ;;  %8677 = vmatmul.mubr.msk.f32.gmra.mrb[28].mxu1 %vm17002_vm0, %v476_v38  ;;  %v459_v32 = vld [vmem:[%s10509_s29 + $0x240] sm:$0xff]  ;;  %v468_v38 = vld [vmem:[%s10509_s29 + $0x288] sm:$0xff] }
  0x5c   : > { %807 = vmatprep.mubr.f32.mxu0 %v400_v33  ;;  %8679 = vmatprep.mubr.msk.f32.mxu1 %vm17002_vm0, %v479_v39  ;;  %v463_v33 = vld [vmem:[%s10509_s29 + $0x260] sm:$0xff]  ;;  %v472_v39 = vld [vmem:[%s10509_s29 + $0x2a8] sm:$0xff] }
  0x5f   : > { %808 = vmatmul.mubr.f32.gmra.mrb[8].mxu0 %v399_v36  ;;  %8680 = vmatmul.mubr.msk.f32.gmra.mrb[30].mxu1 %vm17002_vm0, %v482_v42  ;;  %v465_v36 = vld [vmem:[%s10509_s29 + $0x270] sm:$0xff]  ;;  %v474_v42 = vld [vmem:[%s10509_s29 + $0x2b8] sm:$0xff] }
  0x60   : > { %812 = vmatprep.mubr.f32.mxu0 %v403_v37  ;;  %8682 = vmatprep.mubr.msk.f32.mxu1 %vm17002_vm0, %v485_v43  ;;  %v469_v37 = vld [vmem:[%s10509_s29 + $0x290] sm:$0xff]  ;;  %v478_v43 = vld [vmem:[%s10509_s29 + $0x2d8] sm:$0xff] }
  0x63   : > { %813 = vmatmul.mubr.f32.gmra.mrb[10].mxu0 %v402_v40  ;;  %8683 = vmatmul.mubr.msk.f32.gmra.mrb[32].mxu1 %vm17002_vm0, %v488_v46  ;;  %v471_v40 = vld [vmem:[%s10509_s29 + $0x2a0] sm:$0xff]  ;;  %v480_v46 = vld [vmem:[%s10509_s29 + $0x2e8] sm:$0xff] }
  0x64   : > { %817 = vmatprep.mubr.f32.mxu0 %v406_v41  ;;  %8685 = vmatprep.mubr.msk.f32.mxu1 %vm17002_vm0, %v491_v47  ;;  %v475_v41 = vld [vmem:[%s10509_s29 + $0x2c0] sm:$0xff]  ;;  %v484_v47 = vld [vmem:[%s10509_s29 + $0x308] sm:$0xff] }
  0x67   : > { %818 = vmatmul.mubr.f32.gmra.mrb[12].mxu0 %v405_v44  ;;  %8686 = vmatmul.mubr.msk.f32.gmra.mrb[34].mxu1 %vm17002_vm0, %v494_v50  ;;  %v477_v44 = vld [vmem:[%s10509_s29 + $0x2d0] sm:$0xff]  ;;  %v486_v50 = vld [vmem:[%s10509_s29 + $0x318] sm:$0xff] }
  0x68   : > { %822 = vmatprep.mubr.f32.mxu0 %v409_v45  ;;  %8688 = vmatprep.mubr.msk.f32.mxu1 %vm17002_vm0, %v497_v51  ;;  %v481_v45 = vld [vmem:[%s10509_s29 + $0x2f0] sm:$0xff]  ;;  %v490_v51 = vld [vmem:[%s10509_s29 + $0x338] sm:$0xff] }
  0x6b   : > { %823 = vmatmul.mubr.f32.gmra.mrb[14].mxu0 %v408_v48  ;;  %8689 = vmatmul.mubr.msk.f32.gmra.mrb[36].mxu1 %vm17002_vm0, %v500_v54  ;;  %v483_v48 = vld [vmem:[%s10509_s29 + $0x300] sm:$0xff]  ;;  %v492_v54 = vld [vmem:[%s10509_s29 + $0x348] sm:$0xff] }
  0x6c   : > { %827 = vmatprep.mubr.f32.mxu0 %v412_v49  ;;  %8691 = vmatprep.mubr.msk.f32.mxu1 %vm17002_vm0, %v503_v55  ;;  %v487_v49 = vld [vmem:[%s10509_s29 + $0x320] sm:$0xff]  ;;  %v496_v55 = vld [vmem:[%s10509_s29 + $0x368] sm:$0xff] }
  0x6f   : > { %828 = vmatmul.mubr.f32.gmra.mrb[16].mxu0 %v411_v52  ;;  %8692 = vmatmul.mubr.msk.f32.gmra.mrb[38].mxu1 %vm17002_vm0, %v506_v58  ;;  %v489_v52 = vld [vmem:[%s10509_s29 + $0x330] sm:$0xff]  ;;  %v498_v58 = vld [vmem:[%s10509_s29 + $0x378] sm:$0xff] }
  0x70   : > { %832 = vmatprep.mubr.f32.mxu0 %v415_v53  ;;  %8694 = vmatprep.mubr.msk.f32.mxu1 %vm17002_vm0, %v509_v59  ;;  %v493_v53 = vld [vmem:[%s10509_s29 + $0x350] sm:$0xff]  ;;  %v502_v59 = vld [vmem:[%s10509_s29 + $0x398] sm:$0xff] }
  0x73   : > { %833 = vmatmul.mubr.f32.gmra.mrb[18].mxu0 %v414_v56  ;;  %8695 = vmatmul.mubr.msk.f32.gmra.mrb[40].mxu1 %vm17002_vm0, %v512_v62  ;;  %v495_v56 = vld [vmem:[%s10509_s29 + $0x360] sm:$0xff]  ;;  %v504_v62 = vld [vmem:[%s10509_s29 + $0x3a8] sm:$0xff] }
  0x74   : > { %837 = vmatprep.mubr.f32.mxu0 %v418_v57  ;;  %8697 = vmatprep.mubr.msk.f32.mxu1 %vm17002_vm0, %v515_v63  ;;  %v499_v57 = vld [vmem:[%s10509_s29 + $0x380] sm:$0xff]  ;;  %v508_v63 = vld [vmem:[%s10509_s29 + $0x3c8] sm:$0xff] }
  0x77   : > { %838 = vmatmul.mubr.f32.gmra.mrb[20].mxu0 %v417_v60  ;;  %8698 = vmatmul.mubr.msk.f32.gmra.mrb[42].mxu1 %vm17002_vm0, %v518_v2  ;;  %v501_v60 = vld [vmem:[%s10509_s29 + $0x390] sm:$0xff]  ;;  %v510_v2 = vld [vmem:[%s10509_s29 + $0x3d8] sm:$0xff] }
  0x78   : > { %842 = vmatprep.mubr.f32.mxu0 %v421_v61  ;;  %8700 = vmatprep.mubr.msk.f32.mxu1 %vm17002_vm0, %v521_v6  ;;  %v505_v61 = vld [vmem:[%s10509_s29 + $0x3b0] sm:$0xff] }
  0x79   : > { %v517_v6 = vld [vmem:[%s10509_s29 + $0x410] sm:$0xff] }
  0x7b   : > { %843 = vmatmul.mubr.f32.gmra.mrb[22].mxu0 %v420_v0  ;;  %8701 = vmatmul.mubr.msk.f32.gmra.mrb[44].mxu1 %vm17002_vm0, %v524_v7  ;;  %v507_v0 = vld [vmem:[%s10509_s29 + $0x3c0] sm:$0xff]  ;;  %v516_v7 = vld [vmem:[%s10509_s29 + $0x408] sm:$0xff] }
  0x7c   : > { %847 = vmatprep.mubr.f32.mxu0 %v424_v1  ;;  %8703 = vmatprep.mubr.msk.f32.mxu1 %vm17002_vm0, %v527_v11  ;;  %v511_v1 = vld [vmem:[%s10509_s29 + $0x3e0] sm:$0xff] }
  0x7d   : > { %v523_v11 = vld [vmem:[%s10509_s29 + $0x440] sm:$0xff] }
  0x7f   : > { %848 = vmatmul.mubr.f32.gmra.mrb[24].mxu0 %v423_v4  ;;  %8704 = vmatmul.mubr.msk.f32.gmra.mrb[46].mxu1 %vm17002_vm0, %v530_v13  ;;  %v514_v4 = vld [vmem:[%s10509_s29 + $0x3f8] sm:$0xff] }
  0x80   : > { %852 = vmatprep.mubr.f32.mxu0 %v427_v5  ;;  %v513_v5 = vld [vmem:[%s10509_s29 + $0x3f0] sm:$0xff]  ;;  %v522_v13 = vld [vmem:[%s10509_s29 + $0x438] sm:$0xff] }
  0x83   : > { %853 = vmatmul.mubr.f32.gmra.mrb[26].mxu0 %v426_v8  ;;  %v520_v8 = vld [vmem:[%s10509_s29 + $0x428] sm:$0xff] }
  0x84   : > { %857 = vmatprep.mubr.f32.mxu0 %v430_v9  ;;  %v519_v9 = vld [vmem:[%s10509_s29 + $0x420] sm:$0xff] }
  0x87   : > { %858 = vmatmul.mubr.f32.gmra.mrb[28].mxu0 %v429_v10 }
  0x88   : > { %862 = vmatprep.mubr.f32.mxu0 %v433_v12 }
  0x8b   : > { %863 = vmatmul.mubr.f32.gmra.mrb[30].mxu0 %v432_v14 }
  0x8c   : > { %867 = vmatprep.mubr.f32.mxu0 %v436_v15  ;;  %v526_v15 = vld [vmem:[%s10509_s29 + $0x458] sm:$0xff] }
  0x8f   : > { %868 = vmatmul.mubr.f32.gmra.mrb[32].mxu0 %v435_v16 }
  0x90   : > { %872 = vmatprep.mubr.f32.mxu0 %v439_v17  ;;  %v525_v17 = vld [vmem:[%s10509_s29 + $0x450] sm:$0xff] }
  0x93   : > { %873 = vmatmul.mubr.f32.gmra.mrb[34].mxu0 %v438_v18 }
  0x94   : > { %877 = vmatprep.mubr.f32.mxu0 %v442_v19  ;;  %v529_v19 = vld [vmem:[%s10509_s29 + $0x470] sm:$0xff] }
  0x97   : > { %878 = vmatmul.mubr.f32.gmra.mrb[36].mxu0 %v441_v20 }
  0x98   : > { %882 = vmatprep.mubr.f32.mxu0 %v445_v21  ;;  %v528_v21 = vld [vmem:[%s10509_s29 + $0x468] sm:$0xff] }
  0x9b   : > { %883 = vmatmul.mubr.f32.gmra.mrb[38].mxu0 %v444_v22 }
  0x9c   : > { %887 = vmatprep.mubr.f32.mxu0 %v448_v23 }
  0x9f   : > { %888 = vmatmul.mubr.f32.gmra.mrb[40].mxu0 %v447_v24 }
  0xa0   : > { %892 = vmatprep.mubr.f32.mxu0 %v451_v25 }
  0xa3   : > { %893 = vmatmul.mubr.f32.gmra.mrb[42].mxu0 %v450_v26 }
  0xa4   : > { %897 = vmatprep.mubr.f32.mxu0 %v454_v27 }
  0xa7   : > { %898 = vmatmul.mubr.f32.gmra.mrb[44].mxu0 %v453_v28 }
  0xa8   : > { %902 = vmatprep.mubr.f32.mxu0 %v457_v29 }
  0xab   : > { %903 = vmatmul.mubr.f32.gmra.mrb[46].mxu0 %v456_v30 }
  0xac   : > { %907 = vmatprep.mubr.f32.mxu0 %v460_v31 }
  0xaf   : > { %908 = vmatmul.mubr.f32.gmra.mrb[48].mxu0 %v459_v32 }
  0xb0   : > { %912 = vmatprep.mubr.f32.mxu0 %v463_v33 }
  0xb3   : > { %913 = vmatmul.mubr.f32.gmra.mrb[50].mxu0 %v462_v34  ;;  %v10831_v34 = vld [vmem:[%s16992_s2] ss:$0 sm:$0xff] }
  0xb4   : > { %917 = vmatprep.mubr.f32.mxu0 %v466_v35 }
  0xb7   : > { %918 = vmatmul.mubr.f32.gmra.mrb[52].mxu0 %v465_v36 }
  0xb8   : > { %922 = vmatprep.mubr.f32.mxu0 %v469_v37 }
  0xbb   : > { %923 = vmatmul.mubr.f32.gmra.mrb[54].mxu0 %v468_v38 }
  0xbc   : > { %927 = vmatprep.mubr.f32.mxu0 %v472_v39 }
  0xbf   : > { %928 = vmatmul.mubr.f32.gmra.mrb[56].mxu0 %v471_v40 }
  0xc0   : > { %932 = vmatprep.mubr.f32.mxu0 %v475_v41 }
  0xc3   : > { %933 = vmatmul.mubr.f32.gmra.mrb[58].mxu0 %v474_v42 }
  0xc4   : > { %937 = vmatprep.mubr.f32.mxu0 %v478_v43 }
  0xc7   : > { %938 = vmatmul.mubr.f32.gmra.mrb[60].mxu0 %v477_v44 }
  0xc8   : > { %942 = vmatprep.mubr.f32.mxu0 %v481_v45 }
  0xcb   : > { %943 = vmatmul.mubr.f32.gmra.mrb[62].mxu0 %v480_v46 }
  0xcc   : > { %947 = vmatprep.mubr.f32.mxu0 %v484_v47 }
  0xcf   : > { %948 = vmatmul.mubr.f32.gmra.mrb[64].mxu0 %v483_v48 }
  0xd0   : > { %952 = vmatprep.mubr.f32.mxu0 %v487_v49 }
  0xd3   : > { %953 = vmatmul.mubr.f32.gmra.mrb[66].mxu0 %v486_v50 }
  0xd4   : > { %957 = vmatprep.mubr.f32.mxu0 %v490_v51 }
  0xd7   : > { %958 = vmatmul.mubr.f32.gmra.mrb[68].mxu0 %v489_v52 }
  0xd8   : > { %962 = vmatprep.mubr.f32.mxu0 %v493_v53 }
  0xdb   : > { %963 = vmatmul.mubr.f32.gmra.mrb[70].mxu0 %v492_v54 }
  0xdc   : > { %967 = vmatprep.mubr.f32.mxu0 %v496_v55 }
  0xdf   : > { %968 = vmatmul.mubr.f32.gmra.mrb[72].mxu0 %v495_v56 }
  0xe0   : > { %972 = vmatprep.mubr.f32.mxu0 %v499_v57 }
  0xe3   : > { %973 = vmatmul.mubr.f32.gmra.mrb[74].mxu0 %v498_v58 }
  0xe4   : > { %977 = vmatprep.mubr.f32.mxu0 %v502_v59 }
  0xe7   : > { %978 = vmatmul.mubr.f32.gmra.mrb[76].mxu0 %v501_v60 }
  0xe8   : > { %982 = vmatprep.mubr.f32.mxu0 %v505_v61 }
  0xeb   : > { %983 = vmatmul.mubr.f32.gmra.mrb[78].mxu0 %v504_v62 }
  0xec   : > { %987 = vmatprep.mubr.f32.mxu0 %v508_v63 }
  0xef   : > { %988 = vmatmul.mubr.f32.gmra.mrb[80].mxu0 %v507_v0 }
  0xf0   : > { %992 = vmatprep.mubr.f32.mxu0 %v511_v1 }
  0xf3   : > { %993 = vmatmul.mubr.f32.gmra.mrb[82].mxu0 %v510_v2 }
  0xf4   : > { %997 = vmatprep.mubr.f32.mxu0 %v514_v4 }
  0xf6   : > { %v8636_v10 = vpop.f32.mrb[0].mxu1 }
  0xf7   : > { %998 = vmatmul.mubr.f32.gmra.mrb[84].mxu0 %v513_v5  ;;  %v1094_v12 = vpop.f32.mrb[1].mxu1 }
  0xf8   : > { %1002 = vmatprep.mubr.f32.mxu0 %v517_v6 }
  0xfa   : > { %v8639_v14 = vpop.f32.mrb[2].mxu1 }
  0xfb   : > { %1003 = vmatmul.mubr.f32.gmra.mrb[86].mxu0 %v516_v7  ;;  %v1104_v16 = vpop.f32.mrb[3].mxu1 }
  0xfc   : > { %1007 = vmatprep.mubr.f32.mxu0 %v520_v8 }
  0xfe   : > { %v10800_v18 = vpop.f32.mrb[4].mxu1 }
  0xff   : > { %1008 = vmatmul.mubr.f32.gmra.mrb[88].mxu0 %v519_v9  ;;  %v1114_v20 = vpop.f32.mrb[5].mxu1 }
 0x100   : > { %1012 = vmatprep.mubr.f32.mxu0 %v523_v11 }
 0x102   : > { %v10804_v22 = vpop.f32.mrb[6].mxu1 }
 0x103   : > { %1013 = vmatmul.mubr.f32.gmra.mrb[90].mxu0 %v522_v13  ;;  %v10806_v23 = vpop.f32.mrb[7].mxu1 }
 0x104   : > { %1017 = vmatprep.mubr.f32.mxu0 %v526_v15 }
 0x106   : > { %v10808_v24 = vpop.f32.mrb[8].mxu1 }
 0x107   : > { %1018 = vmatmul.mubr.f32.gmra.mrb[92].mxu0 %v525_v17  ;;  %v10810_v25 = vpop.f32.mrb[9].mxu1 }
 0x108   : > { %1022 = vmatprep.mubr.f32.mxu0 %v529_v19 }
 0x10a   : > { %v10812_v26 = vpop.f32.mrb[10].mxu1 }
 0x10b   : > { %1023 = vmatmul.mubr.f32.gmra.mrb[94].mxu0 %v528_v21  ;;  %v10814_v27 = vpop.f32.mrb[11].mxu1 }
 0x10e   : > { %v10816_v28 = vpop.f32.mrb[12].mxu1 }
 0x10f   : > { %v10818_v29 = vpop.f32.mrb[13].mxu1 }
 0x112   : > { %v10820_v30 = vpop.f32.mrb[14].mxu1 }
 0x113   : > { %v10822_v31 = vpop.f32.mrb[15].mxu1 }
 0x116   : > { %v10824_v32 = vpop.f32.mrb[16].mxu1 }
 0x117   : > { %v10826_v33 = vpop.f32.mrb[17].mxu1 }
 0x11a   : > { %v10833_v35 = vpop.f32.mrb[18].mxu1 }
 0x11b   : > { %v10835_v36 = vpop.f32.mrb[19].mxu1 }
 0x11e   : > { %v10838_v40 = vpop.f32.mrb[20].mxu1 }
 0x11f   : > { %v10840_v42 = vpop.f32.mrb[21].mxu1 }
 0x122   : > { %v789_v37 = vpop.f32.mrb[0].mxu0  ;;  %v10843_v46 = vpop.f32.mrb[22].mxu1 }
 0x123   : > { %v791_v38 = vpop.f32.mrb[1].mxu0  ;;  %v790_v39 = vadd.f32 %v10831_v34, %v789_v37  ;;  %v10845_v49 = vpop.f32.mrb[23].mxu1 }
 0x125   : > { %v1095_v41 = vadd.f32 %v1094_v12, %v790_v39 }
 0x126   : > { %v794_v43 = vpop.f32.mrb[2].mxu0  ;;  %v10848_v54 = vpop.f32.mrb[24].mxu1 }
 0x127   : > { %v795_v44 = vadd.f32 %v10831_v34, %v794_v43  ;;  %v796_v45 = vpop.f32.mrb[3].mxu0  ;;  %v1333_v47 = vmax.f32 %v1095_v41, 0.0  ;;  %v10852_v58 = vpop.f32.mrb[25].mxu1 }
 0x129   : > { %v1100_v48 = vadd.f32 %v8636_v10, %v795_v44  ;;  %v1430_v55 = vsel %vm17003_vm1, %v1333_v47, 0.0 }
 0x12a   : > { %v799_v50 = vpop.f32.mrb[4].mxu0  ;;  %v10855_v0 = vpop.f32.mrb[26].mxu1 }
 0x12b   : > { %v1334_v51 = vmax.f32 %v1100_v48, 0.0  ;;  %v801_v52 = vpop.f32.mrb[5].mxu0  ;;  %v800_v53 = vadd.f32 %v10831_v34, %v799_v50  ;;  %v10858_v4 = vpop.f32.mrb[27].mxu1 }
 0x12d   : > { %v1105_v56 = vadd.f32 %v1104_v16, %v800_v53  ;;  %v1431_v57 = vsel %vm17003_vm1, %v1334_v51, 0.0 }
 0x12e   : > { %v1432_v59 = vadd.f32 %v1431_v57, %v1430_v55  ;;  %v804_v60 = vpop.f32.mrb[6].mxu0  ;;  %v10861_v10 = vpop.f32.mrb[28].mxu1 }
 0x12f   : > { %v1335_v61 = vmax.f32 %v1105_v56, 0.0  ;;  %v805_v62 = vadd.f32 %v10831_v34, %v804_v60  ;;  %v806_v63 = vpop.f32.mrb[7].mxu0  ;;  %v10863_v13 = vpop.f32.mrb[29].mxu1 }
 0x131   : > { %v1433_v1 = vsel %vm17003_vm1, %v1335_v61, 0.0  ;;  %v1110_v2 = vadd.f32 %v8639_v14, %v805_v62 }
 0x132   : > { %v1434_v5 = vadd.f32 %v1433_v1, %v1432_v59  ;;  %v809_v6 = vpop.f32.mrb[8].mxu0  ;;  %v10866_v21 = vpop.f32.mrb[30].mxu1 }
 0x133   : > { %v1336_v7 = vmax.f32 %v1110_v2, 0.0  ;;  %v811_v8 = vpop.f32.mrb[9].mxu0  ;;  %v810_v9 = vadd.f32 %v10831_v34, %v809_v6  ;;  %v10871_v43 = vpop.f32.mrb[31].mxu1 }
 0x134   : > { %v1435_v15 = vrot.slane %v1434_v5, 4 }
 0x135   : > { %v1115_v11 = vadd.f32 %v1114_v20, %v810_v9  ;;  %v1381_v12 = vadd.f32 %v1336_v7, %v1333_v47  ;;  %v1441_v38 = vsel %vm17003_vm1, %v1336_v7, 0.0 }
 0x136   : > { %v814_v16 = vpop.f32.mrb[10].mxu0  ;;  %v1436_v20 = vadd.f32 %v1435_v15, %v1434_v5  ;;  %v10874_v52 = vpop.f32.mrb[32].mxu1 }
 0x137   : > { %v1337_v17 = vmax.f32 %v1115_v11, 0.0  ;;  %v815_v19 = vadd.f32 %v10831_v34, %v814_v16  ;;  %v816_v14 = vpop.f32.mrb[11].mxu0  ;;  %v10878_v56 = vpop.f32.mrb[33].mxu1 }
 0x138   : > { %v1437_v57 = vrot.slane %v1436_v20, 2 }
 0x139   : > { %v1382_v37 = vadd.f32 %v1337_v17, %v1334_v51  ;;  %v1442_v39 = vsel %vm17003_vm1, %v1337_v17, 0.0  ;;  %v1120_v41 = vadd.f32 %v10800_v18, %v815_v19 }
 0x13a   : > { %v1443_v44 = vadd.f32 %v1442_v39, %v1441_v38  ;;  %v819_v45 = vpop.f32.mrb[12].mxu0  ;;  %v10881_v2 = vpop.f32.mrb[34].mxu1  ;;  %v1438_v8 = vadd.f32 %v1437_v57, %v1436_v20 }
 0x13b   : > { %v1338_v47 = vmax.f32 %v1120_v41, 0.0  ;;  %v821_v48 = vpop.f32.mrb[13].mxu0  ;;  %v820_v50 = vadd.f32 %v10831_v34, %v819_v45  ;;  %v10884_v7 = vpop.f32.mrb[35].mxu1 }
 0x13c   : > { %v1439_v39 = vrot.slane %v1438_v8, 1 }
 0x13d   : > { %v1444_v53 = vsel %vm17003_vm1, %v1338_v47, 0.0  ;;  %v1125_v51 = vadd.f32 %v10806_v23, %v820_v50  ;;  %v1383_v55 = vadd.f32 %v1338_v47, %v1335_v61 }
 0x13e   : > { %v1445_v18 = vadd.f32 %v1444_v53, %v1443_v44  ;;  %v824_v59 = vpop.f32.mrb[14].mxu0  ;;  %v10887_v17 = vpop.f32.mrb[36].mxu1 }
 0x13f   : > { %v1339_v60 = vmax.f32 %v1125_v51, 0.0  ;;  %v825_v62 = vadd.f32 %v10831_v34, %v824_v59  ;;  %v826_v63 = vpop.f32.mrb[15].mxu0 }
 0x140   : > { %v1446_v1 = vrot.slane %v1445_v18, 4 }
 0x141   : > { %v1384_v5 = vadd.f32 %v1381_v12, %v1339_v60  ;;  %v1130_v6 = vadd.f32 %v10804_v22, %v825_v62  ;;  %v1452_v19 = vsel %vm17003_vm1, %v1339_v60, 0.0  ;;  %v10892_v22 = vpop.f32.mrb[37].mxu1 }
 0x142   : > { %v1447_v23 = vadd.f32 %v1446_v1, %v1445_v18  ;;  %v829_v61 = vpop.f32.mrb[16].mxu0  ;;  %v10895_v53 = vpop.f32.mrb[38].mxu1  ;;  %v1440_v18 = vadd.f32 %v1439_v39, %v1438_v8 }
 0x143   : > { %v1340_v9 = vmax.f32 %v1130_v6, 0.0  ;;  %v831_v11 = vpop.f32.mrb[17].mxu0  ;;  %v830_v15 = vadd.f32 %v10831_v34, %v829_v61 }
 0x144   : > { %v1448_v16 = vrot.slane %v1447_v23, 2 }
 0x145   : > { %v1135_v14 = vadd.f32 %v10810_v25, %v830_v15  ;;  %v1453_v12 = vsel %vm17003_vm1, %v1340_v9, 0.0  ;;  %v1385_v38 = vadd.f32 %v1382_v37, %v1340_v9  ;;  %v10899_v37 = vpop.f32.mrb[39].mxu1 }
 0x146   : > { %v1449_v41 = vadd.f32 %v1448_v16, %v1447_v23  ;;  %v1454_v20 = vadd.f32 %v1453_v12, %v1452_v19  ;;  %v834_v44 = vpop.f32.mrb[18].mxu0  ;;  %v10903_v9 = vpop.f32.mrb[40].mxu1 }
 0x147   : > { %v1341_v45 = vmax.f32 %v1135_v14, 0.0  ;;  %v835_v47 = vadd.f32 %v10831_v34, %v834_v44  ;;  %v836_v48 = vpop.f32.mrb[19].mxu0  ;;  %v10906_v15 = vpop.f32.mrb[41].mxu1 }
 0x148   : > { %v1450_v50 = vrot.slane %v1449_v41, 1 }
 0x149   : > { %v1386_v51 = vadd.f32 %v1383_v55, %v1341_v45  ;;  %v1455_v57 = vsel %vm17003_vm1, %v1341_v45, 0.0  ;;  %v1140_v25 = vadd.f32 %v10808_v24, %v835_v47 }
 0x14a   : > { %v1451_v59 = vadd.f32 %v1450_v50, %v1449_v41  ;;  %v1456_v60 = vadd.f32 %v1455_v57, %v1454_v20  ;;  %v839_v62 = vpop.f32.mrb[20].mxu0  ;;  %v10909_v39 = vpop.f32.mrb[42].mxu1 }
 0x14b   : > { %v1342_v63 = vmax.f32 %v1140_v25, 0.0  ;;  %v841_v1 = vpop.f32.mrb[21].mxu0  ;;  %v840_v6 = vadd.f32 %v10831_v34, %v839_v62 }
 0x14c   : > { %v1457_v23 = vrot.slane %v1456_v60, 4  ;;  %v1607_v61 = vsel %vm17006_vm2, %v1440_v18, %v1451_v59 }
 0x14d   : > { %v1145_v55 = vadd.f32 %v10814_v27, %v840_v6  ;;  %v1387_v11 = vadd.f32 %v1384_v5, %v1342_v63  ;;  %v1463_v20 = vsel %vm17003_vm1, %v1342_v63, 0.0  ;;  %v10914_v27 = vpop.f32.mrb[43].mxu1 }
 0x14e   : > { %v1458_v24 = vadd.f32 %v1457_v23, %v1456_v60  ;;  %v844_v16 = vpop.f32.mrb[22].mxu0  ;;  %v10917_v59 = vpop.f32.mrb[44].mxu1 }
 0x14f   : > { %v1343_v8 = vmax.f32 %v1145_v55, 0.0  ;;  %v845_v19 = vadd.f32 %v10831_v34, %v844_v16  ;;  %v846_v14 = vpop.f32.mrb[23].mxu0  ;;  %v10921_v63 = vpop.f32.mrb[45].mxu1 }
 0x150   : > { %v1459_v12 = vrot.slane %v1458_v24, 2 }
 0x151   : > { %v1388_v41 = vadd.f32 %v1385_v38, %v1343_v8  ;;  %v1464_v44 = vsel %vm17003_vm1, %v1343_v8, 0.0  ;;  %v1150_v45 = vadd.f32 %v10812_v26, %v845_v19 }
 0x152   : > { %v1460_v5 = vadd.f32 %v1459_v12, %v1458_v24  ;;  %v1465_v47 = vadd.f32 %v1464_v44, %v1463_v20  ;;  %v849_v48 = vpop.f32.mrb[24].mxu0  ;;  %v10926_v44 = vpop.f32.mrb[46].mxu1 }
 0x153   : > { %v1344_v50 = vmax.f32 %v1150_v45, 0.0  ;;  %v851_v57 = vpop.f32.mrb[25].mxu0  ;;  %v850_v25 = vadd.f32 %v10831_v34, %v849_v48 }
 0x154   : > { %v1461_v18 = vrot.slane %v1460_v5, 1 }
 0x155   : > { %v1466_v38 = vsel %vm17003_vm1, %v1344_v50, 0.0  ;;  %v1155_v60 = vadd.f32 %v10818_v29, %v850_v25  ;;  %v1389_v62 = vadd.f32 %v1386_v51, %v1344_v50 }
 0x156   : > { %v1462_v26 = vadd.f32 %v1461_v18, %v1460_v5  ;;  %v1467_v1 = vadd.f32 %v1466_v38, %v1465_v47  ;;  %v854_v6 = vpop.f32.mrb[26].mxu0  ;;  %v10929_v5 = vpop.f32.mrb[47].mxu1 }
 0x157   : > { %v1345_v23 = vmax.f32 %v1155_v60, 0.0  ;;  %v855_v55 = vadd.f32 %v10831_v34, %v854_v6  ;;  %v856_v24 = vpop.f32.mrb[27].mxu0 }
 0x158   : > { %v1609_v16 = vsel %vm1608_vm3, %v1607_v61, %v1462_v26  ;;  %v1468_v8 = vrot.slane %v1467_v1, 4 }
 0x159   : > { %v1390_v19 = vadd.f32 %v1387_v11, %v1345_v23  ;;  %v1160_v14 = vadd.f32 %v10816_v28, %v855_v55  ;;  %v1474_v48 = vsel %vm17003_vm1, %v1345_v23, 0.0 }
 0x15a   : > { %v1469_v12 = vadd.f32 %v1468_v8, %v1467_v1  ;;  %v859_v20 = vpop.f32.mrb[28].mxu0 }
 0x15b   : > { %v1346_v29 = vmax.f32 %v1160_v14, 0.0  ;;  %v861_v51 = vpop.f32.mrb[29].mxu0  ;;  %v860_v45 = vadd.f32 %v10831_v34, %v859_v20 }
 0x15c   : > { %v1470_v47 = vrot.slane %v1469_v12, 2 }
 0x15d   : > { %v1165_v50 = vadd.f32 %v10822_v31, %v860_v45  ;;  %v1475_v61 = vsel %vm17003_vm1, %v1346_v29, 0.0  ;;  %v1391_v11 = vadd.f32 %v1388_v41, %v1346_v29 }
 0x15e   : > { %v1471_v57 = vadd.f32 %v1470_v47, %v1469_v12  ;;  %v1476_v28 = vadd.f32 %v1475_v61, %v1474_v48  ;;  %v864_v25 = vpop.f32.mrb[30].mxu0 }
 0x15f   : > { %v1347_v18 = vmax.f32 %v1165_v50, 0.0  ;;  %v865_v38 = vadd.f32 %v10831_v34, %v864_v25  ;;  %v866_v60 = vpop.f32.mrb[31].mxu0 }
 0x160   : > { %v1472_v26 = vrot.slane %v1471_v57, 1 }
 0x161   : > { %v1392_v1 = vadd.f32 %v1389_v62, %v1347_v18  ;;  %v1477_v6 = vsel %vm17003_vm1, %v1347_v18, 0.0  ;;  %v1170_v55 = vadd.f32 %v10820_v30, %v865_v38 }
 0x162   : > { %v1473_v23 = vadd.f32 %v1472_v26, %v1471_v57  ;;  %v1478_v24 = vadd.f32 %v1477_v6, %v1476_v28  ;;  %v869_v31 = vpop.f32.mrb[32].mxu0 }
 0x163   : > { %v1348_v8 = vmax.f32 %v1170_v55, 0.0  ;;  %v871_v14 = vpop.f32.mrb[33].mxu0  ;;  %v870_v41 = vadd.f32 %v10831_v34, %v869_v31 }
 0x164   : > { %v1479_v12 = vrot.slane %v1478_v24, 4  ;;  %v1611_v20 = vsel %vm1610_vm4, %v1609_v16, %v1473_v23 }
 0x165   : > { %v1175_v29 = vadd.f32 %v10826_v33, %v870_v41  ;;  %v1393_v51 = vadd.f32 %v1390_v19, %v1348_v8  ;;  %v1485_v57 = vsel %vm17003_vm1, %v1348_v8, 0.0 }
 0x166   : > { %v1480_v45 = vadd.f32 %v1479_v12, %v1478_v24  ;;  %v874_v62 = vpop.f32.mrb[34].mxu0 }
 0x167   : > { %v1349_v47 = vmax.f32 %v1175_v29, 0.0  ;;  %v875_v48 = vadd.f32 %v10831_v34, %v874_v62  ;;  %v876_v30 = vpop.f32.mrb[35].mxu0 }
 0x168   : > { %v1481_v50 = vrot.slane %v1480_v45, 2 }
 0x169   : > { %v1394_v61 = vadd.f32 %v1391_v11, %v1349_v47  ;;  %v1486_v28 = vsel %vm17003_vm1, %v1349_v47, 0.0  ;;  %v1180_v25 = vadd.f32 %v10824_v32, %v875_v48 }
 0x16a   : > { %v1482_v18 = vadd.f32 %v1481_v50, %v1480_v45  ;;  %v1487_v38 = vadd.f32 %v1486_v28, %v1485_v57  ;;  %v879_v16 = vpop.f32.mrb[36].mxu0 }
 0x16b   : > { %v1350_v60 = vmax.f32 %v1180_v25, 0.0  ;;  %v881_v33 = vpop.f32.mrb[37].mxu0  ;;  %v880_v19 = vadd.f32 %v10831_v34, %v879_v16 }
 0x16c   : > { %v1483_v26 = vrot.slane %v1482_v18, 1 }
 0x16d   : > { %v1488_v6 = vsel %vm17003_vm1, %v1350_v60, 0.0  ;;  %v1185_v55 = vadd.f32 %v10835_v36, %v880_v19  ;;  %v1395_v23 = vadd.f32 %v1392_v1, %v1350_v60 }
 0x16e   : > { %v1484_v11 = vadd.f32 %v1483_v26, %v1482_v18  ;;  %v1489_v24 = vadd.f32 %v1488_v6, %v1487_v38  ;;  %v884_v31 = vpop.f32.mrb[38].mxu0 }
 0x16f   : > { %v1351_v8 = vmax.f32 %v1185_v55, 0.0  ;;  %v885_v32 = vadd.f32 %v10831_v34, %v884_v31  ;;  %v886_v14 = vpop.f32.mrb[39].mxu0 }
 0x170   : > { %v1490_v41 = vrot.slane %v1489_v24, 4  ;;  %v1613_v12 = vsel %vm1612_vm5, %v1611_v20, %v1484_v11  ;;  %v1675_v11 = vld [vmem:[%s16993_s3 + $0x8] sm:$0xff] }
 0x171   : > { %v1396_v29 = vadd.f32 %v1393_v51, %v1351_v8  ;;  %v1190_v45 = vadd.f32 %v10833_v35, %v885_v32  ;;  %v1496_v50 = vsel %vm17003_vm1, %v1351_v8, 0.0 }
 0x172   : > { %v1491_v62 = vadd.f32 %v1490_v41, %v1489_v24  ;;  %v889_v47 = vpop.f32.mrb[40].mxu0 }
 0x173   : > { %v1352_v48 = vmax.f32 %v1190_v45, 0.0  ;;  %v891_v30 = vpop.f32.mrb[41].mxu0  ;;  %v890_v36 = vadd.f32 %v10831_v34, %v889_v47  ;;  %v1676_v47 = vld [vmem:[%s16993_s3 + $0x10] sm:$0xff] }
 0x174   : > { %v1492_v1 = vrot.slane %v1491_v62, 2 }
 0x175   : > { %v1195_v57 = vadd.f32 %v10840_v42, %v890_v36  ;;  %v1497_v28 = vsel %vm17003_vm1, %v1352_v48, 0.0  ;;  %v1397_v25 = vadd.f32 %v1394_v61, %v1352_v48  ;;  %v1674_v61 = vld [vmem:[%s16993_s3] sm:$0xff]  ;;  %v1677_v48 = vld [vmem:[%s16993_s3 + $0x18] sm:$0xff] }
 0x176   : > { %v1493_v18 = vadd.f32 %v1492_v1, %v1491_v62  ;;  %v1498_v38 = vadd.f32 %v1497_v28, %v1496_v50  ;;  %v894_v20 = vpop.f32.mrb[42].mxu0  ;;  %v8863_v8 = vpack.c.bf16 %v1675_v11, %v1674_v61  ;;  %v8866_v36 = vpack.c.bf16 %v1677_v48, %v1676_v47  ;;  %v1679_v1 = vld [vmem:[%s16993_s3 + $0x28] sm:$0xff] }
 0x177   : > { %v1353_v51 = vmax.f32 %v1195_v57, 0.0  ;;  %v895_v35 = vadd.f32 %v10831_v34, %v894_v20  ;;  %v896_v16 = vpop.f32.mrb[43].mxu0 }
 0x178   : > { %v1494_v60 = vrot.slane %v1493_v18, 1  ;;  %8864 = vmatpush1.bf16.msra.mxu1 %v8863_v8  ;;  %v1682_v8 = vld [vmem:[%s16993_s3 + $0x40] sm:$0xff] }
 0x179   : > { %v1398_v33 = vadd.f32 %v1395_v23, %v1353_v51  ;;  %v1499_v19 = vsel %vm17003_vm1, %v1353_v51, 0.0  ;;  %v1200_v26 = vadd.f32 %v10838_v40, %v895_v35  ;;  %8865 = vmatprep.subr.bf16.mxu1 %v17010_v3 }
 0x17a   : > { %v1500_v6 = vadd.f32 %v1499_v19, %v1498_v38  ;;  %v899_v55 = vpop.f32.mrb[44].mxu0  ;;  %v1495_v42 = vadd.f32 %v1494_v60, %v1493_v18  ;;  %v1680_v60 = vld [vmem:[%s16993_s3 + $0x30] sm:$0xff]  ;;  %v1681_v19 = vld [vmem:[%s16993_s3 + $0x38] sm:$0xff] }
 0x17b   : > { %v1354_v24 = vmax.f32 %v1200_v26, 0.0  ;;  %v901_v31 = vpop.f32.mrb[45].mxu0  ;;  %v900_v23 = vadd.f32 %v10831_v34, %v899_v55  ;;  %v8872_v11 = vpack.c.bf16 %v1681_v19, %v1680_v60  ;;  %v1686_v60 = vld [vmem:[%s16993_s3 + $0x60] sm:$0xff]  ;;  %v1687_v19 = vld [vmem:[%s16993_s3 + $0x68] sm:$0xff] }
 0x17c   : > { %v1501_v32 = vrot.slane %v1500_v6, 4  ;;  %v1615_v40 = vsel %vm1614_vm6, %v1613_v12, %v1495_v42  ;;  %v1678_v12 = vld [vmem:[%s16993_s3 + $0x20] sm:$0xff]  ;;  %8867 = vmatpush1.bf16.msra.mxu1 %v8866_v36 }
 0x17d   : > { %v1205_v14 = vadd.f32 %v10845_v49, %v900_v23  ;;  %v1399_v41 = vadd.f32 %v1396_v29, %v1354_v24  ;;  %v1507_v57 = vsel %vm17003_vm1, %v1354_v24, 0.0  ;;  %v8869_v20 = vpack.c.bf16 %v1679_v1, %v1678_v12  ;;  %8868 = vmatprep.subr.bf16.mxu1 %v17010_v3 }
 0x17e   : > { %v1502_v45 = vadd.f32 %v1501_v32, %v1500_v6  ;;  %v904_v62 = vpop.f32.mrb[46].mxu0  ;;  %v1683_v32 = vld [vmem:[%s16993_s3 + $0x48] sm:$0xff] }
 0x17f   : > { %v1355_v30 = vmax.f32 %v1205_v14, 0.0  ;;  %v905_v49 = vadd.f32 %v10831_v34, %v904_v62  ;;  %v906_v29 = vpop.f32.mrb[47].mxu0  ;;  %v8875_v12 = vpack.c.bf16 %v1683_v32, %v1682_v8  ;;  %v1689_v8 = vld [vmem:[%s16993_s3 + $0x78] sm:$0xff] }
 0x180   : > { %v1503_v50 = vrot.slane %v1502_v45, 2  ;;  %8870 = vmatpush1.bf16.msra.mxu1 %v8869_v20 }
 0x181   : > { %v1400_v28 = vadd.f32 %v1397_v25, %v1355_v30  ;;  %v1508_v18 = vsel %vm17003_vm1, %v1355_v30, 0.0  ;;  %v1210_v38 = vadd.f32 %v10843_v46, %v905_v49  ;;  %8871 = vmatprep.subr.bf16.mxu1 %v17010_v3  ;;  %v1684_v30 = vld [vmem:[%s16993_s3 + $0x50] sm:$0xff]  ;;  %v1685_v49 = vld [vmem:[%s16993_s3 + $0x58] sm:$0xff] }
 0x182   : > { %v1504_v51 = vadd.f32 %v1503_v50, %v1502_v45  ;;  %v1509_v35 = vadd.f32 %v1508_v18, %v1507_v57  ;;  %v909_v16 = vpop.f32.mrb[48].mxu0 }
 0x183   : > { %v1356_v25 = vmax.f32 %v1210_v38, 0.0  ;;  %v911_v26 = vpop.f32.mrb[49].mxu0  ;;  %v910_v6 = vadd.f32 %v10831_v34, %v909_v16 }
 0x184   : > { %v1505_v46 = vrot.slane %v1504_v51, 1  ;;  %8873 = vmatpush1.bf16.msra.mxu1 %v8872_v11 }
 0x185   : > { %v1510_v55 = vsel %vm17003_vm1, %v1356_v25, 0.0  ;;  %v1215_v42 = vadd.f32 %v10852_v58, %v910_v6  ;;  %v1401_v61 = vadd.f32 %v1398_v33, %v1356_v25  ;;  %8874 = vmatprep.subr.bf16.mxu1 %v17010_v3 }
 0x186   : > { %v1506_v24 = vadd.f32 %v1505_v46, %v1504_v51  ;;  %v1511_v31 = vadd.f32 %v1510_v55, %v1509_v35  ;;  %v914_v23 = vpop.f32.mrb[50].mxu0 }
 0x187   : > { %v1357_v14 = vmax.f32 %v1215_v42, 0.0  ;;  %v915_v45 = vadd.f32 %v10831_v34, %v914_v23  ;;  %v916_v58 = vpop.f32.mrb[51].mxu0  ;;  %v8881_v42 = vpack.c.bf16 %v1687_v19, %v1686_v60  ;;  %v1688_v23 = vld [vmem:[%s16993_s3 + $0x70] sm:$0xff] }
 0x188   : > { %v1512_v33 = vrot.slane %v1511_v31, 4  ;;  %v1617_v62 = vsel %vm1616_vm7, %v1615_v40, %v1506_v24  ;;  %8876 = vmatpush1.bf16.msra.mxu1 %v8875_v12  ;;  %v1691_v12 = vld [vmem:[%s16993_s3 + $0x88] sm:$0xff] }
 0x189   : > { %v1402_v47 = vadd.f32 %v1399_v41, %v1357_v14  ;;  %v1220_v48 = vadd.f32 %v10848_v54, %v915_v45  ;;  %v8878_v54 = vpack.c.bf16 %v1685_v49, %v1684_v30  ;;  %v1518_v57 = vsel %vm17003_vm1, %v1357_v14, 0.0  ;;  %8877 = vmatprep.subr.bf16.mxu1 %v17010_v3 }
 0x18a   : > { %v1513_v29 = vadd.f32 %v1512_v33, %v1511_v31  ;;  %v919_v36 = vpop.f32.mrb[52].mxu0  ;;  %v8884_v33 = vpack.c.bf16 %v1689_v8, %v1688_v23  ;;  %v1696_v23 = vld [vmem:[%s16993_s3 + $0xb0] sm:$0xff]  ;;  %v1697_v8 = vld [vmem:[%s16993_s3 + $0xb8] sm:$0xff] }
 0x18b   : > { %v1358_v1 = vmax.f32 %v1220_v48, 0.0  ;;  %v920_v40 = vadd.f32 %v10831_v34, %v919_v36  ;;  %v921_v41 = vpop.f32.mrb[53].mxu0  ;;  %v1690_v48 = vld [vmem:[%s16993_s3 + $0x80] sm:$0xff] }
 0x18c   : > { %v1514_v50 = vrot.slane %v1513_v29, 2  ;;  %8879 = vmatpush1.bf16.msra.mxu1 %v8878_v54 }
 0x18d   : > { %v1519_v18 = vsel %vm17003_vm1, %v1358_v1, 0.0  ;;  %v1225_v38 = vadd.f32 %v10858_v4, %v920_v40  ;;  %v1403_v20 = vadd.f32 %v1400_v28, %v1358_v1  ;;  %8880 = vmatprep.subr.bf16.mxu1 %v17010_v3 }
 0x18e   : > { %v1520_v51 = vadd.f32 %v1519_v18, %v1518_v57  ;;  %v924_v35 = vpop.f32.mrb[54].mxu0  ;;  %v1515_v16 = vadd.f32 %v1514_v50, %v1513_v29  ;;  %v1692_v18 = vld [vmem:[%s16993_s3 + $0x90] sm:$0xff] }
 0x18f   : > { %v1359_v25 = vmax.f32 %v1225_v38, 0.0  ;;  %v925_v26 = vadd.f32 %v10831_v34, %v924_v35  ;;  %v926_v6 = vpop.f32.mrb[55].mxu0  ;;  %v1693_v38 = vld [vmem:[%s16993_s3 + $0x98] sm:$0xff] }
 0x190   : > { %v1516_v4 = vrot.slane %v1515_v16, 1  ;;  %8882 = vmatpush1.bf16.msra.mxu1 %v8881_v42  ;;  %v8890_v19 = vpack.c.bf16 %v1693_v38, %v1692_v18 }
 0x191   : > { %v1404_v28 = vadd.f32 %v1401_v61, %v1359_v25  ;;  %v1521_v46 = vsel %vm17003_vm1, %v1359_v25, 0.0  ;;  %v1230_v55 = vadd.f32 %v10855_v0, %v925_v26  ;;  %8883 = vmatprep.subr.bf16.mxu1 %v17010_v3 }
 0x192   : > { %v1522_v11 = vadd.f32 %v1521_v46, %v1520_v51  ;;  %v929_v24 = vpop.f32.mrb[56].mxu0  ;;  %v1517_v31 = vadd.f32 %v1516_v4, %v1515_v16  ;;  %v1694_v4 = vld [vmem:[%s16993_s3 + $0xa0] sm:$0xff]  ;;  %v1695_v46 = vld [vmem:[%s16993_s3 + $0xa8] sm:$0xff] }
 0x193   : > { %v1360_v61 = vmax.f32 %v1230_v55, 0.0  ;;  %v930_v32 = vadd.f32 %v10831_v34, %v929_v24  ;;  %v931_v14 = vpop.f32.mrb[57].mxu0 }
 0x194   : > { %v11033_v0 = vsel %vm17007_vm8, %v1617_v62, %v1517_v31  ;;  %v1523_v30 = vrot.slane %v1522_v11, 4  ;;  %8885 = vmatpush1.bf16.msra.mxu1 %v8884_v33  ;;  %v8893_v31 = vpack.c.bf16 %v1695_v46, %v1694_v4 }
 0x195   : > { %v1235_v45 = vadd.f32 %v10863_v13, %v930_v32  ;;  %v1405_v58 = vadd.f32 %v1402_v47, %v1360_v61  ;;  %v8887_v13 = vpack.c.bf16 %v1691_v12, %v1690_v48  ;;  %v1529_v1 = vsel %vm17003_vm1, %v1360_v61, 0.0  ;;  %8886 = vmatprep.subr.bf16.mxu1 %v17010_v3 }
 0x196   : > { %v934_v49 = vpop.f32.mrb[58].mxu0  ;;  %v1524_v50 = vadd.f32 %v1523_v30, %v1522_v11  ;;  %v8896_v48 = vpack.c.bf16 %v1697_v8, %v1696_v23 }
 0x197   : > { %v1361_v29 = vmax.f32 %v1235_v45, 0.0  ;;  %v935_v62 = vadd.f32 %v10831_v34, %v934_v49  ;;  %v936_v36 = vpop.f32.mrb[59].mxu0 }
 0x198   : > { %8888 = vmatpush1.bf16.msra.mxu1 %v8887_v13  ;;  %v1525_v25 = vrot.slane %v1524_v50, 2 }
 0x199   : > { %v1406_v47 = vadd.f32 %v1403_v20, %v1361_v29  ;;  %v1530_v40 = vsel %vm17003_vm1, %v1361_v29, 0.0  ;;  %v1240_v41 = vadd.f32 %v10861_v10, %v935_v62  ;;  %8889 = vmatprep.subr.bf16.mxu1 %v17010_v3 }
 0x19a   : > { %v1531_v54 = vadd.f32 %v1530_v40, %v1529_v1  ;;  %v939_v57 = vpop.f32.mrb[60].mxu0  ;;  %v1526_v61 = vadd.f32 %v1525_v25, %v1524_v50  ;;  %v1698_v40 = vld [vmem:[%s16993_s3 + $0xc0] sm:$0xff] }
 0x19b   : > { %v1362_v20 = vmax.f32 %v1240_v41, 0.0  ;;  %v940_v51 = vadd.f32 %v10831_v34, %v939_v57  ;;  %v941_v35 = vpop.f32.mrb[61].mxu0  ;;  %v1699_v41 = vld [vmem:[%s16993_s3 + $0xc8] sm:$0xff] }
 0x19c   : > { %8891 = vmatpush1.bf16.msra.mxu1 %v8890_v19  ;;  %v1527_v62 = vrot.slane %v1526_v61, 1  ;;  %v1700_v19 = vld [vmem:[%s16993_s3 + $0xd0] sm:$0xff] }
 0x19d   : > { %v1532_v10 = vsel %vm17003_vm1, %v1362_v20, 0.0  ;;  %v1245_v16 = vadd.f32 %v10871_v43, %v940_v51  ;;  %v1407_v60 = vadd.f32 %v1404_v28, %v1362_v20  ;;  %8892 = vmatprep.subr.bf16.mxu1 %v17010_v3  ;;  %v8899_v20 = vpack.c.bf16 %v1699_v41, %v1698_v40 }
 0x19e   : > { %v1533_v26 = vadd.f32 %v1532_v10, %v1531_v54  ;;  %v944_v6 = vpop.f32.mrb[62].mxu0  ;;  %v1528_v51 = vadd.f32 %v1527_v62, %v1526_v61 }
 0x19f   : > { %v1363_v55 = vmax.f32 %v1245_v16, 0.0  ;;  %v945_v42 = vadd.f32 %v10831_v34, %v944_v6  ;;  %v946_v43 = vpop.f32.mrb[63].mxu0 }
 0x1a0   : > { %v1534_v28 = vrot.slane %v1533_v26, 4  ;;  %8894 = vmatpush1.bf16.msra.mxu1 %v8893_v31 }
 0x1a1   : > { %v1408_v11 = vadd.f32 %v1405_v58, %v1363_v55  ;;  %v1250_v24 = vadd.f32 %v10866_v21, %v945_v42  ;;  %v1540_v12 = vsel %vm17003_vm1, %v1363_v55, 0.0  ;;  %8895 = vmatprep.subr.bf16.mxu1 %v17010_v3 }
 0x1a2   : > { %v1535_v32 = vadd.f32 %v1534_v28, %v1533_v26  ;;  %v949_v14 = vpop.f32.mrb[64].mxu0 }
 0x1a3   : > { %v1364_v45 = vmax.f32 %v1250_v24, 0.0  ;;  %v950_v58 = vadd.f32 %v10831_v34, %v949_v14  ;;  %v951_v33 = vpop.f32.mrb[65].mxu0 }
 0x1a4   : > { %v1536_v21 = vrot.slane %v1535_v32, 2  ;;  %8897 = vmatpush1.bf16.msra.mxu1 %v8896_v48 }
 0x1a5   : > { %v1541_v30 = vsel %vm17003_vm1, %v1364_v45, 0.0  ;;  %v1255_v49 = vadd.f32 %v10878_v56, %v950_v58  ;;  %v1409_v29 = vadd.f32 %v1406_v47, %v1364_v45  ;;  %8898 = vmatprep.subr.bf16.mxu1 %v17010_v3 }
 0x1a6   : > { %v1537_v36 = vadd.f32 %v1536_v21, %v1535_v32  ;;  %v1542_v13 = vadd.f32 %v1541_v30, %v1540_v12  ;;  %v954_v1 = vpop.f32.mrb[66].mxu0 }
 0x1a7   : > { %v1365_v50 = vmax.f32 %v1255_v49, 0.0  ;;  %v955_v54 = vadd.f32 %v10831_v34, %v954_v1  ;;  %v956_v56 = vpop.f32.mrb[67].mxu0 }
 0x1a8   : > { %v1538_v47 = vrot.slane %v1537_v36, 1  ;;  %8900 = vmatpush1.bf16.msra.mxu1 %v8899_v20 }
 0x1a9   : > { %v1410_v57 = vadd.f32 %v1407_v60, %v1365_v50  ;;  %v1543_v18 = vsel %vm17003_vm1, %v1365_v50, 0.0  ;;  %v1260_v38 = vadd.f32 %v10874_v52, %v955_v54  ;;  %v1701_v60 = vld [vmem:[%s16993_s3 + $0xd8] sm:$0xff]  ;;  %8901 = vmatprep.subr.bf16.mxu1 %v17010_v3 }
 0x1aa   : > { %v1539_v35 = vadd.f32 %v1538_v47, %v1537_v36  ;;  %v1544_v10 = vadd.f32 %v1543_v18, %v1542_v13  ;;  %v959_v16 = vpop.f32.mrb[68].mxu0  ;;  %v8902_v42 = vpack.c.bf16 %v1701_v60, %v1700_v19 }
 0x1ab   : > { %v1366_v25 = vmax.f32 %v1260_v38, 0.0  ;;  %v960_v26 = vadd.f32 %v10831_v34, %v959_v16  ;;  %v961_v52 = vpop.f32.mrb[69].mxu0 }
 0x1ac   : > { %v1620_v6 = vsel %vm17006_vm2, %v1528_v51, %v1539_v35  ;;  %v1545_v4 = vrot.slane %v1544_v10, 4  ;;  %8903 = vmatpush1.bf16.msra.mxu1 %v8902_v42 }
 0x1ad   : > { %v1265_v46 = vadd.f32 %v10884_v7, %v960_v26  ;;  %v1411_v55 = vadd.f32 %v1408_v11, %v1366_v25  ;;  %v1551_v32 = vsel %vm17003_vm1, %v1366_v25, 0.0  ;;  %8904 = vmatprep.subr.bf16.mxu1 %v17010_v3 }
 0x1ae   : > { %v1546_v43 = vadd.f32 %v1545_v4, %v1544_v10  ;;  %v964_v28 = vpop.f32.mrb[70].mxu0 }
 0x1af   : > { %v1367_v24 = vmax.f32 %v1265_v46, 0.0  ;;  %v965_v31 = vadd.f32 %v10831_v34, %v964_v28  ;;  %v966_v23 = vpop.f32.mrb[71].mxu0 }
 0x1b0   : > { %v1547_v8 = vrot.slane %v1546_v43, 2 }
 0x1b1   : > { %v1412_v61 = vadd.f32 %v1409_v29, %v1367_v24  ;;  %v1552_v14 = vsel %vm17003_vm1, %v1367_v24, 0.0  ;;  %v1270_v45 = vadd.f32 %v10881_v2, %v965_v31 }
 0x1b2   : > { %v1548_v7 = vadd.f32 %v1547_v8, %v1546_v43  ;;  %v1553_v11 = vadd.f32 %v1552_v14, %v1551_v32  ;;  %v969_v58 = vpop.f32.mrb[72].mxu0 }
 0x1b3   : > { %v1368_v33 = vmax.f32 %v1270_v45, 0.0  ;;  %v970_v21 = vadd.f32 %v10831_v34, %v969_v58  ;;  %v971_v48 = vpop.f32.mrb[73].mxu0 }
 0x1b4   : > { %v1549_v12 = vrot.slane %v1548_v7, 1 }
 0x1b5   : > { %v1554_v30 = vsel %vm17003_vm1, %v1368_v33, 0.0  ;;  %v1275_v49 = vadd.f32 %v10892_v22, %v970_v21  ;;  %v1413_v29 = vadd.f32 %v1410_v57, %v1368_v33 }
 0x1b6   : > { %v1550_v62 = vadd.f32 %v1549_v12, %v1548_v7  ;;  %v1555_v36 = vadd.f32 %v1554_v30, %v1553_v11  ;;  %v974_v13 = vpop.f32.mrb[74].mxu0 }
 0x1b7   : > { %v1369_v2 = vmax.f32 %v1275_v49, 0.0  ;;  %v975_v1 = vadd.f32 %v10831_v34, %v974_v13  ;;  %v976_v40 = vpop.f32.mrb[75].mxu0 }
 0x1b8   : > { %v1621_v41 = vsel %vm1608_vm3, %v1620_v6, %v1550_v62  ;;  %v1556_v50 = vrot.slane %v1555_v36, 4 }
 0x1b9   : > { %v1414_v54 = vadd.f32 %v1411_v55, %v1369_v2  ;;  %v1280_v56 = vadd.f32 %v10887_v17, %v975_v1  ;;  %v1562_v51 = vsel %vm17003_vm1, %v1369_v2, 0.0 }
 0x1ba   : > { %v1557_v47 = vadd.f32 %v1556_v50, %v1555_v36  ;;  %v979_v18 = vpop.f32.mrb[76].mxu0 }
 0x1bb   : > { %v1370_v38 = vmax.f32 %v1280_v56, 0.0  ;;  %v980_v20 = vadd.f32 %v10831_v34, %v979_v18  ;;  %v981_v22 = vpop.f32.mrb[77].mxu0 }
 0x1bc   : > { %v1558_v57 = vrot.slane %v1557_v47, 2 }
 0x1bd   : > { %v1563_v35 = vsel %vm17003_vm1, %v1370_v38, 0.0  ;;  %v1285_v10 = vadd.f32 %v10899_v37, %v980_v20  ;;  %v1415_v16 = vadd.f32 %v1412_v61, %v1370_v38 }
 0x1be   : > { %v1559_v19 = vadd.f32 %v1558_v57, %v1557_v47  ;;  %v1564_v60 = vadd.f32 %v1563_v35, %v1562_v51  ;;  %v984_v25 = vpop.f32.mrb[78].mxu0 }
 0x1bf   : > { %v1371_v26 = vmax.f32 %v1285_v10, 0.0  ;;  %v985_v17 = vadd.f32 %v10831_v34, %v984_v25  ;;  %v986_v52 = vpop.f32.mrb[79].mxu0  ;;  %v1703_v25 = vld [vmem:[%s16993_s3 + $0xe8] sm:$0xff] }
 0x1c0   : > { %v1560_v6 = vrot.slane %v1559_v19, 1 }
 0x1c1   : > { %v1416_v4 = vadd.f32 %v1413_v29, %v1371_v26  ;;  %v1565_v46 = vsel %vm17003_vm1, %v1371_v26, 0.0  ;;  %v1290_v55 = vadd.f32 %v10895_v53, %v985_v17 }
 0x1c2   : > { %v1561_v42 = vadd.f32 %v1560_v6, %v1559_v19  ;;  %v1566_v43 = vadd.f32 %v1565_v46, %v1564_v60  ;;  %v989_v28 = vpop.f32.mrb[80].mxu0  ;;  %v1702_v60 = vld [vmem:[%s16993_s3 + $0xe0] sm:$0xff] }
 0x1c3   : > { %v1372_v24 = vmax.f32 %v1290_v55, 0.0  ;;  %v990_v37 = vadd.f32 %v10831_v34, %v989_v28  ;;  %v991_v31 = vpop.f32.mrb[81].mxu0  ;;  %v8905_v52 = vpack.c.bf16 %v1703_v25, %v1702_v60  ;;  %v11164_v60 = vmul.f32 0.041666668, %v11033_v0 }
 0x1c4   : > { %v1567_v23 = vrot.slane %v1566_v43, 4  ;;  %v1622_v8 = vsel %vm1610_vm4, %v1621_v41, %v1561_v42 }
 0x1c5   : > { %v1295_v61 = vadd.f32 %v10906_v15, %v990_v37  ;;  %v1417_v32 = vadd.f32 %v1414_v54, %v1372_v24  ;;  %v1573_v21 = vsel %vm17003_vm1, %v1372_v24, 0.0  ;;  %v10232_v15 = vld [vmem:[%s16992_s2] ss:$0 sm:$0xff]  ;;  %8906 = vmatpush1.bf16.msra.mxu1 %v8905_v52 }
 0x1c6   : > { %v1568_v14 = vadd.f32 %v1567_v23, %v1566_v43  ;;  %v994_v45 = vpop.f32.mrb[82].mxu0  ;;  %8907 = vmatprep.subr.bf16.mxu1 %v17010_v3 }
 0x1c7   : > { %v1373_v7 = vmax.f32 %v1295_v61, 0.0  ;;  %v995_v11 = vadd.f32 %v10831_v34, %v994_v45  ;;  %v996_v58 = vpop.f32.mrb[83].mxu0 }
 0x1c8   : > { %v1569_v53 = vrot.slane %v1568_v14, 2 }
 0x1c9   : > { %v1418_v33 = vadd.f32 %v1415_v16, %v1373_v7  ;;  %v1574_v48 = vsel %vm17003_vm1, %v1373_v7, 0.0  ;;  %v1300_v12 = vadd.f32 %v10903_v9, %v995_v11 }
 0x1ca   : > { %v1570_v30 = vadd.f32 %v1569_v53, %v1568_v14  ;;  %v1575_v49 = vadd.f32 %v1574_v48, %v1573_v21  ;;  %v999_v29 = vpop.f32.mrb[84].mxu0 }
 0x1cb   : > { %v1374_v62 = vmax.f32 %v1300_v12, 0.0  ;;  %v1000_v36 = vadd.f32 %v10232_v15, %v999_v29  ;;  %v1001_v13 = vpop.f32.mrb[85].mxu0 }
 0x1cc   : > { %v1571_v34 = vrot.slane %v1570_v30, 1 }
 0x1cd   : > { %v1576_v2 = vsel %vm17003_vm1, %v1374_v62, 0.0  ;;  %v1305_v1 = vadd.f32 %v10914_v27, %v1000_v36  ;;  %v1419_v40 = vadd.f32 %v1416_v4, %v1374_v62 }
 0x1ce   : > { %v1572_v41 = vadd.f32 %v1571_v34, %v1570_v30  ;;  %v1577_v50 = vadd.f32 %v1576_v2, %v1575_v49  ;;  %v1004_v54 = vpop.f32.mrb[86].mxu0 }
 0x1cf   : > { %v1375_v9 = vmax.f32 %v1305_v1, 0.0  ;;  %v1005_v56 = vadd.f32 %v10232_v15, %v1004_v54  ;;  %v1006_v47 = vpop.f32.mrb[87].mxu0 }
 0x1d0   : > { %v1578_v18 = vrot.slane %v1577_v50, 4  ;;  %v1623_v38 = vsel %vm1612_vm5, %v1622_v8, %v1572_v41 }
 0x1d1   : > { %v1420_v20 = vadd.f32 %v1417_v32, %v1375_v9  ;;  %v1310_v22 = vadd.f32 %v10909_v39, %v1005_v56  ;;  %v1584_v27 = vsel %vm17003_vm1, %v1375_v9, 0.0 }
 0x1d2   : > { %v1579_v57 = vadd.f32 %v1578_v18, %v1577_v50  ;;  %v1009_v51 = vpop.f32.mrb[88].mxu0 }
 0x1d3   : > { %v1376_v35 = vmax.f32 %v1310_v22, 0.0  ;;  %v1010_v10 = vadd.f32 %v10232_v15, %v1009_v51  ;;  %v1011_v16 = vpop.f32.mrb[89].mxu0 }
 0x1d4   : > { %v1580_v19 = vrot.slane %v1579_v57, 2 }
 0x1d5   : > { %v1585_v26 = vsel %vm17003_vm1, %v1376_v35, 0.0  ;;  %v1315_v39 = vadd.f32 %v10921_v63, %v1010_v10  ;;  %v1421_v17 = vadd.f32 %v1418_v33, %v1376_v35 }
 0x1d6   : > { %v1581_v6 = vadd.f32 %v1580_v19, %v1579_v57  ;;  %v1586_v4 = vadd.f32 %v1585_v26, %v1584_v27  ;;  %v1014_v46 = vpop.f32.mrb[90].mxu0 }
 0x1d7   : > { %v1377_v55 = vmax.f32 %v1315_v39, 0.0  ;;  %v1015_v42 = vadd.f32 %v10232_v15, %v1014_v46  ;;  %v1016_v43 = vpop.f32.mrb[91].mxu0 }
 0x1d8   : > { %v1582_v28 = vrot.slane %v1581_v6, 1  ;;  %v1832_v43 = vld [vmem:[%s16995_s5 + $0x8] sm:$0xff] }
 0x1d9   : > { %v1422_v24 = vadd.f32 %v1419_v40, %v1377_v55  ;;  %v1587_v37 = vsel %vm17003_vm1, %v1377_v55, 0.0  ;;  %v1320_v31 = vadd.f32 %v10917_v59, %v1015_v42  ;;  %v1831_v42 = vld [vmem:[%s16995_s5] sm:$0xff] }
 0x1da   : > { %v1583_v23 = vadd.f32 %v1582_v28, %v1581_v6  ;;  %v1588_v8 = vadd.f32 %v1587_v37, %v1586_v4  ;;  %v1019_v63 = vpop.f32.mrb[92].mxu0  ;;  %v1809_v6 = vrot.slane %v11164_v60, 1  ;;  %v8908_v37 = vpack.c.bf16 %v1832_v43, %v1831_v42 }
 0x1db   : > { %v1378_v61 = vmax.f32 %v1320_v31, 0.0  ;;  %v1020_v32 = vadd.f32 %v10232_v15, %v1019_v63  ;;  %v1021_v14 = vpop.f32.mrb[93].mxu0  ;;  %v1834_v63 = vld [vmem:[%s16995_s5 + $0x18] sm:$0xff] }
 0x1dc   : > { %v1589_v45 = vrot.slane %v1588_v8, 4  ;;  %v1624_v7 = vsel %vm1614_vm6, %v1623_v38, %v1583_v23 }
 0x1dd   : > { %v1325_v11 = vadd.f32 %v10929_v5, %v1020_v32  ;;  %v1423_v58 = vadd.f32 %v1420_v20, %v1378_v61  ;;  %v1595_v29 = vsel %vm17003_vm1, %v1378_v61, 0.0 }
 0x1de   : > { %v1590_v53 = vadd.f32 %v1589_v45, %v1588_v8  ;;  %v1024_v33 = vpop.f32.mrb[94].mxu0  ;;  %v1833_v8 = vld [vmem:[%s16995_s5 + $0x10] sm:$0xff] }
 0x1df   : > { %v1379_v21 = vmax.f32 %v1325_v11, 0.0  ;;  %v1025_v48 = vadd.f32 %v10232_v15, %v1024_v33  ;;  %v11144_v12 = vmul.f32 0.0625, %v1423_v58  ;;  %v1026_v30 = vpop.f32.mrb[95].mxu0  ;;  %v8911_v14 = vpack.c.bf16 %v1834_v63, %v1833_v8  ;;  %v1836_v11 = vld [vmem:[%s16995_s5 + $0x28] sm:$0xff] }
 0x1e0   : > { %v1591_v59 = vrot.slane %v1590_v53, 2  ;;  %v1838_v30 = vld [vmem:[%s16995_s5 + $0x38] sm:$0xff]  ;;  %v1949_v8 = vlaneseq }
 0x1e1   : > { %v1424_v49 = vadd.f32 %v1421_v17, %v1379_v21  ;;  %v1596_v62 = vsel %vm17003_vm1, %v1379_v21, 0.0  ;;  %v1330_v36 = vadd.f32 %v10926_v44, %v1025_v48  ;;  %1648 = vrot.lane.b32.xlu0 %v11144_v12, %s10386_s30  ;;  %v1641_v1 = vrot.slane %v11144_v12, 1 }
 0x1e2   : > { %v1592_v5 = vadd.f32 %v1591_v59, %v1590_v53  ;;  %v1597_v13 = vadd.f32 %v1596_v62, %v1595_v29  ;;  %v1632_v40 = vrot.slane %v11144_v12, 7  ;;  %v1837_v12 = vld [vmem:[%s16995_s5 + $0x30] sm:$0xff]  ;;  %v1839_v29 = vld [vmem:[%s16995_s5 + $0x40] sm:$0xff]  ;;  %v1840_v62 = vld [vmem:[%s16995_s5 + $0x48] sm:$0xff]  ;;  %v11306_v63 = vshrl.u32 %v1949_v8, 7 }
 0x1e3   : > { %v1427_v34 = vmul.f32 0.0625, %v1424_v49  ;;  %v1380_v2 = vmax.f32 %v1330_v36, 0.0  ;;  %v8917_v49 = vpack.c.bf16 %v1838_v30, %v1837_v12  ;;  %v8920_v36 = vpack.c.bf16 %v1840_v62, %v1839_v29 }
 0x1e4   : > { %v1593_v15 = vrot.slane %v1592_v5, 1  ;;  %v1640_v31 = vsel %vm17006_vm2, 0.0, %v1632_v40  ;;  %v11328_v29 = vadd.s32 40, %v11306_v63 }
 0x1e5   : > { %v1633_v41 = vrot.slane %v1427_v34, 7  ;;  %v1425_v50 = vadd.f32 %v1422_v24, %v1380_v2  ;;  %v1598_v54 = vsel %vm17003_vm1, %v1380_v2, 0.0  ;;  %1650 = vrot.lane.b32.xlu1 %v1427_v34, %s10386_s30  ;;  %v1642_v44 = vrot.slane %v1427_v34, 1 }
 0x1e6   : > { %v1594_v9 = vadd.f32 %v1593_v15, %v1592_v5  ;;  %v1599_v56 = vadd.f32 %v1598_v54, %v1597_v13  ;;  %v1841_v5 = vld [vmem:[%s16995_s5 + $0x50] sm:$0xff]  ;;  %v1842_v13 = vld [vmem:[%s16995_s5 + $0x58] sm:$0xff] }
 0x1e7   : > { %v1428_v47 = vmul.f32 0.0625, %v1425_v50  ;;  %v1643_v18 = vsel %vm17007_vm8, %v1641_v1, %v1642_v44  ;;  %v1634_v38 = vsel %vm17006_vm2, %v1632_v40, %v1633_v41  ;;  %v8923_v1 = vpack.c.bf16 %v1842_v13, %v1841_v5  ;;  %v1843_v40 = vld [vmem:[%s16995_s5 + $0x60] sm:$0xff]  ;;  %v1845_v54 = vld [vmem:[%s16995_s5 + $0x70] sm:$0xff] }
 0x1e8   : > { %v1600_v20 = vrot.slane %v1599_v56, 4  ;;  %1658 = vrot.lane.b32.xlu0 %v1643_v18, %s10387_s13  ;;  %v1625_v22 = vsel %vm1616_vm7, %v1624_v7, %v1594_v9  ;;  %v1835_v7 = vld [vmem:[%s16995_s5 + $0x20] sm:$0xff] }
 0x1e9   : > { %v1644_v57 = vrot.slane %v1428_v47, 1  ;;  %v1635_v51 = vrot.slane %v1428_v47, 7  ;;  %v8914_v21 = vpack.c.bf16 %v1836_v11, %v1835_v7  ;;  %v2112_v7 = vadd.s32 16, %v11306_v63 }
 0x1ea   : > { %v1601_v35 = vadd.f32 %v1600_v20, %v1599_v56  ;;  %v1847_v56 = vld [vmem:[%s16995_s5 + $0x80] sm:$0xff]  ;;  %v1850_v20 = vld [vmem:[%s16995_s5 + $0x98] sm:$0xff]  ;;  %v2113_v11 = vadd.s32 24, %v11306_v63 }
 0x1eb   : > { %v1645_v10 = vsel %vm17007_vm8, %v1642_v44, %v1644_v57  ;;  %v1636_v16 = vsel %vm17006_vm2, %v1633_v41, %v1635_v51  ;;  %v1647_v25 = vsel %vm17007_vm8, %v1644_v57, 0.0  ;;  %v1844_v41 = vld [vmem:[%s16995_s5 + $0x68] sm:$0xff]  ;;  %v1846_v44 = vld [vmem:[%s16995_s5 + $0x78] sm:$0xff]  ;;  %v1851_v57 = vld [vmem:[%s16995_s5 + $0xa0] sm:$0xff] }
 0x1ec   : > { %v1602_v19 = vrot.slane %v1601_v35, 2  ;;  %1660 = vrot.lane.b32.xlu1 %v1645_v10, %s10387_s13  ;;  %1652 = vrot.lane.b32.xlu0 %v1428_v47, %s10386_s30  ;;  %v8926_v50 = vpack.c.bf16 %v1844_v41, %v1843_v40  ;;  %v8929_v9 = vpack.c.bf16 %v1846_v44, %v1845_v54  ;;  %v1848_v47 = vld [vmem:[%s16995_s5 + $0x88] sm:$0xff]  ;;  %v1853_v10 = vld [vmem:[%s16995_s5 + $0xb0] sm:$0xff] }
 0x1ed   : > { %v8932_v18 = vpack.c.bf16 %v1848_v47, %v1847_v56  ;;  %v1852_v51 = vld [vmem:[%s16995_s5 + $0xa8] sm:$0xff]  ;;  %v11338_v54 = vmul.u32.u64.low 2863311531, %v11328_v29  ;;  %v11339_v44 = vmul.u32.u64.high 2863311531, %v11328_v29, %v11338_v54 }
 0x1ee   : > { %v1603_v27 = vadd.f32 %v1602_v19, %v1601_v35  ;;  %v8938_v35 = vpack.c.bf16 %v1852_v51, %v1851_v57  ;;  %v11342_v57 = vadd.s32 48, %v11306_v63 }
 0x1f0   : > { %1662 = vrot.lane.b32.xlu1 %v1647_v25, %s10387_s13  ;;  %1814 = vrot.lane.b32.xlu0 %v11164_v60, %s10386_s30  ;;  %v1604_v26 = vrot.slane %v1603_v27, 1  ;;  %v1856_v25 = vld [vmem:[%s16995_s5 + $0xc8] sm:$0xff] }
 0x1f2   : > { %v1605_v39 = vadd.f32 %v1604_v26, %v1603_v27  ;;  %v1855_v27 = vld [vmem:[%s16995_s5 + $0xc0] sm:$0xff] }
 0x1f3   : > { %v8944_v26 = vpack.c.bf16 %v1856_v25, %v1855_v27 }
 0x1f4   : > { %v1626_v17 = vsel %vm17007_vm8, %v1625_v22, %v1605_v39  ;;  %v1857_v39 = vld [vmem:[%s16995_s5 + $0xd0] sm:$0xff] }
 0x1f5   : > { %v11171_v52 = vmul.f32 0.041666668, %v1626_v17  ;;  %v1858_v17 = vld [vmem:[%s16995_s5 + $0xd8] sm:$0xff] }
 0x1f7   : > { %1816 = vrot.lane.b32.xlu0 %v11171_v52, %s10386_s30  ;;  %v1810_v0 = vrot.slane %v11171_v52, 1 }
 0x1f9   : > { %v1811_v4 = vsel %vm17007_vm8, %v1809_v6, %v1810_v0  ;;  %v1813_v46 = vsel %vm17007_vm8, %v1810_v0, 0.0  ;;  %v8947_v6 = vpack.c.bf16 %v1858_v17, %v1857_v39  ;;  %v1859_v0 = vld [vmem:[%s16995_s5 + $0xe0] sm:$0xff] }
 0x1fa   : > { %1821 = vrot.lane.b32.xlu1 %v1811_v4, %s10387_s13  ;;  %v1860_v4 = vld [vmem:[%s16995_s5 + $0xe8] sm:$0xff] }
 0x1fe   : > { %1823 = vrot.lane.b32.xlu1 %v1813_v46, %s10387_s13  ;;  %v8950_v46 = vpack.c.bf16 %v1860_v4, %v1859_v0 }
 0x253   : > { %v1649_v55 = vpop.permute.xlu0 %1648 }
 0x254   : > { %v1667_v61 = vsel %vm17003_vm1, %v1640_v31, %v1649_v55 }
 0x257   : > { %v1651_v28 = vpop.permute.xlu1 %1650 }
 0x258   : > { %v1668_v58 = vsel %vm17003_vm1, %v1634_v38, %v1651_v28  ;;  %v1849_v38 = vld [vmem:[%s16995_s5 + $0x90] sm:$0xff] }
 0x259   : > { %v8935_v22 = vpack.c.bf16 %v1850_v20, %v1849_v38 }
 0x25a   : > { %v1659_v24 = vpop.permute.xlu0 %1658 }
 0x25b   : > { %v1671_v23 = vsel %vm17005_vm9, %v1649_v55, %v1659_v24  ;;  %v1803_v55 = vrot.slane %v11164_v60, 7 }
 0x25c   : > { %8255 = vmatprep.mubr.msk.f32.mxu1 %vm17004_vm10, %v1671_v23 }
 0x25d   : > { %1786 = vmatmul.mubr.f32.vlgmr.msra.gmra.mrb[48].mxu1 %v1667_v61  ;;  %v1808_v43 = vsel %vm17006_vm2, 0.0, %v1803_v55 }
 0x25e   : > { %8909 = vmatpush1.bf16.msra.mxu1 %v8908_v37  ;;  %v1661_v32 = vpop.permute.xlu1 %1660  ;;  %v1653_v53 = vpop.permute.xlu0 %1652 }
 0x25f   : > { %v1672_v45 = vsel %vm17005_vm9, %v1651_v28, %v1661_v32  ;;  %8910 = vmatprep.subr.bf16.mxu1 %v17010_v3  ;;  %v1669_v59 = vsel %vm17003_vm1, %v1636_v16, %v1653_v53  ;;  %v1854_v16 = vld [vmem:[%s16995_s5 + $0xb8] sm:$0xff]  ;;  %v1804_v28 = vrot.slane %v11171_v52, 7  ;;  %v2111_v52 = vadd.s32 8, %v11306_v63 }
 0x260   : > { %8256 = vmatprep.mubr.msk.f32.mxu1 %vm17004_vm10, %v1672_v45  ;;  %v8941_v19 = vpack.c.bf16 %v1854_v16, %v1853_v10  ;;  %v11310_v61 = vmul.u32.u64.low 2863311531, %v11306_v63  ;;  %v11311_v32 = vmul.u32.u64.high 2863311531, %v11306_v63, %v11310_v61  ;;  %v17008_v10 = vmov 0.0  }
 0x261   : > { %1791 = vmatmul.mubr.f32.gmra.mrb[50].mxu1 %v1668_v58  ;;  %v1805_v60 = vsel %vm17006_vm2, %v1803_v55, %v1804_v28 }
 0x262   : > { %8912 = vmatpush1.bf16.msra.mxu1 %v8911_v14  ;;  %v1663_v33 = vpop.permute.xlu1 %1662  ;;  %v1815_v34 = vpop.permute.xlu0 %1814  ;;  %v11313_v14 = vmul.u32.u64.low 2863311531, %v2111_v52  ;;  %v11314_v45 = vmul.u32.u64.high 2863311531, %v2111_v52, %v11313_v14  ;;  %v2164_v58 = vshrl.u32 %v11311_v32, 4 }
 0x263   : > { %v1673_v48 = vsel %vm17005_vm9, %v1653_v53, %v1663_v33  ;;  %8913 = vmatprep.subr.bf16.mxu1 %v17010_v3  ;;  %v1827_v24 = vsel %vm17003_vm1, %v1808_v43, %v1815_v34 }
 0x264   : > { %8257 = vmatprep.mubr.msk.f32.mxu1 %vm17004_vm10, %v1673_v48  ;;  %v2175_v53 = vshrl.u32 %v11314_v45, 4  ;;  %v11323_v48 = vmul.u32.u64.low 2863311531, %v2113_v11  ;;  %v11324_v12 = vmul.u32.u64.high 2863311531, %v2113_v11, %v11323_v48  ;;  %v2165_v30 = vmul.u32 24, %v2164_v58 }
 0x265   : > { %1796 = vmatmul.mubr.f32.gmra.mrb[52].mxu1 %v1669_v59 }
 0x266   : > { %8915 = vmatpush1.bf16.msra.mxu1 %v8914_v21  ;;  %v11320_v33 = vmul.u32.u64.low 2863311531, %v2112_v7  ;;  %v11321_v21 = vmul.u32.u64.high 2863311531, %v2112_v7, %v11320_v33  ;;  %v2176_v59 = vmul.u32 24, %v2175_v53  ;;  %v2166_v62 = vsub.s32 %v11306_v63, %v2165_v30 }
 0x267   : > { %8916 = vmatprep.subr.bf16.mxu1 %v17010_v3 }
 0x268   : > { %vm2686_vm11 = vcmp.ne.s32.totalorder %v2166_v62, 0  ;;  %vm2734_vm13 = vcmp.lt.s32.totalorder %v2166_v62, 0 }
 0x269   : > { %v1817_v37 = vpop.permute.xlu0 %1816  ;;  %vm2782_vm15 = vmand %vm2734_vm13, %vm2686_vm11 }
 0x26a   : > { %8918 = vmatpush1.bf16.msra.mxu1 %v8917_v49  ;;  %v1828_v23 = vsel %vm17003_vm1, %v1805_v60, %v1817_v37  ;;  %v2114_v49 = vadd.s32 32, %v11306_v63  ;;  %v11365_v60 = vsub.s32 1, %v11306_v63 }
 0x26b   : > { %8919 = vmatprep.subr.bf16.mxu1 %v17010_v3 }
 0x26c   : > { %v1822_v2 = vpop.permute.xlu1 %1821  ;;  %v11331_v5 = vmul.u32.u64.low 2863311531, %v2114_v49  ;;  %v11332_v13 = vmul.u32.u64.high 2863311531, %v2114_v49, %v11331_v5  ;;  %17529 = vst [vmem:[#allocation5_spill] sm:$0xff] %v11365_v60 }
 0x26d   : > { %v1829_v15 = vsel %vm17005_vm9, %v1815_v34, %v1822_v2  ;;  %v2186_v34 = vshrl.u32 %v11321_v21, 4  ;;  %v2197_v2 = vshrl.u32 %v11324_v12, 4 }
 0x26e   : > { %8921 = vmatpush1.bf16.msra.mxu1 %v8920_v36  ;;  %8259 = vmatprep.mubr.msk.f32.mxu1 %vm17004_vm10, %v1829_v15  ;;  %v2177_v36 = vsub.s32 %v2111_v52, %v2176_v59  ;;  %v2830_v15 = vadd.s32 24, %v2166_v62 }
 0x26f   : > { %8922 = vmatprep.subr.bf16.mxu1 %v17010_v3  ;;  %v2187_v40 = vmul.u32 24, %v2186_v34  ;;  %v2198_v41 = vmul.u32 24, %v2197_v2 }
 0x270   : > { %v1824_v42 = vpop.permute.xlu1 %1823  ;;  %vm2687_vm12 = vcmp.ne.s32.totalorder %v2177_v36, 0  ;;  %vm2735_vm14 = vcmp.lt.s32.totalorder %v2177_v36, 0 }
 0x271   : > { %v1830_v31 = vsel %vm17005_vm9, %v1817_v37, %v1824_v42  ;;  %vm2783_vm3 = vmand %vm2735_vm14, %vm2687_vm12  ;;  %v2188_v47 = vsub.s32 %v2112_v7, %v2187_v40  ;;  %v2219_v42 = vshrl.u32 %v11339_v44, 4 }
 0x272   : > { %8924 = vmatpush1.bf16.msra.mxu1 %v8923_v1  ;;  %v2831_v1 = vadd.s32 24, %v2177_v36 }
 0x273   : > { %8925 = vmatprep.subr.bf16.mxu1 %v17010_v3  ;;  %vm2688_vm4 = vcmp.ne.s32.totalorder %v2188_v47, 0  ;;  %vm2736_vm6 = vcmp.lt.s32.totalorder %v2188_v47, 0  ;;  %v2832_v51 = vadd.s32 24, %v2188_v47 }
 0x274   : > { %v2879_v56 = vsel %vm2783_vm3, %v2831_v1, %v2177_v36  ;;  %vm2784_vm14 = vmand %vm2736_vm6, %vm2688_vm4  ;;  %v11406_v1 = vadd.s32 80, %v11306_v63 }
 0x275   : > { %v3582_v20 = vadd.s32 1, %v2879_v56  ;;  %v2880_v39 = vsel %vm2784_vm14, %v2832_v51, %v2188_v47  ;;  %v3107_v28 = vadd.s32 4294967295, %v2879_v56 }
 0x276   : > { %8927 = vmatpush1.bf16.msra.mxu1 %v8926_v50  ;;  %v2208_v50 = vshrl.u32 %v11332_v13, 4  ;;  %v3583_v4 = vadd.s32 1, %v2880_v39  ;;  %v3108_v37 = vadd.s32 4294967295, %v2880_v39 }
 0x277   : > { %8928 = vmatprep.subr.bf16.mxu1 %v17010_v3  ;;  %vm3630_vm12 = vcmp.ge.s32.totalorder %v3582_v20, 0  ;;  %vm3678_vm0 = vcmp.lt.s32.totalorder %v3582_v20, 24 }
 0x278   : > { %vm3631_vm4 = vcmp.ge.s32.totalorder %v3583_v4, 0  ;;  %vm3679_vm6 = vcmp.lt.s32.totalorder %v3583_v4, 24 }
 0x27a   : > { %8930 = vmatpush1.bf16.msra.mxu1 %v8929_v9  ;;  %v2878_v9 = vsel %vm2782_vm15, %v2830_v15, %v2166_v62  ;;  %vm3726_vm15 = vmand %vm3630_vm12, %vm3678_vm0  ;;  %v2119_v15 = vadd.s32 72, %v11306_v63 }
 0x27b   : > { %8931 = vmatprep.subr.bf16.mxu1 %v17010_v3  ;;  %v3581_v38 = vadd.s32 1, %v2878_v9  ;;  %v11352_v25 = vsel %vm3726_vm15, 1.0, %v17008_v10  ;;  %v3106_v17 = vadd.s32 4294967295, %v2878_v9  ;;  %vm3727_vm12 = vmand %vm3631_vm4, %vm3679_vm6  ;;  %vm3155_vm15 = vcmp.ge.s32.totalorder %v3107_v28, 0 }
 0x27c   : > { %17527 = vst [vmem:[#allocation3_spill] sm:$0xff] %v11352_v25  ;;  %v11371_v61 = vsel %vm3727_vm12, 1.0, %v17008_v10  ;;  %vm3204_vm4 = vcmp.lt.s32.totalorder %v3108_v37, 24  ;;  %v11419_v9 = vsub.s32 2, %v11306_v63 }
 0x27d   : > { %vm3629_vm11 = vcmp.ge.s32.totalorder %v3581_v38, 0  ;;  %vm3677_vm13 = vcmp.lt.s32.totalorder %v3581_v38, 24  ;;  %vm3154_vm0 = vcmp.ge.s32.totalorder %v3106_v17, 0  ;;  %17531 = vst [vmem:[#allocation7_spill] sm:$0xff] %v11371_v61 }
 0x27e   : > { %8933 = vmatpush1.bf16.msra.mxu1 %v8932_v18  ;;  %v2199_v18 = vsub.s32 %v2113_v11, %v2198_v41  ;;  %vm3725_vm1 = vmand %vm3629_vm11, %vm3677_vm13  ;;  %17543 = vst [vmem:[#allocation11_spill] sm:$0xff] %v11419_v9 }
 0x27f   : > { %8934 = vmatprep.subr.bf16.mxu1 %v17010_v3  ;;  %v11345_v16 = vsel %vm3725_vm1, 1.0, %v17008_v10  ;;  %vm3202_vm1 = vcmp.lt.s32.totalorder %v3106_v17, 24  ;;  %v11444_v39 = vmul.u32.u64.low 2863311531, %v11406_v1  ;;  %v11445_v17 = vmul.u32.u64.high 2863311531, %v11406_v1, %v11444_v39 }
 0x280   : > { %vm2689_vm5 = vcmp.ne.s32.totalorder %v2199_v18, 0  ;;  %vm2737_vm7 = vcmp.lt.s32.totalorder %v2199_v18, 0  ;;  %17526 = vst [vmem:[#allocation2_spill] sm:$0xff] %v11345_v16 }
 0x281   : > { %vm2785_vm3 = vmand %vm2737_vm7, %vm2689_vm5 }
 0x282   : > { %8936 = vmatpush1.bf16.msra.mxu1 %v8935_v22  ;;  %v2209_v22 = vmul.u32 24, %v2208_v50  ;;  %vm3250_vm5 = vmand %vm3154_vm0, %vm3202_vm1  ;;  %vm3156_vm1 = vcmp.ge.s32.totalorder %v3108_v37, 0 }
 0x283   : > { %8937 = vmatprep.subr.bf16.mxu1 %v17010_v3  ;;  %v11368_v8 = vsel %vm3250_vm5, 1.0, %v17008_v10 }
 0x284   : > { %17530 = vst [vmem:[#allocation6_spill] sm:$0xff] %v11368_v8 }
 0x286   : > { %8939 = vmatpush1.bf16.msra.mxu1 %v8938_v35  ;;  %v2833_v35 = vadd.s32 24, %v2199_v18 }
 0x287   : > { %8940 = vmatprep.subr.bf16.mxu1 %v17010_v3 }
 0x288   : > { %v2881_v0 = vsel %vm2785_vm3, %v2833_v35, %v2199_v18  ;;  %vm3203_vm3 = vcmp.lt.s32.totalorder %v3107_v28, 24 }
 0x289   : > { %v3584_v55 = vadd.s32 1, %v2881_v0  ;;  %v3109_v32 = vadd.s32 4294967295, %v2881_v0 }
 0x28a   : > { %8942 = vmatpush1.bf16.msra.mxu1 %v8941_v19  ;;  %v11348_v19 = vmul.u32.u64.low 2863311531, %v11342_v57  ;;  %v11349_v27 = vmul.u32.u64.high 2863311531, %v11342_v57, %v11348_v19 }
 0x28b   : > { %8943 = vmatprep.subr.bf16.mxu1 %v17010_v3  ;;  %vm3632_vm7 = vcmp.ge.s32.totalorder %v3584_v55, 0  ;;  %vm3680_vm11 = vcmp.lt.s32.totalorder %v3584_v55, 24  ;;  %vm3157_vm12 = vcmp.ge.s32.totalorder %v3109_v32, 0 }
 0x28c   : > { %vm3728_vm0 = vmand %vm3632_vm7, %vm3680_vm11  ;;  %v2230_v45 = vshrl.u32 %v11349_v27, 4 }
 0x28d   : > { %v11383_v21 = vsel %vm3728_vm0, 1.0, %v17008_v10 }
 0x28e   : > { %8945 = vmatpush1.bf16.msra.mxu1 %v8944_v26  ;;  %v3869_v26 = vmul.f32 0.0, %v11345_v16  ;;  %17534 = vst [vmem:[#allocation8_spill] sm:$0xff] %v11383_v21  ;;  %v2231_v30 = vmul.u32 24, %v2230_v45 }
 0x28f   : > { %8946 = vmatprep.subr.bf16.mxu1 %v17010_v3 }
 0x290   : > { %v2232_v36 = vsub.s32 %v11342_v57, %v2231_v30  ;;  %v11489_v30 = vadd.s32 120, %v11306_v63 }
 0x292   : > { %8948 = vmatpush1.bf16.msra.mxu1 %v8947_v6  ;;  %v3870_v6 = vmul.f32 0.0, %v11352_v25  ;;  %v2836_v54 = vadd.s32 24, %v2232_v36 }
 0x293   : > { %8949 = vmatprep.subr.bf16.mxu1 %v17010_v3 }
 0x294   : > { %v9447_v43 = vpack.i.bf16 %v3870_v6, %v3869_v26 }
 0x296   : > { %8951 = vmatpush1.bf16.msra.mxu1 %v8950_v46  ;;  %v2210_v46 = vsub.s32 %v2114_v49, %v2209_v22  ;;  %9448 = vrot.lane.b32.xlu1 %v9447_v43, %s10387_s13  ;;  %v11388_v49 = vadd.s32 64, %v11306_v63  ;;  %v11435_v22 = vmul.u32.u64.low 2863311531, %v2119_v15  ;;  %v11436_v57 = vmul.u32.u64.high 2863311531, %v2119_v15, %v11435_v22 }
 0x297   : > { %8952 = vmatprep.subr.bf16.mxu1 %v17010_v3 }
 0x298   : > { %vm2690_vm13 = vcmp.ne.s32.totalorder %v2210_v46, 0  ;;  %vm2738_vm14 = vcmp.lt.s32.totalorder %v2210_v46, 0  ;;  %v2834_v52 = vadd.s32 24, %v2210_v46 }
 0x299   : > { %1939 = vmatmul.mubr.f32.vlgmr.msra.gmra.mrb[54].mxu1 %v1827_v24  ;;  %v11360_v24 = vsub.s32 0, %v11306_v63  ;;  %vm2786_vm6 = vmand %vm2738_vm14, %vm2690_vm13  ;;  %vm3205_vm13 = vcmp.lt.s32.totalorder %v3109_v32, 24  ;;  %v11422_v56 = vmul.u32.u64.low 2863311531, %v11388_v49  ;;  %v11423_v47 = vmul.u32.u64.high 2863311531, %v11388_v49, %v11422_v56 }
 0x29a   : > { %8260 = vmatprep.mubr.msk.f32.mxu1 %vm17004_vm10, %v1830_v31  ;;  %v2117_v31 = vadd.s32 56, %v11306_v63  ;;  %vm11378_vm10 = vmand %vm3155_vm15, %vm3203_vm3  ;;  %v2882_v33 = vsel %vm2786_vm6, %v2834_v52, %v2210_v46  ;;  %v2121_v46 = vadd.s32 88, %v11306_v63  ;;  %v11477_v52 = vadd.s32 104, %v11306_v63 }
 0x29b   : > { %17528 = vst [vmem:[#allocation4_spill] sm:$0xff] %v11360_v24  ;;  %v3110_v48 = vadd.s32 4294967295, %v2882_v33  ;;  %v3585_v12 = vadd.s32 1, %v2882_v33  ;;  %vm3252_vm14 = vmand %vm3156_vm1, %vm3204_vm4  ;;  %v11395_v13 = vsel %vm11378_vm10, 1.0, %v17008_v10  ;;  %vm2692_vm10 = vcmp.ne.s32.totalorder %v2232_v36, 0 }
 0x29c   : > { %v11375_v7 = vmul.u32.u64.low 2863311531, %v2117_v31  ;;  %v11376_v11 = vmul.u32.u64.high 2863311531, %v2117_v31, %v11375_v7  ;;  %17535 = vst [vmem:[#allocation9_spill] sm:$0xff] %v11395_v13  ;;  %vm11397_vm1 = vmand %vm3157_vm12, %vm3205_vm13  ;;  %v11402_v2 = vsel %vm3252_vm14, 1.0, %v17008_v10  ;;  %vm2740_vm14 = vcmp.lt.s32.totalorder %v2232_v36, 0 }
 0x29d   : > { %1944 = vmatmul.mubr.f32.gmra.mrb[56].mxu1 %v1828_v23  ;;  %v2220_v23 = vmul.u32 24, %v2219_v42  ;;  %vm3158_vm15 = vcmp.ge.s32.totalorder %v3110_v48, 0  ;;  %vm3206_vm3 = vcmp.lt.s32.totalorder %v3110_v48, 24  ;;  %vm3633_vm6 = vcmp.ge.s32.totalorder %v3585_v12, 0  ;;  %17538 = vst [vmem:[#allocation10_spill] sm:$0xff] %v11402_v2  ;;  %vm2788_vm9 = vmand %vm2740_vm14, %vm2692_vm10 }
 0x29e   : > { %vm3681_vm0 = vcmp.lt.s32.totalorder %v3585_v12, 24  ;;  %v2241_v5 = vshrl.u32 %v11376_v11, 4  ;;  %v11428_v18 = vsel %vm11397_vm1, 1.0, %v17008_v10  ;;  %v2884_v20 = vsel %vm2788_vm9, %v2836_v54, %v2232_v36 }
 0x29f   : > { %v2221_v14 = vsub.s32 %v11328_v29, %v2220_v23  ;;  %vm11414_vm13 = vmand %vm3633_vm6, %vm3681_vm0  ;;  %17544 = vst [vmem:[#allocation12_spill] sm:$0xff] %v11428_v18  ;;  %v3587_v27 = vadd.s32 1, %v2884_v20  ;;  %v3112_v26 = vadd.s32 4294967295, %v2884_v20  ;;  %v2252_v37 = vshrl.u32 %v11423_v47, 4 }
 0x2a0   : > { %v2242_v41 = vmul.u32 24, %v2241_v5  ;;  %v11455_v0 = vsel %vm11414_vm13, 1.0, %v17008_v10  ;;  %v11474_v23 = vadd.s32 96, %v11306_v63  ;;  %v2274_v7 = vshrl.u32 %v11445_v17, 4 }
 0x2a1   : > { %vm2691_vm5 = vcmp.ne.s32.totalorder %v2221_v14, 0  ;;  %vm2739_vm7 = vcmp.lt.s32.totalorder %v2221_v14, 0  ;;  %v2835_v53 = vadd.s32 24, %v2221_v14  ;;  %17550 = vst [vmem:[#allocation14_spill] sm:$0xff] %v11455_v0  ;;  %vm3635_vm9 = vcmp.ge.s32.totalorder %v3587_v27, 0 }
 0x2a2   : > { %vm2787_vm11 = vmand %vm2739_vm7, %vm2691_vm5  ;;  %v2243_v44 = vsub.s32 %v2117_v31, %v2242_v41  ;;  %v2263_v31 = vshrl.u32 %v11436_v57, 4  ;;  %v11481_v11 = vmul.u32.u64.low 2863311531, %v2121_v46  ;;  %v11482_v58 = vmul.u32.u64.high 2863311531, %v2121_v46, %v11481_v11 }
 0x2a3   : > { %v2883_v59 = vsel %vm2787_vm11, %v2835_v53, %v2221_v14  ;;  %vm11408_vm7 = vmand %vm3158_vm15, %vm3206_vm3  ;;  %v2253_v14 = vmul.u32 24, %v2252_v37  ;;  %v11485_v53 = vadd.s32 112, %v11306_v63  ;;  %v2275_v12 = vmul.u32 24, %v2274_v7 }
 0x2a4   : > { %v3111_v29 = vadd.s32 4294967295, %v2883_v59  ;;  %v3586_v62 = vadd.s32 1, %v2883_v59  ;;  %vm2693_vm6 = vcmp.ne.s32.totalorder %v2243_v44, 0  ;;  %vm2741_vm0 = vcmp.lt.s32.totalorder %v2243_v44, 0 }
 0x2a5   : > { %v2837_v35 = vadd.s32 24, %v2243_v44  ;;  %vm2789_vm1 = vmand %vm2741_vm0, %vm2693_vm6  ;;  %v11450_v6 = vsel %vm11408_vm7, 1.0, %v17008_v10  ;;  %vm3208_vm7 = vcmp.lt.s32.totalorder %v3112_v26, 24  ;;  %v2264_v45 = vmul.u32 24, %v2263_v31 }
 0x2a6   : > { %vm3159_vm4 = vcmp.ge.s32.totalorder %v3111_v29, 0  ;;  %vm3207_vm5 = vcmp.lt.s32.totalorder %v3111_v29, 24  ;;  %vm3634_vm11 = vcmp.ge.s32.totalorder %v3586_v62, 0  ;;  %vm3682_vm12 = vcmp.lt.s32.totalorder %v3586_v62, 24  ;;  %17549 = vst [vmem:[#allocation13_spill] sm:$0xff] %v11450_v6 }
 0x2a7   : > { %vm11431_vm15 = vmand %vm3159_vm4, %vm3207_vm5  ;;  %v2885_v4 = vsel %vm2789_vm1, %v2837_v35, %v2243_v44  ;;  %vm3683_vm4 = vcmp.lt.s32.totalorder %v3587_v27, 24  ;;  %vm3160_vm5 = vcmp.ge.s32.totalorder %v3112_v26, 0  ;;  %v2254_v33 = vsub.s32 %v11388_v49, %v2253_v14 }
 0x2a8   : > { %vm11438_vm3 = vmand %vm3634_vm11, %vm3682_vm12  ;;  %v11461_v55 = vsel %vm11431_vm15, 1.0, %v17008_v10  ;;  %v11468_v43 = vadd.s32 1, %v2885_v4  ;;  %v3113_v32 = vadd.s32 4294967295, %v2885_v4  ;;  %v2265_v48 = vsub.s32 %v2119_v15, %v2264_v45 }
 0x2a9   : > { %v11466_v42 = vsel %vm11438_vm3, 1.0, %v17008_v10  ;;  %v11492_v59 = vmul.u32.u64.low 2863311531, %v11474_v23  ;;  %v11493_v29 = vmul.u32.u64.high 2863311531, %v11474_v23, %v11492_v59  ;;  %vm2694_vm11 = vcmp.ne.s32.totalorder %v2254_v33, 0  ;;  %vm3731_vm6 = vmand %vm3635_vm9, %vm3683_vm4 }
 0x2aa   : > { %17551 = vst [vmem:[#allocation15_spill] sm:$0xff] %v11466_v42  ;;  %vm3636_vm10 = vcmp.ge.s32.totalorder %v11468_v43, 0  ;;  %v11496_v62 = vmul.u32.u64.low 2863311531, %v11477_v52  ;;  %v11497_v36 = vmul.u32.u64.high 2863311531, %v11477_v52, %v11496_v62  ;;  %vm2695_vm12 = vcmp.ne.s32.totalorder %v2265_v48, 0 }
 0x2ab   : > { %vm2742_vm13 = vcmp.lt.s32.totalorder %v2254_v33, 0  ;;  %vm2743_vm14 = vcmp.lt.s32.totalorder %v2265_v48, 0  ;;  %v2838_v5 = vadd.s32 24, %v2254_v33  ;;  %v2839_v49 = vadd.s32 24, %v2265_v48 }
 0x2ac   : > { %vm2790_vm15 = vmand %vm2742_vm13, %vm2694_vm11  ;;  %v2276_v34 = vsub.s32 %v11406_v1, %v2275_v12  ;;  %v2285_v15 = vshrl.u32 %v11482_v58, 4  ;;  %v11502_v40 = vmul.u32.u64.low 2863311531, %v11485_v53  ;;  %v11503_v41 = vmul.u32.u64.high 2863311531, %v11485_v53, %v11502_v40 }
 0x2ad   : > { %vm2791_vm3 = vmand %vm2743_vm14, %vm2695_vm12  ;;  %v11506_v50 = vmul.u32.u64.low 2863311531, %v11489_v30  ;;  %v11507_v54 = vmul.u32.u64.high 2863311531, %v11489_v30, %v11506_v50  ;;  %v2886_v44 = vsel %vm2790_vm15, %v2838_v5, %v2254_v33  ;;  %vm3684_vm1 = vcmp.lt.s32.totalorder %v11468_v43, 24 }
 0x2ae   : > { %v2887_v56 = vsel %vm2791_vm3, %v2839_v49, %v2265_v48  ;;  %v2286_v47 = vmul.u32 24, %v2285_v15  ;;  %vm2696_vm0 = vcmp.ne.s32.totalorder %v2276_v34, 0  ;;  %vm3256_vm11 = vmand %vm3160_vm5, %vm3208_vm7  ;;  %v3114_v1 = vadd.s32 4294967295, %v2886_v44 }
 0x2af   : > { %v3115_v38 = vadd.s32 4294967295, %v2887_v56  ;;  %v3589_v20 = vadd.s32 1, %v2886_v44  ;;  %vm2744_vm12 = vcmp.lt.s32.totalorder %v2276_v34, 0  ;;  %v2840_v57 = vadd.s32 24, %v2276_v34  ;;  %vm11526_vm15 = vmand %vm3636_vm10, %vm3684_vm1 }
 0x2b0   : > { %v2287_v22 = vsub.s32 %v2121_v46, %v2286_v47  ;;  %v2296_v51 = vshrl.u32 %v11493_v29, 4  ;;  %v11516_v35 = vsel %vm3731_vm6, 1.0, %v17008_v10  ;;  %vm3161_vm9 = vcmp.ge.s32.totalorder %v3113_v32, 0  ;;  %vm2792_vm13 = vmand %vm2744_vm12, %vm2696_vm0 }
 0x2b1   : > { %17552 = vst [vmem:[#allocation16_spill] sm:$0xff] %v11516_v35  ;;  %vm3209_vm4 = vcmp.lt.s32.totalorder %v3113_v32, 24  ;;  %v3590_v27 = vadd.s32 1, %v2887_v56  ;;  %v11520_v39 = vsel %vm3256_vm11, 1.0, %v17008_v10  ;;  %vm3162_vm5 = vcmp.ge.s32.totalorder %v3114_v1, 0 }
 0x2b2   : > { %vm3163_vm7 = vcmp.ge.s32.totalorder %v3115_v38, 0  ;;  %vm3210_vm14 = vcmp.lt.s32.totalorder %v3114_v1, 24  ;;  %vm3211_vm3 = vcmp.lt.s32.totalorder %v3115_v38, 24  ;;  %vm2697_vm6 = vcmp.ne.s32.totalorder %v2287_v22, 0  ;;  %vm11531_vm0 = vmand %vm3161_vm9, %vm3209_vm4 }
 0x2b3   : > { %vm2745_vm2 = vcmp.lt.s32.totalorder %v2287_v22, 0  ;;  %v2841_v17 = vadd.s32 24, %v2287_v22  ;;  %vm3637_vm11 = vcmp.ge.s32.totalorder %v3589_v20, 0  ;;  %v2888_v46 = vsel %vm2792_vm13, %v2840_v57, %v2276_v34  ;;  %vm11537_vm12 = vmand %vm3162_vm5, %vm3210_vm14 }
 0x2b4   : > { %v2297_v37 = vmul.u32 24, %v2296_v51  ;;  %v2307_v31 = vshrl.u32 %v11497_v36, 4  ;;  %v17557_v43 = vmov 0  ;;  %vm3638_vm10 = vcmp.ge.s32.totalorder %v3590_v27, 0  ;;  %vm2793_vm9 = vmand %vm2745_vm2, %vm2697_vm6 }
 0x2b5   : > { %v17558_v43 = vsel %vm11537_vm12, 4294967295, %v17557_v43  ;;  %vm3685_vm1 = vcmp.lt.s32.totalorder %v3589_v20, 24  ;;  %v3591_v14 = vadd.s32 1, %v2888_v46  ;;  %v3116_v45 = vadd.s32 4294967295, %v2888_v46  ;;  %vm11546_vm4 = vmand %vm3163_vm7, %vm3211_vm3 }
 0x2b6   : > { %vm3686_vm8 = vcmp.lt.s32.totalorder %v3590_v27, 24  ;;  %v2298_v32 = vsub.s32 %v11474_v23, %v2297_v37  ;;  %v2308_v7 = vmul.u32 24, %v2307_v31  ;;  %v2318_v11 = vshrl.u32 %v11503_v41, 4  ;;  %vm11552_vm14 = vmand %vm3637_vm11, %vm3685_vm1 }
 0x2b7   : > { %v17559_v58 = vmov 0  ;;  %v2889_v33 = vsel %vm2793_vm9, %v2841_v17, %v2287_v22  ;;  %vm3639_vm13 = vcmp.ge.s32.totalorder %v3591_v14, 0  ;;  %vm3687_vm5 = vcmp.lt.s32.totalorder %v3591_v14, 24  ;;  %vm11559_vm7 = vmand %vm3638_vm10, %vm3686_vm8 }
 0x2b8   : > { %v17560_v58 = vsel %vm11546_vm4, 4294967295, %v17559_v58  ;;  %v2329_v48 = vshrl.u32 %v11507_v54, 4  ;;  %v17561_v12 = vmov 0  ;;  %v3592_v23 = vadd.s32 1, %v2889_v33  ;;  %vm11575_vm10 = vmand %vm3639_vm13, %vm3687_vm5 }
 0x2b9   : > { %v17562_v12 = vsel %vm11552_vm14, 4294967295, %v17561_v12  ;;  %v3117_v59 = vadd.s32 4294967295, %v2889_v33  ;;  %v2309_v29 = vsub.s32 %v11477_v52, %v2308_v7  ;;  %v17563_v62 = vmov 0 }
 0x2ba   : > { %v17564_v62 = vsel %vm11559_vm7, 4294967295, %v17563_v62  ;;  %vm2698_vm6 = vcmp.ne.s32.totalorder %v2298_v32, 0  ;;  %vm2746_vm9 = vcmp.lt.s32.totalorder %v2298_v32, 0  ;;  %v2842_v36 = vadd.s32 24, %v2298_v32 }
 0x2bb   : > { %v11566_v5 = vsel %vm11526_vm15, 1.0, %v17008_v10  ;;  %v11571_v49 = vsel %vm11531_vm0, 1.0, %v17008_v10  ;;  %vm3640_vm11 = vcmp.ge.s32.totalorder %v3592_v23, 0  ;;  %vm3688_vm1 = vcmp.lt.s32.totalorder %v3592_v23, 24  ;;  %vm2794_vm8 = vmand %vm2746_vm9, %vm2698_vm6 }
 0x2bc   : > { %17565 = vst [vmem:[#allocation17_spill] sm:$0xff] %v11566_v5  ;;  %17566 = vst [vmem:[#allocation18_spill] sm:$0xff] %v11571_v49  ;;  %vm3165_vm2 = vcmp.ge.s32.totalorder %v3117_v59, 0  ;;  %vm2699_vm3 = vcmp.ne.s32.totalorder %v2309_v29, 0  ;;  %vm2747_vm7 = vcmp.lt.s32.totalorder %v2309_v29, 0  ;;  %v2843_v34 = vadd.s32 24, %v2309_v29 }
 0x2bd   : > { %vm3213_vm15 = vcmp.lt.s32.totalorder %v3117_v59, 24  ;;  %vm17569_vm14 = vcmp.lt.s32.totalorder %v3116_v45, 24  ;;  %vm17570_vm4 = vcmp.ge.s32.totalorder %v3116_v45, 0  ;;  %v2890_v40 = vsel %vm2794_vm8, %v2842_v36, %v2298_v32  ;;  %vm2795_vm5 = vmand %vm2747_vm7, %vm2699_vm3 }
 0x2be   : > { %vm11581_vm12 = vmand %vm17570_vm4, %vm17569_vm14  ;;  %v2319_v41 = vmul.u32 24, %v2318_v11  ;;  %v2330_v50 = vmul.u32 24, %v2329_v48  ;;  %vm17573_vm0 = vnez %v17558_v43  ;;  %vm17575_vm13 = vnez %v17560_v58 }
 0x2bf   : > { %v11588_v54 = vsel %vm17573_vm0, 1.0, %v17008_v10  ;;  %v11593_v44 = vsel %vm17575_vm13, 1.0, %v17008_v10  ;;  %v3118_v56 = vadd.s32 4294967295, %v2890_v40  ;;  %v3593_v47 = vadd.s32 1, %v2890_v40  ;;  %vm11602_vm14 = vmand %vm3640_vm11, %vm3688_vm1 }
 0x2c0   : > { %17574 = vst [vmem:[#allocation19_spill] sm:$0xff] %v11588_v54  ;;  %17576 = vst [vmem:[#allocation20_spill] sm:$0xff] %v11593_v44  ;;  %vm17577_vm4 = vnez %v17562_v12  ;;  %v2891_v20 = vsel %vm2795_vm5, %v2843_v34, %v2309_v29  ;;  %v2320_v22 = vsub.s32 %v11485_v53, %v2319_v41  ;;  %v2331_v57 = vsub.s32 %v11489_v30, %v2330_v50  ;;  %v5659_v30 = vld [vmem:[%s16997_s7 + $0x8] sm:$0xff] }
 0x2c1   : > { %v11598_v1 = vsel %vm17577_vm4, 1.0, %v17008_v10  ;;  %vm11610_vm7 = vmand %vm3165_vm2, %vm3213_vm15  ;;  %v17581_v51 = vmov 0  ;;  %v3119_v27 = vadd.s32 4294967295, %v2891_v20  ;;  %vm3166_vm3 = vcmp.ge.s32.totalorder %v3118_v56, 0 }
 0x2c2   : > { %17578 = vst [vmem:[#allocation21_spill] sm:$0xff] %v11598_v1  ;;  %v17582_v51 = vsel %vm11610_vm7, 4294967295, %v17581_v51  ;;  %vm3214_vm6 = vcmp.lt.s32.totalorder %v3118_v56, 24  ;;  %v3594_v26 = vadd.s32 1, %v2891_v20  ;;  %vm17583_vm9 = vnez %v17564_v62 }
 0x2c3   : > { %v11617_v17 = vsel %vm17583_vm9, 1.0, %v17008_v10  ;;  %vm11619_vm11 = vmand %vm3166_vm3, %vm3214_vm6  ;;  %v17585_v4 = vmov 0  ;;  %vm3641_vm1 = vcmp.ge.s32.totalorder %v3593_v47, 0  ;;  %vm3689_vm8 = vcmp.lt.s32.totalorder %v3593_v47, 24 }
 0x2c4   : > { %17584 = vst [vmem:[#allocation22_spill] sm:$0xff] %v11617_v17  ;;  %v17586_v4 = vsel %vm11619_vm11, 4294967295, %v17585_v4  ;;  %v11624_v53 = vadd.s32 128, %v11306_v63  ;;  %vm3167_vm2 = vcmp.ge.s32.totalorder %v3119_v27, 0  ;;  %vm3215_vm15 = vcmp.lt.s32.totalorder %v3119_v27, 24  ;;  %vm11626_vm13 = vmand %vm3641_vm1, %vm3689_vm8 }
 0x2c5   : > { %vm3642_vm0 = vcmp.ge.s32.totalorder %v3594_v26, 0  ;;  %vm2700_vm5 = vcmp.ne.s32.totalorder %v2320_v22, 0  ;;  %vm11630_vm4 = vmand %vm3167_vm2, %vm3215_vm15  ;;  %vm3690_vm3 = vcmp.lt.s32.totalorder %v3594_v26, 24  ;;  %vm2701_vm6 = vcmp.ne.s32.totalorder %v2331_v57, 0 }
 0x2c6   : > { %vm2748_vm9 = vcmp.lt.s32.totalorder %v2320_v22, 0  ;;  %vm2749_vm11 = vcmp.lt.s32.totalorder %v2331_v57, 0  ;;  %v11637_v37 = vsel %vm11575_vm10, 1.0, %v17008_v10  ;;  %vm11639_vm7 = vmand %vm3642_vm0, %vm3690_vm3  ;;  %v2844_v43 = vadd.s32 24, %v2320_v22 }
 0x2c7   : > { %17591 = vst [vmem:[#allocation23_spill] sm:$0xff] %v11637_v37  ;;  %v2845_v14 = vadd.s32 24, %v2331_v57  ;;  %v2127_v45 = vadd.s32 136, %v11306_v63  ;;  %v11647_v32 = vsel %vm11581_vm12, 1.0, %v17008_v10  ;;  %vm2796_vm1 = vmand %vm2748_vm9, %vm2700_vm5  ;;  %v2128_v58 = vadd.s32 144, %v11306_v63 }
 0x2c8   : > { %17594 = vst [vmem:[#allocation24_spill] sm:$0xff] %v11647_v32  ;;  %v11650_v7 = vmul.u32.u64.low 2863311531, %v11624_v53  ;;  %v11651_v11 = vmul.u32.u64.high 2863311531, %v11624_v53, %v11650_v7  ;;  %v11657_v33 = vsel %vm11602_vm14, 1.0, %v17008_v10  ;;  %vm2797_vm10 = vmand %vm2749_vm11, %vm2701_vm6  ;;  %v2892_v48 = vsel %vm2796_vm1, %v2844_v43, %v2320_v22 }
 0x2c9   : > { %17595 = vst [vmem:[#allocation25_spill] sm:$0xff] %v11657_v33  ;;  %v11659_v12 = vmul.u32.u64.low 2863311531, %v2127_v45  ;;  %v11660_v23 = vmul.u32.u64.high 2863311531, %v2127_v45, %v11659_v12  ;;  %vm17596_vm12 = vnez %v17582_v51  ;;  %v2893_v29 = vsel %vm2797_vm10, %v2845_v14, %v2331_v57 }
 0x2ca   : > { %v11665_v59 = vsel %vm17596_vm12, 1.0, %v17008_v10  ;;  %v3595_v62 = vadd.s32 1, %v2892_v48  ;;  %v11668_v52 = vadd.s32 4294967295, %v2892_v48  ;;  %v11671_v34 = vadd.s32 152, %v11306_v63 }
 0x2cb   : > { %17597 = vst [vmem:[#allocation26_spill] sm:$0xff] %v11665_v59  ;;  %v11673_v15 = vmul.u32.u64.low 2863311531, %v2128_v58  ;;  %v11674_v40 = vmul.u32.u64.high 2863311531, %v2128_v58, %v11673_v15  ;;  %vm17598_vm14 = vnez %v17586_v4  ;;  %v11684_v50 = vsel %vm11630_vm4, 1.0, %v17008_v10  ;;  %v5658_v4 = vld [vmem:[%s16997_s7] sm:$0xff] }
 0x2cc   : > { %v11679_v41 = vsel %vm17598_vm14, 1.0, %v17008_v10  ;;  %17600 = vst [vmem:[#allocation28_spill] sm:$0xff] %v11684_v50  ;;  %v11689_v56 = vsel %vm11626_vm13, 1.0, %v17008_v10  ;;  %v11694_v47 = vsel %vm11639_vm7, 1.0, %v17008_v10  ;;  %v3596_v20 = vadd.s32 1, %v2893_v29 }
 0x2cd   : > { %17599 = vst [vmem:[#allocation27_spill] sm:$0xff] %v11679_v41  ;;  %17601 = vst [vmem:[#allocation29_spill] sm:$0xff] %v11689_v56  ;;  %vm3643_vm11 = vcmp.ge.s32.totalorder %v3595_v62, 0  ;;  %v11696_v22 = vadd.s32 4294967295, %v2893_v29  ;;  %vm3691_vm8 = vcmp.lt.s32.totalorder %v3595_v62, 24  ;;  %v2340_v27 = vshrl.u32 %v11651_v11, 4 }
 0x2ce   : > { %17602 = vst [vmem:[#allocation30_spill] sm:$0xff] %v11694_v47  ;;  %v2351_v26 = vshrl.u32 %v11660_v23, 4  ;;  %vm3168_vm7 = vcmp.ge.s32.totalorder %v11668_v52, 0  ;;  %v2362_v46 = vshrl.u32 %v11674_v40, 4  ;;  %vm3216_vm2 = vcmp.lt.s32.totalorder %v11668_v52, 24  ;;  %vm11729_vm4 = vmand %vm3643_vm11, %vm3691_vm8 }
 0x2cf   : > { %v11710_v31 = vmul.u32.u64.low 2863311531, %v11671_v34  ;;  %v11711_v43 = vmul.u32.u64.high 2863311531, %v11671_v34, %v11710_v31  ;;  %v2341_v14 = vmul.u32 24, %v2340_v27  ;;  %v8953_v11 = vpack.c.bf16 %v5659_v30, %v5658_v4  ;;  %v11722_v29 = vld [vmem:[%s16994_s4] ss:$0 sm:$0xff] }
 0x2d0   : > { %v2352_v7 = vmul.u32 24, %v2351_v26  ;;  %vm3644_vm15 = vcmp.ge.s32.totalorder %v3596_v20, 0  ;;  %vm3692_vm0 = vcmp.lt.s32.totalorder %v3596_v20, 24  ;;  %v2363_v12 = vmul.u32 24, %v2362_v46 }
 0x2d1   : > { %v11717_v23 = vadd.s32 160, %v11306_v63  ;;  %vm3169_vm13 = vcmp.ge.s32.totalorder %v11696_v22, 0  ;;  %vm3217_vm5 = vcmp.lt.s32.totalorder %v11696_v22, 24  ;;  %v2342_v40 = vsub.s32 %v11624_v53, %v2341_v14  ;;  %8954 = vmatpush1.bf16.msra.mxu1 %v8953_v11  ;;  %v5660_v53 = vld [vmem:[%s16997_s7 + $0x10] sm:$0xff]  ;;  %vm11747_vm3 = vmand %vm3644_vm15, %vm3692_vm0 }
 0x2d2   : > { %v2364_v26 = vsub.s32 %v2128_v58, %v2363_v12  ;;  %v2373_v4 = vshrl.u32 %v11711_v43, 4  ;;  %8955 = vmatprep.subr.bf16.mxu1 %v17010_v3  ;;  %vm11760_vm0 = vmand %vm3168_vm7, %vm3216_vm2  ;;  %v11780_v22 = vsel %vm11729_vm4, 1.0, %v17008_v10 }
 0x2d3   : > { %v11735_v30 = vmul.u32.u64.low 2863311531, %v11717_v23  ;;  %v11736_v46 = vmul.u32.u64.high 2863311531, %v11717_v23, %v11735_v30  ;;  %vm2702_vm6 = vcmp.ne.s32.totalorder %v2342_v40, 0  ;;  %vm2750_vm1 = vcmp.lt.s32.totalorder %v2342_v40, 0  ;;  %17613 = vst [vmem:[#allocation31_spill] sm:$0xff] %v11780_v22 }
 0x2d4   : > { %vm2798_vm12 = vmand %vm2750_vm1, %vm2702_vm6  ;;  %v2846_v31 = vadd.s32 24, %v2342_v40  ;;  %v2374_v14 = vmul.u32 24, %v2373_v4  ;;  %vm2704_vm14 = vcmp.ne.s32.totalorder %v2364_v26, 0  ;;  %vm2752_vm8 = vcmp.lt.s32.totalorder %v2364_v26, 0 }
 0x2d5   : > { %v2848_v20 = vadd.s32 24, %v2364_v26  ;;  %vm2800_vm15 = vmand %vm2752_vm8, %vm2704_vm14  ;;  %v2384_v36 = vshrl.u32 %v11736_v46, 4  ;;  %v17607_v4 = vmov 0 }
 0x2d6   : > { %v2375_v57 = vsub.s32 %v11671_v34, %v2374_v14  ;;  %v17608_v4 = vsel %vm11760_vm0, 4294967295, %v17607_v4  ;;  %vm11768_vm6 = vmand %vm3169_vm13, %vm3217_vm5  ;;  %v5665_v34 = vld [vmem:[%s16997_s7 + $0x38] sm:$0xff] }
 0x2d7   : > { %v2385_v27 = vmul.u32 24, %v2384_v36 }
 0x2d8   : > { %vm2753_vm1 = vcmp.lt.s32.totalorder %v2375_v57, 0  ;;  %v2849_v52 = vadd.s32 24, %v2375_v57 }
 0x330   : > { %v1787_v38 = vpop.f32.mrb[48].mxu1 }
 0x331   : > { %v1789_v51 = vpop.f32.mrb[49].mxu1 }
 0x332   : > { %v2353_v51 = vsub.s32 %v2127_v45, %v2352_v7  ;;  %v5661_v45 = vld [vmem:[%s16997_s7 + $0x18] sm:$0xff]  ;;  %v11752_v7 = vadd.f32 %v11722_v29, %v1787_v38 }
 0x333   : > { %v8956_v12 = vpack.c.bf16 %v5661_v45, %v5660_v53 }
 0x334   : > { %v11714_v48 = vpop.f32.mrb[50].mxu1  ;;  %vm2703_vm9 = vcmp.ne.s32.totalorder %v2353_v51, 0  ;;  %vm2751_vm10 = vcmp.lt.s32.totalorder %v2353_v51, 0  ;;  %v2847_v43 = vadd.s32 24, %v2353_v51 }
 0x335   : > { %v1794_v15 = vpop.f32.mrb[51].mxu1  ;;  %vm2799_vm11 = vmand %vm2751_vm10, %vm2703_vm9  ;;  %8957 = vmatpush1.bf16.msra.mxu1 %v8956_v12  ;;  %vm2705_vm9 = vcmp.ne.s32.totalorder %v2375_v57, 0  ;;  %v11802_v58 = vadd.f32 %v11722_v29, %v11714_v48 }
 0x336   : > { %v2894_v15 = vsel %vm2798_vm12, %v2846_v31, %v2342_v40  ;;  %v2895_v30 = vsel %vm2799_vm11, %v2847_v43, %v2353_v51  ;;  %v2896_v40 = vsel %vm2800_vm15, %v2848_v20, %v2364_v26  ;;  %8958 = vmatprep.subr.bf16.mxu1 %v17010_v3  ;;  %vm2801_vm14 = vmand %vm2753_vm1, %vm2705_vm9  ;;  %v11785_v26 = vsel %vm11747_vm3, 1.0, %v17008_v10 }
 0x337   : > { %v3122_v38 = vadd.s32 4294967295, %v2894_v15  ;;  %v3597_v28 = vadd.s32 1, %v2894_v15  ;;  %v3598_v19 = vadd.s32 1, %v2895_v30  ;;  %17614 = vst [vmem:[#allocation32_spill] sm:$0xff] %v11785_v26  ;;  %v2897_v46 = vsel %vm2801_vm14, %v2849_v52, %v2375_v57  ;;  %v5663_v15 = vld [vmem:[%s16997_s7 + $0x28] sm:$0xff] }
 0x338   : > { %v1797_v62 = vpop.f32.mrb[52].mxu1  ;;  %v11787_v53 = vadd.s32 1, %v2896_v40  ;;  %vm17615_vm9 = vnez %v17608_v4  ;;  %v11804_v57 = vadd.s32 1, %v2897_v46  ;;  %v11806_v31 = vadd.s32 4294967295, %v2896_v40 }
 0x339   : > { %v1799_v11 = vpop.f32.mrb[53].mxu1  ;;  %vm3170_vm7 = vcmp.ge.s32.totalorder %v3122_v38, 0  ;;  %vm3218_vm10 = vcmp.lt.s32.totalorder %v3122_v38, 24  ;;  %vm3645_vm8 = vcmp.ge.s32.totalorder %v3597_v28, 0  ;;  %vm3646_vm13 = vcmp.ge.s32.totalorder %v3598_v19, 0 }
 0x33a   : > { %v3123_v11 = vadd.s32 4294967295, %v2895_v30  ;;  %vm11773_vm11 = vmand %vm3170_vm7, %vm3218_vm10  ;;  %vm3693_vm5 = vcmp.lt.s32.totalorder %v3597_v28, 24  ;;  %vm3694_vm0 = vcmp.lt.s32.totalorder %v3598_v19, 24  ;;  %v11792_v45 = vsel %vm17615_vm9, 1.0, %v17008_v10 }
 0x33b   : > { %17616 = vst [vmem:[#allocation33_spill] sm:$0xff] %v11792_v45  ;;  %v11797_v19 = vsel %vm11768_vm6, 1.0, %v17008_v10  ;;  %vm3741_vm4 = vmand %vm3645_vm8, %vm3693_vm5  ;;  %v2131_v28 = vadd.s32 168, %v11306_v63  ;;  %v11810_v14 = vadd.f32 %v11722_v29, %v1797_v62  ;;  %v11815_v20 = vsel %vm11773_vm11, 1.0, %v17008_v10  ;;  %v5662_v62 = vld [vmem:[%s16997_s7 + $0x20] sm:$0xff] }
 0x33c   : > { %vm3171_vm2 = vcmp.ge.s32.totalorder %v3123_v11, 0  ;;  %vm3219_vm12 = vcmp.lt.s32.totalorder %v3123_v11, 24  ;;  %17617 = vst [vmem:[#allocation34_spill] sm:$0xff] %v11797_v19  ;;  %vm3742_vm3 = vmand %vm3646_vm13, %vm3694_vm0  ;;  %v11820_v48 = vadd.s32 4294967295, %v2897_v46  ;;  %v11823_v12 = vsel %vm3741_vm4, 1.0, %v17008_v10 }
 0x33d   : > { %vm3267_vm15 = vmand %vm3171_vm2, %vm3219_vm12  ;;  %17618 = vst [vmem:[#allocation35_spill] sm:$0xff] %v11815_v20  ;;  %vm3647_vm0 = vcmp.ge.s32.totalorder %v11787_v53, 0  ;;  %vm3695_vm6 = vcmp.lt.s32.totalorder %v11787_v53, 24  ;;  %v2386_v29 = vsub.s32 %v11717_v23, %v2385_v27  ;;  %v11835_v30 = vsel %vm3742_vm3, 1.0, %v17008_v10  ;;  %v5664_v23 = vld [vmem:[%s16997_s7 + $0x30] sm:$0xff] }
 0x33e   : > { %v11818_v36 = vsel %vm3267_vm15, 1.0, %v17008_v10  ;;  %17620 = vst [vmem:[#allocation37_spill] sm:$0xff] %v11823_v12  ;;  %17621 = vst [vmem:[#allocation38_spill] sm:$0xff] %v11835_v30  ;;  %v11837_v4 = vmul.u32.u64.low 2863311531, %v2131_v28  ;;  %v11838_v38 = vmul.u32.u64.high 2863311531, %v2131_v28, %v11837_v4  ;;  %v2132_v11 = vadd.s32 176, %v11306_v63 }
 0x33f   : > { %17619 = vst [vmem:[#allocation36_spill] sm:$0xff] %v11818_v36  ;;  %vm3648_vm1 = vcmp.ge.s32.totalorder %v11804_v57, 0  ;;  %vm3172_vm7 = vcmp.ge.s32.totalorder %v11806_v31, 0  ;;  %vm2706_vm2 = vcmp.ne.s32.totalorder %v2386_v29, 0  ;;  %vm2754_vm10 = vcmp.lt.s32.totalorder %v2386_v29, 0  ;;  %vm11890_vm4 = vmand %vm3647_vm0, %vm3695_vm6 }
 0x340   : > { %v2850_v52 = vadd.s32 24, %v2386_v29  ;;  %vm3696_vm12 = vcmp.lt.s32.totalorder %v11804_v57, 24  ;;  %vm2802_vm14 = vmand %vm2754_vm10, %vm2706_vm2  ;;  %v2133_v40 = vadd.s32 184, %v11306_v63  ;;  %v8959_v4 = vpack.c.bf16 %v5663_v15, %v5662_v62  ;;  %v5666_v15 = vld [vmem:[%s16997_s7 + $0x40] sm:$0xff] }
 0x341   : > { %v11851_v51 = vmul.u32.u64.low 2863311531, %v2132_v11  ;;  %v11852_v46 = vmul.u32.u64.high 2863311531, %v2132_v11, %v11851_v51  ;;  %v8962_v43 = vpack.c.bf16 %v5665_v34, %v5664_v23  ;;  %v2134_v10 = vadd.s32 192, %v11306_v63  ;;  %vm11906_vm3 = vmand %vm3648_vm1, %vm3696_vm12 }
 0x342   : > { %v2898_v27 = vsel %vm2802_vm14, %v2850_v52, %v2386_v29  ;;  %v2395_v3 = vshrl.u32 %v11838_v38, 4  ;;  %v11859_v36 = vadd.s32 200, %v11306_v63  ;;  %8960 = vmatpush1.bf16.msra.mxu1 %v8959_v4  ;;  %vm3173_vm11 = vcmp.ge.s32.totalorder %v11820_v48, 0  ;;  %v5668_v4 = vld [vmem:[%s16997_s7 + $0x50] sm:$0xff] }
 0x343   : > { %v3126_v16 = vadd.s32 4294967295, %v2898_v27  ;;  %v11856_v25 = vadd.s32 1, %v2898_v27  ;;  %v11861_v20 = vmul.u32.u64.low 2863311531, %v2133_v40  ;;  %v11862_v30 = vmul.u32.u64.high 2863311531, %v2133_v40, %v11861_v20 }
 0x344   : > { %v11864_v12 = vmul.u32.u64.low 2863311531, %v2134_v10  ;;  %v11865_v19 = vmul.u32.u64.high 2863311531, %v2134_v10, %v11864_v12  ;;  %vm3220_vm8 = vcmp.lt.s32.totalorder %v11806_v31, 24  ;;  %vm3221_vm13 = vcmp.lt.s32.totalorder %v11820_v48, 24  ;;  %v5667_v20 = vld [vmem:[%s16997_s7 + $0x48] sm:$0xff] }
 0x345   : > { %v2396_v29 = vmul.u32 24, %v2395_v3  ;;  %v17622_v62 = vmov 0.0|0.0   ;;  %vm3174_vm5 = vcmp.ge.s32.totalorder %v3126_v16, 0  ;;  %v2406_v12 = vshrl.u32 %v11852_v46, 4  ;;  %vm11917_vm1 = vmand %vm3172_vm7, %vm3220_vm8 }
 0x346   : > { %8961 = vmatprep.subr.bf16.mxu1 %v17622_v62  ;;  %v11879_v38 = vmul.u32.u64.low 2863311531, %v11859_v36  ;;  %v11880_v23 = vmul.u32.u64.high 2863311531, %v11859_v36, %v11879_v38  ;;  %vm3222_vm15 = vcmp.lt.s32.totalorder %v3126_v16, 24  ;;  %vm3649_vm9 = vcmp.ge.s32.totalorder %v11856_v25, 0  ;;  %vm11929_vm12 = vmand %vm3173_vm11, %vm3221_vm13 }
 0x347   : > { %v2397_v34 = vsub.s32 %v2131_v28, %v2396_v29  ;;  %v11884_v3 = vadd.s32 208, %v11306_v63  ;;  %v2407_v51 = vmul.u32 24, %v2406_v12  ;;  %v2417_v46 = vshrl.u32 %v11862_v30, 4  ;;  %8963 = vmatpush1.bf16.msra.mxu1 %v8962_v43  ;;  %v5669_v29 = vld [vmem:[%s16997_s7 + $0x58] sm:$0xff]  ;;  %vm11935_vm14 = vmand %vm3174_vm5, %vm3222_vm15 }
 0x348   : > { %v2428_v28 = vshrl.u32 %v11865_v19, 4  ;;  %v8965_v27 = vpack.c.bf16 %v5667_v20, %v5666_v15  ;;  %vm3697_vm2 = vcmp.lt.s32.totalorder %v11856_v25, 24  ;;  %8964 = vmatprep.subr.bf16.mxu1 %v17622_v62  ;;  %v2439_v20 = vshrl.u32 %v11880_v23, 4 }
 0x349   : > { %vm2707_vm0 = vcmp.ne.s32.totalorder %v2397_v34, 0  ;;  %vm2755_vm6 = vcmp.lt.s32.totalorder %v2397_v34, 0  ;;  %v2851_v19 = vadd.s32 24, %v2397_v34  ;;  %v2408_v43 = vsub.s32 %v2132_v11, %v2407_v51  ;;  %vm11949_vm5 = vmand %vm3649_vm9, %vm3697_vm2 }
 0x34a   : > { %vm2803_vm10 = vmand %vm2755_vm6, %vm2707_vm0  ;;  %v2418_v30 = vmul.u32 24, %v2417_v46  ;;  %v2429_v15 = vmul.u32 24, %v2428_v28  ;;  %v8968_v26 = vpack.c.bf16 %v5669_v29, %v5668_v4  ;;  %v17633_v48 = vmov 0.0  }
 0x34b   : > { %v2899_v12 = vsel %vm2803_vm10, %v2851_v19, %v2397_v34  ;;  %v11922_v38 = vmul.u32.u64.low 2863311531, %v11884_v3  ;;  %v11923_v45 = vmul.u32.u64.high 2863311531, %v11884_v3, %v11922_v38  ;;  %vm2708_vm7 = vcmp.ne.s32.totalorder %v2408_v43, 0  ;;  %8966 = vmatpush1.bf16.msra.mxu1 %v8965_v27 }
 0x34c   : > { %v3127_v23 = vadd.s32 4294967295, %v2899_v12  ;;  %v3602_v31 = vadd.s32 1, %v2899_v12  ;;  %v2419_v51 = vsub.s32 %v2133_v40, %v2418_v30  ;;  %v17631_v34 = vmov 0  ;;  %8967 = vmatprep.subr.bf16.mxu1 %v17622_v62 }
 0x34d   : > { %v17632_v34 = vsel %vm11935_vm14, 4294967295, %v17631_v34  ;;  %vm2756_vm8 = vcmp.lt.s32.totalorder %v2408_v43, 0  ;;  %v2852_v46 = vadd.s32 24, %v2408_v43  ;;  %v2430_v28 = vsub.s32 %v2134_v10, %v2429_v15 }
 0x34e   : > { %v2440_v4 = vmul.u32 24, %v2439_v20  ;;  %v11943_v29 = vsel %vm11890_vm4, 1.0, %v17633_v48  ;;  %vm3175_vm11 = vcmp.ge.s32.totalorder %v3127_v23, 0  ;;  %vm3223_vm13 = vcmp.lt.s32.totalorder %v3127_v23, 24  ;;  %vm2804_vm6 = vmand %vm2756_vm8, %vm2708_vm7 }
 0x34f   : > { %17634 = vst [vmem:[#allocation39_spill] sm:$0xff] %v11943_v29  ;;  %vm3650_vm0 = vcmp.ge.s32.totalorder %v3602_v31, 0  ;;  %vm2709_vm15 = vcmp.ne.s32.totalorder %v2419_v51, 0  ;;  %vm2757_vm10 = vcmp.lt.s32.totalorder %v2419_v51, 0  ;;  %v2853_v10 = vadd.s32 24, %v2419_v51  ;;  %vm11953_vm14 = vmand %vm3175_vm11, %vm3223_vm13  ;;  %8969 = vmatpush1.bf16.msra.mxu1 %v8968_v26 }
 0x350   : > { %v2900_v40 = vsel %vm2804_vm6, %v2852_v46, %v2408_v43  ;;  %v17637_v52 = vmov 0  ;;  %vm3698_vm4 = vcmp.lt.s32.totalorder %v3602_v31, 24  ;;  %v2441_v30 = vsub.s32 %v11859_v36, %v2440_v4  ;;  %vm2805_vm9 = vmand %vm2757_vm10, %vm2709_vm15  ;;  %8970 = vmatprep.subr.bf16.mxu1 %v17622_v62 }
 0x351   : > { %v17638_v52 = vsel %vm11953_vm14, 4294967295, %v17637_v52  ;;  %v3603_v27 = vadd.s32 1, %v2900_v40  ;;  %v3128_v19 = vadd.s32 4294967295, %v2900_v40  ;;  %v11961_v25 = vsel %vm11906_vm3, 1.0, %v17633_v48  ;;  %vm11971_vm6 = vmand %vm3650_vm0, %vm3698_vm4 }
 0x352   : > { %17639 = vst [vmem:[#allocation40_spill] sm:$0xff] %v11961_v25  ;;  %vm2710_vm2 = vcmp.ne.s32.totalorder %v2430_v28, 0  ;;  %vm2758_vm7 = vcmp.lt.s32.totalorder %v2430_v28, 0  ;;  %v2854_v15 = vadd.s32 24, %v2430_v28  ;;  %v11967_v43 = vsel %vm11917_vm1, 1.0, %v17633_v48 }
 0x353   : > { %17640 = vst [vmem:[#allocation41_spill] sm:$0xff] %v11967_v43  ;;  %v2901_v20 = vsel %vm2805_vm9, %v2853_v10, %v2419_v51  ;;  %vm3651_vm8 = vcmp.ge.s32.totalorder %v3603_v27, 0  ;;  %vm3699_vm11 = vcmp.lt.s32.totalorder %v3603_v27, 24  ;;  %vm2806_vm13 = vmand %vm2758_vm7, %vm2710_vm2  ;;  %vm3176_vm3 = vcmp.ge.s32.totalorder %v3128_v19, 0  ;;  %v5670_v27 = vld [vmem:[%s16997_s7 + $0x60] sm:$0xff] }
 0x354   : > { %v3604_v36 = vadd.s32 1, %v2901_v20  ;;  %vm3224_vm15 = vcmp.lt.s32.totalorder %v3128_v19, 24  ;;  %vm2711_vm10 = vcmp.ne.s32.totalorder %v2441_v30, 0  ;;  %vm11975_vm14 = vmand %vm3651_vm8, %vm3699_vm11  ;;  %v3129_v57 = vadd.s32 4294967295, %v2901_v20  ;;  %v5671_v19 = vld [vmem:[%s16997_s7 + $0x68] sm:$0xff]  ;;  %v5673_v20 = vld [vmem:[%s16997_s7 + $0x78] sm:$0xff] }
 0x355   : > { %vm2759_vm1 = vcmp.lt.s32.totalorder %v2441_v30, 0  ;;  %v2855_v12 = vadd.s32 24, %v2441_v30  ;;  %v2902_v38 = vsel %vm2806_vm13, %v2854_v15, %v2430_v28  ;;  %v11982_v23 = vsel %vm11929_vm12, 1.0, %v17633_v48  ;;  %vm3272_vm12 = vmand %vm3176_vm3, %vm3224_vm15 }
 0x356   : > { %17645 = vst [vmem:[#allocation42_spill] sm:$0xff] %v11982_v23  ;;  %vm17646_vm0 = vnez %v17632_v34  ;;  %v11992_v51 = vsel %vm11949_vm5, 1.0, %v17633_v48  ;;  %vm2807_vm4 = vmand %vm2759_vm1, %vm2711_vm10  ;;  %v11995_v46 = vadd.s32 216, %v11306_v63  ;;  %vm17649_vm9 = vnez %v17638_v52 }
 0x357   : > { %v11987_v31 = vsel %vm17646_vm0, 1.0, %v17633_v48  ;;  %17648 = vst [vmem:[#allocation44_spill] sm:$0xff] %v11992_v51  ;;  %v12000_v11 = vsel %vm17649_vm9, 1.0, %v17633_v48  ;;  %v2903_v28 = vsel %vm2807_vm4, %v2855_v12, %v2441_v30  ;;  %v3130_v34 = vadd.s32 4294967295, %v2902_v38 }
 0x358   : > { %17647 = vst [vmem:[#allocation43_spill] sm:$0xff] %v11987_v31  ;;  %17650 = vst [vmem:[#allocation45_spill] sm:$0xff] %v12000_v11  ;;  %v3605_v4 = vadd.s32 1, %v2902_v38  ;;  %v12006_v16 = vsel %vm11971_vm6, 1.0, %v17633_v48  ;;  %v12011_v10 = vsel %vm11975_vm14, 1.0, %v17633_v48  ;;  %v3131_v40 = vadd.s32 4294967295, %v2903_v28 }
 0x359   : > { %17651 = vst [vmem:[#allocation46_spill] sm:$0xff] %v12006_v16  ;;  %17652 = vst [vmem:[#allocation47_spill] sm:$0xff] %v12011_v10  ;;  %v2450_v52 = vshrl.u32 %v11923_v45, 4  ;;  %vm3652_vm5 = vcmp.ge.s32.totalorder %v3604_v36, 0  ;;  %vm3700_vm2 = vcmp.lt.s32.totalorder %v3604_v36, 24  ;;  %vm3177_vm7 = vcmp.ge.s32.totalorder %v3129_v57, 0 }
 0x35a   : > { %v3606_v30 = vadd.s32 1, %v2903_v28  ;;  %vm3225_vm8 = vcmp.lt.s32.totalorder %v3129_v57, 24  ;;  %v12021_v15 = vsel %vm3272_vm12, 1.0, %v17633_v48  ;;  %vm3178_vm14 = vcmp.ge.s32.totalorder %v3130_v34, 0  ;;  %v5672_v45 = vld [vmem:[%s16997_s7 + $0x70] sm:$0xff]  ;;  %vm12042_vm10 = vmand %vm3652_vm5, %vm3700_vm2  ;;  %v5675_v36 = vld [vmem:[%s16997_s7 + $0x88] sm:$0xff] }
 0x35b   : > { %17653 = vst [vmem:[#allocation48_spill] sm:$0xff] %v12021_v15  ;;  %vm3226_vm11 = vcmp.lt.s32.totalorder %v3130_v34, 24  ;;  %vm3179_vm13 = vcmp.ge.s32.totalorder %v3131_v40, 0  ;;  %vm3653_vm6 = vcmp.ge.s32.totalorder %v3605_v4, 0  ;;  %v2451_v26 = vmul.u32 24, %v2450_v52  ;;  %vm12062_vm0 = vmand %vm3177_vm7, %vm3225_vm8  ;;  %v5676_v57 = vld [vmem:[%s16997_s7 + $0x90] sm:$0xff] }
 0x35c   : > { %v8971_v53 = vpack.c.bf16 %v5671_v19, %v5670_v27  ;;  %vm3227_vm3 = vcmp.lt.s32.totalorder %v3131_v40, 24  ;;  %v12030_v12 = vmul.u32.u64.low 2863311531, %v11995_v46  ;;  %v12031_v38 = vmul.u32.u64.high 2863311531, %v11995_v46, %v12030_v12  ;;  %v5677_v16 = vld [vmem:[%s16997_s7 + $0x98] sm:$0xff]  ;;  %vm12082_vm2 = vmand %vm3178_vm14, %vm3226_vm11 }
 0x35d   : > { %v12034_v28 = vadd.s32 224, %v11306_v63  ;;  %vm3654_vm15 = vcmp.ge.s32.totalorder %v3606_v30, 0  ;;  %v2452_v15 = vsub.s32 %v11884_v3, %v2451_v26  ;;  %v12038_v10 = vadd.s32 232, %v11306_v63  ;;  %vm12092_vm7 = vmand %vm3179_vm13, %vm3227_vm3 }
 0x35e   : > { %8972 = vmatpush1.bf16.msra.mxu1 %v8971_v53  ;;  %v8974_v11 = vpack.c.bf16 %v5673_v20, %v5672_v45  ;;  %vm3701_vm1 = vcmp.lt.s32.totalorder %v3605_v4, 24  ;;  %v12052_v3 = vadd.s32 240, %v11306_v63  ;;  %v5674_v45 = vld [vmem:[%s16997_s7 + $0x80] sm:$0xff]  ;;  %v12067_v53 = vadd.s32 248, %v11306_v63 }
 0x35f   : > { %v12047_v27 = vmul.u32.u64.low 2863311531, %v12034_v28  ;;  %v12048_v19 = vmul.u32.u64.high 2863311531, %v12034_v28, %v12047_v27  ;;  %8973 = vmatprep.subr.bf16.mxu1 %v17622_v62  ;;  %vm2712_vm4 = vcmp.ne.s32.totalorder %v2452_v15, 0  ;;  %vm2760_vm9 = vcmp.lt.s32.totalorder %v2452_v15, 0  ;;  %vm12105_vm8 = vmand %vm3653_vm6, %vm3701_vm1 }
 0x360   : > { %v2856_v26 = vadd.s32 24, %v2452_v15  ;;  %17658 = vst [vmem:[#allocation49_spill] sm:$0xff] %v12067_v53  ;;  %vm3702_vm12 = vcmp.lt.s32.totalorder %v3606_v30, 24  ;;  %v2461_v12 = vshrl.u32 %v12031_v38, 4  ;;  %vm2808_vm5 = vmand %vm2760_vm9, %vm2712_vm4  ;;  %v8258_v30 = vld [vmem:[%s16996_s6] ss:$0 sm:$0xff] }
 0x361   : > { %v12071_v27 = vmul.u32.u64.low 2863311531, %v12038_v10  ;;  %v12072_v31 = vmul.u32.u64.high 2863311531, %v12038_v10, %v12071_v27  ;;  %v12087_v51 = vmul.u32.u64.low 2863311531, %v12052_v3  ;;  %v12088_v43 = vmul.u32.u64.high 2863311531, %v12052_v3, %v12087_v51  ;;  %vm12115_vm14 = vmand %vm3654_vm15, %vm3702_vm12 }
 0x362   : > { %v2904_v38 = vsel %vm2808_vm5, %v2856_v26, %v2452_v15  ;;  %8975 = vmatpush1.bf16.msra.mxu1 %v8974_v11  ;;  %v8977_v27 = vpack.c.bf16 %v5675_v36, %v5674_v45  ;;  %v2462_v29 = vmul.u32 24, %v2461_v12  ;;  %v2472_v50 = vshrl.u32 %v12048_v19, 4 }
 0x363   : > { %v3607_v22 = vadd.s32 1, %v2904_v38  ;;  %v3132_v34 = vadd.s32 4294967295, %v2904_v38  ;;  %8976 = vmatprep.subr.bf16.mxu1 %v17622_v62  ;;  %v12101_v11 = vsel %vm12042_vm10, 1.0, %v17633_v48  ;;  %v8980_v45 = vpack.c.bf16 %v5677_v16, %v5676_v57 }
 0x364   : > { %17663 = vst [vmem:[#allocation50_spill] sm:$0xff] %v12101_v11  ;;  %v12110_v40 = vmul.u32.u64.low 2863311531, %v12067_v53  ;;  %v12111_v15 = vmul.u32.u64.high 2863311531, %v12067_v53, %v12110_v40  ;;  %v2463_v52 = vsub.s32 %v11995_v46, %v2462_v29  ;;  %v2473_v36 = vmul.u32 24, %v2472_v50 }
 0x365   : > { %vm3655_vm11 = vcmp.ge.s32.totalorder %v3607_v22, 0  ;;  %vm3703_vm13 = vcmp.lt.s32.totalorder %v3607_v22, 24  ;;  %vm3180_vm3 = vcmp.ge.s32.totalorder %v3132_v34, 0  ;;  %vm3228_vm10 = vcmp.lt.s32.totalorder %v3132_v34, 24 }
 0x366   : > { %17666 = vst [vmem:[#allocation51_spill] sm:$0xff] %v12111_v15  ;;  %vm12120_vm6 = vmand %vm3655_vm11, %vm3703_vm13  ;;  %v2483_v26 = vshrl.u32 %v12072_v31, 4  ;;  %v2494_v16 = vshrl.u32 %v12088_v43, 4  ;;  %8978 = vmatpush1.bf16.msra.mxu1 %v8977_v27  ;;  %vm2713_vm15 = vcmp.ne.s32.totalorder %v2463_v52, 0  ;;  %vm2761_vm1 = vcmp.lt.s32.totalorder %v2463_v52, 0 }
 0x367   : > { %v2857_v29 = vadd.s32 24, %v2463_v52  ;;  %vm12129_vm4 = vmand %vm3180_vm3, %vm3228_vm10  ;;  %8979 = vmatprep.subr.bf16.mxu1 %v17622_v62  ;;  %v12135_v50 = vadd.s32 256, %v11306_v63  ;;  %v12140_v43 = vsel %vm12062_vm0, 1.0, %v17633_v48  ;;  %v12145_v31 = vsel %vm12082_vm2, 1.0, %v17633_v48 }
 0x368   : > { %17674 = vst [vmem:[#allocation53_spill] sm:$0xff] %v12140_v43  ;;  %17675 = vst [vmem:[#allocation54_spill] sm:$0xff] %v12145_v31  ;;  %v12150_v46 = vsel %vm12092_vm7, 1.0, %v17633_v48  ;;  %v12155_v12 = vsel %vm12105_vm8, 1.0, %v17633_v48  ;;  %v12158_v38 = vsub.s32 %v12034_v28, %v2473_v36  ;;  %v2484_v27 = vmul.u32 24, %v2483_v26 }
 0x369   : > { %17673 = vst [vmem:[#allocation52_spill] sm:$0xff] %v12135_v50  ;;  %17676 = vst [vmem:[#allocation55_spill] sm:$0xff] %v12150_v46  ;;  %v2495_v23 = vmul.u32 24, %v2494_v16  ;;  %v12165_v25 = vsel %vm12115_vm14, 1.0, %v17633_v48  ;;  %v12170_v51 = vsel %vm12120_vm6, 1.0, %v17633_v48  ;;  %v12178_v28 = vsel %vm12129_vm4, 1.0, %v17633_v48 }
 0x36a   : > { %17677 = vst [vmem:[#allocation56_spill] sm:$0xff] %v12155_v12  ;;  %vm2809_vm9 = vmand %vm2761_vm1, %vm2713_vm15  ;;  %8981 = vmatpush1.bf16.msra.mxu1 %v8980_v45  ;;  %v12182_v19 = vmul.u32.u64.low 2863311531, %v12135_v50  ;;  %v12183_v26 = vmul.u32.u64.high 2863311531, %v12135_v50, %v12182_v19  ;;  %v17687_v53 = vsub.s32 3, %v11306_v63  ;;  %vm17692_vm0 = vcmask 1046528  }
 0x36b   : > { %v2905_v20 = vsel %vm2809_vm9, %v2857_v29, %v2463_v52  ;;  %17678 = vst [vmem:[#allocation57_spill] sm:$0xff] %v12165_v25  ;;  %17679 = vst [vmem:[#allocation58_spill] sm:$0xff] %v12170_v51  ;;  %v12173_v52 = vadd.s32 264, %v11306_v63  ;;  %8982 = vmatprep.subr.bf16.mxu1 %v17622_v62  ;;  %v12203_v19 = vadd.s32 24, %v12158_v38  ;;  %v12206_v36 = vsub.s32 %v12052_v3, %v2495_v23 }
 0x36c   : > { %v1940_v57 = vpop.f32.mrb[54].mxu1  ;;  %17681 = vst [vmem:[#allocation60_spill] sm:$0xff] %v12178_v28  ;;  %17682 = vst [vmem:[#allocation61_spill] sm:$0xff] %v12183_v26  ;;  %v12191_v16 = vadd.s32 1, %v2905_v20  ;;  %v12193_v29 = vadd.s32 4294967295, %v2905_v20  ;;  %v17690_v28 = vsub.s32 5, %v11306_v63 }
 0x36d   : > { %v12160_v34 = vadd.f32 %v8258_v30, %v1940_v57  ;;  %v1942_v40 = vpop.f32.mrb[55].mxu1  ;;  %17680 = vst [vmem:[#allocation59_spill] sm:$0xff] %v12173_v52  ;;  %17685 = vst [vmem:[#allocation64_spill] sm:$0xff] %v12203_v19  ;;  %v17691_v19 = vsub.s32 6, %v11306_v63  ;;  %vm17695_vm5 = vcmask 1040384  }
 0x36e   : > { %17683 = vst [vmem:[#allocation62_spill] sm:$0xff] %v12193_v29  ;;  %v12200_v40 = vsub.s32 %v12038_v10, %v2484_v27  ;;  %17686 = vst [vmem:[#allocation65_spill] sm:$0xff] %v12206_v36 }
 0x36f   : > { %v1952_v45 = vrot.slane %v12160_v34, %v11360_v24  ;;  %v1956_v4 = vrot.slane %v12160_v34, %v11365_v60  ;;  %v12197_v57 = vrot.slane %v12160_v34, %v11419_v9  ;;  %v12219_v3 = vrot.slane %v12160_v34, %v17687_v53  ;;  %vm17694_vm12 = vmmov %vm17692_vm0 }
 0x370   : > { %v1945_v22 = vpop.f32.mrb[56].mxu1  ;;  %17684 = vst [vmem:[#allocation63_spill] sm:$0xff] %v12200_v40  ;;  %v12236_v53 = vrot.slane %v12160_v34, %v17691_v19  ;;  %vm17697_vm2 = vmmov %vm17695_vm5 }
 0x371   : > { %v12208_v62 = vadd.f32 %v8258_v30, %v1945_v22  ;;  %v1947_v50 = vpop.f32.mrb[57].mxu1  ;;  %v2013_v20 = vadd.f32 %v1952_v45, %v11752_v7  ;;  %v2014_v52 = vadd.f32 %v1952_v45, %v11802_v58  ;;  %v2015_v26 = vadd.f32 %v1952_v45, %v11810_v14  ;;  %vm17699_vm7 = vmmov %vm17697_vm2 }
 0x372   : > { %v2016_v9 = vadd.f32 %v1956_v4, %v11752_v7  ;;  %v2017_v10 = vadd.f32 %v1956_v4, %v11802_v58  ;;  %v2018_v27 = vadd.f32 %v1956_v4, %v11810_v14  ;;  %v17689_v22 = vsub.s32 4, %v11306_v63  ;;  %vm17701_vm8 = vmmov %vm17697_vm2 }
 0x373   : > { %v12221_v30 = vmax.f32 %v2013_v20, 0.0  ;;  %v2062_v50 = vmax.f32 %v2014_v52, 0.0  ;;  %v2063_v23 = vmax.f32 %v2015_v26, 0.0  ;;  %v12231_v4 = vrot.slane %v12160_v34, %v17690_v28  ;;  %vm17703_vm14 = vmmov %vm17697_vm2 }
 0x374   : > { %v12226_v36 = vrot.slane %v12160_v34, %v17689_v22  ;;  %v2064_v45 = vmax.f32 %v2016_v9, 0.0  ;;  %v2065_v15 = vmax.f32 %v2017_v10, 0.0  ;;  %v12242_v51 = vmax.f32 %v2018_v27, 0.0  ;;  %vm17705_vm11 = vmmov %vm17697_vm2 }
 0x375   : > { %17688 = vst [vmem:[#allocation66_spill] sm:$0xff] %v12221_v30  ;;  %v9452_v52 = vpack.i.bf16 %v12221_v30, %v17633_v48  ;;  %v3443_v26 = vrot.slane %v12221_v30, 1  ;;  %v3444_v20 = vrot.slane %v2062_v50, 1  ;;  %v2971_v22 = vrot.slane %v12221_v30, 7  ;;  %vm17707_vm13 = vmmov %vm17692_vm0 }
 0x376   : > { %v2972_v9 = vrot.slane %v2062_v50, 7  ;;  %v2974_v10 = vrot.slane %v2063_v23, 7  ;;  %v2976_v40 = vrot.slane %v2064_v45, 7  ;;  %v2978_v46 = vrot.slane %v2065_v15, 7  ;;  %vm17711_vm3 = vmmov %vm17692_vm0 }
 0x377   : > { %9453 = vrot.lane.b32.xlu0 %v9452_v52, %s10386_s30  ;;  %v12246_v28 = vsel %vm17692_vm0, %v3443_v26, %v3444_v20  ;;  %v3580_v19 = vsel %vm17694_vm12, 0.0, %v3443_v26  ;;  %v12250_v29 = vsel %vm17695_vm5, 0.0, %v2971_v22  ;;  %v2019_v27 = vadd.f32 %v12197_v57, %v11752_v7  ;;  %vm17713_vm6 = vmmov %vm17692_vm0 }
 0x378   : > { %17693 = vst [vmem:[#allocation67_spill] sm:$0xff] %v12246_v28  ;;  %17696 = vst [vmem:[#allocation68_spill] sm:$0xff] %v12250_v29  ;;  %v3871_v31 = vmul.f32 %v11371_v61, %v3580_v19  ;;  %v3872_v30 = vmul.f32 %v11383_v21, %v12246_v28  ;;  %v12256_v48 = vsel %vm17697_vm2, %v2971_v22, %v2972_v9 }
 0x379   : > { %17698 = vst [vmem:[#allocation69_spill] sm:$0xff] %v12256_v48  ;;  %v3928_v52 = vmul.f32 %v11368_v8, %v12250_v29  ;;  %v3929_v26 = vmul.f32 %v11395_v13, %v12256_v48  ;;  %v12265_v25 = vsel %vm17699_vm7, %v2972_v9, %v2974_v10  ;;  %v12268_v19 = vsel %vm17701_vm8, %v2974_v10, %v2976_v40  ;;  %vm17715_vm10 = vmmov %vm17692_vm0 }
 0x37a   : > { %17700 = vst [vmem:[#allocation70_spill] sm:$0xff] %v12265_v25  ;;  %17702 = vst [vmem:[#allocation71_spill] sm:$0xff] %v12268_v19  ;;  %v9462_v61 = vpack.i.bf16 %v3872_v30, %v3871_v31  ;;  %v3930_v22 = vmul.f32 %v11402_v2, %v12265_v25  ;;  %v12273_v21 = vsel %vm17703_vm14, %v2976_v40, %v2978_v46  ;;  %v2980_v9 = vrot.slane %v12242_v51, 7 }
 0x37b   : > { %17704 = vst [vmem:[#allocation72_spill] sm:$0xff] %v12273_v21  ;;  %v2020_v28 = vadd.f32 %v12197_v57, %v11802_v58  ;;  %v9457_v29 = vpack.i.bf16 %v3929_v26, %v3928_v52  ;;  %v3931_v48 = vmul.f32 %v11428_v18, %v12268_v19  ;;  %v3446_v13 = vrot.slane %v2063_v23, 1  ;;  %vm17718_vm15 = vmmov %vm17697_vm2 }
 0x37c   : > { %9463 = vrot.lane.b32.xlu1 %v9462_v61, %s10387_s13  ;;  %v3932_v31 = vmul.f32 %v11450_v6, %v12273_v21  ;;  %v3448_v30 = vrot.slane %v2064_v45, 1  ;;  %v3450_v10 = vrot.slane %v2065_v15, 1  ;;  %v3452_v40 = vrot.slane %v12242_v51, 1  ;;  %vm17720_vm1 = vmmov %vm17697_vm2 }
 0x37d   : > { %9458 = vrot.lane.b32.xlu0 %v9457_v29, %s10389_s14  ;;  %v12286_v52 = vsel %vm17705_vm11, %v2978_v46, %v2980_v9  ;;  %v12289_v26 = vsel %vm17707_vm13, %v3444_v20, %v3446_v13  ;;  %v2067_v19 = vmax.f32 %v2019_v27, 0.0  ;;  %v17709_v25 = vsub.s32 7, %v11306_v63  ;;  %vm17722_vm4 = vmmov %vm17692_vm0 }
 0x37e   : > { %17706 = vst [vmem:[#allocation73_spill] sm:$0xff] %v12286_v52  ;;  %17708 = vst [vmem:[#allocation74_spill] sm:$0xff] %v12289_v26  ;;  %v12296_v21 = vpack.i.bf16 %v2063_v23, %v2062_v50  ;;  %v3933_v6 = vmul.f32 %v11461_v55, %v12286_v52  ;;  %v12301_v18 = vsel %vm17711_vm3, %v3446_v13, %v3448_v30  ;;  %v2068_v23 = vmax.f32 %v2020_v28, 0.0 }
 0x37f   : > { %v12294_v61 = vrot.slane %v12160_v34, %v17709_v25  ;;  %17712 = vst [vmem:[#allocation76_spill] sm:$0xff] %v12301_v18  ;;  %v3873_v46 = vmul.f32 %v11455_v0, %v12289_v26  ;;  %v9467_v29 = vpack.i.bf16 %v3931_v48, %v3930_v22  ;;  %v3874_v20 = vmul.f32 %v11466_v42, %v12301_v18  ;;  %vm17724_vm9 = vmmov %vm17692_vm0 }
 0x380   : > { %17710 = vst [vmem:[#allocation75_spill] sm:$0xff] %v12296_v21  ;;  %v12308_v27 = vsel %vm17713_vm6, %v3448_v30, %v3450_v10  ;;  %v12311_v34 = vsel %vm17715_vm10, %v3450_v10, %v3452_v40  ;;  %9473 = vrot.lane.b32.xlu1 %v12296_v21, %s10386_s30  ;;  %v9482_v25 = vpack.i.bf16 %v3933_v6, %v3932_v31  ;;  %v2982_v22 = vrot.slane %v2067_v19, 7  ;;  %vm17727_vm0 = vmmov %vm17720_vm1 }
 0x381   : > { %17714 = vst [vmem:[#allocation77_spill] sm:$0xff] %v12308_v27  ;;  %17716 = vst [vmem:[#allocation78_spill] sm:$0xff] %v12311_v34  ;;  %v3875_v13 = vmul.f32 %v11516_v35, %v12308_v27  ;;  %v12317_v50 = vpack.i.bf16 %v2065_v15, %v2064_v45  ;;  %9468 = vrot.lane.b32.xlu0 %v9467_v29, %s10389_s14  ;;  %v3876_v48 = vmul.f32 %v11566_v5, %v12311_v34 }
 0x382   : > { %v2021_v30 = vadd.f32 %v12197_v57, %v11810_v14  ;;  %v2022_v10 = vadd.f32 %v12219_v3, %v11752_v7  ;;  %v9477_v42 = vpack.i.bf16 %v3874_v20, %v3873_v46  ;;  %v2984_v6 = vrot.slane %v2068_v23, 7  ;;  %vm17729_vm12 = vmmov %vm17727_vm0 }
 0x383   : > { %17717 = vst [vmem:[#allocation79_spill] sm:$0xff] %v12317_v50  ;;  %v3454_v31 = vrot.slane %v2067_v19, 1  ;;  %v3456_v0 = vrot.slane %v2068_v23, 1  ;;  %v12327_v15 = vsel %vm17718_vm15, %v2980_v9, %v2982_v22  ;;  %v2023_v29 = vadd.f32 %v12219_v3, %v11802_v58  ;;  %vm17731_vm5 = vmmov %vm17711_vm3 }
 0x384   : > { %17719 = vst [vmem:[#allocation80_spill] sm:$0xff] %v12327_v15  ;;  %v2069_v45 = vmax.f32 %v2021_v30, 0.0  ;;  %v2070_v28 = vmax.f32 %v2022_v10, 0.0  ;;  %9483 = vrot.lane.b32.xlu1 %v9482_v25, %s10389_s14  ;;  %v12333_v5 = vsel %vm17720_vm1, %v2982_v22, %v2984_v6  ;;  %v3934_v57 = vmul.f32 %v11520_v39, %v12327_v15  ;;  %vm17734_vm2 = vmmov %vm17711_vm3 }
 0x385   : > { %17721 = vst [vmem:[#allocation81_spill] sm:$0xff] %v12333_v5  ;;  %v12338_v46 = vsel %vm17722_vm4, %v3452_v40, %v3454_v31  ;;  %v12341_v20 = vsel %vm17724_vm9, %v3454_v31, %v3456_v0  ;;  %9478 = vrot.lane.b32.xlu0 %v9477_v42, %s10387_s13  ;;  %v3935_v9 = vmul.f32 %v11571_v49, %v12333_v5  ;;  %v2071_v21 = vmax.f32 %v2023_v29, 0.0  ;;  %vm17737_vm7 = vmmov %vm17727_vm0 }
 0x386   : > { %17723 = vst [vmem:[#allocation82_spill] sm:$0xff] %v12338_v46  ;;  %17725 = vst [vmem:[#allocation83_spill] sm:$0xff] %v12341_v20  ;;  %v2986_v30 = vrot.slane %v2069_v45, 7  ;;  %v2988_v10 = vrot.slane %v2070_v28, 7  ;;  %v3877_v25 = vmul.f32 %v11598_v1, %v12338_v46  ;;  %v9492_v22 = vpack.i.bf16 %v3876_v48, %v3875_v13  ;;  %v17753_v46 = vld [vmem:[#allocation28_spill] sm:$0xff] }
 0x387   : > { %v3878_v35 = vmul.f32 %v11617_v17, %v12341_v20  ;;  %v3458_v34 = vrot.slane %v2069_v45, 1  ;;  %v3460_v40 = vrot.slane %v2070_v28, 1  ;;  %v12351_v27 = vpack.i.bf16 %v2067_v19, %v12242_v51  ;;  %vm17739_vm8 = vmmov %vm17734_vm2 }
 0x388   : > { %v12354_v31 = vsel %vm17727_vm0, %v2984_v6, %v2986_v30  ;;  %v12357_v42 = vsel %vm17729_vm12, %v2986_v30, %v2988_v10  ;;  %9493 = vrot.lane.b32.xlu1 %v9492_v22, %s10387_s13  ;;  %v12367_v51 = vpack.i.bf16 %v2069_v45, %v2068_v23  ;;  %v9497_v19 = vpack.i.bf16 %v3935_v9, %v3934_v57  ;;  %vm17741_vm14 = vmmov %vm17727_vm0 }
 0x389   : > { %17726 = vst [vmem:[#allocation84_spill] sm:$0xff] %v12351_v27  ;;  %17728 = vst [vmem:[#allocation85_spill] sm:$0xff] %v12354_v31  ;;  %v3936_v13 = vmul.f32 %v11588_v54, %v12354_v31  ;;  %v3937_v48 = vmul.f32 %v11593_v44, %v12357_v42  ;;  %v12365_v17 = vsel %vm17731_vm5, %v3456_v0, %v3458_v34  ;;  %9488 = vrot.lane.b32.xlu0 %v12317_v50, %s10386_s30 }
 0x38a   : > { %17730 = vst [vmem:[#allocation86_spill] sm:$0xff] %v12357_v42  ;;  %17732 = vst [vmem:[#allocation87_spill] sm:$0xff] %v12365_v17  ;;  %v9507_v6 = vpack.i.bf16 %v3878_v35, %v3877_v25  ;;  %v12372_v29 = vsel %vm17734_vm2, %v3458_v34, %v3460_v40  ;;  %v2024_v30 = vadd.f32 %v12219_v3, %v11810_v14  ;;  %v2990_v0 = vrot.slane %v2071_v21, 7 }
 0x38b   : > { %17733 = vst [vmem:[#allocation88_spill] sm:$0xff] %v12367_v51  ;;  %17735 = vst [vmem:[#allocation89_spill] sm:$0xff] %v12372_v29  ;;  %v3879_v22 = vmul.f32 %v11637_v37, %v12365_v17  ;;  %v12378_v1 = vpack.i.bf16 %v2071_v21, %v2070_v28  ;;  %v2025_v23 = vadd.f32 %v12226_v36, %v11752_v7  ;;  %v3462_v57 = vrot.slane %v2071_v21, 1 }
 0x38c   : > { %v9512_v45 = vpack.i.bf16 %v3937_v48, %v3936_v13  ;;  %v2072_v20 = vmax.f32 %v2024_v30, 0.0  ;;  %v2026_v35 = vadd.f32 %v12226_v36, %v11802_v58  ;;  %9503 = vrot.lane.b32.xlu1 %v12351_v27, %s10386_s30  ;;  %v3880_v3 = vmul.f32 %v11657_v33, %v12372_v29  ;;  %vm17743_vm11 = vmmov %vm17727_vm0 }
 0x38d   : > { %17736 = vst [vmem:[#allocation90_spill] sm:$0xff] %v12378_v1  ;;  %v12389_v34 = vsel %vm17737_vm7, %v2988_v10, %v2990_v0  ;;  %v2073_v28 = vmax.f32 %v2025_v23, 0.0  ;;  %v2027_v9 = vadd.f32 %v12226_v36, %v11810_v14  ;;  %9498 = vrot.lane.b32.xlu0 %v9497_v19, %s10389_s14  ;;  %v12395_v48 = vsel %vm17739_vm8, %v3460_v40, %v3462_v57  ;;  %vm17745_vm13 = vmmov %vm17734_vm2 }
 0x38e   : > { %17738 = vst [vmem:[#allocation91_spill] sm:$0xff] %v12389_v34  ;;  %v2992_v25 = vrot.slane %v2072_v20, 7  ;;  %v2074_v13 = vmax.f32 %v2026_v35, 0.0  ;;  %17740 = vst [vmem:[#allocation92_spill] sm:$0xff] %v12395_v48  ;;  %v2028_v21 = vadd.f32 %v12231_v4, %v11752_v7  ;;  %v3938_v30 = vmul.f32 %v11647_v32, %v12389_v34 }
 0x38f   : > { %v2994_v33 = vrot.slane %v2073_v28, 7  ;;  %v3464_v10 = vrot.slane %v2072_v20, 1  ;;  %v3466_v37 = vrot.slane %v2073_v28, 1  ;;  %v3881_v19 = vmul.f32 %v11689_v56, %v12395_v48  ;;  %vm17747_vm3 = vmmov %vm17734_vm2 }
 0x390   : > { %v12402_v23 = vsel %vm17741_vm14, %v2990_v0, %v2992_v25  ;;  %v2996_v36 = vrot.slane %v2074_v13, 7  ;;  %v3468_v35 = vrot.slane %v2074_v13, 1  ;;  %9513 = vrot.lane.b32.xlu1 %v9512_v45, %s10389_s14  ;;  %vm17749_vm6 = vmmov %vm17727_vm0  ;;  %v9522_v48 = vpack.i.bf16 %v3880_v3, %v3879_v22 }
 0x391   : > { %17742 = vst [vmem:[#allocation93_spill] sm:$0xff] %v12402_v23  ;;  %v3939_v40 = vmul.f32 %v11665_v59, %v12402_v23  ;;  %v12410_v29 = vsel %vm17743_vm11, %v2992_v25, %v2994_v33  ;;  %v12413_v17 = vsel %vm17745_vm13, %v3462_v57, %v3464_v10  ;;  %v12416_v27 = vsel %vm17747_vm3, %v3464_v10, %v3466_v37  ;;  %vm17751_vm10 = vmmov %vm17734_vm2 }
 0x392   : > { %17744 = vst [vmem:[#allocation94_spill] sm:$0xff] %v12410_v29  ;;  %17746 = vst [vmem:[#allocation95_spill] sm:$0xff] %v12413_v17  ;;  %9508 = vrot.lane.b32.xlu0 %v9507_v6, %s10387_s13  ;;  %v12420_v0 = vsel %vm17749_vm6, %v2994_v33, %v2996_v36  ;;  %v3940_v45 = vmul.f32 %v11679_v41, %v12410_v29  ;;  %v3882_v56 = vmul.f32 %v11694_v47, %v12413_v17  ;;  %v17755_v6 = vld [vmem:[#allocation31_spill] sm:$0xff] }
 0x393   : > { %17748 = vst [vmem:[#allocation96_spill] sm:$0xff] %v12416_v27  ;;  %17750 = vst [vmem:[#allocation97_spill] sm:$0xff] %v12420_v0  ;;  %v12427_v25 = vsel %vm17751_vm10, %v3466_v37, %v3468_v35  ;;  %v9527_v57 = vpack.i.bf16 %v3939_v40, %v3938_v30  ;;  %v3941_v10 = vmul.f32 %v17753_v46, %v12420_v0  ;;  %v2075_v18 = vmax.f32 %v2027_v9, 0.0  ;;  %v17756_v37 = vld [vmem:[#allocation32_spill] sm:$0xff] }
 0x394   : > { %17752 = vst [vmem:[#allocation98_spill] sm:$0xff] %v12427_v25  ;;  %v12431_v50 = vpack.i.bf16 %v2073_v28, %v2072_v20  ;;  %v3883_v33 = vmul.f32 %v17755_v6, %v12416_v27  ;;  %v2076_v26 = vmax.f32 %v2028_v21, 0.0  ;;  %v2029_v29 = vadd.f32 %v12231_v4, %v11802_v58  ;;  %9523 = vrot.lane.b32.xlu1 %v9522_v48, %s10387_s13  ;;  %vm17757_vm15 = vmmov %vm17727_vm0 }
 0x395   : > { %v9537_v47 = vpack.i.bf16 %v3882_v56, %v3881_v19  ;;  %v3884_v22 = vmul.f32 %v17756_v37, %v12427_v25  ;;  %v2030_v3 = vadd.f32 %v12231_v4, %v11810_v14  ;;  %v2031_v20 = vadd.f32 %v12236_v53, %v11752_v7  ;;  %vm17759_vm1 = vmmov %vm17727_vm0 }
 0x396   : > { %17754 = vst [vmem:[#allocation99_spill] sm:$0xff] %v12431_v50  ;;  %9518 = vrot.lane.b32.xlu0 %v12367_v51, %s10386_s30  ;;  %v9542_v28 = vpack.i.bf16 %v3941_v10, %v3940_v45  ;;  %v2998_v9 = vrot.slane %v2075_v18, 7  ;;  %v3000_v21 = vrot.slane %v2076_v26, 7  ;;  %v2077_v30 = vmax.f32 %v2029_v29, 0.0  ;;  %v17761_v45 = vld [vmem:[#allocation33_spill] sm:$0xff]  ;;  %v17762_v29 = vld [vmem:[#allocation34_spill] sm:$0xff]  ;;  %vm17763_vm4 = vmmov %vm17734_vm2 }
 0x397   : > { %v2078_v40 = vmax.f32 %v2030_v3, 0.0  ;;  %v3470_v6 = vrot.slane %v2075_v18, 1  ;;  %v3472_v48 = vrot.slane %v2076_v26, 1  ;;  %v2079_v56 = vmax.f32 %v2031_v20, 0.0  ;;  %vm17765_vm9 = vmmov %vm17727_vm0 }
 0x398   : > { %v12447_v19 = vsel %vm17757_vm15, %v2996_v36, %v2998_v9  ;;  %v12450_v37 = vsel %vm17759_vm1, %v2998_v9, %v3000_v21  ;;  %v3002_v4 = vrot.slane %v2077_v30, 7  ;;  %v3474_v25 = vrot.slane %v2077_v30, 1  ;;  %9533 = vrot.lane.b32.xlu1 %v12378_v1, %s10386_s30  ;;  %vm17767_vm0 = vmmov %vm17734_vm2  ;;  %v17769_v1 = vld [vmem:[#allocation37_spill] sm:$0xff] }
 0x399   : > { %17758 = vst [vmem:[#allocation100_spill] sm:$0xff] %v12447_v19  ;;  %17760 = vst [vmem:[#allocation101_spill] sm:$0xff] %v12450_v37  ;;  %v3942_v10 = vmul.f32 %v17761_v45, %v12447_v19  ;;  %v3943_v3 = vmul.f32 %v17762_v29, %v12450_v37  ;;  %v3004_v27 = vrot.slane %v2078_v40, 7  ;;  %v12459_v20 = vsel %vm17763_vm4, %v3468_v35, %v3470_v6 }
 0x39a   : > { %17764 = vst [vmem:[#allocation102_spill] sm:$0xff] %v12459_v20  ;;  %9528 = vrot.lane.b32.xlu0 %v9527_v57, %s10389_s14  ;;  %v12463_v36 = vsel %vm17765_vm9, %v3000_v21, %v3002_v4  ;;  %v12466_v9 = vsel %vm17767_vm0, %v3470_v6, %v3472_v48  ;;  %v12470_v17 = vmul.f32 %v17769_v1, %v12459_v20  ;;  %vm17770_vm12 = vmmov %vm17767_vm0  ;;  %v17775_v57 = vld [vmem:[#allocation38_spill] sm:$0xff]  ;;  %v17776_v6 = vld [vmem:[#allocation35_spill] sm:$0xff]  ;;  %v3476_v45 = vrot.slane %v2078_v40, 1 }
 0x39b   : > { %17766 = vst [vmem:[#allocation103_spill] sm:$0xff] %v12463_v36  ;;  %17768 = vst [vmem:[#allocation104_spill] sm:$0xff] %v12466_v9  ;;  %v12473_v51 = vsel %vm17770_vm12, %v3472_v48, %v3474_v25  ;;  %v9552_v37 = vpack.i.bf16 %v3884_v22, %v3883_v33  ;;  %v12475_v19 = vpack.i.bf16 %v2075_v18, %v2074_v13  ;;  %v17777_v1 = vld [vmem:[#allocation36_spill] sm:$0xff]  ;;  %v17778_v18 = vld [vmem:[#allocation39_spill] sm:$0xff]  ;;  %v3006_v48 = vrot.slane %v2079_v56, 7 }
 0x39c   : > { %17771 = vst [vmem:[#allocation105_spill] sm:$0xff] %v12473_v51  ;;  %vm17773_vm5 = vmmov %vm17759_vm1  ;;  %v12482_v21 = vmul.f32 %v17775_v57, %v12466_v9  ;;  %v9557_v0 = vpack.i.bf16 %v3943_v3, %v3942_v10  ;;  %v3944_v29 = vmul.f32 %v17776_v6, %v12463_v36  ;;  %9543 = vrot.lane.b32.xlu1 %v9542_v28, %s10389_s14  ;;  %v3478_v57 = vrot.slane %v2079_v56, 1  ;;  %v17786_v9 = vld [vmem:[#allocation41_spill] sm:$0xff] }
 0x39d   : > { %17772 = vst [vmem:[#allocation106_spill] sm:$0xff] %v12475_v19  ;;  %v12478_v35 = vsel %vm17773_vm5, %v3002_v4, %v3004_v27  ;;  %v12491_v13 = vmul.f32 %v17778_v18, %v12473_v51  ;;  %v12493_v33 = vpack.i.bf16 %v2077_v30, %v2076_v26  ;;  %v2032_v22 = vadd.f32 %v12236_v53, %v11802_v58  ;;  %vm17780_vm2 = vmmov %vm17767_vm0  ;;  %v17785_v51 = vld [vmem:[#allocation40_spill] sm:$0xff] }
 0x39e   : > { %17774 = vst [vmem:[#allocation107_spill] sm:$0xff] %v12478_v35  ;;  %v3945_v20 = vmul.f32 %v17777_v1, %v12478_v35  ;;  %9538 = vrot.lane.b32.xlu0 %v9537_v47, %s10387_s13  ;;  %v9567_v4 = vpack.i.bf16 %v12482_v21, %v12470_v17  ;;  %v12501_v10 = vsel %vm17780_vm2, %v3474_v25, %v3476_v45  ;;  %vm17783_vm7 = vmmov %vm17759_vm1  ;;  %vm3656_vm15 = vcmp.ge.s32.totalorder %v12191_v16, 0 }
 0x39f   : > { %17779 = vst [vmem:[#allocation108_spill] sm:$0xff] %v12493_v33  ;;  %17781 = vst [vmem:[#allocation109_spill] sm:$0xff] %v12501_v10  ;;  %v2033_v28 = vadd.f32 %v12236_v53, %v11810_v14  ;;  %v2034_v3 = vadd.f32 %v12294_v61, %v11752_v7  ;;  %v12507_v26 = vpack.i.bf16 %v2079_v56, %v2078_v40  ;;  %v2080_v30 = vmax.f32 %v2032_v22, 0.0 }
 0x3a0   : > { %v12510_v18 = vsel %vm17783_vm7, %v3004_v27, %v3006_v48  ;;  %v9572_v47 = vpack.i.bf16 %v3945_v20, %v3944_v29  ;;  %v3888_v17 = vmul.f32 %v17785_v51, %v12501_v10  ;;  %9553 = vrot.lane.b32.xlu1 %v9552_v37, %s10387_s13  ;;  %vm17787_vm8 = vmmov %vm17767_vm0  ;;  %v2035_v22 = vadd.f32 %v12294_v61, %v11802_v58  ;;  %v17794_v10 = vld [vmem:[#allocation42_spill] sm:$0xff] }
 0x3a1   : > { %17782 = vst [vmem:[#allocation110_spill] sm:$0xff] %v12507_v26  ;;  %17784 = vst [vmem:[#allocation111_spill] sm:$0xff] %v12510_v18  ;;  %v2081_v21 = vmax.f32 %v2033_v28, 0.0  ;;  %v12514_v25 = vmax.f32 %v2034_v3, 0.0  ;;  %v3008_v53 = vrot.slane %v2080_v30, 7  ;;  %v12519_v35 = vmul.f32 %v17786_v9, %v12510_v18 }
 0x3a2   : > { %v12522_v40 = vsel %vm17787_vm8, %v3476_v45, %v3478_v57  ;;  %v3480_v27 = vrot.slane %v2080_v30, 1  ;;  %9548 = vrot.lane.b32.xlu0 %v12431_v50, %s10386_s30  ;;  %vm17789_vm14 = vmmov %vm17759_vm1  ;;  %v17793_v45 = vld [vmem:[#allocation44_spill] sm:$0xff]  ;;  %vm2762_vm4 = vcmp.lt.s32.totalorder %v12158_v38, 0  ;;  %vm3704_vm9 = vcmp.lt.s32.totalorder %v12191_v16, 24 }
 0x3a3   : > { %17788 = vst [vmem:[#allocation112_spill] sm:$0xff] %v12522_v40  ;;  %v3010_v56 = vrot.slane %v2081_v21, 7  ;;  %v3012_v29 = vrot.slane %v12514_v25, 7  ;;  %v3482_v20 = vrot.slane %v2081_v21, 1  ;;  %v12530_v37 = vsel %vm17789_vm14, %v3006_v48, %v3008_v53  ;;  %vm17791_vm11 = vmmov %vm17767_vm0  ;;  %v17799_v48 = vld [vmem:[#allocation46_spill] sm:$0xff] }
 0x3a4   : > { %17790 = vst [vmem:[#allocation113_spill] sm:$0xff] %v12530_v37  ;;  %v12533_v28 = vsel %vm17791_vm11, %v3478_v57, %v3480_v27  ;;  %v12537_v3 = vmul.f32 %v17793_v45, %v12522_v40  ;;  %v3484_v51 = vrot.slane %v12514_v25, 1  ;;  %v12542_v50 = vmul.f32 %v17794_v10, %v12530_v37  ;;  %vm17795_vm13 = vmmov %vm17759_vm1  ;;  %9563 = vrot.lane.b32.xlu1 %v12475_v19, %s10386_s30  ;;  %v17800_v45 = vld [vmem:[#allocation43_spill] sm:$0xff]  ;;  %v17801_v37 = vld [vmem:[#allocation45_spill] sm:$0xff] }
 0x3a5   : > { %17792 = vst [vmem:[#allocation114_spill] sm:$0xff] %v12533_v28  ;;  %v12545_v18 = vsel %vm17795_vm13, %v3008_v53, %v3010_v56  ;;  %vm17797_vm3 = vmmov %vm17759_vm1  ;;  %v12552_v57 = vmul.f32 %v17799_v48, %v12533_v28  ;;  %v9582_v48 = vpack.i.bf16 %v3888_v17, %v12491_v13  ;;  %v17806_v28 = vld [vmem:[#allocation47_spill] sm:$0xff]  ;;  %vm2714_vm1 = vcmp.ne.s32.totalorder %v12158_v38, 0 }
 0x3a6   : > { %17796 = vst [vmem:[#allocation115_spill] sm:$0xff] %v12545_v18  ;;  %v12548_v36 = vsel %vm17797_vm3, %v3010_v56, %v3012_v29  ;;  %v12558_v40 = vmul.f32 %v17800_v45, %v12545_v18  ;;  %vm17802_vm6 = vmmov %vm17767_vm0  ;;  %9558 = vrot.lane.b32.xlu0 %v9557_v0, %s10389_s14  ;;  %v1984_v0 = vrot.slane %v12208_v62, %v11360_v24  ;;  %v17810_v24 = vld [vmem:[#allocation48_spill] sm:$0xff]  ;;  %v2150_v32 = vadd.s32 320, %v11306_v63 }
 0x3a7   : > { %17798 = vst [vmem:[#allocation116_spill] sm:$0xff] %v12548_v36  ;;  %v12562_v10 = vmul.f32 %v17801_v37, %v12548_v36  ;;  %v12565_v53 = vsel %vm17802_vm6, %v3480_v27, %v3482_v20  ;;  %vm17804_vm10 = vmmov %vm17767_vm0  ;;  %v12580_v36 = vpack.i.bf16 %v2081_v21, %v2080_v30  ;;  %v9587_v27 = vpack.i.bf16 %v12542_v50, %v12519_v35 }
 0x3a8   : > { %17803 = vst [vmem:[#allocation117_spill] sm:$0xff] %v12565_v53  ;;  %v12568_v56 = vsel %vm17804_vm10, %v3482_v20, %v3484_v51  ;;  %v12574_v19 = vmul.f32 %v17806_v28, %v12565_v53  ;;  %v2083_v37 = vmax.f32 %v2035_v22, 0.0  ;;  %v2036_v20 = vadd.f32 %v12294_v61, %v11810_v14  ;;  %9573 = vrot.lane.b32.xlu1 %v9572_v47, %s10389_s14  ;;  %vm17808_vm0 = vmmov %vm17797_vm3 }
 0x3a9   : > { %17805 = vst [vmem:[#allocation118_spill] sm:$0xff] %v12568_v56  ;;  %v12578_v18 = vmul.f32 %v12101_v11, %v12568_v56  ;;  %17807 = vst [vmem:[#allocation119_spill] sm:$0xff] %v12580_v36  ;;  %v9602_v13 = vpack.i.bf16 %v12562_v10, %v12558_v40  ;;  %v2037_v35 = vadd.f32 %v1984_v0, %v11752_v7  ;;  %v17821_v56 = vmov 0.0  }
 0x3aa   : > { %v2084_v61 = vmax.f32 %v2036_v20, 0.0  ;;  %v3014_v50 = vrot.slane %v2083_v37, 7  ;;  %9568 = vrot.lane.b32.xlu0 %v9567_v4, %s10387_s13  ;;  %v2038_v10 = vadd.f32 %v1984_v0, %v11802_v58  ;;  %v3486_v21 = vrot.slane %v2083_v37, 1  ;;  %vm17811_vm12 = vmmov %vm17780_vm2 }
 0x3ab   : > { %v2039_v40 = vadd.f32 %v1984_v0, %v11810_v14  ;;  %v1988_v22 = vrot.slane %v12208_v62, %v11365_v60  ;;  %v2085_v20 = vmax.f32 %v2037_v35, 0.0  ;;  %vm3752_vm5 = vmand %vm3656_vm15, %vm3704_vm9  ;;  %v2152_v54 = vadd.s32 336, %v11306_v63 }
 0x3ac   : > { %v12606_v30 = vsel %vm17808_vm0, %v3012_v29, %v3014_v50  ;;  %v3016_v47 = vrot.slane %v2084_v61, 7  ;;  %v3488_v17 = vrot.slane %v2084_v61, 1  ;;  %v12612_v28 = vmax.f32 %v2038_v10, 0.0  ;;  %9583 = vrot.lane.b32.xlu1 %v9582_v48, %s10387_s13  ;;  %vm17813_vm2 = vmmov %vm17808_vm0  ;;  %v17817_v48 = vld [vmem:[#allocation57_spill] sm:$0xff] }
 0x3ad   : > { %17809 = vst [vmem:[#allocation120_spill] sm:$0xff] %v12606_v30  ;;  %v12610_v11 = vmul.f32 %v17810_v24, %v12606_v30  ;;  %v12615_v4 = vsel %vm17811_vm12, %v3484_v51, %v3486_v21  ;;  %v12619_v0 = vmax.f32 %v2039_v40, 0.0  ;;  %v3018_v35 = vrot.slane %v2085_v20, 7  ;;  %vm17815_vm7 = vmmov %vm17802_vm6 }
 0x3ae   : > { %17812 = vst [vmem:[#allocation121_spill] sm:$0xff] %v12615_v4  ;;  %v12623_v29 = vsel %vm17813_vm2, %v3014_v50, %v3016_v47  ;;  %v12626_v60 = vsel %vm17815_vm7, %v3486_v21, %v3488_v17  ;;  %v12630_v10 = vmul.f32 %v12155_v12, %v12615_v4  ;;  %9578 = vrot.lane.b32.xlu0 %v12493_v33, %s10386_s30  ;;  %v3020_v51 = vrot.slane %v12612_v28, 7  ;;  %vm17819_vm8 = vmmov %vm17808_vm0 }
 0x3af   : > { %17814 = vst [vmem:[#allocation122_spill] sm:$0xff] %v12623_v29  ;;  %17816 = vst [vmem:[#allocation123_spill] sm:$0xff] %v12626_v60  ;;  %v12636_v16 = vmul.f32 %v12140_v43, %v12623_v29  ;;  %v12641_v50 = vmul.f32 %v17817_v48, %v12626_v60  ;;  %v3490_v40 = vrot.slane %v2085_v20, 1  ;;  %v12644_v21 = vpack.i.bf16 %v2083_v37, %v12514_v25  ;;  %v17825_v29 = vld [vmem:[#allocation54_spill] sm:$0xff]  ;;  %v17828_v37 = vld [vmem:[#allocation55_spill] sm:$0xff] }
 0x3b0   : > { %v12647_v12 = vsel %vm17819_vm8, %v3016_v47, %v3018_v35  ;;  %v3492_v4 = vrot.slane %v12612_v28, 1  ;;  %v12651_v53 = vsel %vm3752_vm5, 1.0, %v17821_v56  ;;  %vm17823_vm14 = vmmov %vm17808_vm0  ;;  %v12660_v48 = vpack.i.bf16 %v2085_v20, %v2084_v61  ;;  %9593 = vrot.lane.b32.xlu1 %v12507_v26, %s10386_s30  ;;  %v17835_v20 = vld [vmem:[#allocation63_spill] sm:$0xff] }
 0x3b1   : > { %17818 = vst [vmem:[#allocation124_spill] sm:$0xff] %v12644_v21  ;;  %17820 = vst [vmem:[#allocation125_spill] sm:$0xff] %v12647_v12  ;;  %v12654_v33 = vsel %vm17823_vm14, %v3018_v35, %v3020_v51  ;;  %v12658_v30 = vmul.f32 %v17825_v29, %v12647_v12  ;;  %v12664_v25 = vpack.i.bf16 %v12619_v0, %v12612_v28  ;;  %v3022_v26 = vrot.slane %v12619_v0, 7 }
 0x3b2   : > { %17822 = vst [vmem:[#allocation126_spill] sm:$0xff] %v12651_v53  ;;  %17824 = vst [vmem:[#allocation127_spill] sm:$0xff] %v12654_v33  ;;  %v12670_v47 = vmul.f32 %v17828_v37, %v12654_v33  ;;  %v2040_v61 = vadd.f32 %v1988_v22, %v11752_v7  ;;  %9588 = vrot.lane.b32.xlu0 %v9587_v27, %s10389_s14  ;;  %v9617_v28 = vpack.i.bf16 %v12636_v16, %v12610_v11  ;;  %v17833_v33 = vld [vmem:[#allocation62_spill] sm:$0xff] }
 0x3b3   : > { %17826 = vst [vmem:[#allocation128_spill] sm:$0xff] %v12660_v48  ;;  %17827 = vst [vmem:[#allocation129_spill] sm:$0xff] %v12664_v25  ;;  %vm3181_vm3 = vcmp.ge.s32.totalorder %v17833_v33, 0  ;;  %v2041_v27 = vadd.f32 %v1988_v22, %v11802_v58  ;;  %vm2715_vm9 = vcmp.ne.s32.totalorder %v17835_v20, 0  ;;  %v3494_v43 = vrot.slane %v12619_v0, 1 }
 0x3b4   : > { %vm17829_vm11 = vmmov %vm17802_vm6  ;;  %9603 = vrot.lane.b32.xlu1 %v9602_v13, %s10389_s14  ;;  %v2859_v13 = vadd.s32 24, %v17835_v20 }
 0x3b5   : > { %v12673_v35 = vsel %vm17829_vm11, %v3488_v17, %v3490_v40  ;;  %vm17831_vm13 = vmmov %vm17802_vm6  ;;  %v17834_v17 = vld [vmem:[#allocation58_spill] sm:$0xff]  ;;  %vm3229_vm6 = vcmp.lt.s32.totalorder %v17833_v33, 24  ;;  %v12708_v33 = vsel %vm17808_vm0, %v3020_v51, %v3022_v26  ;;  %v12714_v11 = vmax.f32 %v2041_v27, 0.0  ;;  %v17839_v51 = vld [vmem:[#allocation64_spill] sm:$0xff] }
 0x3b6   : > { %17830 = vst [vmem:[#allocation130_spill] sm:$0xff] %v12673_v35  ;;  %v12676_v60 = vsel %vm17831_vm13, %v3490_v40, %v3492_v4  ;;  %v12688_v12 = vmul.f32 %v17834_v17, %v12673_v35  ;;  %v12690_v40 = vmax.f32 %v2040_v61, 0.0  ;;  %vm2810_vm10 = vmand %vm2762_vm4, %vm2714_vm1  ;;  %v2042_v61 = vadd.f32 %v1988_v22, %v11810_v14 }
 0x3b7   : > { %17832 = vst [vmem:[#allocation131_spill] sm:$0xff] %v12676_v60  ;;  %v12702_v16 = vmul.f32 %v12651_v53, %v12676_v60  ;;  %vm3277_vm15 = vmand %vm3181_vm3, %vm3229_vm6  ;;  %v17838_v53 = vpack.i.bf16 %v12552_v57, %v12537_v3  ;;  %vm2763_vm1 = vcmp.lt.s32.totalorder %v17835_v20, 0  ;;  %v2906_v60 = vsel %vm2810_vm10, %v17839_v51, %v12158_v38  ;;  %v17842_v3 = vld [vmem:[#allocation60_spill] sm:$0xff] }
 0x3b8   : > { %17836 = vst [vmem:[#allocation62_spill] sm:$0xff] %v12708_v33  ;;  %v3024_v17 = vrot.slane %v12690_v40, 7  ;;  %v12712_v35 = vsel %vm3277_vm15, 1.0, %v17821_v56  ;;  %v12720_v22 = vmax.f32 %v2042_v61, 0.0  ;;  %vm17840_vm4 = vmmov %vm17808_vm0  ;;  %v3026_v27 = vrot.slane %v12714_v11, 7 }
 0x3b9   : > { %17837 = vst [vmem:[#allocation63_spill] sm:$0xff] %v12712_v35  ;;  %9598 = vrot.lane.b32.xlu0 %v17838_v53, %s10387_s13  ;;  %vm2811_vm12 = vmand %vm2763_vm1, %vm2715_vm9  ;;  %v3134_v29 = vadd.s32 4294967295, %v2906_v60  ;;  %v12733_v57 = vmul.f32 %v17842_v3, %v12708_v33  ;;  %v3496_v24 = vrot.slane %v12690_v40, 1  ;;  %v17843_v38 = vpack.i.bf16 %v12578_v18, %v12574_v19 }
 0x3ba   : > { %v12727_v37 = vsel %vm17840_vm4, %v3022_v26, %v3024_v17  ;;  %v2907_v53 = vsel %vm2811_vm12, %v2859_v13, %v17835_v20  ;;  %v17191_v61 = vrot.slane %v12720_v22, 7  ;;  %vm17844_vm5 = vmmov %vm17808_vm0  ;;  %v12757_v19 = vsel %vm17829_vm11, %v3492_v4, %v3494_v43  ;;  %v17854_v4 = vld [vmem:[#allocation65_spill] sm:$0xff] }
 0x3bb   : > { %17841 = vst [vmem:[#allocation64_spill] sm:$0xff] %v12727_v37  ;;  %9613 = vrot.lane.b32.xlu1 %v17843_v38, %s10387_s13  ;;  %v12743_v26 = vsel %vm17844_vm5, %v3024_v17, %v3026_v27  ;;  %v3135_v51 = vadd.s32 4294967295, %v2907_v53  ;;  %vm3182_vm2 = vcmp.ge.s32.totalorder %v3134_v29, 0  ;;  %vm3230_vm7 = vcmp.lt.s32.totalorder %v3134_v29, 24  ;;  %vm17846_vm8 = vmmov %vm17808_vm0  ;;  %v17852_v38 = vld [vmem:[#allocation51_spill] sm:$0xff] }
 0x3bc   : > { %17845 = vst [vmem:[#allocation132_spill] sm:$0xff] %v12743_v26  ;;  %v12749_v0 = vmul.f32 %v12712_v35, %v12727_v37  ;;  %v12754_v20 = vsel %vm17846_vm8, %v3026_v27, %v17191_v61  ;;  %vm3278_vm14 = vmand %vm3182_vm2, %vm3230_vm7  ;;  %v3609_v17 = vadd.s32 1, %v2906_v60  ;;  %v3610_v27 = vadd.s32 1, %v2907_v53  ;;  %v17856_v53 = vld [vmem:[#allocation49_spill] sm:$0xff] }
 0x3bd   : > { %9608 = vrot.lane.b32.xlu0 %v12580_v36, %s10386_s30  ;;  %17847 = vst [vmem:[#allocation133_spill] sm:$0xff] %v12754_v20  ;;  %17848 = vst [vmem:[#allocation134_spill] sm:$0xff] %v12757_v19  ;;  %vm3183_vm3 = vcmp.ge.s32.totalorder %v3135_v51, 0  ;;  %vm3231_vm6 = vcmp.lt.s32.totalorder %v3135_v51, 24  ;;  %v12763_v29 = vsel %vm3278_vm14, 1.0, %v17821_v56  ;;  %v17853_v61 = vshrl.u32 %v17852_v38, 4 }
 0x3be   : > { %vm17849_vm13 = vmmov %vm17829_vm11  ;;  %17851 = vst [vmem:[#allocation136_spill] sm:$0xff] %v12763_v29  ;;  %v12767_v13 = vmul.f32 %v12763_v29, %v12743_v26  ;;  %vm2716_vm15 = vcmp.ne.s32.totalorder %v17854_v4, 0  ;;  %vm3657_vm9 = vcmp.ge.s32.totalorder %v3609_v17, 0  ;;  %vm3705_vm0 = vcmp.lt.s32.totalorder %v3609_v17, 24 }
 0x3bf   : > { %v12760_v18 = vsel %vm17849_vm13, %v3494_v43, %v3496_v24  ;;  %vm3279_vm10 = vmand %vm3183_vm3, %vm3231_vm6  ;;  %v2506_v36 = vmul.u32 24, %v17853_v61  ;;  %9623 = vrot.lane.b32.xlu1 %v12644_v21, %s10386_s30  ;;  %vm2764_vm1 = vcmp.lt.s32.totalorder %v17854_v4, 0  ;;  %vm3658_vm4 = vcmp.ge.s32.totalorder %v3610_v27, 0 }
 0x3c0   : > { %17850 = vst [vmem:[#allocation135_spill] sm:$0xff] %v12760_v18  ;;  %v12775_v43 = vsel %vm3279_vm10, 1.0, %v17821_v56  ;;  %vm3706_vm12 = vcmp.lt.s32.totalorder %v3610_v27, 24  ;;  %vm3753_vm5 = vmand %vm3657_vm9, %vm3705_vm0  ;;  %v2860_v38 = vadd.s32 24, %v17854_v4  ;;  %v3498_v17 = vrot.slane %v12714_v11, 1 }
 0x3c1   : > { %17855 = vst [vmem:[#allocation51_spill] sm:$0xff] %v12775_v43  ;;  %9618 = vrot.lane.b32.xlu0 %v9617_v28, %s10389_s14  ;;  %v12781_v60 = vmul.f32 %v12775_v43, %v12754_v20  ;;  %v2507_v61 = vsub.s32 %v17856_v53, %v2506_v36  ;;  %vm3754_vm2 = vmand %vm3658_vm4, %vm3706_vm12  ;;  %v12785_v51 = vsel %vm3753_vm5, 1.0, %v17821_v56  ;;  %v9642_v28 = vpack.i.bf16 %v12702_v16, %v12688_v12 }
 0x3c2   : > { %17857 = vst [vmem:[#allocation65_spill] sm:$0xff] %v12785_v51  ;;  %v9647_v20 = vpack.i.bf16 %v12749_v0, %v12733_v57  ;;  %v12795_v27 = vsel %vm3754_vm2, 1.0, %v17821_v56  ;;  %vm2812_vm8 = vmand %vm2764_vm1, %vm2716_vm15  ;;  %v17859_v36 = vpack.i.bf16 %v12670_v47, %v12658_v30  ;;  %v17860_v0 = vpack.i.bf16 %v12641_v50, %v12630_v10 }
 0x3c3   : > { %17858 = vst [vmem:[#allocation49_spill] sm:$0xff] %v12795_v27  ;;  %vm2717_vm7 = vcmp.ne.s32.totalorder %v2507_v61, 0  ;;  %v9662_v12 = vpack.i.bf16 %v12781_v60, %v12767_v13  ;;  %vm2765_vm14 = vcmp.lt.s32.totalorder %v2507_v61, 0  ;;  %v2861_v16 = vadd.s32 24, %v2507_v61  ;;  %vm17863_vm3 = vmmov %vm17849_vm13 }
 0x3c4   : > { %9633 = vrot.lane.b32.xlu1 %v17859_v36, %s10389_s14  ;;  %v2908_v57 = vsel %vm2812_vm8, %v2860_v38, %v17854_v4  ;;  %v3897_v53 = vmul.f32 %v12785_v51, %v12757_v19  ;;  %v3898_v21 = vmul.f32 %v12795_v27, %v12760_v18  ;;  %vm2813_vm11 = vmand %vm2765_vm14, %vm2717_vm7  ;;  %v12817_v30 = vsel %vm17849_vm13, %v3496_v24, %v3498_v17  ;;  %v17865_v38 = vld [vmem:[#allocation11_spill] sm:$0xff] }
 0x3c5   : > { %9628 = vrot.lane.b32.xlu0 %v17860_v0, %s10387_s13  ;;  %17861 = vst [vmem:[#allocation137_spill] sm:$0xff] %v12817_v30  ;;  %v3611_v47 = vadd.s32 1, %v2908_v57  ;;  %v2909_v13 = vsel %vm2813_vm11, %v2861_v16, %v2507_v61  ;;  %v17862_v60 = vrot.slane %v12720_v22, 1  ;;  %v1992_v10 = vrot.slane %v12208_v62, %v17865_v38  ;;  %vm17885_vm13 = vmmov %vm17863_vm3 }
 0x3c6   : > { %v3136_v50 = vadd.s32 4294967295, %v2908_v57  ;;  %v3612_v36 = vadd.s32 1, %v2909_v13  ;;  %v3137_v0 = vadd.s32 4294967295, %v2909_v13  ;;  %v9657_v27 = vpack.i.bf16 %v3898_v21, %v3897_v53  ;;  %v5678_v21 = vld [vmem:[%s16997_s7 + $0xa0] sm:$0xff] }
 0x3c7   : > { %v12822_v4 = vsel %vm17863_vm3, %v3498_v17, %v17862_v60  ;;  %vm3659_vm6 = vcmp.ge.s32.totalorder %v3611_v47, 0  ;;  %vm3707_vm10 = vcmp.lt.s32.totalorder %v3611_v47, 24  ;;  %v2043_v24 = vadd.f32 %v1992_v10, %v11752_v7 }
 0x3c8   : > { %17864 = vst [vmem:[#allocation138_spill] sm:$0xff] %v12822_v4  ;;  %9643 = vrot.lane.b32.xlu1 %v9642_v28, %s10387_s13  ;;  %vm3755_vm15 = vmand %vm3659_vm6, %vm3707_vm10  ;;  %v2044_v61 = vadd.f32 %v1992_v10, %v11802_v58  ;;  %vm3184_vm9 = vcmp.ge.s32.totalorder %v3136_v50, 0  ;;  %vm3232_vm0 = vcmp.lt.s32.totalorder %v3136_v50, 24  ;;  %vm3660_vm1 = vcmp.ge.s32.totalorder %v3612_v36, 0 }
 0x3c9   : > { %9638 = vrot.lane.b32.xlu0 %v12660_v48, %s10386_s30  ;;  %vm3708_vm4 = vcmp.lt.s32.totalorder %v3612_v36, 24  ;;  %v12832_v17 = vsel %vm3755_vm15, 1.0, %v17821_v56  ;;  %vm3185_vm12 = vcmp.ge.s32.totalorder %v3137_v0, 0  ;;  %vm12834_vm5 = vmand %vm3184_vm9, %vm3232_vm0  ;;  %v12840_v28 = vpack.i.bf16 %v12714_v11, %v12690_v40 }
 0x3ca   : > { %17866 = vst [vmem:[#allocation139_spill] sm:$0xff] %v12832_v17  ;;  %vm3756_vm2 = vmand %vm3660_vm1, %vm3708_vm4  ;;  %v12842_v57 = vmax.f32 %v2043_v24, 0.0  ;;  %v12844_v47 = vmax.f32 %v2044_v61, 0.0  ;;  %vm3233_vm7 = vcmp.lt.s32.totalorder %v3137_v0, 24  ;;  %v3899_v60 = vmul.f32 %v12832_v17, %v12817_v30 }
 0x3cb   : > { %17869 = vst [vmem:[#allocation140_spill] sm:$0xff] %v12840_v28  ;;  %v12847_v13 = vsel %vm3756_vm2, 1.0, %v17821_v56  ;;  %vm3281_vm8 = vmand %vm3185_vm12, %vm3233_vm7  ;;  %v17871_v50 = vsub.s32 3, %v11306_v63  ;;  %v2045_v40 = vadd.f32 %v1992_v10, %v11810_v14  ;;  %v12866_v61 = vsel %vm12834_vm5, 1.0, %v17821_v56 }
 0x3cc   : > { %17870 = vst [vmem:[#allocation141_spill] sm:$0xff] %v12847_v13  ;;  %9653 = vrot.lane.b32.xlu1 %v12664_v25, %s10386_s30  ;;  %v3900_v11 = vmul.f32 %v12847_v13, %v12822_v4  ;;  %v3030_v0 = vrot.slane %v12842_v57, 7  ;;  %v3032_v24 = vrot.slane %v12844_v47, 7  ;;  %17872 = vst [vmem:[#allocation142_spill] sm:$0xff] %v12866_v61  ;;  %v17874_v13 = vld [vmem:[#allocation61_spill] sm:$0xff]  ;;  %v17875_v51 = vrot.slane %v12720_v22, 7 }
 0x3cd   : > { %v12854_v36 = vrot.slane %v12208_v62, %v17871_v50  ;;  %9648 = vrot.lane.b32.xlu0 %v9647_v20, %s10389_s14  ;;  %v12870_v50 = vsel %vm3281_vm8, 1.0, %v17821_v56  ;;  %v12874_v38 = vmax.f32 %v2045_v40, 0.0  ;;  %v2516_v17 = vshrl.u32 %v17874_v13, 4  ;;  %vm17892_vm0 = vmmov %vm17885_vm13 }
 0x3ce   : > { %17873 = vst [vmem:[#allocation143_spill] sm:$0xff] %v12870_v50  ;;  %vm17876_vm14 = vcmask 1040384   ;;  %v3502_v20 = vrot.slane %v12842_v57, 1  ;;  %v12901_v53 = vpack.i.bf16 %v12842_v57, %v12720_v22  ;;  %vm17894_vm7 = vmmov %vm17892_vm0 }
 0x3cf   : > { %v2046_v10 = vadd.f32 %v12854_v36, %v11752_v7  ;;  %v12880_v4 = vsel %vm17876_vm14, %v17875_v51, %v3030_v0  ;;  %vm17878_vm11 = vmmov %vm17876_vm14  ;;  %v2517_v13 = vmul.u32 24, %v2516_v17  ;;  %v5679_v51 = vld [vmem:[%s16997_s7 + $0xa8] sm:$0xff]  ;;  %v3034_v17 = vrot.slane %v12874_v38, 7 }
 0x3d0   : > { %17877 = vst [vmem:[#allocation61_spill] sm:$0xff] %v12880_v4  ;;  %v12883_v16 = vsel %vm17878_vm11, %v3030_v0, %v3032_v24  ;;  %v3958_v30 = vmul.f32 %v12866_v61, %v12880_v4  ;;  %9663 = vrot.lane.b32.xlu1 %v9662_v12, %s10389_s14  ;;  %17881 = vst [vmem:[#allocation146_spill] sm:$0xff] %v12901_v53  ;;  %v17882_v0 = vld [vmem:[#allocation59_spill] sm:$0xff]  ;;  %v8983_v26 = vpack.c.bf16 %v5679_v51, %v5678_v21 }
 0x3d1   : > { %17879 = vst [vmem:[#allocation144_spill] sm:$0xff] %v12883_v16  ;;  %v3959_v40 = vmul.f32 %v12870_v50, %v12883_v16  ;;  %v12890_v18 = vmax.f32 %v2046_v10, 0.0  ;;  %v12904_v19 = vmul.u32.u64.low 2863311531, %v17882_v0  ;;  %v12905_v25 = vmul.u32.u64.high 2863311531, %v17882_v0, %v12904_v19  ;;  %9658 = vrot.lane.b32.xlu0 %v9657_v27, %s10387_s13  ;;  %v17883_v16 = vld [vmem:[#allocation52_spill] sm:$0xff]  ;;  %vm17887_vm15 = vmmov %vm17878_vm11 }
 0x3d2   : > { %v9672_v10 = vpack.i.bf16 %v3900_v11, %v3899_v60  ;;  %v2518_v4 = vsub.s32 %v17883_v16, %v2517_v13  ;;  %v17884_v50 = vrot.slane %v12720_v22, 1  ;;  %v2144_v61 = vadd.s32 272, %v11306_v63  ;;  %8984 = vmatpush1.bf16.msra.mxu1 %v8983_v26  ;;  %v5681_v16 = vld [vmem:[%s16997_s7 + $0xb8] sm:$0xff]  ;;  %vm17890_vm9 = vmmov %vm17878_vm11 }
 0x3d3   : > { %17880 = vst [vmem:[#allocation145_spill] sm:$0xff] %v12890_v18  ;;  %v9677_v48 = vpack.i.bf16 %v3959_v40, %v3958_v30  ;;  %v17233_v57 = vrot.slane %v12890_v18, 7  ;;  %v2145_v19 = vadd.s32 280, %v11306_v63  ;;  %v3504_v27 = vrot.slane %v12844_v47, 1 }
 0x3d4   : > { %v12913_v12 = vsel %vm17885_vm13, %v17884_v50, %v3502_v20  ;;  %vm2718_vm3 = vcmp.ne.s32.totalorder %v2518_v4, 0  ;;  %vm2766_vm6 = vcmp.lt.s32.totalorder %v2518_v4, 0  ;;  %v2862_v37 = vadd.s32 24, %v2518_v4  ;;  %9673 = vrot.lane.b32.xlu1 %v9672_v10, %s10387_s13  ;;  %v5680_v50 = vld [vmem:[%s16997_s7 + $0xb0] sm:$0xff] }
 0x3d5   : > { %17886 = vst [vmem:[#allocation59_spill] sm:$0xff] %v12913_v12  ;;  %v2527_v30 = vshrl.u32 %v12905_v25, 4  ;;  %vm2814_vm10 = vmand %vm2766_vm6, %vm2718_vm3  ;;  %v12922_v22 = vsel %vm17887_vm15, %v3032_v24, %v3034_v17  ;;  %v12924_v60 = vmul.u32.u64.low 2863311531, %v2144_v61  ;;  %v12925_v11 = vmul.u32.u64.high 2863311531, %v2144_v61, %v12924_v60  ;;  %9668 = vrot.lane.b32.xlu0 %v12840_v28, %s10386_s30 }
 0x3d6   : > { %17888 = vst [vmem:[#allocation52_spill] sm:$0xff] %v12922_v22  ;;  %v2910_v25 = vsel %vm2814_vm10, %v2862_v37, %v2518_v4  ;;  %v12935_v40 = vmul.u32.u64.low 2863311531, %v2145_v19  ;;  %v12936_v13 = vmul.u32.u64.high 2863311531, %v2145_v19, %v12935_v40  ;;  %v3506_v26 = vrot.slane %v12874_v38, 1  ;;  %vm17899_vm3 = vmmov %vm17892_vm0 }
 0x3d7   : > { %v17889_v24 = vmov 0.0|0.0   ;;  %v2528_v21 = vmul.u32 24, %v2527_v30  ;;  %v12943_v51 = vsel %vm17890_vm9, %v3034_v17, %v17233_v57  ;;  %v3138_v10 = vadd.s32 4294967295, %v2910_v25 }
 0x3d8   : > { %8985 = vmatprep.subr.bf16.mxu1 %v17889_v24  ;;  %17891 = vst [vmem:[#allocation147_spill] sm:$0xff] %v12943_v51  ;;  %v3613_v60 = vadd.s32 1, %v2910_v25  ;;  %v12946_v43 = vsel %vm17892_vm0, %v3502_v20, %v3504_v27  ;;  %v17232_v37 = vrot.slane %v12890_v18, 1  ;;  %v8986_v4 = vpack.c.bf16 %v5681_v16, %v5680_v50  ;;  %9683 = vrot.lane.b32.xlu1 %v12901_v53, %s10386_s30 }
 0x3d9   : > { %17893 = vst [vmem:[#allocation148_spill] sm:$0xff] %v12946_v43  ;;  %v2047_v40 = vadd.f32 %v12854_v36, %v11802_v58  ;;  %v2529_v30 = vsub.s32 %v17882_v0, %v2528_v21  ;;  %vm3186_vm1 = vcmp.ge.s32.totalorder %v3138_v10, 0  ;;  %vm3234_vm4 = vcmp.lt.s32.totalorder %v3138_v10, 24  ;;  %9678 = vrot.lane.b32.xlu0 %v9677_v48, %s10389_s14  ;;  %v5682_v21 = vld [vmem:[%s16997_s7 + $0xc0] sm:$0xff]  ;;  %v5683_v10 = vld [vmem:[%s16997_s7 + $0xc8] sm:$0xff] }
 0x3da   : > { %vm3661_vm12 = vcmp.ge.s32.totalorder %v3613_v60, 0  ;;  %vm3282_vm5 = vmand %vm3186_vm1, %vm3234_vm4  ;;  %vm3709_vm2 = vcmp.lt.s32.totalorder %v3613_v60, 24  ;;  %v2538_v20 = vshrl.u32 %v12925_v11, 4  ;;  %v2549_v17 = vshrl.u32 %v12936_v13, 4  ;;  %8987 = vmatpush1.bf16.msra.mxu1 %v8986_v4 }
 0x3db   : > { %v12958_v50 = vsel %vm17894_vm7, %v3504_v27, %v3506_v26  ;;  %vm2719_vm8 = vcmp.ne.s32.totalorder %v2529_v30, 0  ;;  %vm2767_vm14 = vcmp.lt.s32.totalorder %v2529_v30, 0  ;;  %v2863_v16 = vadd.s32 24, %v2529_v30  ;;  %vm12963_vm11 = vmand %vm3661_vm12, %vm3709_vm2  ;;  %8988 = vmatprep.subr.bf16.mxu1 %v17889_v24 }
 0x3dc   : > { %17895 = vst [vmem:[#allocation149_spill] sm:$0xff] %v12958_v50  ;;  %v12961_v0 = vsel %vm3282_vm5, 1.0, %v17821_v56  ;;  %vm2815_vm13 = vmand %vm2767_vm14, %vm2719_vm8  ;;  %v2539_v48 = vmul.u32 24, %v2538_v20  ;;  %v2550_v11 = vmul.u32 24, %v2549_v17  ;;  %v12971_v27 = vsel %vm17899_vm3, %v3506_v26, %v17232_v37 }
 0x3dd   : > { %17896 = vst [vmem:[#allocation150_spill] sm:$0xff] %v12961_v0  ;;  %17900 = vst [vmem:[#allocation151_spill] sm:$0xff] %v12971_v27  ;;  %v12975_v13 = vpack.i.bf16 %v12874_v38, %v12844_v47  ;;  %v2911_v60 = vsel %vm2815_vm13, %v2863_v16, %v2529_v30  ;;  %v3960_v4 = vmul.f32 %v12961_v0, %v12922_v22  ;;  %v12985_v20 = vmax.f32 %v2047_v40, 0.0 }
 0x3de   : > { %v2048_v26 = vadd.f32 %v12854_v36, %v11810_v14  ;;  %v3139_v17 = vadd.s32 4294967295, %v2911_v60  ;;  %v3614_v38 = vadd.s32 1, %v2911_v60  ;;  %v2540_v47 = vsub.s32 %v2144_v61, %v2539_v48 }
 0x3df   : > { %17901 = vst [vmem:[#allocation152_spill] sm:$0xff] %v12975_v13  ;;  %17902 = vst [vmem:[#allocation153_spill] sm:$0xff] %v12985_v20  ;;  %v2551_v37 = vsub.s32 %v2145_v19, %v2550_v11  ;;  %v12992_v57 = vsel %vm12963_vm11, 1.0, %v17821_v56  ;;  %v3038_v30 = vrot.slane %v12985_v20, 7  ;;  %v8989_v16 = vpack.c.bf16 %v5683_v10, %v5682_v21 }
 0x3e0   : > { %17903 = vst [vmem:[#allocation154_spill] sm:$0xff] %v12992_v57  ;;  %v12994_v53 = vmax.f32 %v2048_v26, 0.0  ;;  %vm3187_vm6 = vcmp.ge.s32.totalorder %v3139_v17, 0  ;;  %vm3235_vm10 = vcmp.lt.s32.totalorder %v3139_v17, 24  ;;  %vm3662_vm15 = vcmp.ge.s32.totalorder %v3614_v38, 0 }
 0x3e1   : > { %vm3710_vm9 = vcmp.lt.s32.totalorder %v3614_v38, 24  ;;  %vm3283_vm0 = vmand %vm3187_vm6, %vm3235_vm10  ;;  %vm2720_vm1 = vcmp.ne.s32.totalorder %v2540_v47, 0  ;;  %vm2721_vm4 = vcmp.ne.s32.totalorder %v2551_v37, 0  ;;  %vm2768_vm12 = vcmp.lt.s32.totalorder %v2540_v47, 0  ;;  %8990 = vmatpush1.bf16.msra.mxu1 %v8989_v16 }
 0x3e2   : > { %17904 = vst [vmem:[#allocation155_spill] sm:$0xff] %v12994_v53  ;;  %vm2769_vm5 = vcmp.lt.s32.totalorder %v2551_v37, 0  ;;  %v12998_v36 = vsel %vm3283_vm0, 1.0, %v17821_v56  ;;  %vm3758_vm2 = vmand %vm3662_vm15, %vm3710_vm9  ;;  %v3901_v61 = vmul.f32 %v12992_v57, %v12913_v12  ;;  %v2864_v19 = vadd.s32 24, %v2540_v47  ;;  %8991 = vmatprep.subr.bf16.mxu1 %v17889_v24 }
 0x3e3   : > { %17905 = vst [vmem:[#allocation156_spill] sm:$0xff] %v12998_v36  ;;  %v2865_v40 = vadd.s32 24, %v2551_v37  ;;  %v3961_v25 = vmul.f32 %v12998_v36, %v12943_v51  ;;  %v13006_v48 = vsel %vm3758_vm2, 1.0, %v17821_v56  ;;  %vm2816_vm7 = vmand %vm2768_vm12, %vm2720_vm1  ;;  %v17907_v11 = vrot.slane %v12890_v18, 7 }
 0x3e4   : > { %17906 = vst [vmem:[#allocation157_spill] sm:$0xff] %v13006_v48  ;;  %vm17908_vm8 = vcmask 1040384   ;;  %v17910_v10 = vsub.s32 4, %v11306_v63  ;;  %v3902_v26 = vmul.f32 %v13006_v48, %v12946_v43  ;;  %vm2817_vm14 = vmand %vm2769_vm5, %vm2721_vm4  ;;  %v2912_v17 = vsel %vm2816_vm7, %v2864_v19, %v2540_v47 }
 0x3e5   : > { %v13011_v21 = vsel %vm17908_vm8, %v17907_v11, %v3038_v30  ;;  %v17248_v38 = vrot.slane %v12994_v53, 7  ;;  %v13023_v16 = vadd.s32 288, %v11306_v63  ;;  %v9692_v57 = vpack.i.bf16 %v3961_v25, %v3960_v4  ;;  %vm17912_vm1 = vmmov %vm17908_vm8  ;;  %v5684_v25 = vld [vmem:[%s16997_s7 + $0xd0] sm:$0xff] }
 0x3e6   : > { %17909 = vst [vmem:[#allocation158_spill] sm:$0xff] %v13011_v21  ;;  %v13016_v60 = vrot.slane %v12208_v62, %v17910_v10  ;;  %v2913_v12 = vsel %vm2817_vm14, %v2865_v40, %v2551_v37  ;;  %v3615_v11 = vadd.s32 1, %v2912_v17  ;;  %v13026_v28 = vadd.s32 296, %v11306_v63  ;;  %vm17920_vm7 = vmmov %vm17912_vm1 }
 0x3e7   : > { %v9687_v51 = vpack.i.bf16 %v3902_v26, %v3901_v61  ;;  %v3616_v10 = vadd.s32 1, %v2913_v12  ;;  %v3140_v22 = vadd.s32 4294967295, %v2912_v17  ;;  %v3141_v0 = vadd.s32 4294967295, %v2913_v12  ;;  %9693 = vrot.lane.b32.xlu1 %v9692_v57, %s10389_s14  ;;  %v5685_v26 = vld [vmem:[%s16997_s7 + $0xd8] sm:$0xff]  ;;  %vm17923_vm8 = vmmov %vm17912_vm1 }
 0x3e8   : > { %vm3663_vm11 = vcmp.ge.s32.totalorder %v3615_v11, 0  ;;  %vm3711_vm13 = vcmp.lt.s32.totalorder %v3615_v11, 24  ;;  %v2049_v47 = vadd.f32 %v13016_v60, %v11752_v7  ;;  %v2050_v19 = vadd.f32 %v13016_v60, %v11802_v58 }
 0x3e9   : > { %9688 = vrot.lane.b32.xlu0 %v9687_v51, %s10387_s13  ;;  %vm3664_vm3 = vcmp.ge.s32.totalorder %v3616_v10, 0  ;;  %vm3712_vm6 = vcmp.lt.s32.totalorder %v3616_v10, 24  ;;  %vm3759_vm10 = vmand %vm3663_vm11, %vm3711_vm13  ;;  %vm3188_vm15 = vcmp.ge.s32.totalorder %v3140_v22, 0  ;;  %vm3189_vm9 = vcmp.ge.s32.totalorder %v3141_v0, 0 }
 0x3ea   : > { %vm3760_vm0 = vmand %vm3664_vm3, %vm3712_vm6  ;;  %v13035_v12 = vsel %vm3759_vm10, 1.0, %v17821_v56  ;;  %v13040_v57 = vsel %vm17912_vm1, %v3038_v30, %v17248_v38  ;;  %vm3236_vm4 = vcmp.lt.s32.totalorder %v3140_v22, 24  ;;  %vm3237_vm12 = vcmp.lt.s32.totalorder %v3141_v0, 24 }
 0x3eb   : > { %17911 = vst [vmem:[#allocation159_spill] sm:$0xff] %v13035_v12  ;;  %17913 = vst [vmem:[#allocation160_spill] sm:$0xff] %v13040_v57  ;;  %v13043_v37 = vsel %vm3760_vm0, 1.0, %v17821_v56  ;;  %v3903_v51 = vmul.f32 %v13035_v12, %v12958_v50  ;;  %v13047_v4 = vmax.f32 %v2049_v47, 0.0  ;;  %v13049_v61 = vmax.f32 %v2050_v19, 0.0 }
 0x3ec   : > { %17914 = vst [vmem:[#allocation161_spill] sm:$0xff] %v13043_v37  ;;  %vm3284_vm5 = vmand %vm3188_vm15, %vm3236_vm4  ;;  %v3904_v40 = vmul.f32 %v13043_v37, %v12971_v27  ;;  %v13057_v22 = vmul.u32.u64.low 2863311531, %v13023_v16  ;;  %v13058_v0 = vmul.u32.u64.high 2863311531, %v13023_v16, %v13057_v22  ;;  %v3510_v38 = vrot.slane %v12985_v20, 1 }
 0x3ed   : > { %17915 = vst [vmem:[#allocation162_spill] sm:$0xff] %v13047_v4  ;;  %17916 = vst [vmem:[#allocation163_spill] sm:$0xff] %v13049_v61  ;;  %v13054_v30 = vsel %vm3284_vm5, 1.0, %v17821_v56  ;;  %9698 = vrot.lane.b32.xlu0 %v12975_v13, %s10386_s30  ;;  %v13074_v10 = vmul.u32.u64.low 2863311531, %v13026_v28  ;;  %v13075_v47 = vmul.u32.u64.high 2863311531, %v13026_v28, %v13074_v10  ;;  %v8992_v27 = vpack.c.bf16 %v5685_v26, %v5684_v25 }
 0x3ee   : > { %vm3285_vm2 = vmand %vm3189_vm9, %vm3237_vm12  ;;  %17917 = vst [vmem:[#allocation164_spill] sm:$0xff] %v13054_v30  ;;  %v3962_v11 = vmul.f32 %v13054_v30, %v13011_v21  ;;  %v9702_v19 = vpack.i.bf16 %v3904_v40, %v3903_v51  ;;  %v2148_v50 = vadd.s32 304, %v11306_v63  ;;  %v2560_v43 = vshrl.u32 %v13058_v0, 4  ;;  %v13100_v51 = vpop.permute.xlu0 %9453 }
 0x3ef   : > { %v13069_v17 = vsel %vm3285_vm2, 1.0, %v17821_v56  ;;  %v3042_v21 = vrot.slane %v13047_v4, 7  ;;  %v2571_v10 = vshrl.u32 %v13075_v47, 4  ;;  %8993 = vmatpush1.bf16.msra.mxu1 %v8992_v27  ;;  %v2149_v40 = vadd.s32 312, %v11306_v63 }
 0x3f0   : > { %17918 = vst [vmem:[#allocation165_spill] sm:$0xff] %v13069_v17  ;;  %v3963_v22 = vmul.f32 %v13069_v17, %v13040_v57  ;;  %9703 = vrot.lane.b32.xlu1 %v9702_v19, %s10387_s13  ;;  %v13090_v25 = vpack.i.bf16 %v12985_v20, %v12890_v18  ;;  %v2561_v26 = vmul.u32 24, %v2560_v43  ;;  %8994 = vmatprep.subr.bf16.mxu1 %v17889_v24  ;;  %v17919_v33 = vrot.slane %v12994_v53, 7 }
 0x3f1   : > { %v2572_v19 = vmul.u32 24, %v2571_v10  ;;  %v17925_v10 = vrot.slane %v12890_v18, 1  ;;  %vm17926_vm14 = vcmask 1046528   ;;  %v17928_v57 = vrot.slane %v12994_v53, 1 }
 0x3f2   : > { %v9707_v13 = vpack.i.bf16 %v3963_v22, %v3962_v11  ;;  %v13093_v11 = vmul.u32.u64.low 2863311531, %v2148_v50  ;;  %v13094_v0 = vmul.u32.u64.high 2863311531, %v2148_v50, %v13093_v11  ;;  %v2562_v27 = vsub.s32 %v13023_v16, %v2561_v26  ;;  %vm17929_vm11 = vmmov %vm17926_vm14 }
 0x3f3   : > { %v13097_v22 = vmul.u32.u64.low 2863311531, %v2149_v40  ;;  %v13098_v47 = vmul.u32.u64.high 2863311531, %v2149_v40, %v13097_v22  ;;  %v13108_v43 = vsel %vm17920_vm7, %v17919_v33, %v3042_v21  ;;  %v2573_v20 = vsub.s32 %v13026_v28, %v2572_v19 }
 0x3f4   : > { %9708 = vrot.lane.b32.xlu0 %v9707_v13, %s10389_s14  ;;  %9713 = vrot.lane.b32.xlu1 %v13090_v25, %s10386_s30  ;;  %17921 = vst [vmem:[#allocation166_spill] sm:$0xff] %v13108_v43  ;;  %v17922_v13 = vrot.slane %v13049_v61, 7  ;;  %v13118_v22 = vsel %vm17926_vm14, %v17925_v10, %v3510_v38  ;;  %v13124_v16 = vsel %vm17929_vm11, %v3510_v38, %v17928_v57  ;;  %vm2722_vm13 = vcmp.ne.s32.totalorder %v2562_v27, 0  ;;  %v13135_v10 = vpop.permute.xlu1 %9448 }
 0x3f5   : > { %17927 = vst [vmem:[#allocation168_spill] sm:$0xff] %v13118_v22  ;;  %17930 = vst [vmem:[#allocation169_spill] sm:$0xff] %v13124_v16  ;;  %vm2770_vm3 = vcmp.lt.s32.totalorder %v2562_v27, 0  ;;  %v2866_v28 = vadd.s32 24, %v2562_v27  ;;  %v2582_v19 = vshrl.u32 %v13094_v0, 4  ;;  %vm2723_vm6 = vcmp.ne.s32.totalorder %v2573_v20, 0  ;;  %v13140_v0 = vpop.permute.xlu0 %9458 }
 0x3f6   : > { %v13113_v11 = vsel %vm17923_vm8, %v3042_v21, %v17922_v13  ;;  %v5686_v21 = vld [vmem:[%s16997_s7 + $0xe0] sm:$0xff]  ;;  %v5687_v13 = vld [vmem:[%s16997_s7 + $0xe8] sm:$0xff]  ;;  %vm2771_vm10 = vcmp.lt.s32.totalorder %v2573_v20, 0  ;;  %vm2818_vm15 = vmand %vm2770_vm3, %vm2722_vm13  ;;  %v2867_v38 = vadd.s32 24, %v2573_v20  ;;  %v2593_v57 = vshrl.u32 %v13098_v47, 4  ;;  %17931 = vst [vmem:[#allocation170_spill] sm:$0xff] %v13140_v0 }
 0x3f7   : > { %17924 = vst [vmem:[#allocation167_spill] sm:$0xff] %v13113_v11  ;;  %vm2819_vm9 = vmand %vm2771_vm10, %vm2723_vm6  ;;  %v2914_v26 = vsel %vm2818_vm15, %v2866_v28, %v2562_v27  ;;  %v2583_v33 = vmul.u32 24, %v2582_v19  ;;  %v8995_v18 = vpack.c.bf16 %v5687_v13, %v5686_v21  ;;  %v2051_v29 = vadd.f32 %v13016_v60, %v11810_v14 }
 0x3f8   : > { %v2915_v35 = vsel %vm2819_vm9, %v2867_v38, %v2573_v20  ;;  %v3142_v3 = vadd.s32 4294967295, %v2914_v26  ;;  %v3617_v45 = vadd.s32 1, %v2914_v26  ;;  %v2594_v9 = vmul.u32 24, %v2593_v57  ;;  %v13145_v20 = vpop.permute.xlu1 %9463 }
 0x3f9   : > { %v3143_v1 = vadd.s32 4294967295, %v2915_v35  ;;  %v3618_v6 = vadd.s32 1, %v2915_v35  ;;  %v2584_v23 = vsub.s32 %v2148_v50, %v2583_v33  ;;  %8996 = vmatpush1.bf16.msra.mxu1 %v8995_v18  ;;  %v13142_v46 = vmax.f32 %v2051_v29, 0.0  ;;  %v13169_v47 = vpop.permute.xlu0 %9468 }
 0x3fa   : > { %vm3190_vm0 = vcmp.ge.s32.totalorder %v3142_v3, 0  ;;  %vm3238_vm1 = vcmp.lt.s32.totalorder %v3142_v3, 24  ;;  %vm3665_vm4 = vcmp.ge.s32.totalorder %v3617_v45, 0  ;;  %vm3713_vm12 = vcmp.lt.s32.totalorder %v3617_v45, 24  ;;  %8997 = vmatprep.subr.bf16.mxu1 %v17889_v24  ;;  %17940 = vst [vmem:[#allocation176_spill] sm:$0xff] %v13169_v47 }
 0x3fb   : > { %17932 = vst [vmem:[#allocation171_spill] sm:$0xff] %v13142_v46  ;;  %vm3191_vm5 = vcmp.ge.s32.totalorder %v3143_v1, 0  ;;  %vm3239_vm2 = vcmp.lt.s32.totalorder %v3143_v1, 24  ;;  %vm3286_vm7 = vmand %vm3190_vm0, %vm3238_vm1  ;;  %vm3666_vm8 = vcmp.ge.s32.totalorder %v3618_v6, 0  ;;  %vm3714_vm14 = vcmp.lt.s32.totalorder %v3618_v6, 24 }
 0x3fc   : > { %vm3287_vm11 = vmand %vm3191_vm5, %vm3239_vm2  ;;  %v13148_v35 = vsel %vm3286_vm7, 1.0, %v17821_v56  ;;  %v2595_v18 = vsub.s32 %v2149_v40, %v2594_v9  ;;  %vm2724_vm13 = vcmp.ne.s32.totalorder %v2584_v23, 0  ;;  %vm2772_vm3 = vcmp.lt.s32.totalorder %v2584_v23, 0  ;;  %v13184_v41 = vpop.permute.xlu1 %9473 }
 0x3fd   : > { %17933 = vst [vmem:[#allocation172_spill] sm:$0xff] %v13148_v35  ;;  %v13151_v3 = vsel %vm3287_vm11, 1.0, %v17821_v56  ;;  %v3964_v29 = vmul.f32 %v13148_v35, %v13108_v43  ;;  %vm3761_vm6 = vmand %vm3665_vm4, %vm3713_vm12  ;;  %v2868_v1 = vadd.s32 24, %v2584_v23  ;;  %v17935_v6 = vrot.slane %v13047_v4, 1 }
 0x3fe   : > { %17934 = vst [vmem:[#allocation173_spill] sm:$0xff] %v13151_v3  ;;  %v17936_v50 = vrot.slane %v12994_v53, 1  ;;  %vm17937_vm10 = vcmask 1046528   ;;  %v3965_v9 = vmul.f32 %v13151_v3, %v13113_v11  ;;  %vm3762_vm15 = vmand %vm3666_vm8, %vm3714_vm14  ;;  %v13167_v40 = vsel %vm3761_vm6, 1.0, %v17821_v56 }
 0x3ff   : > { %17939 = vst [vmem:[#allocation175_spill] sm:$0xff] %v13167_v40  ;;  %vm2725_vm9 = vcmp.ne.s32.totalorder %v2595_v18, 0  ;;  %vm2773_vm0 = vcmp.lt.s32.totalorder %v2595_v18, 0  ;;  %v13172_v45 = vsel %vm3762_vm15, 1.0, %v17821_v56  ;;  %v3905_v27 = vmul.f32 %v13167_v40, %v13118_v22  ;;  %vm2820_vm1 = vmand %vm2772_vm3, %vm2724_vm13 }
 0x400   : > { %v13162_v60 = vsel %vm17937_vm10, %v17936_v50, %v17935_v6  ;;  %17941 = vst [vmem:[#allocation177_spill] sm:$0xff] %v13172_v45  ;;  %v2869_v33 = vadd.s32 24, %v2595_v18  ;;  %v17942_v26 = vsub.s32 5, %v11306_v63  ;;  %v9722_v13 = vpack.i.bf16 %v3965_v9, %v3964_v29  ;;  %vm2821_vm4 = vmand %vm2773_vm0, %vm2725_vm9  ;;  %v13235_v59 = vpop.permute.xlu1 %9483 }
 0x401   : > { %17938 = vst [vmem:[#allocation174_spill] sm:$0xff] %v13162_v60  ;;  %v3906_v28 = vmul.f32 %v13172_v45, %v13124_v16  ;;  %v2916_v19 = vsel %vm2820_vm1, %v2868_v1, %v2584_v23  ;;  %v3046_v38 = vrot.slane %v13142_v46, 7  ;;  %v17944_v29 = vrot.slane %v13047_v4, 1  ;;  %vm17945_vm12 = vmmov %vm17937_vm10 }
 0x402   : > { %v2004_v21 = vrot.slane %v12208_v62, %v17942_v26  ;;  %v2917_v57 = vsel %vm2821_vm4, %v2869_v33, %v2595_v18  ;;  %v3619_v6 = vadd.s32 1, %v2916_v19  ;;  %v3144_v34 = vadd.s32 4294967295, %v2916_v19  ;;  %9723 = vrot.lane.b32.xlu1 %v9722_v13, %s10389_s14  ;;  %17957 = vst [vmem:[#allocation186_spill] sm:$0xff] %v13235_v59 }
 0x403   : > { %v9717_v42 = vpack.i.bf16 %v3906_v28, %v3905_v27  ;;  %v17943_v26 = vrot.slane %v13049_v61, 1  ;;  %v3620_v23 = vadd.s32 1, %v2917_v57  ;;  %v3145_v1 = vadd.s32 4294967295, %v2917_v57  ;;  %v13197_v27 = vpop.permute.xlu0 %9478  ;;  %v5689_v57 = vld [vmem:[%s16997_s7 + $0xf8] sm:$0xff] }
 0x404   : > { %v2052_v50 = vadd.f32 %v2004_v21, %v11752_v7  ;;  %vm3667_vm5 = vcmp.ge.s32.totalorder %v3619_v6, 0  ;;  %vm3715_vm2 = vcmp.lt.s32.totalorder %v3619_v6, 24  ;;  %vm3192_vm7 = vcmp.ge.s32.totalorder %v3144_v34, 0 }
 0x405   : > { %v13192_v9 = vsel %vm17945_vm12, %v17944_v29, %v17943_v26  ;;  %9718 = vrot.lane.b32.xlu0 %v9717_v42, %s10387_s13  ;;  %vm3668_vm8 = vcmp.ge.s32.totalorder %v3620_v23, 0  ;;  %vm3716_vm14 = vcmp.lt.s32.totalorder %v3620_v23, 24  ;;  %vm3763_vm11 = vmand %vm3667_vm5, %vm3715_vm2  ;;  %vm3193_vm13 = vcmp.ge.s32.totalorder %v3145_v1, 0  ;;  %v5688_v42 = vld [vmem:[%s16997_s7 + $0xf0] sm:$0xff] }
 0x406   : > { %17946 = vst [vmem:[#allocation178_spill] sm:$0xff] %v13192_v9  ;;  %v13194_v18 = vmax.f32 %v2052_v50, 0.0  ;;  %vm3240_vm3 = vcmp.lt.s32.totalorder %v3144_v34, 24  ;;  %vm3764_vm6 = vmand %vm3668_vm8, %vm3716_vm14  ;;  %v13200_v33 = vsel %vm3763_vm11, 1.0, %v17821_v56  ;;  %v17949_v13 = vrot.slane %v13049_v61, 7 }
 0x407   : > { %17948 = vst [vmem:[#allocation180_spill] sm:$0xff] %v13200_v33  ;;  %vm17950_vm10 = vcmask 1040384   ;;  %vm3241_vm15 = vcmp.lt.s32.totalorder %v3145_v1, 24  ;;  %v13215_v6 = vsel %vm3764_vm6, 1.0, %v17821_v56  ;;  %v3907_v50 = vmul.f32 %v13200_v33, %v13162_v60  ;;  %vm3288_vm9 = vmand %vm3192_vm7, %vm3240_vm3 }
 0x408   : > { %17947 = vst [vmem:[#allocation179_spill] sm:$0xff] %v13194_v18  ;;  %v13205_v28 = vsel %vm17950_vm10, %v17949_v13, %v3046_v38  ;;  %v17281_v19 = vrot.slane %v13194_v18, 7  ;;  %17952 = vst [vmem:[#allocation182_spill] sm:$0xff] %v13215_v6  ;;  %v13221_v26 = vpack.i.bf16 %v13047_v4, %v12994_v53  ;;  %v3908_v29 = vmul.f32 %v13215_v6, %v13192_v9 }
 0x409   : > { %17951 = vst [vmem:[#allocation181_spill] sm:$0xff] %v13205_v28  ;;  %vm17954_vm0 = vmmov %vm17950_vm10  ;;  %v13233_v13 = vsel %vm3288_vm9, 1.0, %v17821_v56  ;;  %v8998_v53 = vpack.c.bf16 %v5689_v57, %v5688_v42  ;;  %v9450_v1 = vunpack.i.l.bf16 %v13135_v10  ;;  %v13250_v5 = vunpack.i.l.bf16 %v13100_v51  ;;  %v13255_v57 = vpop.permute.xlu0 %9488 }
 0x40a   : > { %17953 = vst [vmem:[#allocation183_spill] sm:$0xff] %v13221_v26  ;;  %v13229_v23 = vsel %vm17954_vm0, %v3046_v38, %v17281_v19  ;;  %vm3289_vm1 = vmand %vm3193_vm13, %vm3241_vm15  ;;  %9728 = vrot.lane.b32.xlu0 %v13221_v26, %s10386_s30  ;;  %v3966_v4 = vmul.f32 %v13233_v13, %v13205_v28  ;;  %v2053_v38 = vadd.f32 %v2004_v21, %v11802_v58  ;;  %v2151_v42 = vadd.s32 328, %v11306_v63 }
 0x40b   : > { %17955 = vst [vmem:[#allocation184_spill] sm:$0xff] %v13229_v23  ;;  %17956 = vst [vmem:[#allocation185_spill] sm:$0xff] %v13233_v13  ;;  %v13240_v34 = vsel %vm3289_vm1, 1.0, %v17821_v56  ;;  %v9732_v19 = vpack.i.bf16 %v3908_v29, %v3907_v50  ;;  %8999 = vmatpush1.bf16.msra.mxu1 %v8998_v53  ;;  %v2054_v44 = vadd.f32 %v2004_v21, %v11810_v14  ;;  %v9451_v53 = vunpack.i.h.bf16 %v13135_v10 }
 0x40c   : > { %17958 = vst [vmem:[#allocation187_spill] sm:$0xff] %v13240_v34  ;;  %v3967_v31 = vmul.f32 %v13240_v34, %v13229_v23  ;;  %v13258_v29 = vmax.f32 %v2053_v38, 0.0  ;;  %v13260_v34 = vmul.u32.u64.low 2863311531, %v2150_v32  ;;  %v13261_v15 = vmul.u32.u64.high 2863311531, %v2150_v32, %v13260_v34  ;;  %9127 = vmatprep.subr.bf16.mxu1 %v17889_v24  ;;  %vm17971_vm7 = vmmov %vm17954_vm0 }
 0x40d   : > { %9733 = vrot.lane.b32.xlu1 %v9732_v19, %s10387_s13  ;;  %v13264_v13 = vmul.u32.u64.low 2863311531, %v2151_v42  ;;  %v13265_v3 = vmul.u32.u64.high 2863311531, %v2151_v42, %v13264_v13  ;;  %v13270_v21 = vpack.i.bf16 %v13142_v46, %v13049_v61  ;;  %v13279_v19 = vpop.permute.xlu1 %9493  ;;  %v13281_v34 = vmax.f32 %v2054_v44, 0.0  ;;  %v13298_v52 = vpop.permute.xlu0 %9498 }
 0x40e   : > { %v9737_v50 = vpack.i.bf16 %v3967_v31, %v3966_v4  ;;  %17959 = vst [vmem:[#allocation188_spill] sm:$0xff] %v13258_v29  ;;  %v5690_v31 = vld [vmem:[%s16997_s7 + $0x100] sm:$0xff]  ;;  %v5691_v4 = vld [vmem:[%s16997_s7 + $0x108] sm:$0xff]  ;;  %v3518_v10 = vrot.slane %v13142_v46, 1  ;;  %vm17962_vm4 = vcmask 261120   ;;  %v3050_v6 = vrot.slane %v13258_v29, 7 }
 0x40f   : > { %17960 = vst [vmem:[#allocation189_spill] sm:$0xff] %v13270_v21  ;;  %17961 = vst [vmem:[#allocation190_spill] sm:$0xff] %v13281_v34  ;;  %v5367_v38 = vsel %vm17962_vm4, %v13250_v5, %v9450_v1  ;;  %v17963_v33 = vunpack.i.l.bf16 %v13140_v0  ;;  %vm17964_vm12 = vcmask 916480   ;;  %v3394_v44 = vmul.f32 0.0, %v11368_v8 }
 0x410   : > { %9738 = vrot.lane.b32.xlu0 %v9737_v50, %s10389_s14  ;;  %v2604_v50 = vshrl.u32 %v13261_v15, 4  ;;  %v2615_v46 = vshrl.u32 %v13265_v3, 4  ;;  %v9001_v13 = vpack.c.bf16 %v5691_v4, %v5690_v31  ;;  %v2153_v1 = vadd.s32 344, %v11306_v63  ;;  %17965 = vst [vmem:[#allocation191_spill] sm:$0xff] %v13298_v52  ;;  %vm17976_vm14 = vmmov %vm17962_vm4 }
 0x411   : > { %9743 = vrot.lane.b32.xlu1 %v13270_v21, %s10386_s30  ;;  %v5415_v45 = vsel %vm17964_vm12, %v5367_v38, %v17963_v33  ;;  %vm17966_vm5 = vcmask 654336   ;;  %v17967_v8 = vrot.slane %v13049_v61, 1  ;;  %vm17968_vm2 = vcmask 1046528   ;;  %v13316_v35 = vpop.permute.xlu1 %9503  ;;  %vm17978_vm3 = vmmov %vm17964_vm12 }
 0x412   : > { %5963 = vmatprep.mubr.f32.mxu1 %v5415_v45  ;;  %v2605_v26 = vmul.u32 24, %v2604_v50  ;;  %v5319_v33 = vsel %vm17966_vm5, %v3394_v44, %v13250_v5  ;;  %v2616_v38 = vmul.u32 24, %v2615_v46  ;;  %9002 = vmatpush1.bf16.msra.mxu0 %v9001_v13  ;;  %v17325_v15 = vrot.slane %v13281_v34, 7  ;;  %vm17974_vm8 = vmmov %vm17968_vm2 }
 0x413   : > { %v13307_v3 = vsel %vm17968_vm2, %v17967_v8, %v3518_v10  ;;  %5964 = vmatmul.mubr.f32.vlgmr.msra.gmra.mrb[58].mxu1 %v5319_v33  ;;  %v13309_v45 = vmul.u32.u64.low 2863311531, %v2152_v54  ;;  %v13310_v31 = vmul.u32.u64.high 2863311531, %v2152_v54, %v13309_v45  ;;  %9003 = vmatprep.subr.bf16.mxu0 %v17889_v24  ;;  %v17970_v8 = vrot.slane %v13194_v18, 7 }
 0x414   : > { %17969 = vst [vmem:[#allocation192_spill] sm:$0xff] %v13307_v3  ;;  %v2606_v4 = vsub.s32 %v2150_v32, %v2605_v26  ;;  %9143 = vmatpush1.bf16.msra.mxu1 %v9001_v13  ;;  %v13313_v21 = vmul.u32.u64.low 2863311531, %v2153_v1  ;;  %v13314_v50 = vmul.u32.u64.high 2863311531, %v2153_v1, %v13313_v21  ;;  %v2617_v46 = vsub.s32 %v2151_v42, %v2616_v38 }
 0x415   : > { %v13322_v44 = vsel %vm17971_vm7, %v17970_v8, %v3050_v6  ;;  %v17973_v33 = vrot.slane %v13194_v18, 1  ;;  %v5368_v26 = vsel %vm17976_vm14, %v13250_v5, %v9451_v53  ;;  %9128 = vmatprep.subr.bf16.mxu1 %v17889_v24  ;;  %v17977_v42 = vunpack.i.h.bf16 %v13140_v0  ;;  %v13346_v49 = vpop.permute.xlu1 %9513 }
 0x416   : > { %17972 = vst [vmem:[#allocation193_spill] sm:$0xff] %v13322_v44  ;;  %vm2726_vm11 = vcmp.ne.s32.totalorder %v2606_v4, 0  ;;  %vm2774_vm13 = vcmp.lt.s32.totalorder %v2606_v4, 0  ;;  %v2870_v21 = vadd.s32 24, %v2606_v4  ;;  %vm2727_vm6 = vcmp.ne.s32.totalorder %v2617_v46, 0  ;;  %17980 = vst [vmem:[#allocation196_spill] sm:$0xff] %v13346_v49 }
 0x417   : > { %v13327_v32 = vsel %vm17974_vm8, %v3518_v10, %v17973_v33  ;;  %v5416_v13 = vsel %vm17978_vm3, %v5368_v26, %v17977_v42  ;;  %vm2775_vm10 = vcmp.lt.s32.totalorder %v2617_v46, 0  ;;  %vm2822_vm15 = vmand %vm2774_vm13, %vm2726_vm11  ;;  %v2871_v38 = vadd.s32 24, %v2617_v46  ;;  %v13336_v10 = vpop.permute.xlu0 %9508 }
 0x418   : > { %17975 = vst [vmem:[#allocation194_spill] sm:$0xff] %v13327_v32  ;;  %v2626_v45 = vshrl.u32 %v13310_v31, 4  ;;  %5968 = vmatprep.mubr.f32.mxu1 %v5416_v13  ;;  %vm2823_vm9 = vmand %vm2775_vm10, %vm2727_vm6  ;;  %v2918_v53 = vsel %vm2822_vm15, %v2870_v21, %v2606_v4  ;;  %v13341_v8 = vsel %vm17954_vm0, %v3050_v6, %v17325_v15  ;;  %v2637_v26 = vshrl.u32 %v13314_v50, 4 }
 0x419   : > { %17979 = vst [vmem:[#allocation195_spill] sm:$0xff] %v13341_v8  ;;  %v2919_v42 = vsel %vm2823_vm9, %v2871_v38, %v2617_v46  ;;  %v3146_v61 = vadd.s32 4294967295, %v2918_v53  ;;  %v3621_v0 = vadd.s32 1, %v2918_v53  ;;  %v17982_v46 = vld [vmem:[#allocation9_spill] sm:$0xff]  ;;  %vm17986_vm6 = vcmask 261120  }
 0x41a   : > { %v2627_v23 = vmul.u32 24, %v2626_v45  ;;  %v3147_v17 = vadd.s32 4294967295, %v2919_v42  ;;  %v3622_v31 = vadd.s32 1, %v2919_v42  ;;  %v2638_v13 = vmul.u32 24, %v2637_v26 }
 0x41b   : > { %vm3194_vm1 = vcmp.ge.s32.totalorder %v3146_v61, 0  ;;  %vm3242_vm4 = vcmp.lt.s32.totalorder %v3146_v61, 24  ;;  %vm3669_vm12 = vcmp.ge.s32.totalorder %v3621_v0, 0  ;;  %vm3717_vm5 = vcmp.lt.s32.totalorder %v3621_v0, 24  ;;  %v13352_v38 = vpop.permute.xlu0 %9518 }
 0x41c   : > { %vm3195_vm2 = vcmp.ge.s32.totalorder %v3147_v17, 0  ;;  %vm3243_vm7 = vcmp.lt.s32.totalorder %v3147_v17, 24  ;;  %vm3290_vm8 = vmand %vm3194_vm1, %vm3242_vm4  ;;  %vm3670_vm14 = vcmp.ge.s32.totalorder %v3622_v31, 0  ;;  %vm3718_vm11 = vcmp.lt.s32.totalorder %v3622_v31, 24  ;;  %v13379_v31 = vpop.permute.xlu1 %9523 }
 0x41d   : > { %vm3291_vm13 = vmand %vm3195_vm2, %vm3243_vm7  ;;  %v13349_v6 = vsel %vm3290_vm8, 1.0, %v17821_v56  ;;  %v2628_v4 = vsub.s32 %v2152_v54, %v2627_v23  ;;  %v2639_v50 = vsub.s32 %v2153_v1, %v2638_v13  ;;  %v3395_v21 = vmul.f32 0.0, %v17982_v46 }
 0x41e   : > { %17981 = vst [vmem:[#allocation197_spill] sm:$0xff] %v13349_v6  ;;  %v13355_v45 = vsel %vm3291_vm13, 1.0, %v17821_v56  ;;  %v3968_v61 = vmul.f32 %v13349_v6, %v13322_v44  ;;  %vm3765_vm3 = vmand %vm3669_vm12, %vm3717_vm5  ;;  %v17984_v17 = vsub.s32 6, %v11306_v63  ;;  %v17985_v54 = vunpack.i.l.bf16 %v13145_v20 }
 0x41f   : > { %17983 = vst [vmem:[#allocation198_spill] sm:$0xff] %v13355_v45  ;;  %v3969_v1 = vmul.f32 %v13355_v45, %v13341_v8  ;;  %vm3766_vm10 = vmand %vm3670_vm14, %vm3718_vm11  ;;  %v13372_v26 = vsel %vm3765_vm3, 1.0, %v17821_v56  ;;  %vm2728_vm15 = vcmp.ne.s32.totalorder %v2628_v4, 0  ;;  %vm2729_vm9 = vcmp.ne.s32.totalorder %v2639_v50, 0  ;;  %v13394_v8 = vpop.permute.xlu0 %9528 }
 0x420   : > { %v13363_v53 = vrot.slane %v12208_v62, %v17984_v17  ;;  %v5369_v23 = vsel %vm17986_vm6, %v13250_v5, %v17985_v54  ;;  %17987 = vst [vmem:[#allocation199_spill] sm:$0xff] %v13372_v26  ;;  %v13375_v0 = vsel %vm3766_vm10, 1.0, %v17821_v56  ;;  %v3909_v42 = vmul.f32 %v13372_v26, %v13307_v3  ;;  %17992 = vst [vmem:[#allocation201_spill] sm:$0xff] %v13394_v8 }
 0x421   : > { %17988 = vst [vmem:[#allocation200_spill] sm:$0xff] %v13375_v0  ;;  %vm2776_vm0 = vcmp.lt.s32.totalorder %v2628_v4, 0  ;;  %vm2777_vm1 = vcmp.lt.s32.totalorder %v2639_v50, 0  ;;  %v9752_v13 = vpack.i.bf16 %v3969_v1, %v3968_v61  ;;  %v3910_v17 = vmul.f32 %v13375_v0, %v13327_v32 }
 0x422   : > { %vm2824_vm4 = vmand %vm2776_vm0, %vm2728_vm15  ;;  %v2872_v54 = vadd.s32 24, %v2628_v4  ;;  %v2873_v15 = vadd.s32 24, %v2639_v50  ;;  %vm17989_vm5 = vcmask 654336   ;;  %v2055_v33 = vadd.f32 %v13363_v53, %v11752_v7 }
 0x423   : > { %vm2825_vm12 = vmand %vm2777_vm1, %vm2729_vm9  ;;  %v5320_v28 = vsel %vm17989_vm5, %v3395_v21, %v13250_v5  ;;  %v2056_v46 = vadd.f32 %v13363_v53, %v11802_v58  ;;  %v17990_v45 = vunpack.i.l.bf16 %v13169_v47  ;;  %vm17991_vm2 = vcmask 916480   ;;  %9753 = vrot.lane.b32.xlu1 %v9752_v13, %s10389_s14 }
 0x424   : > { %v9747_v1 = vpack.i.bf16 %v3910_v17, %v3909_v42  ;;  %v2920_v0 = vsel %vm2824_vm4, %v2872_v54, %v2628_v4  ;;  %v2921_v6 = vsel %vm2825_vm12, %v2873_v15, %v2639_v50  ;;  %v17343_v26 = vrot.slane %v13281_v34, 1  ;;  %5969 = vmatmul.mubr.f32.gmra.mrb[60].mxu1 %v5320_v28 }
 0x425   : > { %v5417_v61 = vsel %vm17991_vm2, %v5369_v23, %v17990_v45  ;;  %v3623_v21 = vadd.s32 1, %v2920_v0  ;;  %v3624_v44 = vadd.s32 1, %v2921_v6  ;;  %v13396_v32 = vmax.f32 %v2055_v33, 0.0  ;;  %v13412_v33 = vpop.permute.xlu1 %9533 }
 0x426   : > { %v13398_v3 = vmax.f32 %v2056_v46, 0.0  ;;  %5973 = vmatprep.mubr.f32.mxu1 %v5417_v61  ;;  %9748 = vrot.lane.b32.xlu0 %v9747_v1, %s10387_s13  ;;  %v17995_v45 = vrot.slane %v13258_v29, 1  ;;  %v17996_v23 = vrot.slane %v13194_v18, 1  ;;  %vm17997_vm7 = vcmask 1046528   ;;  %18000 = vst [vmem:[#allocation206_spill] sm:$0xff] %v13412_v33 }
 0x427   : > { %17993 = vst [vmem:[#allocation202_spill] sm:$0xff] %v13396_v32  ;;  %v13410_v28 = vpack.i.bf16 %v13258_v29, %v13194_v18  ;;  %v3148_v4 = vadd.s32 4294967295, %v2920_v0  ;;  %v3149_v50 = vadd.s32 4294967295, %v2921_v6  ;;  %vm3671_vm8 = vcmp.ge.s32.totalorder %v3623_v21, 0  ;;  %vm18002_vm3 = vmmov %vm17997_vm7 }
 0x428   : > { %17994 = vst [vmem:[#allocation203_spill] sm:$0xff] %v13398_v3  ;;  %v13406_v15 = vsel %vm17997_vm7, %v17996_v23, %v17995_v45  ;;  %vm3672_vm14 = vcmp.ge.s32.totalorder %v3624_v44, 0  ;;  %vm3719_vm11 = vcmp.lt.s32.totalorder %v3623_v21, 24  ;;  %vm3720_vm13 = vcmp.lt.s32.totalorder %v3624_v44, 24  ;;  %v13443_v21 = vpop.permute.xlu0 %9538 }
 0x429   : > { %17998 = vst [vmem:[#allocation204_spill] sm:$0xff] %v13406_v15  ;;  %17999 = vst [vmem:[#allocation205_spill] sm:$0xff] %v13410_v28  ;;  %v18001_v46 = vmov %v17995_v45  ;;  %v3054_v13 = vrot.slane %v13396_v32, 7  ;;  %v17342_v17 = vrot.slane %v13398_v3, 7  ;;  %vm3196_vm10 = vcmp.ge.s32.totalorder %v3148_v4, 0 }
 0x42a   : > { %v13419_v42 = vsel %vm18002_vm3, %v18001_v46, %v17343_v26  ;;  %vm3767_vm6 = vmand %vm3671_vm8, %vm3719_vm11  ;;  %vm3197_vm9 = vcmp.ge.s32.totalorder %v3149_v50, 0  ;;  %vm3244_vm0 = vcmp.lt.s32.totalorder %v3148_v4, 24  ;;  %vm3245_vm1 = vcmp.lt.s32.totalorder %v3149_v50, 24  ;;  %9758 = vrot.lane.b32.xlu0 %v13410_v28, %s10386_s30  ;;  %v18023_v28 = vld [vmem:[#allocation68_spill] sm:$0xff] }
 0x42b   : > { %18003 = vst [vmem:[#allocation207_spill] sm:$0xff] %v13419_v42  ;;  %vm3768_vm15 = vmand %vm3672_vm14, %vm3720_vm13  ;;  %v13424_v6 = vsel %vm3767_vm6, 1.0, %v17821_v56  ;;  %v18006_v54 = vrot.slane %v13281_v34, 7  ;;  %vm18007_vm4 = vcmask 1040384   ;;  %v9466_v45 = vunpack.i.h.bf16 %v13145_v20 }
 0x42c   : > { %18004 = vst [vmem:[#allocation208_spill] sm:$0xff] %v13424_v6  ;;  %v13427_v44 = vsel %vm3768_vm15, 1.0, %v17821_v56  ;;  %v3911_v0 = vmul.f32 %v13424_v6, %v13406_v15  ;;  %vm18009_vm12 = vmmov %vm18007_vm4  ;;  %v3396_v50 = vmul.f32 0.0, %v11402_v2  ;;  %v2057_v20 = vadd.f32 %v13363_v53, %v11810_v14  ;;  %v13486_v6 = vpop.permute.xlu0 %9548 }
 0x42d   : > { %18005 = vst [vmem:[#allocation209_spill] sm:$0xff] %v13427_v44  ;;  %v13436_v61 = vsel %vm18007_vm4, %v18006_v54, %v3054_v13  ;;  %v13441_v1 = vsel %vm18009_vm12, %v3054_v13, %v17342_v17  ;;  %vm3292_vm5 = vmand %vm3196_vm10, %vm3244_vm0  ;;  %v3912_v23 = vmul.f32 %v13427_v44, %v13419_v42  ;;  %v18013_v54 = vsub.s32 7, %v11306_v63  ;;  %v13469_v44 = vpop.permute.xlu1 %9543 }
 0x42e   : > { %18008 = vst [vmem:[#allocation210_spill] sm:$0xff] %v13436_v61  ;;  %18010 = vst [vmem:[#allocation211_spill] sm:$0xff] %v13441_v1  ;;  %v13449_v4 = vsel %vm3292_vm5, 1.0, %v17821_v56  ;;  %vm18014_vm7 = vcmask 654336   ;;  %v2154_v2 = vadd.s32 352, %v11306_v63  ;;  %vm18019_vm8 = vcmask 261120  }
 0x42f   : > { %vm3293_vm2 = vmand %vm3197_vm9, %vm3245_vm1  ;;  %18011 = vst [vmem:[#allocation212_spill] sm:$0xff] %v13449_v4  ;;  %v3970_v13 = vmul.f32 %v13449_v4, %v13436_v61  ;;  %v13460_v17 = vrot.slane %v12208_v62, %v18013_v54  ;;  %v9762_v26 = vpack.i.bf16 %v3912_v23, %v3911_v0  ;;  %v5321_v18 = vsel %vm18014_vm7, %v3396_v50, %v13250_v5 }
 0x430   : > { %v13453_v46 = vsel %vm3293_vm2, 1.0, %v17821_v56  ;;  %18015 = vst [vmem:[#allocation214_spill] sm:$0xff] %v13469_v44  ;;  %v9456_v4 = vunpack.i.h.bf16 %v13100_v51  ;;  %5974 = vmatmul.mubr.f32.gmra.mrb[62].mxu1 %v5321_v18  ;;  %v2155_v62 = vadd.s32 360, %v11306_v63  ;;  %v13481_v50 = vmax.f32 %v2057_v20, 0.0  ;;  %18017 = vst [vmem:[#allocation216_spill] sm:$0xff] %v13486_v6  ;;  %v18024_v20 = vld [vmem:[#allocation12_spill] sm:$0xff] }
 0x431   : > { %18012 = vst [vmem:[#allocation213_spill] sm:$0xff] %v13453_v46  ;;  %v3971_v29 = vmul.f32 %v13453_v46, %v13441_v1  ;;  %9763 = vrot.lane.b32.xlu1 %v9762_v26, %s10387_s13  ;;  %v2058_v0 = vadd.f32 %v13460_v17, %v11752_v7  ;;  %v13477_v23 = vmul.u32.u64.low 2863311531, %v2154_v2  ;;  %v13478_v54 = vmul.u32.u64.high 2863311531, %v2154_v2, %v13477_v23  ;;  %v13516_v33 = vpop.permute.xlu1 %9553  ;;  %vm18026_vm11 = vmmov %vm18014_vm7 }
 0x432   : > { %18016 = vst [vmem:[#allocation215_spill] sm:$0xff] %v13481_v50  ;;  %v13483_v46 = vmul.u32.u64.low 2863311531, %v2155_v62  ;;  %v13484_v51 = vmul.u32.u64.high 2863311531, %v2155_v62, %v13483_v46  ;;  %v5370_v7 = vsel %vm18019_vm8, %v9456_v4, %v9466_v45  ;;  %v9480_v23 = vunpack.i.l.bf16 %v13197_v27  ;;  %18025 = vst [vmem:[#allocation68_spill] sm:$0xff] %v13516_v33 }
 0x433   : > { %v9767_v53 = vpack.i.bf16 %v3971_v29, %v3970_v13  ;;  %v13492_v29 = vpack.i.bf16 %v13396_v32, %v13281_v34  ;;  %v5692_v13 = vld [vmem:[%s16997_s7 + $0x110] sm:$0xff]  ;;  %v5693_v46 = vld [vmem:[%s16997_s7 + $0x118] sm:$0xff]  ;;  %v3526_v26 = vrot.slane %v13396_v32, 1  ;;  %v18020_v5 = vunpack.i.h.bf16 %v13169_v47  ;;  %vm18028_vm13 = vmmov %vm18002_vm3 }
 0x434   : > { %vm18021_vm14 = vcmask 916480   ;;  %v13510_v45 = vmax.f32 %v2058_v0, 0.0  ;;  %v2648_v18 = vshrl.u32 %v13478_v54, 4  ;;  %v3397_v44 = vmul.f32 %v18024_v20, %v18023_v28  ;;  %vm18032_vm3 = vmmov %vm18007_vm4 }
 0x435   : > { %18018 = vst [vmem:[#allocation217_spill] sm:$0xff] %v13492_v29  ;;  %9768 = vrot.lane.b32.xlu0 %v9767_v53, %s10389_s14  ;;  %v5418_v53 = vsel %vm18021_vm14, %v5370_v7, %v18020_v5  ;;  %9773 = vrot.lane.b32.xlu1 %v13492_v29, %s10386_s30  ;;  %v2659_v32 = vshrl.u32 %v13484_v51, 4  ;;  %v3058_v47 = vrot.slane %v13481_v50, 7  ;;  %v9004_v5 = vpack.c.bf16 %v5693_v46, %v5692_v13  ;;  %v13532_v13 = vpop.permute.xlu0 %9558  ;;  %vm18035_vm6 = vmmov %vm18028_vm13 }
 0x436   : > { %18022 = vst [vmem:[#allocation218_spill] sm:$0xff] %v13510_v45  ;;  %5978 = vmatprep.mubr.f32.mxu1 %v5418_v53  ;;  %v2156_v7 = vadd.s32 368, %v11306_v63  ;;  %v2649_v29 = vmul.u32 24, %v2648_v18  ;;  %v5322_v54 = vsel %vm18026_vm11, %v3397_v44, %v9456_v4  ;;  %v2157_v6 = vadd.s32 376, %v11306_v63  ;;  %18030 = vst [vmem:[#allocation220_spill] sm:$0xff] %v13532_v13 }
 0x437   : > { %v2660_v53 = vmul.u32 24, %v2659_v32  ;;  %v18027_v1 = vrot.slane %v13281_v34, 1  ;;  %5979 = vmatmul.mubr.f32.gmra.mrb[64].mxu1 %v5322_v54  ;;  %9005 = vmatpush1.bf16.msra.mxu0 %v9004_v5  ;;  %v17370_v18 = vrot.slane %v13510_v45, 7  ;;  %v18031_v32 = vrot.slane %v13398_v3, 7  ;;  %vm18038_vm10 = vmmov %vm18019_vm8 }
 0x438   : > { %v13529_v51 = vmul.u32.u64.low 2863311531, %v2156_v7  ;;  %v13530_v20 = vmul.u32.u64.high 2863311531, %v2156_v7, %v13529_v51  ;;  %v2650_v46 = vsub.s32 %v2154_v2, %v2649_v29  ;;  %9144 = vmatpush1.bf16.msra.mxu1 %v9004_v5  ;;  %9006 = vmatprep.subr.bf16.mxu0 %v17889_v24  ;;  %v18034_v54 = vrot.slane %v13398_v3, 1  ;;  %vm18040_vm0 = vmmov %vm18021_vm14 }
 0x439   : > { %v13527_v28 = vsel %vm18028_vm13, %v18027_v1, %v3526_v26  ;;  %v13535_v44 = vmul.u32.u64.low 2863311531, %v2157_v6  ;;  %v13536_v4 = vmul.u32.u64.high 2863311531, %v2157_v6, %v13535_v44  ;;  %v2661_v63 = vsub.s32 %v2155_v62, %v2660_v53  ;;  %9129 = vmatprep.subr.bf16.mxu1 %v17889_v24  ;;  %vm18042_vm2 = vmmov %vm18032_vm3  ;;  %v13566_v13 = vpop.permute.xlu0 %9568 }
 0x43a   : > { %18029 = vst [vmem:[#allocation219_spill] sm:$0xff] %v13527_v28  ;;  %v13542_v1 = vsel %vm18032_vm3, %v18031_v32, %v3058_v47  ;;  %v13547_v51 = vsel %vm18035_vm6, %v3526_v26, %v18034_v54  ;;  %v18037_v2 = vunpack.i.l.bf16 %v13184_v41  ;;  %vm2730_vm15 = vcmp.ne.s32.totalorder %v2650_v46, 0  ;;  %v13556_v44 = vpop.permute.xlu1 %9563  ;;  %18044 = vst [vmem:[#allocation225_spill] sm:$0xff] %v13566_v13 }
 0x43b   : > { %18033 = vst [vmem:[#allocation221_spill] sm:$0xff] %v13542_v1  ;;  %18036 = vst [vmem:[#allocation222_spill] sm:$0xff] %v13547_v51  ;;  %vm2778_vm9 = vcmp.lt.s32.totalorder %v2650_v46, 0  ;;  %v2874_v5 = vadd.s32 24, %v2650_v46  ;;  %v18039_v62 = vunpack.i.l.bf16 %v13235_v59  ;;  %vm2731_vm1 = vcmp.ne.s32.totalorder %v2661_v63, 0 }
 0x43c   : > { %v5371_v29 = vsel %vm18038_vm10, %v18037_v2, %v9480_v23  ;;  %18041 = vst [vmem:[#allocation223_spill] sm:$0xff] %v13556_v44  ;;  %vm2779_vm4 = vcmp.lt.s32.totalorder %v2661_v63, 0  ;;  %vm2826_vm12 = vmand %vm2778_vm9, %vm2730_vm15  ;;  %v2875_v26 = vadd.s32 24, %v2661_v63  ;;  %v2670_v32 = vshrl.u32 %v13530_v20, 4 }
 0x43d   : > { %v5419_v53 = vsel %vm18040_vm0, %v5371_v29, %v18039_v62  ;;  %vm2827_vm5 = vmand %vm2779_vm4, %vm2731_vm1  ;;  %v2922_v23 = vsel %vm2826_vm12, %v2874_v5, %v2650_v46  ;;  %v13562_v54 = vsel %vm18042_vm2, %v3058_v47, %v17370_v18  ;;  %v2681_v2 = vshrl.u32 %v13536_v4, 4 }
 0x43e   : > { %5983 = vmatprep.mubr.f32.mxu1 %v5419_v53  ;;  %18043 = vst [vmem:[#allocation224_spill] sm:$0xff] %v13562_v54  ;;  %v3530_v29 = vrot.slane %v13481_v50, 1  ;;  %v2923_v62 = vsel %vm2827_vm5, %v2875_v26, %v2661_v63  ;;  %v3150_v0 = vadd.s32 4294967295, %v2922_v23  ;;  %v3625_v34 = vadd.s32 1, %v2922_v23  ;;  %v13569_v47 = vpop.permute.xlu1 %9573 }
 0x43f   : > { %v2671_v44 = vmul.u32 24, %v2670_v32  ;;  %v3151_v33 = vadd.s32 4294967295, %v2923_v62  ;;  %v3626_v20 = vadd.s32 1, %v2923_v62  ;;  %v2682_v53 = vmul.u32 24, %v2681_v2  ;;  %18045 = vst [vmem:[#allocation226_spill] sm:$0xff] %v13569_v47 }
 0x440   : > { %v17369_v46 = vrot.slane %v13510_v45, 1  ;;  %vm3198_vm7 = vcmp.ge.s32.totalorder %v3150_v0, 0  ;;  %vm3246_vm8 = vcmp.lt.s32.totalorder %v3150_v0, 24  ;;  %vm3673_vm14 = vcmp.ge.s32.totalorder %v3625_v34, 0 }
 0x441   : > { %vm3721_vm11 = vcmp.lt.s32.totalorder %v3625_v34, 24  ;;  %vm3199_vm13 = vcmp.ge.s32.totalorder %v3151_v33, 0  ;;  %vm3247_vm3 = vcmp.lt.s32.totalorder %v3151_v33, 24  ;;  %vm3294_vm6 = vmand %vm3198_vm7, %vm3246_vm8  ;;  %vm3674_vm10 = vcmp.ge.s32.totalorder %v3626_v20, 0 }
 0x442   : > { %vm3722_vm15 = vcmp.lt.s32.totalorder %v3626_v20, 24  ;;  %vm3295_vm9 = vmand %vm3199_vm13, %vm3247_vm3  ;;  %v13572_v4 = vsel %vm3294_vm6, 1.0, %v17821_v56  ;;  %v2672_v63 = vsub.s32 %v2156_v7, %v2671_v44  ;;  %v2683_v5 = vsub.s32 %v2157_v6, %v2682_v53  ;;  %v18053_v7 = vld [vmem:[#allocation69_spill] sm:$0xff]  ;;  %v13597_v20 = vpop.permute.xlu0 %9578 }
 0x443   : > { %18046 = vst [vmem:[#allocation227_spill] sm:$0xff] %v13572_v4  ;;  %v18047_v26 = vrot.slane %v13398_v3, 1  ;;  %vm18048_vm0 = vcmask 1046528   ;;  %v13580_v0 = vsel %vm3295_vm9, 1.0, %v17821_v56  ;;  %v3972_v33 = vmul.f32 %v13572_v4, %v13542_v1  ;;  %vm3769_vm1 = vmand %vm3673_vm14, %vm3721_vm11  ;;  %v18054_v6 = vld [vmem:[#allocation13_spill] sm:$0xff] }
 0x444   : > { %18050 = vst [vmem:[#allocation229_spill] sm:$0xff] %v13580_v0  ;;  %vm18051_vm4 = vmmov %vm18048_vm0  ;;  %v3398_v44 = vmul.f32 %v18054_v6, %v18053_v7  ;;  %v3973_v2 = vmul.f32 %v13580_v0, %v13562_v54  ;;  %v13595_v62 = vsel %vm3769_vm1, 1.0, %v17821_v56  ;;  %vm2732_vm5 = vcmp.ne.s32.totalorder %v2672_v63, 0 }
 0x445   : > { %v13577_v32 = vsel %vm18048_vm0, %v18047_v26, %v3530_v29  ;;  %v13588_v23 = vsel %vm18051_vm4, %v3530_v29, %v17369_v46  ;;  %vm3770_vm12 = vmand %vm3674_vm10, %vm3722_vm15  ;;  %18055 = vst [vmem:[#allocation69_spill] sm:$0xff] %v13595_v62  ;;  %vm2733_vm2 = vcmp.ne.s32.totalorder %v2683_v5, 0  ;;  %v3913_v29 = vmul.f32 %v13595_v62, %v13527_v28 }
 0x446   : > { %18049 = vst [vmem:[#allocation228_spill] sm:$0xff] %v13577_v32  ;;  %18052 = vst [vmem:[#allocation230_spill] sm:$0xff] %v13588_v23  ;;  %v13600_v34 = vsel %vm3770_vm12, 1.0, %v17821_v56  ;;  %vm2780_vm7 = vcmp.lt.s32.totalorder %v2672_v63, 0  ;;  %vm2781_vm8 = vcmp.lt.s32.totalorder %v2683_v5, 0  ;;  %v9782_v53 = vpack.i.bf16 %v3973_v2, %v3972_v33 }
 0x447   : > { %18056 = vst [vmem:[#allocation231_spill] sm:$0xff] %v13597_v20  ;;  %18057 = vst [vmem:[#allocation232_spill] sm:$0xff] %v13600_v34  ;;  %v3914_v26 = vmul.f32 %v13600_v34, %v13547_v51  ;;  %v2876_v7 = vadd.s32 24, %v2672_v63  ;;  %v2877_v46 = vadd.s32 24, %v2683_v5  ;;  %v18058_v18 = vunpack.i.l.bf16 %v13184_v41  ;;  %v13618_v34 = vpop.permute.xlu1 %9583 }
 0x448   : > { %vm2828_vm14 = vmand %vm2780_vm7, %vm2732_vm5  ;;  %vm18059_vm13 = vcmask 654336   ;;  %v2059_v20 = vadd.f32 %v13460_v17, %v11802_v58  ;;  %v2060_v0 = vadd.f32 %v13460_v17, %v11810_v14  ;;  %v18060_v47 = vunpack.i.h.bf16 %v13197_v27  ;;  %9783 = vrot.lane.b32.xlu1 %v9782_v53, %s10389_s14 }
 0x449   : > { %vm2829_vm11 = vmand %vm2781_vm8, %vm2733_vm2  ;;  %v5323_v6 = vsel %vm18059_vm13, %v3398_v44, %v18058_v18  ;;  %v18061_v33 = vunpack.i.h.bf16 %v13184_v41  ;;  %vm18062_vm3 = vcmask 261120   ;;  %v9495_v13 = vunpack.i.l.bf16 %v13279_v19 }
 0x44a   : > { %v9777_v4 = vpack.i.bf16 %v3914_v26, %v3913_v29  ;;  %v2924_v18 = vsel %vm2828_vm14, %v2876_v7, %v2672_v63  ;;  %v2925_v44 = vsel %vm2829_vm11, %v2877_v46, %v2683_v5  ;;  %5984 = vmatmul.mubr.f32.gmra.mrb[66].mxu1 %v5323_v6  ;;  %v13622_v54 = vmax.f32 %v2059_v20, 0.0  ;;  %v13634_v46 = vpop.permute.xlu0 %9588  ;;  %v18070_v7 = vld [vmem:[#allocation70_spill] sm:$0xff] }
 0x44b   : > { %v5372_v2 = vsel %vm18062_vm3, %v18061_v33, %v18060_v47  ;;  %v3627_v58 = vadd.s32 1, %v2924_v18  ;;  %v3628_v62 = vadd.s32 1, %v2925_v44  ;;  %v13624_v14 = vmax.f32 %v2060_v0, 0.0  ;;  %18067 = vst [vmem:[#allocation235_spill] sm:$0xff] %v13634_v46  ;;  %v13642_v20 = vpop.permute.xlu1 %9593 }
 0x44c   : > { %18063 = vst [vmem:[#allocation233_spill] sm:$0xff] %v13622_v54  ;;  %9778 = vrot.lane.b32.xlu0 %v9777_v4, %s10387_s13  ;;  %v13629_v27 = vpack.i.bf16 %v13481_v50, %v13398_v3  ;;  %v3152_v17 = vadd.s32 4294967295, %v2924_v18  ;;  %v3153_v47 = vadd.s32 4294967295, %v2925_v44  ;;  %v18065_v53 = vunpack.i.h.bf16 %v13235_v59 }
 0x44d   : > { %18064 = vst [vmem:[#allocation234_spill] sm:$0xff] %v13624_v14  ;;  %vm18066_vm6 = vcmask 916480   ;;  %vm3675_vm10 = vcmp.ge.s32.totalorder %v3627_v58, 0  ;;  %vm3676_vm15 = vcmp.ge.s32.totalorder %v3628_v62, 0  ;;  %vm3723_vm9 = vcmp.lt.s32.totalorder %v3627_v58, 24 }
 0x44e   : > { %v5420_v63 = vsel %vm18066_vm6, %v5372_v2, %v18065_v53  ;;  %vm3724_vm0 = vcmp.lt.s32.totalorder %v3628_v62, 24  ;;  %vm3771_vm1 = vmand %vm3675_vm10, %vm3723_vm9  ;;  %vm3200_vm4 = vcmp.ge.s32.totalorder %v3152_v17, 0  ;;  %vm3201_vm12 = vcmp.ge.s32.totalorder %v3153_v47, 0 }
 0x44f   : > { %5988 = vmatprep.mubr.f32.mxu1 %v5420_v63  ;;  %vm3248_vm5 = vcmp.lt.s32.totalorder %v3152_v17, 24  ;;  %vm3249_vm2 = vcmp.lt.s32.totalorder %v3153_v47, 24  ;;  %v9490_v4 = vunpack.i.l.bf16 %v13255_v57  ;;  %vm3772_vm7 = vmand %vm3676_vm15, %vm3724_vm0  ;;  %v13638_v5 = vsel %vm3771_vm1, 1.0, %v17821_v56  ;;  %v13675_v63 = vpop.permute.xlu0 %9598 }
 0x450   : > { %18068 = vst [vmem:[#allocation236_spill] sm:$0xff] %v13638_v5  ;;  %v3921_v0 = vrot.slane %v13622_v54, 7  ;;  %v17385_v6 = vrot.slane %v13624_v14, 7  ;;  %v13646_v29 = vsel %vm3772_vm7, 1.0, %v17821_v56  ;;  %v3915_v26 = vmul.f32 %v13638_v5, %v13577_v32  ;;  %9788 = vrot.lane.b32.xlu0 %v13629_v27, %s10386_s30  ;;  %vm3296_vm8 = vmand %vm3200_vm4, %vm3248_vm5  ;;  %s10393_s30 = smov 48  }
 0x451   : > { %18069 = vst [vmem:[#allocation237_spill] sm:$0xff] %v13646_v29  ;;  %v3399_v33 = vmul.f32 %v11461_v55, %v18070_v7  ;;  %v3916_v2 = vmul.f32 %v13646_v29, %v13588_v23  ;;  %vm3297_vm14 = vmand %vm3201_vm12, %vm3249_vm2  ;;  %v13658_v18 = vsel %vm3296_vm8, 1.0, %v17821_v56  ;;  %v18072_v44 = vrot.slane %v13510_v45, 7 }
 0x452   : > { %18071 = vst [vmem:[#allocation70_spill] sm:$0xff] %v13658_v18  ;;  %vm18073_vm11 = vcmask 1040384   ;;  %v13671_v53 = vsel %vm3297_vm14, 1.0, %v17821_v56  ;;  %vm18077_vm3 = vcmask 654336   ;;  %v9496_v3 = vunpack.i.h.bf16 %v13279_v19  ;;  %v5694_v56 = vld [vmem:[%s16997_s7 + $0x120] sm:$0xff] }
 0x453   : > { %v13663_v58 = vsel %vm18073_vm11, %v18072_v44, %v3921_v0  ;;  %vm18074_vm13 = vmmov %vm18073_vm11  ;;  %18075 = vst [vmem:[#allocation238_spill] sm:$0xff] %v13671_v53  ;;  %v9792_v7 = vpack.i.bf16 %v3916_v2, %v3915_v26  ;;  %v18076_v44 = vunpack.i.h.bf16 %v13184_v41  ;;  %vm18078_vm6 = vcmask 261120   ;;  %v5695_v26 = vld [vmem:[%s16997_s7 + $0x128] sm:$0xff] }
 0x454   : > { %v13668_v17 = vsel %vm18074_vm13, %v3921_v0, %v17385_v6  ;;  %v3974_v47 = vmul.f32 %v13658_v18, %v13663_v58  ;;  %v9491_v0 = vunpack.i.h.bf16 %v13255_v57  ;;  %v5373_v6 = vsel %vm18078_vm6, %v9490_v4, %v9495_v13  ;;  %v13699_v13 = vpop.permute.xlu1 %9603  ;;  %vm18083_vm15 = vmmov %vm18077_vm3 }
 0x455   : > { %v3975_v62 = vmul.f32 %v13671_v53, %v13668_v17  ;;  %v5324_v50 = vsel %vm18077_vm3, %v3399_v33, %v18076_v44  ;;  %9793 = vrot.lane.b32.xlu1 %v9792_v7, %s10387_s13  ;;  %v4017_v33 = vmul.f32 %v13006_v48, %v13118_v22  ;;  %v4018_v57 = vmul.f32 %v13035_v12, %v13124_v16  ;;  %v18082_v7 = vld [vmem:[#allocation71_spill] sm:$0xff]  ;;  %s10390_s13 = smov 64   ;;  %vm18084_vm9 = vmmov %vm18078_vm6 }
 0x456   : > { %5989 = vmatmul.mubr.f32.gmra.mrb[68].mxu1 %v5324_v50  ;;  %v18079_v19 = vunpack.i.l.bf16 %v13298_v52  ;;  %vm18080_vm10 = vcmask 916480   ;;  %18081 = vst [vmem:[#allocation239_spill] sm:$0xff] %v13699_v13  ;;  %v4067_v44 = vmul.f32 %v12998_v36, %v13108_v43  ;;  %v3400_v12 = vmul.f32 %v11520_v39, %v18082_v7  ;;  %vm18089_vm1 = vmmov %vm18078_vm6  ;;  %v18109_v36 = vld [vmem:[#allocation195_spill] sm:$0xff] }
 0x457   : > { %v9797_v41 = vpack.i.bf16 %v3975_v62, %v3974_v47  ;;  %v4068_v62 = vmul.f32 %v13054_v30, %v13113_v11  ;;  %v9510_v47 = vunpack.i.l.bf16 %v13336_v10  ;;  %v9007_v48 = vpack.c.bf16 %v5695_v26, %v5694_v56  ;;  %vm18086_vm0 = vmmov %vm18080_vm10 }
 0x458   : > { %v5421_v50 = vsel %vm18080_vm10, %v5373_v6, %v18079_v19  ;;  %v13710_v6 = vpop.permute.xlu0 %9608  ;;  %v9505_v19 = vunpack.i.l.bf16 %v13316_v35  ;;  %v9807_v2 = vpack.i.bf16 %v4018_v57, %v4017_v33  ;;  %v5325_v16 = vsel %vm18083_vm15, %v3400_v12, %v9490_v4  ;;  %v13731_v57 = vpop.permute.xlu1 %9613  ;;  %vm18090_vm4 = vmmov %vm18077_vm3 }
 0x459   : > { %5993 = vmatprep.mubr.f32.mxu1 %v5421_v50  ;;  %9798 = vrot.lane.b32.xlu0 %v9797_v41, %s10389_s14  ;;  %v5374_v50 = vsel %vm18084_vm9, %v9491_v0, %v9496_v3  ;;  %v9812_v22 = vpack.i.bf16 %v4068_v62, %v4067_v44  ;;  %v4019_v56 = vmul.f32 %v13043_v37, %v13162_v60  ;;  %v18085_v26 = vunpack.i.h.bf16 %v13298_v52  ;;  %s10391_s14 = smov 16   ;;  %v18087_v3 = vld [vmem:[#allocation72_spill] sm:$0xff]  ;;  %v18092_v62 = vld [vmem:[#allocation165_spill] sm:$0xff]  ;;  %vm18096_vm12 = vmmov %vm18086_vm0 }
 0x45a   : > { %9803 = vrot.lane.b32.xlu1 %v13090_v25, %s10390_s13  ;;  %9145 = vmatpush1.bf16.msra.mxu1 %v9007_v48  ;;  %v9511_v25 = vunpack.i.h.bf16 %v13336_v10  ;;  %v4020_v12 = vmul.f32 %v13167_v40, %v13192_v9  ;;  %v5375_v33 = vsel %vm18089_vm1, %v9505_v19, %v9510_v47  ;;  %v9506_v44 = vunpack.i.h.bf16 %v13316_v35  ;;  %vm18101_vm5 = vmmov %vm18089_vm1  ;;  %v18104_v40 = vld [vmem:[#allocation177_spill] sm:$0xff] }
 0x45b   : > { %5994 = vmatmul.mubr.f32.gmra.mrb[70].mxu1 %v5325_v16  ;;  %v5422_v59 = vsel %vm18086_vm0, %v5374_v50, %v18085_v26  ;;  %9130 = vmatprep.subr.bf16.mxu1 %v17889_v24  ;;  %v18088_v16 = vld [vmem:[#allocation18_spill] sm:$0xff]  ;;  %v18093_v26 = vld [vmem:[#allocation184_spill] sm:$0xff]  ;;  %v18095_v47 = vunpack.i.l.bf16 %v13346_v49  ;;  %vm18102_vm2 = vmmov %vm18077_vm3 }
 0x45c   : > { %5998 = vmatprep.mubr.f32.mxu1 %v5422_v59  ;;  %v3401_v4 = vmul.f32 %v18088_v16, %v18087_v3  ;;  %9008 = vmatpush1.bf16.msra.mxu0 %v9007_v48  ;;  %v18094_v59 = vld [vmem:[#allocation172_spill] sm:$0xff]  ;;  %v13744_v35 = vpop.permute.xlu0 %9618  ;;  %v9822_v48 = vpack.i.bf16 %v4020_v12, %v4019_v56  ;;  %v5376_v60 = vsel %vm18101_vm5, %v9506_v44, %v9511_v25  ;;  %v9520_v56 = vunpack.i.l.bf16 %v13352_v38  ;;  %v13767_v43 = vpop.permute.xlu1 %9623  ;;  %vm18112_vm7 = vmmov %vm18086_vm0 }
 0x45d   : > { %9808 = vrot.lane.b32.xlu0 %v9807_v2, %s10391_s14  ;;  %v18091_v2 = vld [vmem:[#allocation181_spill] sm:$0xff]  ;;  %v4070_v41 = vmul.f32 %v18094_v59, %v18093_v26  ;;  %v5423_v37 = vsel %vm18096_vm12, %v5375_v33, %v18095_v47  ;;  %18097 = vst [vmem:[#allocation71_spill] sm:$0xff] %v13744_v35  ;;  %9009 = vmatprep.subr.bf16.mxu0 %v17889_v24  ;;  %v9525_v47 = vunpack.i.l.bf16 %v13379_v31  ;;  %v18103_v25 = vld [vmem:[#allocation192_spill] sm:$0xff]  ;;  %v18105_v26 = vld [vmem:[#allocation194_spill] sm:$0xff] }
 0x45e   : > { %9813 = vrot.lane.b32.xlu1 %v9812_v22, %s10392_s28  ;;  %v5326_v10 = vsel %vm18090_vm4, %v3401_v4, %v9491_v0  ;;  %v4069_v50 = vmul.f32 %v18092_v62, %v18091_v2  ;;  %v18098_v22 = vld [vmem:[#allocation183_spill] sm:$0xff]  ;;  %v18099_v0 = vld [vmem:[#allocation73_spill] sm:$0xff]  ;;  %v4021_v52 = vmul.f32 %v18104_v40, %v18103_v25  ;;  %v18106_v2 = vld [vmem:[#allocation180_spill] sm:$0xff]  ;;  %v9526_v40 = vunpack.i.h.bf16 %v13379_v31 }
 0x45f   : > { %5999 = vmatmul.mubr.f32.gmra.mrb[72].mxu1 %v5326_v10  ;;  %v18100_v4 = vld [vmem:[#allocation19_spill] sm:$0xff]  ;;  %v5696_v10 = vld [vmem:[%s16997_s7 + $0x130] sm:$0xff]  ;;  %v5697_v33 = vld [vmem:[%s16997_s7 + $0x138] sm:$0xff]  ;;  %v4022_v11 = vmul.f32 %v18106_v2, %v18105_v26  ;;  %v9521_v26 = vunpack.i.h.bf16 %v13352_v38  ;;  %v18118_v31 = vunpack.i.l.bf16 %v13394_v8  ;;  %v9540_v38 = vunpack.i.l.bf16 %v13443_v21 }
 0x460   : > { %6003 = vmatprep.mubr.f32.mxu1 %v5423_v37  ;;  %v3402_v9 = vmul.f32 %v18100_v4, %v18099_v0  ;;  %v9827_v37 = vpack.i.bf16 %v4070_v41, %v4069_v50  ;;  %v18107_v59 = vld [vmem:[#allocation193_spill] sm:$0xff]  ;;  %v18114_v50 = vld [vmem:[#allocation20_spill] sm:$0xff]  ;;  %vm18116_vm8 = vmmov %vm18102_vm2 }
 0x461   : > { %9818 = vrot.lane.b32.xlu0 %v18098_v22, %s10390_s13  ;;  %v18108_v62 = vld [vmem:[#allocation173_spill] sm:$0xff]  ;;  %vm18117_vm14 = vmmov %vm18089_vm1 }
 0x462   : > { %9823 = vrot.lane.b32.xlu1 %v9822_v48, %s10391_s14  ;;  %v5327_v22 = vsel %vm18102_vm2, %v3402_v9, %v9505_v19  ;;  %v4071_v30 = vmul.f32 %v18108_v62, %v18107_v59  ;;  %v18110_v4 = vld [vmem:[#allocation185_spill] sm:$0xff]  ;;  %v18111_v48 = vunpack.i.h.bf16 %v13346_v49  ;;  %v9010_v9 = vpack.c.bf16 %v5697_v33, %v5696_v10  ;;  %v18113_v19 = vld [vmem:[#allocation80_spill] sm:$0xff]  ;;  %vm18119_vm11 = vmmov %vm18086_vm0 }
 0x463   : > { %6004 = vmatmul.mubr.f32.gmra.mrb[74].mxu1 %v5327_v22  ;;  %v4072_v12 = vmul.f32 %v18110_v4, %v18109_v36  ;;  %v3403_v2 = vmul.f32 %v18114_v50, %v18113_v19  ;;  %v13780_v22 = vpop.permute.xlu0 %9628  ;;  %v18115_v25 = vld [vmem:[#allocation189_spill] sm:$0xff]  ;;  %v9837_v49 = vpack.i.bf16 %v4022_v11, %v4021_v52  ;;  %v5377_v10 = vsel %vm18117_vm14, %v9520_v56, %v9525_v47  ;;  %v18120_v52 = vld [vmem:[#allocation182_spill] sm:$0xff]  ;;  %vm18129_vm13 = vmmov %vm18102_vm2 }
 0x464   : > { %v5424_v41 = vsel %vm18112_vm7, %v5376_v60, %v18111_v48  ;;  %9146 = vmatpush1.bf16.msra.mxu1 %v9010_v9  ;;  %v5425_v48 = vsel %vm18119_vm11, %v5377_v10, %v18118_v31  ;;  %9011 = vmatpush1.bf16.msra.mxu0 %v9010_v9  ;;  %v4023_v11 = vmul.f32 %v18120_v52, %v13406_v15  ;;  %v18122_v47 = vld [vmem:[#allocation81_spill] sm:$0xff]  ;;  %v13806_v9 = vpop.permute.xlu1 %9633  ;;  %v18126_v10 = vld [vmem:[#allocation211_spill] sm:$0xff]  ;;  %vm18130_vm3 = vmmov %vm18089_vm1  ;;  %v18132_v59 = vunpack.i.h.bf16 %v13394_v8 }
 0x465   : > { %9828 = vrot.lane.b32.xlu0 %v9827_v37, %s10392_s28  ;;  %6008 = vmatprep.mubr.f32.mxu1 %v5424_v41  ;;  %v5328_v60 = vsel %vm18116_vm8, %v3403_v2, %v9506_v44  ;;  %v9842_v37 = vpack.i.bf16 %v4072_v12, %v4071_v30  ;;  %v18121_v44 = vld [vmem:[#allocation199_spill] sm:$0xff]  ;;  %v5698_v12 = vld [vmem:[%s16997_s7 + $0x140] sm:$0xff]  ;;  %18124 = vst [vmem:[#allocation72_spill] sm:$0xff] %v13806_v9  ;;  %v18127_v31 = vld [vmem:[#allocation197_spill] sm:$0xff]  ;;  %vm18167_vm7 = vcmask 1046528   ;;  %vm18175_vm14 = vcmask 1040384  }
 0x466   : > { %9833 = vrot.lane.b32.xlu1 %v18115_v25, %s10390_s13  ;;  %9131 = vmatprep.subr.bf16.mxu1 %v17889_v24  ;;  %v4024_v2 = vmul.f32 %v18121_v44, %v13419_v42  ;;  %v18123_v25 = vld [vmem:[#allocation24_spill] sm:$0xff]  ;;  %v5699_v41 = vld [vmem:[%s16997_s7 + $0x148] sm:$0xff]  ;;  %v4074_v33 = vmul.f32 %v18127_v31, %v18126_v10  ;;  %v5378_v42 = vsel %vm18130_vm3, %v9521_v26, %v9526_v40  ;;  %v18131_v15 = vld [vmem:[#allocation214_spill] sm:$0xff]  ;;  %v9541_v10 = vunpack.i.h.bf16 %v13443_v21 }
 0x467   : > { %6009 = vmatmul.mubr.f32.gmra.mrb[76].mxu1 %v5328_v60  ;;  %v3404_v30 = vmul.f32 %v18123_v25, %v18122_v47  ;;  %9012 = vmatprep.subr.bf16.mxu0 %v17889_v24  ;;  %v17412_v36 = vunpack.i.l.bf16 %v18131_v15  ;;  %vm18133_vm6 = vmmov %vm18086_vm0  ;;  %v13821_v4 = vpop.permute.xlu0 %9638  ;;  %v18134_v62 = vld [vmem:[#allocation205_spill] sm:$0xff]  ;;  %v18139_v21 = vld [vmem:[#allocation200_spill] sm:$0xff] }
 0x468   : > { %6013 = vmatprep.mubr.f32.mxu1 %v5425_v48  ;;  %v18128_v48 = vld [vmem:[#allocation206_spill] sm:$0xff]  ;;  %v9852_v31 = vpack.i.bf16 %v4024_v2, %v4023_v11  ;;  %vm18137_vm10 = vmmov %vm18089_vm1  ;;  %v4025_v11 = vmul.f32 %v18139_v21, %v13527_v28  ;;  %v13837_v2 = vpop.permute.xlu1 %9643  ;;  %v18151_v28 = vld [vmem:[#allocation220_spill] sm:$0xff] }
 0x469   : > { %9838 = vrot.lane.b32.xlu0 %v9837_v49, %s10391_s14  ;;  %v18125_v49 = vld [vmem:[#allocation187_spill] sm:$0xff]  ;;  %v9535_v44 = vunpack.i.l.bf16 %v18128_v48  ;;  %v5329_v52 = vsel %vm18129_vm13, %v3404_v30, %v9520_v56  ;;  %v18135_v56 = vld [vmem:[#allocation85_spill] sm:$0xff]  ;;  %vm18138_vm15 = vmmov %vm18102_vm2 }
 0x46a   : > { %v4073_v60 = vmul.f32 %v18125_v49, %v13436_v61  ;;  %9843 = vrot.lane.b32.xlu1 %v9842_v37, %s10392_s28  ;;  %v5426_v61 = vsel %vm18133_vm6, %v5378_v42, %v18132_v59  ;;  %v9013_v49 = vpack.c.bf16 %v5699_v41, %v5698_v12  ;;  %v18136_v37 = vld [vmem:[#allocation26_spill] sm:$0xff]  ;;  %v9536_v42 = vunpack.i.h.bf16 %v18128_v48  ;;  %v18142_v41 = vld [vmem:[#allocation224_spill] sm:$0xff]  ;;  %vm18144_vm9 = vmmov %vm18086_vm0 }
 0x46b   : > { %6014 = vmatmul.mubr.f32.gmra.mrb[78].mxu1 %v5329_v52  ;;  %v3405_v40 = vmul.f32 %v18136_v37, %v18135_v56  ;;  %v5379_v30 = vsel %vm18137_vm10, %v9535_v44, %v9540_v38  ;;  %v18141_v38 = vld [vmem:[#allocation198_spill] sm:$0xff]  ;;  %v18146_v48 = vld [vmem:[#allocation27_spill] sm:$0xff]  ;;  %vm18147_vm0 = vmmov %vm18089_vm1  ;;  %v13853_v21 = vpop.permute.xlu0 %9648 }
 0x46c   : > { %6018 = vmatprep.mubr.f32.mxu1 %v5426_v61  ;;  %v9857_v52 = vpack.i.bf16 %v4074_v33, %v4073_v60  ;;  %9147 = vmatpush1.bf16.msra.mxu1 %v9013_v49  ;;  %v4075_v12 = vmul.f32 %v18141_v38, %v13542_v1  ;;  %v18148_v33 = vld [vmem:[#allocation68_spill] sm:$0xff]  ;;  %18149 = vst [vmem:[#allocation18_spill] sm:$0xff] %v13853_v21  ;;  %vm18153_vm1 = vmmov %vm18102_vm2  ;;  %v18154_v1 = vunpack.i.h.bf16 %v18131_v15  ;;  %v3978_v38 = vrot.slane %v13624_v14, 1  ;;  %v18156_v8 = vld [vmem:[#allocation209_spill] sm:$0xff] }
 0x46d   : > { %9848 = vrot.lane.b32.xlu0 %v18134_v62, %s10390_s13  ;;  %9014 = vmatpush1.bf16.msra.mxu0 %v9013_v49  ;;  %v5330_v59 = vsel %vm18138_vm15, %v3405_v40, %v9521_v26  ;;  %v18140_v62 = vld [vmem:[#allocation208_spill] sm:$0xff]  ;;  %v5427_v26 = vsel %vm18144_vm9, %v5379_v30, %v17412_v36  ;;  %v18152_v30 = vld [vmem:[#allocation217_spill] sm:$0xff]  ;;  %vm18155_vm4 = vmmov %vm18133_vm6 }
 0x46e   : > { %9853 = vrot.lane.b32.xlu1 %v9852_v31, %s10391_s14  ;;  %v4026_v61 = vmul.f32 %v18140_v62, %v13547_v51  ;;  %9132 = vmatprep.subr.bf16.mxu1 %v17889_v24  ;;  %v18143_v49 = vld [vmem:[#allocation212_spill] sm:$0xff]  ;;  %v18145_v31 = vld [vmem:[#allocation86_spill] sm:$0xff]  ;;  %v9555_v62 = vunpack.i.l.bf16 %v18148_v33  ;;  %vm18162_vm12 = vmmov %vm18153_vm1 }
 0x46f   : > { %6019 = vmatmul.mubr.f32.gmra.mrb[80].mxu1 %v5330_v59  ;;  %v4076_v60 = vmul.f32 %v18143_v49, %v18142_v41  ;;  %9015 = vmatprep.subr.bf16.mxu0 %v17889_v24  ;;  %v3406_v40 = vmul.f32 %v18146_v48, %v18145_v31  ;;  %v5380_v59 = vsel %vm18147_vm0, %v9536_v42, %v9541_v10  ;;  %v18150_v51 = vld [vmem:[#allocation216_spill] sm:$0xff]  ;;  %v3976_v49 = vrot.slane %v13622_v54, 1  ;;  %vm18163_vm5 = vmmov %vm18147_vm0 }
 0x470   : > { %6023 = vmatprep.mubr.f32.mxu1 %v5427_v26  ;;  %v9550_v41 = vunpack.i.l.bf16 %v18150_v51  ;;  %v9867_v36 = vpack.i.bf16 %v4026_v61, %v4025_v11  ;;  %v5428_v10 = vsel %vm18155_vm4, %v5380_v59, %v18154_v1  ;;  %v4027_v48 = vmul.f32 %v18156_v8, %v13577_v32  ;;  %v18159_v61 = vld [vmem:[#allocation28_spill] sm:$0xff]  ;;  %vm18165_vm2 = vmmov %vm18155_vm4 }
 0x471   : > { %9858 = vrot.lane.b32.xlu0 %v9857_v52, %s10392_s28  ;;  %v5331_v52 = vsel %vm18153_vm1, %v3406_v40, %v9535_v44  ;;  %v9872_v26 = vpack.i.bf16 %v4076_v60, %v4075_v12  ;;  %v18158_v44 = vld [vmem:[#allocation91_spill] sm:$0xff]  ;;  %v5700_v1 = vld [vmem:[%s16997_s7 + $0x150] sm:$0xff]  ;;  %v5701_v60 = vld [vmem:[%s16997_s7 + $0x158] sm:$0xff]  ;;  %v13878_v40 = vpop.permute.xlu1 %9653  ;;  %v9551_v8 = vunpack.i.h.bf16 %v18150_v51 }
 0x472   : > { %9863 = vrot.lane.b32.xlu1 %v18152_v30, %s10390_s13  ;;  %v18157_v30 = vld [vmem:[#allocation69_spill] sm:$0xff]  ;;  %v3407_v12 = vmul.f32 %v18159_v61, %v18158_v44  ;;  %v5381_v15 = vsel %vm18163_vm5, %v9550_v41, %v9555_v62  ;;  %v18164_v61 = vunpack.i.l.bf16 %v18151_v28  ;;  %vm18169_vm8 = vmmov %vm18167_vm7 }
 0x473   : > { %6024 = vmatmul.mubr.f32.gmra.mrb[82].mxu1 %v5331_v52  ;;  %v4028_v11 = vmul.f32 %v18157_v30, %v13588_v23  ;;  %v18161_v52 = vld [vmem:[#allocation227_spill] sm:$0xff]  ;;  %v13899_v51 = vsel %vm18169_vm8, %v3976_v49, %v3978_v38  ;;  %v13901_v23 = vpop.permute.xlu0 %9658  ;;  %vm18180_vm11 = vmmov %vm18147_vm0 }
 0x474   : > { %6028 = vmatprep.mubr.f32.mxu1 %v5428_v10  ;;  %v4078_v30 = vmul.f32 %v18161_v52, %v13668_v17  ;;  %v9556_v10 = vunpack.i.h.bf16 %v18148_v33  ;;  %v5332_v32 = vsel %vm18162_vm12, %v3407_v12, %v9536_v42  ;;  %18170 = vst [vmem:[#allocation73_spill] sm:$0xff] %v13899_v51  ;;  %v9016_v33 = vpack.c.bf16 %v5701_v60, %v5700_v1  ;;  %v18176_v52 = vld [vmem:[#allocation74_spill] sm:$0xff]  ;;  %v18178_v1 = vld [vmem:[#allocation76_spill] sm:$0xff]  ;;  %v18179_v60 = vld [vmem:[#allocation7_spill] sm:$0xff] }
 0x475   : > { %9868 = vrot.lane.b32.xlu0 %v9867_v36, %s10391_s14  ;;  %v18160_v36 = vld [vmem:[#allocation213_spill] sm:$0xff]  ;;  %v9882_v12 = vpack.i.bf16 %v4028_v11, %v4027_v48  ;;  %v13917_v25 = vmul.f32 %v18179_v60, %v18178_v1  ;;  %vm18182_vm13 = vmmov %vm18153_vm1  ;;  %v13928_v1 = vpop.permute.xlu1 %9663 }
 0x476   : > { %v4077_v59 = vmul.f32 %v18160_v36, %v13663_v58  ;;  %9873 = vrot.lane.b32.xlu1 %v9872_v26, %s10392_s28  ;;  %v5429_v58 = vsel %vm18165_vm2, %v5381_v15, %v18164_v61  ;;  %v18166_v36 = vrot.slane %v13510_v45, 1  ;;  %v18171_v26 = vld [vmem:[#allocation225_spill] sm:$0xff]  ;;  %v18174_v61 = vrot.slane %v13624_v14, 7  ;;  %9148 = vmatpush1.bf16.msra.mxu1 %v9016_v33  ;;  %18184 = vst [vmem:[#allocation80_spill] sm:$0xff] %v13928_v1  ;;  %vm18188_vm3 = vmmov %vm18165_vm2 }
 0x477   : > { %6029 = vmatmul.mubr.f32.gmra.mrb[84].mxu1 %v5332_v32  ;;  %v9570_v42 = vunpack.i.l.bf16 %v18171_v26  ;;  %v18172_v32 = vld [vmem:[#allocation93_spill] sm:$0xff]  ;;  %v5382_v11 = vsel %vm18180_vm11, %v9551_v8, %v9556_v10  ;;  %9133 = vmatprep.subr.bf16.mxu1 %v17889_v24  ;;  %vm18191_vm6 = vmmov %vm18147_vm0 }
 0x478   : > { %v13896_v17 = vsel %vm18167_vm7, %v18166_v36, %v3976_v49  ;;  %6033 = vmatprep.mubr.f32.mxu1 %v5429_v58  ;;  %v18173_v15 = vld [vmem:[#allocation33_spill] sm:$0xff]  ;;  %v4033_v36 = vsel %vm18175_vm14, %v18174_v61, 0.0  ;;  %v18177_v49 = vld [vmem:[#allocation3_spill] sm:$0xff]  ;;  %v9887_v48 = vpack.i.bf16 %v4078_v30, %v4077_v59  ;;  %v18183_v61 = vld [vmem:[#allocation232_spill] sm:$0xff]  ;;  %9017 = vmatpush1.bf16.msra.mxu0 %v9016_v33 }
 0x479   : > { %18168 = vst [vmem:[#allocation183_spill] sm:$0xff] %v13896_v17  ;;  %9878 = vrot.lane.b32.xlu0 %v13629_v27, %s10390_s13  ;;  %v3408_v62 = vmul.f32 %v18173_v15, %v18172_v32  ;;  %v13913_v37 = vmul.f32 %v18177_v49, %v18176_v52  ;;  %v18181_v27 = vld [vmem:[#allocation223_spill] sm:$0xff]  ;;  %v4029_v50 = vmul.f32 %v18183_v61, %v13896_v17  ;;  %v18185_v30 = vld [vmem:[#allocation226_spill] sm:$0xff]  ;;  %v18186_v10 = vld [vmem:[#allocation229_spill] sm:$0xff]  ;;  %v4080_v49 = vmul.f32 0.0, %v13658_v18 }
 0x47a   : > { %v9565_v58 = vunpack.i.l.bf16 %v18181_v27  ;;  %9883 = vrot.lane.b32.xlu1 %v9882_v12, %s10391_s14  ;;  %v4030_v52 = vmul.f32 %v13638_v5, %v13899_v51  ;;  %v4079_v60 = vmul.f32 %v18186_v10, %v4033_v36  ;;  %v18187_v12 = vunpack.i.h.bf16 %v18151_v28  ;;  %v18189_v61 = vld [vmem:[#allocation94_spill] sm:$0xff]  ;;  %v5703_v33 = vld [vmem:[%s16997_s7 + $0x168] sm:$0xff]  ;;  %vm18192_vm10 = vmmov %vm18167_vm7  ;;  %9018 = vmatprep.subr.bf16.mxu0 %v17889_v24 }
 0x47b   : > { %v5333_v15 = vsel %vm18182_vm13, %v3408_v62, %v9550_v41  ;;  %v9571_v62 = vunpack.i.h.bf16 %v18171_v26  ;;  %v9892_v5 = vpack.i.bf16 %v13622_v54, %v13510_v45  ;;  %v18190_v59 = vld [vmem:[#allocation34_spill] sm:$0xff]  ;;  %v13950_v26 = vsel %vm18192_vm10, %v3978_v38, 0.0  ;;  %vm18194_vm15 = vmmov %vm18153_vm1 }
 0x47c   : > { %6034 = vmatmul.mubr.f32.gmra.mrb[86].mxu1 %v5333_v15  ;;  %v5430_v41 = vsel %vm18188_vm3, %v5382_v11, %v18187_v12  ;;  %v3409_v15 = vmul.f32 %v18190_v59, %v18189_v61  ;;  %v5383_v36 = vsel %vm18191_vm6, %v9565_v58, %v9570_v42  ;;  %v5702_v51 = vld [vmem:[%s16997_s7 + $0x160] sm:$0xff]  ;;  %18193 = vst [vmem:[#allocation189_spill] sm:$0xff] %v13950_v26  ;;  %v13954_v11 = vpop.permute.xlu0 %9668  ;;  %v9566_v42 = vunpack.i.h.bf16 %v18181_v27  ;;  %vm18196_vm9 = vmmov %vm18165_vm2  ;;  %v18197_v27 = vld [vmem:[#allocation97_spill] sm:$0xff] }
 0x47d   : > { %9888 = vrot.lane.b32.xlu0 %v9887_v48, %s10392_s28  ;;  %6038 = vmatprep.mubr.f32.mxu1 %v5430_v41  ;;  %v9897_v12 = vpack.i.bf16 %v4030_v52, %v4029_v50  ;;  %v9902_v28 = vpack.i.bf16 %v4080_v49, %v4079_v60  ;;  %v18195_v38 = vunpack.i.l.bf16 %v18185_v30  ;;  %v9019_v48 = vpack.c.bf16 %v5703_v33, %v5702_v51  ;;  %v13970_v52 = vpop.permute.xlu1 %9673  ;;  %v18199_v49 = vld [vmem:[#allocation67_spill] sm:$0xff]  ;;  %v18200_v60 = vld [vmem:[#allocation2_spill] sm:$0xff]  ;;  %vm18205_vm4 = vmmov %vm18165_vm2 }
 0x47e   : > { %9893 = vrot.lane.b32.xlu1 %v9892_v5, %s10390_s13  ;;  %v5334_v41 = vsel %vm18194_vm15, %v3409_v15, %v9551_v8  ;;  %v4031_v45 = vmul.f32 %v13646_v29, %v13950_v26  ;;  %v18198_v5 = vld [vmem:[#allocation35_spill] sm:$0xff]  ;;  %v5384_v8 = vsel %vm18147_vm0, %v9566_v42, %v9571_v62  ;;  %v3984_v15 = vmul.f32 %v18200_v60, %v18199_v49  ;;  %v18203_v62 = vld [vmem:[#allocation6_spill] sm:$0xff]  ;;  %vm18209_vm12 = vmmov %vm18153_vm1 }
 0x47f   : > { %v5431_v54 = vsel %vm18196_vm9, %v5383_v36, %v18195_v38  ;;  %v3410_v50 = vmul.f32 %v18198_v5, %v18197_v27  ;;  %v18201_v36 = vld [vmem:[#allocation231_spill] sm:$0xff]  ;;  %9149 = vmatpush1.bf16.msra.mxu1 %v9019_v48  ;;  %9020 = vmatpush1.bf16.msra.mxu0 %v9019_v48  ;;  %v4034_v38 = vmul.f32 %v18203_v62, %v18082_v7  ;;  %v4081_v17 = vmul.f32 0.0, %v13671_v53  ;;  %vm18210_vm5 = vmmov %vm18147_vm0 }
 0x480   : > { %6039 = vmatmul.mubr.f32.gmra.mrb[88].mxu1 %v5334_v41  ;;  %v9585_v41 = vunpack.i.l.bf16 %v13618_v34  ;;  %v9580_v51 = vunpack.i.l.bf16 %v18201_v36  ;;  %v17426_v49 = vunpack.i.l.bf16 %v13634_v46  ;;  %v18204_v29 = vunpack.i.h.bf16 %v18185_v30  ;;  %v13987_v48 = vpop.permute.xlu0 %9678  ;;  %9134 = vmatprep.subr.bf16.mxu1 %v17889_v24  ;;  %vm18215_vm7 = vmmov %vm18153_vm1 }
 0x481   : > { %9898 = vrot.lane.b32.xlu0 %v9897_v12, %s10391_s14  ;;  %6043 = vmatprep.mubr.f32.mxu1 %v5431_v54  ;;  %v18202_v54 = vld [vmem:[#allocation66_spill] sm:$0xff]  ;;  %v5335_v12 = vsel %vm18153_vm1, %v3410_v50, %v9565_v58  ;;  %18206 = vst [vmem:[#allocation81_spill] sm:$0xff] %v13987_v48  ;;  %v18207_v58 = vld [vmem:[#allocation100_spill] sm:$0xff]  ;;  %v9600_v30 = vunpack.i.l.bf16 %v13675_v63  ;;  %vm18217_vm8 = vmmov %vm18147_vm0  ;;  %v9615_v60 = vunpack.i.l.bf16 %v13731_v57  ;;  %v18238_v18 = vunpack.i.h.bf16 %v13699_v13 }
 0x482   : > { %9903 = vrot.lane.b32.xlu1 %v9902_v28, %s10392_s28  ;;  %v9907_v33 = vpack.i.bf16 %v18202_v54, %v13624_v14  ;;  %v5432_v26 = vsel %vm18205_vm4, %v5384_v8, %v18204_v29  ;;  %v9917_v28 = vpack.i.bf16 %v3984_v15, %v4031_v45  ;;  %v18208_v50 = vld [vmem:[#allocation36_spill] sm:$0xff]  ;;  %v9586_v54 = vunpack.i.h.bf16 %v13618_v34  ;;  %v5705_v29 = vld [vmem:[%s16997_s7 + $0x178] sm:$0xff]  ;;  %9021 = vmatprep.subr.bf16.mxu0 %v17889_v24  ;;  %v14005_v34 = vpop.permute.xlu1 %9683  ;;  %vm18219_vm14 = vmmov %vm18165_vm2 }
 0x483   : > { %v3411_v7 = vmul.f32 %v18208_v50, %v18207_v58  ;;  %v9581_v45 = vunpack.i.h.bf16 %v18201_v36  ;;  %v5385_v15 = vsel %vm18210_vm5, %v9580_v51, %v9585_v41  ;;  %v18211_v36 = vld [vmem:[#allocation101_spill] sm:$0xff]  ;;  %vm18223_vm11 = vmmov %vm18147_vm0 }
 0x484   : > { %6044 = vmatmul.mubr.f32.gmra.mrb[90].mxu1 %v5335_v12  ;;  %v5704_v12 = vld [vmem:[%s16997_s7 + $0x170] sm:$0xff]  ;;  %v5433_v62 = vsel %vm18165_vm2, %v5385_v15, %v17426_v49  ;;  %v18213_v41 = vld [vmem:[#allocation9_spill] sm:$0xff]  ;;  %v18216_v49 = vld [vmem:[#allocation10_spill] sm:$0xff] }
 0x485   : > { %9908 = vrot.lane.b32.xlu0 %v9907_v33, %s10390_s13  ;;  %6048 = vmatprep.mubr.f32.mxu1 %v5432_v26  ;;  %v9912_v26 = vpack.i.bf16 %v4034_v38, %v4081_v17  ;;  %v5336_v8 = vsel %vm18209_vm12, %v3411_v7, %v9566_v42  ;;  %v18212_v17 = vld [vmem:[#allocation41_spill] sm:$0xff]  ;;  %v9022_v42 = vpack.c.bf16 %v5705_v29, %v5704_v12  ;;  %v14017_v7 = vpop.permute.xlu0 %9688  ;;  %v18214_v33 = vld [vmem:[#allocation75_spill] sm:$0xff]  ;;  %vm18225_vm13 = vmmov %vm18153_vm1 }
 0x486   : > { %9918 = vrot.lane.b32.xlu1 %v9917_v28, %s10391_s14  ;;  %v3412_v38 = vmul.f32 %v18212_v17, %v18211_v36  ;;  %v4035_v28 = vmul.f32 %v18213_v41, %v18087_v3  ;;  %v18218_v3 = vunpack.i.h.bf16 %v13634_v46  ;;  %v9601_v41 = vunpack.i.h.bf16 %v13675_v63  ;;  %v18224_v63 = vld [vmem:[#allocation79_spill] sm:$0xff]  ;;  %v18229_v12 = vld [vmem:[#allocation14_spill] sm:$0xff]  ;;  %vm18231_vm3 = vmmov %vm18165_vm2 }
 0x487   : > { %9150 = vmatpush1.bf16.msra.mxu1 %v9022_v42  ;;  %9023 = vmatpush1.bf16.msra.mxu0 %v9022_v42  ;;  %v5707_v42 = vld [vmem:[%s16997_s7 + $0x188] sm:$0xff]  ;;  %vm18234_vm6 = vmmov %vm18147_vm0 }
 0x488   : > { %6049 = vmatmul.mubr.f32.gmra.mrb[92].mxu1 %v5336_v8  ;;  %v9595_v8 = vunpack.i.l.bf16 %v13642_v20  ;;  %v5337_v15 = vsel %vm18215_vm7, %v3412_v38, %v9580_v51  ;;  %v18221_v51 = vld [vmem:[#allocation103_spill] sm:$0xff]  ;;  %v14038_v38 = vpop.permute.xlu1 %9693  ;;  %9135 = vmatprep.subr.bf16.mxu1 %v17889_v24  ;;  %vm18235_vm10 = vmmov %vm18153_vm1 }
 0x489   : > { %9913 = vrot.lane.b32.xlu0 %v9912_v26, %s10392_s28  ;;  %6053 = vmatprep.mubr.f32.mxu1 %v5433_v62  ;;  %v4036_v26 = vmul.f32 %v18216_v49, %v18099_v0  ;;  %v5386_v62 = vsel %vm18217_vm8, %v9581_v45, %v9586_v54  ;;  %v18222_v0 = vld [vmem:[#allocation42_spill] sm:$0xff]  ;;  %vm18239_vm15 = vmmov %vm18165_vm2 }
 0x48a   : > { %9923 = vrot.lane.b32.xlu1 %v18214_v33, %s10390_s13  ;;  %v5434_v29 = vsel %vm18219_vm14, %v5386_v62, %v18218_v3  ;;  %v18220_v33 = vpack.i.bf16 %v13917_v25, %v13913_v37  ;;  %v3413_v49 = vmul.f32 %v18222_v0, %v18221_v51  ;;  %v5387_v54 = vsel %vm18223_vm11, %v9595_v8, %v9600_v30  ;;  %v18226_v37 = vld [vmem:[#allocation77_spill] sm:$0xff]  ;;  %v18227_v3 = vld [vmem:[#allocation8_spill] sm:$0xff]  ;;  %vm18247_vm9 = vmmov %vm18153_vm1 }
 0x48b   : > { %v9937_v62 = vpack.i.bf16 %v4036_v26, %v4035_v28  ;;  %v18230_v28 = vunpack.i.l.bf16 %v13699_v13  ;;  %v14059_v26 = vpop.permute.xlu0 %9698  ;;  %9024 = vmatprep.subr.bf16.mxu0 %v17889_v24  ;;  %vm18249_vm1 = vmmov %vm18165_vm2  ;;  %v9630_v13 = vunpack.i.l.bf16 %v13780_v22 }
 0x48c   : > { %6054 = vmatmul.mubr.f32.gmra.mrb[94].mxu1 %v5337_v15  ;;  %v9596_v15 = vunpack.i.h.bf16 %v13642_v20  ;;  %v5338_v25 = vsel %vm18225_vm13, %v3413_v49, %v9581_v45  ;;  %v5706_v20 = vld [vmem:[%s16997_s7 + $0x180] sm:$0xff]  ;;  %v18232_v49 = vld [vmem:[#allocation107_spill] sm:$0xff]  ;;  %v14075_v53 = vpop.permute.xlu1 %9703  ;;  %vm18252_vm4 = vmmov %vm18215_vm7 }
 0x48d   : > { %9928 = vrot.lane.b32.xlu0 %v18220_v33, %s10391_s14  ;;  %6058 = vmatprep.mubr.f32.mxu1 %v5434_v29  ;;  %v3987_v29 = vmul.f32 %v18227_v3, %v18226_v37  ;;  %v18228_v33 = vld [vmem:[#allocation78_spill] sm:$0xff]  ;;  %v5435_v45 = vsel %vm18231_vm3, %v5387_v54, %v18230_v28  ;;  %v9025_v46 = vpack.c.bf16 %v5707_v42, %v5706_v20  ;;  %v18236_v37 = vld [vmem:[#allocation12_spill] sm:$0xff]  ;;  %vm18253_vm12 = vmmov %vm18147_vm0 }
 0x48e   : > { %9933 = vrot.lane.b32.xlu1 %v18224_v63, %s10393_s30  ;;  %v3988_v30 = vmul.f32 %v18229_v12, %v18228_v33  ;;  %v18233_v12 = vld [vmem:[#allocation43_spill] sm:$0xff]  ;;  %v5388_v33 = vsel %vm18234_vm6, %v9596_v15, %v9601_v41  ;;  %v18245_v42 = vld [vmem:[#allocation16_spill] sm:$0xff]  ;;  %vm18255_vm5 = vmmov %vm18249_vm1 }
 0x48f   : > { %v3414_v3 = vmul.f32 %v18233_v12, %v18232_v49  ;;  %v5436_v20 = vsel %vm18239_vm15, %v5388_v33, %v18238_v18  ;;  %9026 = vmatpush1.bf16.msra.mxu0 %v9025_v46  ;;  %9151 = vmatpush1.bf16.msra.mxu1 %v9025_v46  ;;  %v9611_v18 = vunpack.i.h.bf16 %v13710_v6  ;;  %v18246_v33 = vld [vmem:[#allocation84_spill] sm:$0xff]  ;;  %vm18258_vm2 = vmmov %vm18147_vm0 }
 0x490   : > { %6059 = vmatmul.mubr.f32.gmra.mrb[96].mxu1 %v5338_v25  ;;  %v9610_v25 = vunpack.i.l.bf16 %v13710_v6  ;;  %v9947_v54 = vpack.i.bf16 %v3988_v30, %v3987_v29  ;;  %v18244_v30 = vld [vmem:[#allocation83_spill] sm:$0xff]  ;;  %9027 = vmatprep.subr.bf16.mxu0 %v17889_v24  ;;  %v18250_v6 = vld [vmem:[#allocation113_spill] sm:$0xff]  ;;  %vm18264_vm7 = vmmov %vm18252_vm4 }
 0x491   : > { %9938 = vrot.lane.b32.xlu0 %v9937_v62, %s10392_s28  ;;  %6063 = vmatprep.mubr.f32.mxu1 %v5435_v45  ;;  %v5339_v28 = vsel %vm18235_vm10, %v3414_v3, %v9595_v8  ;;  %v4037_v62 = vmul.f32 %v18236_v37, %v18113_v19  ;;  %v18237_v45 = vld [vmem:[#allocation13_spill] sm:$0xff]  ;;  %v18240_v8 = vld [vmem:[#allocation111_spill] sm:$0xff]  ;;  %v9616_v19 = vunpack.i.h.bf16 %v13731_v57  ;;  %v18242_v37 = vld [vmem:[#allocation82_spill] sm:$0xff] }
 0x492   : > { %9943 = vrot.lane.b32.xlu1 %v18224_v63, %s10390_s13  ;;  %v4038_v14 = vmul.f32 %v18237_v45, %v18122_v47  ;;  %v18241_v63 = vld [vmem:[#allocation45_spill] sm:$0xff]  ;;  %v18243_v47 = vld [vmem:[#allocation15_spill] sm:$0xff]  ;;  %v3990_v45 = vmul.f32 %v18245_v42, %v18244_v30  ;;  %v5389_v57 = vsel %vm18147_vm0, %v9610_v25, %v9615_v60  ;;  %9136 = vmatprep.subr.bf16.mxu1 %v17889_v24  ;;  %v18248_v42 = vunpack.i.l.bf16 %v13744_v35  ;;  %v5708_v60 = vld [vmem:[%s16997_s7 + $0x190] sm:$0xff] }
 0x493   : > { %v3415_v3 = vmul.f32 %v18241_v63, %v18240_v8  ;;  %v3989_v29 = vmul.f32 %v18243_v47, %v18242_v37  ;;  %v5390_v41 = vsel %vm18253_vm12, %v9611_v18, %v9616_v19  ;;  %v18254_v30 = vunpack.i.h.bf16 %v13744_v35  ;;  %v18259_v19 = vld [vmem:[#allocation87_spill] sm:$0xff]  ;;  %v18261_v47 = vld [vmem:[#allocation89_spill] sm:$0xff]  ;;  %vm18266_vm8 = vmmov %vm18249_vm1 }
 0x494   : > { %6064 = vmatmul.mubr.f32.gmra.mrb[98].mxu1 %v5339_v28  ;;  %v14089_v28 = vpop.permute.xlu0 %9708  ;;  %v5437_v46 = vsel %vm18249_vm1, %v5389_v57, %v18248_v42  ;;  %v9625_v42 = vunpack.i.l.bf16 %v13767_v43  ;;  %v4039_v57 = vmul.f32 %v11461_v55, %v18135_v56  ;;  %v18256_v55 = vld [vmem:[#allocation115_spill] sm:$0xff]  ;;  %v18257_v56 = vld [vmem:[#allocation53_spill] sm:$0xff]  ;;  %vm18269_vm14 = vmmov %vm18147_vm0 }
 0x495   : > { %9948 = vrot.lane.b32.xlu0 %v9947_v54, %s10391_s14  ;;  %6068 = vmatprep.mubr.f32.mxu1 %v5436_v20  ;;  %v9957_v54 = vpack.i.bf16 %v4038_v14, %v4037_v62  ;;  %v5340_v20 = vsel %vm18247_vm9, %v3415_v3, %v9596_v15  ;;  %v18251_v14 = vld [vmem:[#allocation48_spill] sm:$0xff]  ;;  %v14106_v15 = vpop.permute.xlu1 %9713  ;;  %v5709_v3 = vld [vmem:[%s16997_s7 + $0x198] sm:$0xff]  ;;  %vm18270_vm11 = vmmov %vm18252_vm4 }
 0x496   : > { %9953 = vrot.lane.b32.xlu1 %v18246_v33, %s10393_s30  ;;  %v3416_v62 = vmul.f32 %v18251_v14, %v18250_v6  ;;  %v18262_v35 = vld [vmem:[#allocation21_spill] sm:$0xff]  ;;  %vm18273_vm13 = vmmov %vm18249_vm1 }
 0x497   : > { %v3992_v37 = vmul.f32 %v18262_v35, %v18261_v47  ;;  %v18268_v35 = vld [vmem:[#allocation54_spill] sm:$0xff]  ;;  %vm18281_vm3 = vmmov %vm18252_vm4 }
 0x498   : > { %6069 = vmatmul.mubr.f32.gmra.mrb[100].mxu1 %v5340_v20  ;;  %v9967_v20 = vpack.i.bf16 %v3990_v45, %v3989_v29  ;;  %v5438_v29 = vsel %vm18255_vm5, %v5390_v41, %v18254_v30  ;;  %v14127_v45 = vpop.permute.xlu0 %9718  ;;  %v9626_v41 = vunpack.i.h.bf16 %v13767_v43  ;;  %v18263_v30 = vld [vmem:[#allocation88_spill] sm:$0xff]  ;;  %vm18282_vm6 = vmmov %vm18147_vm0 }
 0x499   : > { %9958 = vrot.lane.b32.xlu0 %v9957_v54, %s10392_s28  ;;  %6073 = vmatprep.mubr.f32.mxu1 %v5437_v46  ;;  %v5341_v54 = vsel %vm18252_vm4, %v3416_v62, %v9610_v25  ;;  %v4040_v46 = vmul.f32 %v11520_v39, %v18145_v31  ;;  %v9631_v25 = vunpack.i.h.bf16 %v13780_v22  ;;  %v3417_v39 = vmul.f32 %v18257_v56, %v18256_v55  ;;  %v18260_v62 = vld [vmem:[#allocation17_spill] sm:$0xff]  ;;  %v18267_v43 = vld [vmem:[#allocation116_spill] sm:$0xff]  ;;  %vm18284_vm10 = vmmov %vm18249_vm1 }
 0x49a   : > { %9963 = vrot.lane.b32.xlu1 %v18246_v33, %s10390_s13  ;;  %v9028_v33 = vpack.c.bf16 %v5709_v3, %v5708_v60  ;;  %v5391_v31 = vsel %vm18258_vm2, %v9625_v42, %v9630_v13  ;;  %v14142_v3 = vpop.permute.xlu1 %9723  ;;  %vm18287_vm15 = vmmov %vm18281_vm3 }
 0x49b   : > { %v9977_v22 = vpack.i.bf16 %v4040_v46, %v4039_v57  ;;  %v5342_v60 = vsel %vm18264_vm7, %v3417_v39, %v9611_v18  ;;  %v5392_v57 = vsel %vm18269_vm14, %v9626_v41, %v9631_v25  ;;  %v5710_v18 = vld [vmem:[%s16997_s7 + $0x1a0] sm:$0xff]  ;;  %v5711_v46 = vld [vmem:[%s16997_s7 + $0x1a8] sm:$0xff]  ;;  %v9645_v39 = vunpack.i.l.bf16 %v13837_v2  ;;  %vm18290_vm9 = vmmov %vm18147_vm0 }
 0x49c   : > { %6074 = vmatmul.mubr.f32.gmra.mrb[102].mxu1 %v5341_v54  ;;  %v3991_v54 = vmul.f32 %v18260_v62, %v18259_v19  ;;  %v3418_v62 = vmul.f32 %v18268_v35, %v18267_v43  ;;  %9029 = vmatpush1.bf16.msra.mxu0 %v9028_v33  ;;  %v9031_v47 = vpack.c.bf16 %v5711_v46, %v5710_v18  ;;  %v18280_v18 = vld [vmem:[#allocation90_spill] sm:$0xff]  ;;  %vm18292_vm0 = vmmov %vm18249_vm1 }
 0x49d   : > { %9968 = vrot.lane.b32.xlu0 %v9967_v20, %s10391_s14  ;;  %6078 = vmatprep.mubr.f32.mxu1 %v5438_v29  ;;  %v18265_v20 = vunpack.i.l.bf16 %v13806_v9  ;;  %vm18295_vm1 = vmmov %vm18258_vm2 }
 0x49e   : > { %9152 = vmatpush1.bf16.msra.mxu1 %v9028_v33  ;;  %9973 = vrot.lane.b32.xlu1 %v18263_v30, %s10393_s30  ;;  %v5343_v25 = vsel %vm18270_vm11, %v3418_v62, %v9625_v42  ;;  %v18272_v33 = vunpack.i.h.bf16 %v13806_v9  ;;  %v18274_v42 = vld [vmem:[#allocation120_spill] sm:$0xff]  ;;  %v18275_v62 = vld [vmem:[#allocation55_spill] sm:$0xff]  ;;  %vm18297_vm4 = vmmov %vm18281_vm3 }
 0x49f   : > { %9137 = vmatprep.subr.bf16.mxu1 %v17889_v24  ;;  %v5439_v29 = vsel %vm18266_vm8, %v5391_v31, %v18265_v20  ;;  %v14160_v31 = vpop.permute.xlu0 %9728  ;;  %v4041_v20 = vmul.f32 %v18088_v16, %v18158_v44  ;;  %9030 = vmatprep.subr.bf16.mxu0 %v17889_v24  ;;  %v14178_v16 = vpop.permute.xlu1 %9733  ;;  %v9646_v44 = vunpack.i.h.bf16 %v13837_v2  ;;  %v18283_v2 = vunpack.i.l.bf16 %v13853_v21  ;;  %vm18302_vm12 = vmmov %vm18292_vm0 }
 0x4a0   : > { %6079 = vmatmul.mubr.f32.gmra.mrb[104].mxu1 %v5342_v60  ;;  %v9987_v60 = vpack.i.bf16 %v3992_v37, %v3991_v54  ;;  %v5440_v54 = vsel %vm18273_vm13, %v5392_v57, %v18272_v33  ;;  %v18278_v37 = vld [vmem:[#allocation95_spill] sm:$0xff]  ;;  %v9641_v57 = vunpack.i.h.bf16 %v13821_v4  ;;  %9032 = vmatpush1.bf16.msra.mxu0 %v9031_v47  ;;  %vm18305_vm5 = vmmov %vm18295_vm1 }
 0x4a1   : > { %9978 = vrot.lane.b32.xlu0 %v9977_v22, %s10392_s28  ;;  %6083 = vmatprep.mubr.f32.mxu1 %v5439_v29  ;;  %v9640_v22 = vunpack.i.l.bf16 %v13821_v4  ;;  %v18271_v29 = vld [vmem:[#allocation19_spill] sm:$0xff]  ;;  %v9660_v4 = vunpack.i.l.bf16 %v13901_v23  ;;  %vm18308_vm2 = vmmov %vm18281_vm3 }
 0x4a2   : > { %9983 = vrot.lane.b32.xlu1 %v18263_v30, %s10390_s13  ;;  %v4042_v13 = vmul.f32 %v18271_v29, %v18172_v32  ;;  %v3419_v30 = vmul.f32 %v18275_v62, %v18274_v42  ;;  %v18276_v32 = vld [vmem:[#allocation92_spill] sm:$0xff]  ;;  %v18277_v29 = vld [vmem:[#allocation22_spill] sm:$0xff]  ;;  %9153 = vmatpush1.bf16.msra.mxu1 %v9031_v47  ;;  %vm18310_vm7 = vmmov %vm18292_vm0 }
 0x4a3   : > { %v3993_v19 = vmul.f32 %v18277_v29, %v18276_v32  ;;  %v5393_v33 = vsel %vm18282_vm6, %v9640_v22, %v9645_v39  ;;  %v14194_v29 = vpop.permute.xlu0 %9738  ;;  %9138 = vmatprep.subr.bf16.mxu1 %v17889_v24  ;;  %v5712_v39 = vld [vmem:[%s16997_s7 + $0x1b0] sm:$0xff]  ;;  %v14216_v32 = vpop.permute.xlu1 %9743  ;;  %9033 = vmatprep.subr.bf16.mxu0 %v17889_v24  ;;  %vm18314_vm8 = vmmov %vm18308_vm2 }
 0x4a4   : > { %6084 = vmatmul.mubr.f32.gmra.mrb[106].mxu1 %v5343_v25  ;;  %v18279_v25 = vld [vmem:[#allocation23_spill] sm:$0xff]  ;;  %v9997_v46 = vpack.i.bf16 %v4042_v13, %v4041_v20  ;;  %v5441_v9 = vsel %vm18284_vm10, %v5393_v33, %v18283_v2  ;;  %v18285_v13 = vld [vmem:[#allocation122_spill] sm:$0xff]  ;;  %vm18319_vm14 = vmmov %vm18295_vm1 }
 0x4a5   : > { %9988 = vrot.lane.b32.xlu0 %v9987_v60, %s10391_s14  ;;  %6088 = vmatprep.mubr.f32.mxu1 %v5440_v54  ;;  %v3994_v10 = vmul.f32 %v18279_v25, %v18278_v37  ;;  %v5344_v60 = vsel %vm18281_vm3, %v3419_v30, %v9626_v41  ;;  %v18286_v41 = vld [vmem:[#allocation60_spill] sm:$0xff]  ;;  %v5713_v30 = vld [vmem:[%s16997_s7 + $0x1b8] sm:$0xff]  ;;  %v5394_v37 = vsel %vm18290_vm9, %v9641_v57, %v9646_v44  ;;  %vm18320_vm11 = vmmov %vm18292_vm0 }
 0x4a6   : > { %9993 = vrot.lane.b32.xlu1 %v18280_v18, %s10393_s30  ;;  %v3420_v20 = vmul.f32 %v18286_v41, %v18285_v13  ;;  %v18289_v54 = vld [vmem:[#allocation24_spill] sm:$0xff]  ;;  %v17440_v41 = vunpack.i.l.bf16 %v13928_v1  ;;  %vm18325_vm13 = vmmov %vm18308_vm2 }
 0x4a7   : > { %v10007_v33 = vpack.i.bf16 %v3994_v10, %v3993_v19  ;;  %v4044_v25 = vmul.f32 %v18289_v54, %v18197_v27  ;;  %v18291_v10 = vunpack.i.h.bf16 %v13853_v21  ;;  %v14222_v19 = vpack.c.bf16 %v5713_v30, %v5712_v39  ;;  %v18293_v27 = vld [vmem:[#allocation125_spill] sm:$0xff]  ;;  %v18298_v30 = vld [vmem:[#allocation96_spill] sm:$0xff]  ;;  %v14246_v21 = vpop.permute.xlu1 %9753  ;;  %vm18326_vm3 = vmmov %vm18295_vm1 }
 0x4a8   : > { %6089 = vmatmul.mubr.f32.gmra.mrb[108].mxu1 %v5344_v60  ;;  %v9655_v60 = vunpack.i.l.bf16 %v13878_v40  ;;  %v9656_v54 = vunpack.i.h.bf16 %v13878_v40  ;;  %vm18328_vm6 = vmmov %vm18292_vm0 }
 0x4a9   : > { %9998 = vrot.lane.b32.xlu0 %v9997_v46, %s10392_s28  ;;  %6093 = vmatprep.mubr.f32.mxu1 %v5441_v9  ;;  %v5345_v9 = vsel %vm18287_vm15, %v3420_v20, %v9640_v22  ;;  %v18288_v46 = vld [vmem:[#allocation20_spill] sm:$0xff]  ;;  %v5442_v47 = vsel %vm18292_vm0, %v5394_v37, %v18291_v10  ;;  %v18294_v22 = vld [vmem:[#allocation63_spill] sm:$0xff]  ;;  %v14231_v20 = vpop.permute.xlu0 %9748  ;;  %v18301_v10 = vld [vmem:[#allocation29_spill] sm:$0xff] }
 0x4aa   : > { %10003 = vrot.lane.b32.xlu1 %v18280_v18, %s10390_s13  ;;  %v4043_v2 = vmul.f32 %v18288_v46, %v18189_v61  ;;  %v9661_v61 = vunpack.i.h.bf16 %v13901_v23  ;;  %v3421_v44 = vmul.f32 %v18294_v22, %v18293_v27  ;;  %v5395_v18 = vsel %vm18295_vm1, %v9655_v60, %v9660_v4  ;;  %9154 = vmatpush1.bf16.msra.mxu1 %v14222_v19  ;;  %v18296_v37 = vld [vmem:[#allocation99_spill] sm:$0xff]  ;;  %v18300_v46 = vld [vmem:[#allocation98_spill] sm:$0xff]  ;;  %vm18331_vm10 = vmmov %vm18295_vm1 }
 0x4ab   : > { %v5443_v40 = vsel %vm18302_vm12, %v5395_v18, %v17440_v41  ;;  %v18306_v18 = vld [vmem:[#allocation26_spill] sm:$0xff]  ;;  %9139 = vmatprep.subr.bf16.mxu1 %v17889_v24  ;;  %v9675_v4 = vunpack.i.l.bf16 %v13970_v52  ;;  %v18312_v22 = vld [vmem:[#allocation51_spill] sm:$0xff]  ;;  %9035 = vmatpush1.bf16.msra.mxu0 %v14222_v19  ;;  %v9691_v19 = vunpack.i.h.bf16 %v14017_v7  ;;  %vm18333_vm15 = vmmov %vm18308_vm2 }
 0x4ac   : > { %6094 = vmatmul.mubr.f32.gmra.mrb[110].mxu1 %v5345_v9  ;;  %v10017_v39 = vpack.i.bf16 %v4044_v25, %v4043_v2  ;;  %v5346_v23 = vsel %vm18297_vm4, %v3421_v44, %v9641_v57  ;;  %v18303_v25 = vld [vmem:[#allocation127_spill] sm:$0xff]  ;;  %v18304_v57 = vld [vmem:[#allocation136_spill] sm:$0xff]  ;;  %v5396_v44 = vsel %vm18305_vm5, %v9656_v54, %v9661_v61  ;;  %v4045_v41 = vmul.f32 %v18306_v18, %v18207_v58  ;;  %vm18339_vm9 = vmmov %vm18292_vm0 }
 0x4ad   : > { %10008 = vrot.lane.b32.xlu0 %v10007_v33, %s10391_s14  ;;  %6098 = vmatprep.mubr.f32.mxu1 %v5442_v47  ;;  %v18299_v33 = vld [vmem:[#allocation25_spill] sm:$0xff]  ;;  %v3996_v47 = vmul.f32 %v18301_v10, %v18300_v46  ;;  %v3422_v2 = vmul.f32 %v18304_v57, %v18303_v25  ;;  %v5714_v10 = vld [vmem:[%s16997_s7 + $0x1c0] sm:$0xff]  ;;  %v9670_v61 = vunpack.i.l.bf16 %v13954_v11  ;;  %v18309_v58 = vunpack.i.h.bf16 %v13928_v1  ;;  %vm18342_vm0 = vmmov %vm18295_vm1 }
 0x4ae   : > { %10013 = vrot.lane.b32.xlu1 %v18296_v37, %s10393_s30  ;;  %v3995_v9 = vmul.f32 %v18299_v33, %v18298_v30  ;;  %v17443_v30 = vunpack.i.l.bf16 %v13987_v48  ;;  %v18311_v57 = vld [vmem:[#allocation62_spill] sm:$0xff]  ;;  %9036 = vmatprep.subr.bf16.mxu0 %v17889_v24  ;;  %vm18343_vm1 = vmmov %vm18308_vm2 }
 0x4af   : > { %v5347_v46 = vsel %vm18308_vm2, %v3422_v2, %v9655_v60  ;;  %v5444_v18 = vsel %vm18310_vm7, %v5396_v44, %v18309_v58  ;;  %v3423_v62 = vmul.f32 %v18312_v22, %v18311_v57  ;;  %v9671_v60 = vunpack.i.h.bf16 %v13954_v11  ;;  %v18316_v44 = vld [vmem:[#allocation30_spill] sm:$0xff]  ;;  %vm18345_vm4 = vmmov %vm18328_vm6 }
 0x4b0   : > { %6099 = vmatmul.mubr.f32.gmra.mrb[112].mxu1 %v5346_v23  ;;  %v5715_v23 = vld [vmem:[%s16997_s7 + $0x1c8] sm:$0xff]  ;;  %v10027_v33 = vpack.i.bf16 %v3996_v47, %v3995_v9  ;;  %v14286_v47 = vpop.permute.xlu1 %9763  ;;  %v5397_v58 = vsel %vm18319_vm14, %v9670_v61, %v9675_v4  ;;  %v9690_v22 = vunpack.i.l.bf16 %v14017_v7  ;;  %v18323_v4 = vld [vmem:[#allocation28_spill] sm:$0xff]  ;;  %v9686_v7 = vunpack.i.h.bf16 %v14005_v34  ;;  %vm18349_vm12 = vmmov %vm18343_vm1 }
 0x4b1   : > { %10018 = vrot.lane.b32.xlu0 %v10017_v39, %s10392_s28  ;;  %6103 = vmatprep.mubr.f32.mxu1 %v5443_v40  ;;  %v18307_v39 = vld [vmem:[#allocation27_spill] sm:$0xff]  ;;  %v5348_v2 = vsel %vm18314_vm8, %v3423_v62, %v9656_v54  ;;  %v5445_v1 = vsel %vm18320_vm11, %v5397_v58, %v17443_v30  ;;  %v18321_v62 = vld [vmem:[#allocation64_spill] sm:$0xff]  ;;  %v18322_v54 = vld [vmem:[#allocation142_spill] sm:$0xff]  ;;  %v9685_v58 = vunpack.i.l.bf16 %v14005_v34  ;;  %v18338_v34 = vunpack.i.l.bf16 %v14038_v38 }
 0x4b2   : > { %v4046_v40 = vmul.f32 %v18307_v39, %v18211_v36  ;;  %10023 = vrot.lane.b32.xlu1 %v18296_v37, %s10390_s13  ;;  %v14271_v36 = vpop.permute.xlu0 %9758  ;;  %v9037_v39 = vpack.c.bf16 %v5715_v23, %v5714_v10  ;;  %v9676_v37 = vunpack.i.h.bf16 %v13970_v52  ;;  %v5717_v10 = vld [vmem:[%s16997_s7 + $0x1d8] sm:$0xff]  ;;  %v18315_v52 = vld [vmem:[#allocation102_spill] sm:$0xff]  ;;  %v18318_v23 = vld [vmem:[#allocation31_spill] sm:$0xff] }
 0x4b3   : > { %v3997_v11 = vmul.f32 %v18316_v44, %v18315_v52  ;;  %v3424_v44 = vmul.f32 %v18322_v54, %v18321_v62  ;;  %v18337_v30 = vld [vmem:[#allocation37_spill] sm:$0xff]  ;;  %vm18354_vm5 = vmmov %vm18342_vm0 }
 0x4b4   : > { %6104 = vmatmul.mubr.f32.gmra.mrb[114].mxu1 %v5347_v46  ;;  %v10037_v9 = vpack.i.bf16 %v4046_v40, %v4045_v41  ;;  %v5716_v46 = vld [vmem:[%s16997_s7 + $0x1d0] sm:$0xff]  ;;  %9038 = vmatpush1.bf16.msra.mxu0 %v9037_v39  ;;  %vm18355_vm2 = vmmov %vm18345_vm4 }
 0x4b5   : > { %10028 = vrot.lane.b32.xlu0 %v10027_v33, %s10391_s14  ;;  %6108 = vmatprep.mubr.f32.mxu1 %v5444_v18  ;;  %v18313_v33 = vld [vmem:[#allocation106_spill] sm:$0xff]  ;;  %v18317_v41 = vld [vmem:[#allocation104_spill] sm:$0xff]  ;;  %v18324_v18 = vld [vmem:[#allocation33_spill] sm:$0xff] }
 0x4b6   : > { %9155 = vmatpush1.bf16.msra.mxu1 %v9037_v39  ;;  %10033 = vrot.lane.b32.xlu1 %v18313_v33, %s10393_s30  ;;  %v3998_v40 = vmul.f32 %v18318_v23, %v18317_v41  ;;  %v9040_v23 = vpack.c.bf16 %v5717_v10, %v5716_v46  ;;  %v14303_v41 = vpop.permute.xlu0 %9768  ;;  %v4048_v52 = vmul.f32 %v18324_v18, %v18232_v49  ;;  %v14321_v18 = vpop.permute.xlu1 %9773  ;;  %vm18358_vm7 = vmmov %vm18343_vm1 }
 0x4b7   : > { %9140 = vmatprep.subr.bf16.mxu1 %v17889_v24  ;;  %v5398_v46 = vsel %vm18326_vm3, %v9671_v60, %v9676_v37  ;;  %v5399_v37 = vsel %vm18331_vm10, %v9685_v58, %v9690_v22  ;;  %v18335_v22 = vld [vmem:[#allocation32_spill] sm:$0xff]  ;;  %9039 = vmatprep.subr.bf16.mxu0 %v17889_v24  ;;  %vm18359_vm8 = vmmov %vm18342_vm0 }
 0x4b8   : > { %6109 = vmatmul.mubr.f32.gmra.mrb[116].mxu1 %v5348_v2  ;;  %v4047_v2 = vmul.f32 %v18323_v4, %v18221_v51  ;;  %v18327_v51 = vunpack.i.h.bf16 %v13987_v48  ;;  %v4049_v48 = vmul.f32 %v18190_v59, %v18240_v8  ;;  %v17447_v59 = vunpack.i.l.bf16 %v14089_v28  ;;  %9041 = vmatpush1.bf16.msra.mxu0 %v9040_v23  ;;  %vm18360_vm14 = vmmov %vm18355_vm2 }
 0x4b9   : > { %10038 = vrot.lane.b32.xlu0 %v10037_v9, %s10392_s28  ;;  %6113 = vmatprep.mubr.f32.mxu1 %v5445_v1  ;;  %v10047_v1 = vpack.i.bf16 %v3998_v40, %v3997_v11  ;;  %v5349_v9 = vsel %vm18325_vm13, %v3424_v44, %v9670_v61  ;;  %v18330_v11 = vld [vmem:[#allocation143_spill] sm:$0xff]  ;;  %v5718_v44 = vld [vmem:[%s16997_s7 + $0x1e0] sm:$0xff]  ;;  %vm18363_vm11 = vmmov %vm18342_vm0 }
 0x4ba   : > { %10043 = vrot.lane.b32.xlu1 %v18313_v33, %s10390_s13  ;;  %9156 = vmatpush1.bf16.msra.mxu1 %v9040_v23  ;;  %v5446_v49 = vsel %vm18328_vm6, %v5398_v46, %v18327_v51  ;;  %v18329_v33 = vld [vmem:[#allocation132_spill] sm:$0xff]  ;;  %v5719_v40 = vld [vmem:[%s16997_s7 + $0x1e8] sm:$0xff]  ;;  %v10057_v4 = vpack.i.bf16 %v4048_v52, %v4047_v2  ;;  %v18334_v46 = vld [vmem:[#allocation105_spill] sm:$0xff]  ;;  %v5447_v2 = vsel %vm18339_vm9, %v5399_v37, %v18338_v34  ;;  %v9700_v37 = vunpack.i.l.bf16 %v14059_v26  ;;  %v14360_v39 = vpop.permute.xlu1 %9783 }
 0x4bb   : > { %v3425_v61 = vmul.f32 %v18330_v11, %v18329_v33  ;;  %9141 = vmatprep.subr.bf16.mxu1 %v17889_v24  ;;  %v3999_v51 = vmul.f32 %v18335_v22, %v18334_v46  ;;  %v9043_v11 = vpack.c.bf16 %v5719_v40, %v5718_v44  ;;  %9042 = vmatprep.subr.bf16.mxu0 %v17889_v24  ;;  %v5721_v23 = vld [vmem:[%s16997_s7 + $0x1f8] sm:$0xff]  ;;  %vm18365_vm13 = vmmov %vm18343_vm1 }
 0x4bc   : > { %6114 = vmatmul.mubr.f32.gmra.mrb[118].mxu1 %v5349_v9  ;;  %vm18370_vm3 = vmmov %vm18355_vm2 }
 0x4bd   : > { %10048 = vrot.lane.b32.xlu0 %v10047_v1, %s10391_s14  ;;  %6118 = vmatprep.mubr.f32.mxu1 %v5446_v49  ;;  %v18332_v1 = vld [vmem:[#allocation108_spill] sm:$0xff]  ;;  %v5350_v9 = vsel %vm18333_vm15, %v3425_v61, %v9671_v60  ;;  %v18336_v49 = vld [vmem:[#allocation109_spill] sm:$0xff]  ;;  %v18341_v61 = vld [vmem:[#allocation150_spill] sm:$0xff] }
 0x4be   : > { %10053 = vrot.lane.b32.xlu1 %v18332_v1, %s10393_s30  ;;  %v4000_v10 = vmul.f32 %v18337_v30, %v18336_v49  ;;  %v14343_v52 = vpop.permute.xlu0 %9778  ;;  %v18340_v60 = vld [vmem:[#allocation133_spill] sm:$0xff]  ;;  %v5400_v30 = vsel %vm18342_vm0, %v9686_v7, %v9691_v19  ;;  %9157 = vmatpush1.bf16.msra.mxu1 %v9043_v11  ;;  %v9705_v49 = vunpack.i.l.bf16 %v14075_v53  ;;  %vm18373_vm6 = vmmov %vm18342_vm0 }
 0x4bf   : > { %v3426_v22 = vmul.f32 %v18341_v61, %v18340_v60  ;;  %v18346_v19 = vld [vmem:[#allocation61_spill] sm:$0xff]  ;;  %9044 = vmatpush1.bf16.msra.mxu0 %v9043_v11  ;;  %9142 = vmatprep.subr.bf16.mxu1 %v17889_v24  ;;  %v9715_v11 = vunpack.i.l.bf16 %v14106_v15  ;;  %vm18374_vm10 = vmmov %vm18343_vm1 }
 0x4c0   : > { %6119 = vmatmul.mubr.f32.gmra.mrb[120].mxu1 %v5350_v9  ;;  %v4050_v9 = vmul.f32 %v18198_v5, %v18250_v6  ;;  %v10067_v44 = vpack.i.bf16 %v4000_v10, %v3999_v51  ;;  %v18344_v5 = vunpack.i.h.bf16 %v14038_v38  ;;  %v18348_v51 = vld [vmem:[#allocation110_spill] sm:$0xff]  ;;  %9045 = vmatprep.subr.bf16.mxu0 %v17889_v24  ;;  %vm18375_vm15 = vmmov %vm18355_vm2 }
 0x4c1   : > { %10058 = vrot.lane.b32.xlu0 %v10057_v4, %s10392_s28  ;;  %6123 = vmatprep.mubr.f32.mxu1 %v5447_v2  ;;  %v5351_v40 = vsel %vm18343_vm1, %v3426_v22, %v9685_v58  ;;  %v18347_v4 = vld [vmem:[#allocation156_spill] sm:$0xff]  ;;  %v9706_v58 = vunpack.i.h.bf16 %v14075_v53  ;;  %v18351_v53 = vld [vmem:[#allocation38_spill] sm:$0xff]  ;;  %vm18383_vm9 = vmmov %vm18343_vm1 }
 0x4c2   : > { %10063 = vrot.lane.b32.xlu1 %v18332_v1, %s10390_s13  ;;  %v5448_v8 = vsel %vm18345_vm4, %v5400_v30, %v18344_v5  ;;  %v14369_v6 = vpop.permute.xlu0 %9788  ;;  %v3427_v10 = vmul.f32 %v18347_v4, %v18346_v19  ;;  %v9701_v1 = vunpack.i.h.bf16 %v14059_v26  ;;  %v10077_v22 = vpack.i.bf16 %v4050_v9, %v4049_v48  ;;  %v5720_v30 = vld [vmem:[%s16997_s7 + $0x1f0] sm:$0xff]  ;;  %v18352_v26 = vld [vmem:[#allocation114_spill] sm:$0xff]  ;;  %v18353_v48 = vld [vmem:[#allocation39_spill] sm:$0xff] }
 0x4c3   : > { %v18350_v2 = vld [vmem:[#allocation112_spill] sm:$0xff]  ;;  %v4002_v9 = vmul.f32 %v18353_v48, %v18352_v26  ;;  %v17446_v5 = vunpack.i.h.bf16 %v14089_v28  ;;  %v9720_v4 = vunpack.i.l.bf16 %v14127_v45  ;;  %vm18385_vm1 = vmmov %vm18355_vm2 }
 0x4c4   : > { %6124 = vmatmul.mubr.f32.gmra.mrb[122].mxu1 %v5351_v40  ;;  %v5352_v34 = vsel %vm18349_vm12, %v3427_v10, %v9686_v7  ;;  %v5401_v40 = vsel %vm18354_vm5, %v9700_v37, %v9705_v49  ;;  %v18356_v7 = vld [vmem:[#allocation144_spill] sm:$0xff]  ;;  %v4051_v49 = vmul.f32 %v18208_v50, %v18256_v55  ;;  %v17448_v50 = vunpack.i.l.bf16 %v14142_v3  ;;  %vm18388_vm4 = vmmov %vm18358_vm7 }
 0x4c5   : > { %10068 = vrot.lane.b32.xlu0 %v10067_v44, %s10391_s14  ;;  %6128 = vmatprep.mubr.f32.mxu1 %v5448_v8  ;;  %v4001_v44 = vmul.f32 %v18351_v53, %v18350_v2  ;;  %v5449_v8 = vsel %vm18355_vm2, %v5401_v40, %v17447_v59  ;;  %v18357_v10 = vld [vmem:[#allocation164_spill] sm:$0xff]  ;;  %v9046_v53 = vpack.c.bf16 %v5721_v23, %v5720_v30  ;;  %v9721_v55 = vunpack.i.h.bf16 %v14127_v45  ;;  %vm18389_vm12 = vmmov %vm18342_vm0 }
 0x4c6   : > { %10073 = vrot.lane.b32.xlu1 %v18348_v51, %s10393_s30  ;;  %v3428_v48 = vmul.f32 %v18357_v10, %v18356_v7  ;;  %v5402_v23 = vsel %vm18359_vm8, %v9701_v1, %v9706_v58  ;;  %v5403_v58 = vsel %vm18363_vm11, %v9715_v11, %v9720_v4  ;;  %v18366_v10 = vld [vmem:[#allocation117_spill] sm:$0xff]  ;;  %v17449_v4 = vunpack.i.h.bf16 %v14142_v3  ;;  %vm18390_vm5 = vmmov %vm18385_vm1 }
 0x4c7   : > { %v14395_v46 = vpop.permute.xlu1 %9793  ;;  %v10087_v40 = vpack.i.bf16 %v4002_v9, %v4001_v44  ;;  %9158 = vmatpush1.bf16.msra.mxu1 %v9046_v53  ;;  %9047 = vmatpush1.bf16.msra.mxu0 %v9046_v53  ;;  %v18364_v9 = vld [vmem:[#allocation119_spill] sm:$0xff]  ;;  %v9735_v59 = vunpack.i.l.bf16 %v14178_v16  ;;  %vm18393_vm2 = vmmov %vm18342_vm0 }
 0x4c8   : > { %6129 = vmatmul.mubr.f32.gmra.mrb[124].mxu1 %v5352_v34  ;;  %v4052_v34 = vmul.f32 %v18212_v17, %v18267_v43  ;;  %v5353_v30 = vsel %vm18358_vm7, %v3428_v48, %v9700_v37  ;;  %v5450_v17 = vsel %vm18360_vm14, %v5402_v23, %v17446_v5  ;;  %v18362_v37 = vld [vmem:[#allocation165_spill] sm:$0xff]  ;;  %v9716_v48 = vunpack.i.h.bf16 %v14106_v15  ;;  %9048 = vmatprep.subr.bf16.mxu1 %v17889_v24  ;;  %v18368_v23 = vld [vmem:[#allocation118_spill] sm:$0xff]  ;;  %vm18395_vm7 = vmmov %vm18388_vm4 }
 0x4c9   : > { %10078 = vrot.lane.b32.xlu0 %v10077_v22, %s10392_s28  ;;  %6133 = vmatprep.mubr.f32.mxu1 %v5449_v8  ;;  %v5451_v15 = vsel %vm18370_vm3, %v5403_v58, %v17448_v50  ;;  %vm18401_vm8 = vmmov %vm18385_vm1 }
 0x4ca   : > { %10083 = vrot.lane.b32.xlu1 %v18348_v51, %s10390_s13  ;;  %v18361_v51 = vld [vmem:[#allocation52_spill] sm:$0xff]  ;;  %v10097_v45 = vpack.i.bf16 %v4052_v34, %v4051_v49  ;;  %v18371_v49 = vld [vmem:[#allocation147_spill] sm:$0xff]  ;;  %vm18404_vm14 = vmmov %vm18342_vm0 }
 0x4cb   : > { %v14409_v22 = vpop.permute.xlu0 %9798  ;;  %v3429_v44 = vmul.f32 %v18362_v37, %v18361_v51  ;;  %vm18405_vm11 = vmmov %vm18388_vm4 }
 0x4cc   : > { %6134 = vmatmul.mubr.f32.gmra.mrb[126].mxu1 %v5353_v30  ;;  %v14418_v43 = vpop.permute.xlu1 %9803  ;;  %vm18411_vm3 = vmmov %vm18388_vm4 }
 0x4cd   : > { %10088 = vrot.lane.b32.xlu0 %v10087_v40, %s10391_s14  ;;  %6138 = vmatprep.mubr.f32.mxu1 %v5450_v17  ;;  %v5354_v8 = vsel %vm18365_vm13, %v3429_v44, %v9701_v1  ;;  %v18367_v40 = vld [vmem:[#allocation40_spill] sm:$0xff]  ;;  %v5404_v44 = vsel %vm18373_vm6, %v9716_v48, %v9721_v55  ;;  %v9731_v55 = vunpack.i.h.bf16 %v14160_v31  ;;  %vm18407_vm13 = vmmov %vm18385_vm1 }
 0x4ce   : > { %10093 = vrot.lane.b32.xlu1 %v18364_v9, %s10393_s30  ;;  %v4003_v30 = vmul.f32 %v18367_v40, %v18366_v10  ;;  %v18369_v17 = vld [vmem:[#allocation44_spill] sm:$0xff]  ;;  %vm18416_vm6 = vmmov %vm18342_vm0 }
 0x4cf   : > { %v14428_v53 = vpop.permute.xlu0 %9808  ;;  %v4004_v37 = vmul.f32 %v18369_v17, %v18368_v23  ;;  %v18372_v1 = vld [vmem:[#allocation172_spill] sm:$0xff]  ;;  %v9730_v17 = vunpack.i.l.bf16 %v14160_v31 }
 0x4d0   : > { %6139 = vmatmul.mubr.f32.gmra.mrb[128].mxu1 %v5354_v8  ;;  %v14439_v5 = vpop.permute.xlu1 %9813  ;;  %v3430_v34 = vmul.f32 %v18372_v1, %v18371_v49  ;;  %v5452_v1 = vsel %vm18375_vm15, %v5404_v44, %v17449_v4  ;;  %v18382_v44 = vld [vmem:[#allocation124_spill] sm:$0xff]  ;;  %vm18423_vm15 = vmmov %vm18411_vm3 }
 0x4d1   : > { %10098 = vrot.lane.b32.xlu0 %v10097_v45, %s10392_s28  ;;  %6143 = vmatprep.mubr.f32.mxu1 %v5451_v15  ;;  %v10107_v58 = vpack.i.bf16 %v4004_v37, %v4003_v30  ;;  %v4053_v45 = vmul.f32 %v18222_v0, %v18274_v42  ;;  %v4054_v15 = vmul.f32 %v18233_v12, %v18285_v13  ;;  %v9736_v0 = vunpack.i.h.bf16 %v14178_v16  ;;  %v18378_v42 = vld [vmem:[#allocation121_spill] sm:$0xff]  ;;  %v18379_v37 = vld [vmem:[#allocation46_spill] sm:$0xff]  ;;  %v18380_v13 = vld [vmem:[#allocation123_spill] sm:$0xff] }
 0x4d2   : > { %10103 = vrot.lane.b32.xlu1 %v18364_v9, %s10390_s13  ;;  %v5355_v50 = vsel %vm18374_vm10, %v3430_v34, %v9715_v11  ;;  %v18376_v9 = vld [vmem:[#allocation158_spill] sm:$0xff]  ;;  %v18377_v11 = vld [vmem:[#allocation173_spill] sm:$0xff]  ;;  %v4005_v12 = vmul.f32 %v18379_v37, %v18378_v42  ;;  %v18381_v34 = vld [vmem:[#allocation47_spill] sm:$0xff]  ;;  %v17450_v16 = vunpack.i.h.bf16 %v14194_v29  ;;  %v18384_v37 = vunpack.i.l.bf16 %v14194_v29 }
 0x4d3   : > { %v14449_v8 = vpop.permute.xlu0 %9818  ;;  %v3431_v30 = vmul.f32 %v18377_v11, %v18376_v9  ;;  %v5405_v11 = vsel %vm18342_vm0, %v9730_v17, %v9735_v59  ;;  %vm18418_vm10 = vmmov %vm18385_vm1  ;;  %v17452_v26 = vunpack.i.h.bf16 %v14439_v5 }
 0x4d4   : > { %6144 = vmatmul.mubr.f32.gmra.mrb[130].mxu1 %v5355_v50  ;;  %v14460_v40 = vpop.permute.xlu1 %9823  ;;  %v4006_v50 = vmul.f32 %v18381_v34, %v18380_v13  ;;  %v5453_v42 = vsel %vm18385_vm1, %v5405_v11, %v18384_v37  ;;  %v9750_v34 = vunpack.i.l.bf16 %v14231_v20  ;;  %v18386_v13 = vld [vmem:[#allocation160_spill] sm:$0xff] }
 0x4d5   : > { %10108 = vrot.lane.b32.xlu0 %v10107_v58, %s10391_s14  ;;  %6148 = vmatprep.mubr.f32.mxu1 %v5452_v1  ;;  %v10117_v58 = vpack.i.bf16 %v4054_v15, %v4053_v45  ;;  %v5356_v1 = vsel %vm18383_vm9, %v3431_v30, %v9716_v48  ;;  %v18387_v45 = vld [vmem:[#allocation185_spill] sm:$0xff]  ;;  %v9745_v48 = vunpack.i.l.bf16 %v14216_v32  ;;  %vm18424_vm9 = vmmov %vm18342_vm0 }
 0x4d6   : > { %10113 = vrot.lane.b32.xlu1 %v18382_v44, %s10393_s30  ;;  %v3432_v15 = vmul.f32 %v18387_v45, %v18386_v13  ;;  %v10127_v59 = vpack.i.bf16 %v4006_v50, %v4005_v12  ;;  %v9751_v50 = vunpack.i.h.bf16 %v14231_v20  ;;  %vm18426_vm0 = vmmov %vm18385_vm1 }
 0x4d7   : > { %v14473_v4 = vpop.permute.xlu0 %9828  ;;  %vm18429_vm1 = vmmov %vm18393_vm2 }
 0x4d8   : > { %6149 = vmatmul.mubr.f32.gmra.mrb[132].mxu1 %v5356_v1  ;;  %v14482_v31 = vpop.permute.xlu1 %9833  ;;  %v5357_v37 = vsel %vm18388_vm4, %v3432_v15, %v9730_v17  ;;  %v4055_v1 = vmul.f32 %v18241_v63, %v18293_v27  ;;  %v18391_v63 = vld [vmem:[#allocation166_spill] sm:$0xff]  ;;  %v18392_v27 = vld [vmem:[#allocation187_spill] sm:$0xff]  ;;  %vm18432_vm4 = vmmov %vm18411_vm3 }
 0x4d9   : > { %10118 = vrot.lane.b32.xlu0 %v10117_v58, %s10392_s28  ;;  %6153 = vmatprep.mubr.f32.mxu1 %v5453_v42  ;;  %v4056_v58 = vmul.f32 %v18251_v14, %v18303_v25  ;;  %v5406_v42 = vsel %vm18389_vm12, %v9731_v55, %v9736_v0  ;;  %v3433_v17 = vmul.f32 %v18392_v27, %v18391_v63  ;;  %v9746_v25 = vunpack.i.h.bf16 %v14216_v32  ;;  %v18394_v0 = vld [vmem:[#allocation128_spill] sm:$0xff] }
 0x4da   : > { %10123 = vrot.lane.b32.xlu1 %v18382_v44, %s10390_s13  ;;  %v5454_v12 = vsel %vm18390_vm5, %v5406_v42, %v17450_v16  ;;  %v5407_v14 = vsel %vm18393_vm2, %v9745_v48, %v9750_v34  ;;  %v18397_v42 = vld [vmem:[#allocation50_spill] sm:$0xff]  ;;  %v18400_v34 = vunpack.i.l.bf16 %v14246_v21  ;;  %v9765_v63 = vunpack.i.l.bf16 %v14286_v47  ;;  %vm18439_vm5 = vmmov %vm18426_vm0 }
 0x4db   : > { %v14490_v30 = vpop.permute.xlu0 %9838  ;;  %v10182_v15 = vpack.i.bf16 %v4056_v58, %v4055_v1  ;;  %v5358_v20 = vsel %vm18395_vm7, %v3433_v17, %v9731_v55  ;;  %v18402_v1 = vld [vmem:[#allocation167_spill] sm:$0xff]  ;;  %v18403_v55 = vld [vmem:[#allocation197_spill] sm:$0xff]  ;;  %v5408_v17 = vsel %vm18404_vm14, %v9746_v25, %v9751_v50  ;;  %vm18438_vm12 = vcmask 523264   ;;  %vm18442_vm2 = vmmov %vm18429_vm1 }
 0x4dc   : > { %6154 = vmatmul.mubr.f32.gmra.mrb[134].mxu1 %v5357_v37  ;;  %v14503_v44 = vpop.permute.xlu1 %9843  ;;  %v18396_v37 = vld [vmem:[#allocation130_spill] sm:$0xff]  ;;  %v5455_v32 = vsel %vm18401_vm8, %v5407_v14, %v18400_v34  ;;  %v3434_v58 = vmul.f32 %v18403_v55, %v18402_v1  ;;  %v9760_v14 = vunpack.i.l.bf16 %v14271_v36  ;;  %v9766_v55 = vunpack.i.h.bf16 %v14286_v47  ;;  %v18422_v47 = vld [vmem:[#allocation60_spill] sm:$0xff]  ;;  %vm18445_vm7 = vmmov %vm18411_vm3 }
 0x4dd   : > { %10128 = vrot.lane.b32.xlu0 %v10127_v59, %s10391_s14  ;;  %6158 = vmatprep.mubr.f32.mxu1 %v5454_v12  ;;  %v4007_v16 = vmul.f32 %v18397_v42, %v18396_v37  ;;  %v18398_v59 = vld [vmem:[#allocation131_spill] sm:$0xff]  ;;  %v18399_v12 = vld [vmem:[#allocation56_spill] sm:$0xff]  ;;  %v18409_v1 = vld [vmem:[#allocation198_spill] sm:$0xff] }
 0x4de   : > { %10133 = vrot.lane.b32.xlu1 %v18394_v0, %s10393_s30  ;;  %v4008_v11 = vmul.f32 %v18399_v12, %v18398_v59  ;;  %v4057_v12 = vmul.f32 %v18257_v56, %v18311_v57  ;;  %v18406_v56 = vunpack.i.h.bf16 %v14246_v21  ;;  %v18435_v59 = vld [vmem:[#allocation138_spill] sm:$0xff]  ;;  %vm18447_vm8 = vmmov %vm18426_vm0  ;;  %v18454_v37 = vld [vmem:[#allocation49_spill] sm:$0xff] }
 0x4df   : > { %v14512_v45 = vpop.permute.xlu0 %9848  ;;  %vm18448_vm14 = vmmov %vm18438_vm12 }
 0x4e0   : > { %6159 = vmatmul.mubr.f32.gmra.mrb[136].mxu1 %v5358_v20  ;;  %v14523_v27 = vpop.permute.xlu1 %9853  ;;  %v4058_v20 = vmul.f32 %v18268_v35, %v18321_v62  ;;  %v10187_v34 = vpack.i.bf16 %v4008_v11, %v4007_v16  ;;  %v5456_v57 = vsel %vm18407_vm13, %v5408_v17, %v18406_v56  ;;  %v18408_v62 = vld [vmem:[#allocation181_spill] sm:$0xff]  ;;  %v9761_v16 = vunpack.i.h.bf16 %v14271_v36  ;;  %vm18452_vm13 = vmmov %vm18411_vm3 }
 0x4e1   : > { %10183 = vrot.lane.b32.xlu0 %v10182_v15, %s10392_s28  ;;  %6163 = vmatprep.mubr.f32.mxu1 %v5455_v32  ;;  %v5359_v32 = vsel %vm18405_vm11, %v3434_v58, %v9745_v48  ;;  %v18410_v11 = vld [vmem:[#allocation129_spill] sm:$0xff]  ;;  %v18417_v36 = vunpack.i.l.bf16 %v14303_v41  ;;  %vm5511_vm11 = vcmask 130048  }
 0x4e2   : > { %10138 = vrot.lane.b32.xlu1 %v18394_v0, %s10390_s13  ;;  %v3435_v0 = vmul.f32 %v18409_v1, %v18408_v62  ;;  %v10192_v48 = vpack.i.bf16 %v4058_v20, %v4057_v12  ;;  %v18413_v56 = vld [vmem:[#allocation57_spill] sm:$0xff]  ;;  %v5409_v62 = vsel %vm18416_vm6, %v9760_v14, %v9765_v63  ;;  %v9780_v20 = vunpack.i.l.bf16 %v14343_v52  ;;  %vm18458_vm6 = vmmov %vm18426_vm0 }
 0x4e3   : > { %v14537_v15 = vpop.permute.xlu0 %9858  ;;  %v5457_v12 = vsel %vm18418_vm10, %v5409_v62, %v18417_v36  ;;  %vm18463_vm10 = vmmov %vm18438_vm12 }
 0x4e4   : > { %6164 = vmatmul.mubr.f32.gmra.mrb[138].mxu1 %v5359_v32  ;;  %v14544_v35 = vpop.permute.xlu1 %9863  ;;  %v5360_v17 = vsel %vm18411_vm3, %v3435_v0, %v9746_v25  ;;  %v18412_v32 = vld [vmem:[#allocation134_spill] sm:$0xff]  ;;  %v18419_v25 = vld [vmem:[#allocation184_spill] sm:$0xff]  ;;  %vm18457_vm3 = vmmov %vm18429_vm1 }
 0x4e5   : > { %10188 = vrot.lane.b32.xlu0 %v10187_v34, %s10391_s14  ;;  %6168 = vmatprep.mubr.f32.mxu1 %v5456_v57  ;;  %v4009_v50 = vmul.f32 %v18413_v56, %v18412_v32  ;;  %v18414_v34 = vld [vmem:[#allocation135_spill] sm:$0xff]  ;;  %v18415_v57 = vld [vmem:[#allocation58_spill] sm:$0xff]  ;;  %v18420_v0 = vld [vmem:[#allocation212_spill] sm:$0xff] }
 0x4e6   : > { %10143 = vrot.lane.b32.xlu1 %v18410_v11, %s10393_s30  ;;  %v4010_v42 = vmul.f32 %v18415_v57, %v18414_v34  ;;  %v3436_v56 = vmul.f32 %v18420_v0, %v18419_v25  ;;  %v18421_v57 = vld [vmem:[#allocation55_spill] sm:$0xff]  ;;  %v9775_v34 = vunpack.i.l.bf16 %v14321_v18  ;;  %v9785_v25 = vunpack.i.l.bf16 %v14360_v39 }
 0x4e7   : > { %v14553_v58 = vpop.permute.xlu0 %9868  ;;  %v4059_v63 = vmul.f32 %v18421_v57, %v18329_v33  ;;  %v18425_v33 = vunpack.i.h.bf16 %v14303_v41  ;;  %v9781_v57 = vunpack.i.h.bf16 %v14343_v52 }
 0x4e8   : > { %6169 = vmatmul.mubr.f32.gmra.mrb[140].mxu1 %v5360_v17  ;;  %v14566_v1 = vpop.permute.xlu1 %9873  ;;  %v4060_v17 = vmul.f32 %v18422_v47, %v18340_v60  ;;  %v10197_v36 = vpack.i.bf16 %v4010_v42, %v4009_v50  ;;  %v18427_v42 = vld [vmem:[#allocation193_spill] sm:$0xff] }
 0x4e9   : > { %10193 = vrot.lane.b32.xlu0 %v10192_v48, %s10392_s28  ;;  %6173 = vmatprep.mubr.f32.mxu1 %v5457_v12  ;;  %v5361_v48 = vsel %vm18423_vm15, %v3436_v56, %v9760_v14  ;;  %v5410_v12 = vsel %vm18424_vm9, %v9761_v16, %v9766_v55  ;;  %v18428_v14 = vld [vmem:[#allocation213_spill] sm:$0xff]  ;;  %v5411_v55 = vsel %vm18429_vm1, %v9775_v34, %v9780_v20  ;;  %v9776_v56 = vunpack.i.h.bf16 %v14321_v18  ;;  %vm18464_vm15 = vmmov %vm18432_vm4 }
 0x4ea   : > { %10148 = vrot.lane.b32.xlu1 %v18410_v11, %s10390_s13  ;;  %v5458_v60 = vsel %vm18426_vm0, %v5410_v12, %v18425_v33  ;;  %v3437_v50 = vmul.f32 %v18428_v14, %v18427_v42  ;;  %v14594_v11 = vpop.f32.mrb[58].mxu1  ;;  %v18431_v12 = vld [vmem:[#allocation140_spill] sm:$0xff]  ;;  %v18436_v42 = vld [vmem:[#allocation65_spill] sm:$0xff]  ;;  %vm18465_vm9 = vmmov %vm18429_vm1  ;;  %vm5560_vm1 = vcmask 785408  }
 0x4eb   : > { %v14578_v62 = vpop.permute.xlu0 %9878  ;;  %18430 = vst [vmem:[#allocation206_spill] sm:$0xff] %v14594_v11  ;;  %v5967_v0 = vpop.f32.mrb[59].mxu1  ;;  %v4012_v14 = vmul.f32 %v18436_v42, %v18435_v59  ;;  %v5412_v42 = vsel %vm18442_vm2, %v9776_v56, %v9781_v57  ;;  %v18443_v59 = vld [vmem:[#allocation63_spill] sm:$0xff] }
 0x4ec   : > { %6174 = vmatmul.mubr.f32.gmra.mrb[142].mxu1 %v5361_v48  ;;  %v14588_v47 = vpop.permute.xlu1 %9883  ;;  %v10202_v48 = vpack.i.bf16 %v4060_v17, %v4059_v63  ;;  %v5362_v33 = vsel %vm18432_vm4, %v3437_v50, %v9761_v16  ;;  %v18437_v20 = vunpack.i.h.bf16 %v14578_v62  ;;  %v5459_v63 = vsel %vm18439_vm5, %v5411_v55, %v9785_v25  ;;  %v18440_v16 = vld [vmem:[#allocation195_spill] sm:$0xff]  ;;  %vm18474_vm4 = vmmov %vm18463_vm10 }
 0x4ed   : > { %10198 = vrot.lane.b32.xlu0 %v10197_v36, %s10391_s14  ;;  %6178 = vmatprep.mubr.f32.mxu1 %v5458_v60  ;;  %v18433_v36 = vld [vmem:[#allocation137_spill] sm:$0xff]  ;;  %v18434_v60 = vld [vmem:[#allocation126_spill] sm:$0xff]  ;;  %v18441_v0 = vld [vmem:[#allocation227_spill] sm:$0xff]  ;;  %v4061_v18 = vmul.f32 %v18443_v59, %v18346_v19  ;;  %v9795_v55 = vunpack.i.l.bf16 %v14395_v46  ;;  %v18446_v19 = vunpack.i.h.bf16 %v14360_v39 }
 0x4ee   : > { %10153 = vrot.lane.b32.xlu1 %v18431_v12, %s10393_s30  ;;  %v4011_v32 = vmul.f32 %v18434_v60, %v18433_v36  ;;  %v14609_v11 = vsel %vm18438_vm12, %v9785_v25, %v18437_v20  ;;  %v3438_v50 = vmul.f32 %v18441_v0, %v18440_v16  ;;  %v9800_v60 = vunpack.i.l.bf16 %v14409_v22  ;;  %v18450_v36 = vld [vmem:[#allocation229_spill] sm:$0xff]  ;;  %vm18475_vm12 = vmmov %vm18445_vm7 }
 0x4ef   : > { %v14599_v52 = vpop.permute.xlu0 %9888  ;;  %v5460_v59 = vsel %vm18447_vm8, %v5412_v42, %v18446_v19  ;;  %v18451_v42 = vld [vmem:[#allocation146_spill] sm:$0xff]  ;;  %vm18480_vm5 = vmmov %vm18474_vm4 }
 0x4f0   : > { %6179 = vmatmul.mubr.f32.gmra.mrb[144].mxu1 %v5362_v33  ;;  %v14613_v17 = vpop.permute.xlu1 %9893  ;;  %v18444_v33 = vld [vmem:[#allocation136_spill] sm:$0xff]  ;;  %v10207_v57 = vpack.i.bf16 %v4012_v14, %v4011_v32  ;;  %v5363_v16 = vsel %vm18445_vm7, %v3438_v50, %v9775_v34  ;;  %v9796_v34 = vunpack.i.h.bf16 %v14395_v46  ;;  %v9791_v14 = vunpack.i.h.bf16 %v14369_v6  ;;  %vm18483_vm2 = vmmov %vm18474_vm4 }
 0x4f1   : > { %10203 = vrot.lane.b32.xlu0 %v10202_v48, %s10392_s28  ;;  %6183 = vmatprep.mubr.f32.mxu1 %v5459_v63  ;;  %v9896_v20 = vunpack.i.h.bf16 %v14613_v17  ;;  %v4062_v25 = vmul.f32 %v18444_v33, %v18356_v7  ;;  %v9790_v48 = vunpack.i.l.bf16 %v14369_v6  ;;  %v9801_v6 = vunpack.i.h.bf16 %v14409_v22  ;;  %v18461_v22 = vld [vmem:[#allocation51_spill] sm:$0xff]  ;;  %vm18486_vm7 = vmmov %vm18483_vm2 }
 0x4f2   : > { %10158 = vrot.lane.b32.xlu1 %v18431_v12, %s10390_s13  ;;  %v18449_v12 = vld [vmem:[#allocation210_spill] sm:$0xff]  ;;  %vm18489_vm8 = vmmov %vm18483_vm2 }
 0x4f3   : > { %v14629_v63 = vpop.permute.xlu0 %9898  ;;  %v14637_v7 = vsel %vm18448_vm14, %v9800_v60, %v9896_v20  ;;  %v3439_v32 = vmul.f32 %v18450_v36, %v18449_v12  ;;  %v10212_v50 = vpack.i.bf16 %v4062_v25, %v4061_v18  ;;  %v18455_v36 = vld [vmem:[#allocation148_spill] sm:$0xff]  ;;  %v18456_v12 = vld [vmem:[#allocation139_spill] sm:$0xff]  ;;  %v5413_v46 = vsel %vm18457_vm3, %v9790_v48, %v9795_v55  ;;  %vm18493_vm14 = vmmov %vm18483_vm2 }
 0x4f4   : > { %v9901_v0 = vunpack.i.h.bf16 %v14629_v63  ;;  %6184 = vmatmul.mubr.f32.gmra.mrb[146].mxu1 %v5363_v16  ;;  %v14639_v33 = vpop.permute.xlu1 %9903  ;;  %v4014_v10 = vmul.f32 %v18456_v12, %v18455_v36  ;;  %v9810_v25 = vunpack.i.l.bf16 %v14428_v53  ;;  %v18460_v12 = vld [vmem:[#allocation70_spill] sm:$0xff]  ;;  %v4063_v18 = vmul.f32 %v18461_v22, %v18361_v51  ;;  %vm18498_vm3 = vmmov %vm18483_vm2 }
 0x4f5   : > { %10208 = vrot.lane.b32.xlu0 %v10207_v57, %s10391_s14  ;;  %6188 = vmatprep.mubr.f32.mxu1 %v5460_v59  ;;  %v5364_v57 = vsel %vm18452_vm13, %v3439_v32, %v9776_v56  ;;  %v18453_v59 = vld [vmem:[#allocation59_spill] sm:$0xff]  ;;  %v9805_v36 = vunpack.i.l.bf16 %v14418_v43  ;;  %v5414_v51 = vsel %vm18465_vm9, %v9791_v14, %v9796_v34  ;;  %vm18496_vm13 = vmmov %vm18483_vm2 }
 0x4f6   : > { %v14647_v16 = vsel %vm5511_vm11, %v9896_v20, %v9901_v0  ;;  %10163 = vrot.lane.b32.xlu1 %v18451_v42, %s10393_s30  ;;  %v4013_v23 = vmul.f32 %v18454_v37, %v18453_v59  ;;  %v5461_v20 = vsel %vm18458_vm6, %v5413_v46, %v9800_v60  ;;  %v18459_v32 = vld [vmem:[#allocation211_spill] sm:$0xff]  ;;  %v4064_v60 = vmul.f32 %v18322_v54, %v18371_v49  ;;  %vm18503_vm6 = vmmov %vm18483_vm2 }
 0x4f7   : > { %v14651_v19 = vpop.permute.xlu0 %9908  ;;  %v3440_v37 = vmul.f32 %v18460_v12, %v18459_v32  ;;  %v5462_v49 = vsel %vm18426_vm0, %v5414_v51, %v9801_v6  ;;  %v14696_v34 = vpop.f32.mrb[60].mxu1  ;;  %v18469_v51 = vld [vmem:[#allocation149_spill] sm:$0xff]  ;;  %vm18512_vm9 = vmmov %vm18483_vm2 }
 0x4f8   : > { %6189 = vmatmul.mubr.f32.gmra.mrb[148].mxu1 %v5364_v57  ;;  %v14663_v0 = vpop.permute.xlu1 %9918  ;;  %v9911_v56 = vunpack.i.h.bf16 %v14651_v19  ;;  %v18462_v57 = vunpack.i.l.bf16 %v14651_v19  ;;  %v10217_v12 = vpack.i.bf16 %v4014_v10, %v4013_v23  ;;  %v18466_v10 = vld [vmem:[#allocation221_spill] sm:$0xff]  ;;  %v18467_v23 = vld [vmem:[#allocation238_spill] sm:$0xff]  ;;  %18468 = vst [vmem:[#allocation205_spill] sm:$0xff] %v14696_v34  ;;  %vm18516_vm0 = vmmov %vm18483_vm2 }
 0x4f9   : > { %10213 = vrot.lane.b32.xlu0 %v10212_v50, %s10392_s28  ;;  %6193 = vmatprep.mubr.f32.mxu1 %v5461_v20  ;;  %v9921_v55 = vunpack.i.h.bf16 %v14663_v0  ;;  %v5365_v20 = vsel %vm18464_vm15, %v3440_v37, %v9790_v48  ;;  %v3441_v37 = vmul.f32 %v18467_v23, %v18466_v10  ;;  %v5545_v48 = vsel %vm5511_vm11, %v9805_v36, %v9810_v25  ;;  %v5723_v25 = vld [vmem:[%s16997_s7 + $0x208] sm:$0xff]  ;;  %v18471_v10 = vld [vmem:[#allocation152_spill] sm:$0xff]  ;;  %v18472_v23 = vld [vmem:[#allocation170_spill] sm:$0xff] }
 0x4fa   : > { %v14677_v46 = vsel %vm18463_vm10, %v9801_v6, %v18462_v57  ;;  %10168 = vrot.lane.b32.xlu1 %v18451_v42, %s10390_s13  ;;  %v9811_v57 = vunpack.i.h.bf16 %v14428_v53  ;;  %v18477_v34 = vld [vmem:[#allocation154_spill] sm:$0xff]  ;;  %vm18505_vm10 = vmmov %vm18483_vm2 }
 0x4fb   : > { %v14682_v50 = vpop.permute.xlu0 %9913  ;;  %v5512_v42 = vsel %vm5511_vm11, %v9911_v56, %v9921_v55  ;;  %v5722_v55 = vld [vmem:[%s16997_s7 + $0x200] sm:$0xff]  ;;  %vm18509_vm15 = vmmov %vm18483_vm2 }
 0x4fc   : > { %v17451_v54 = vunpack.i.h.bf16 %v14682_v50  ;;  %6194 = vmatmul.mubr.f32.gmra.mrb[150].mxu1 %v5365_v20  ;;  %v14689_v22 = vpop.permute.xlu1 %9923  ;;  %v10222_v20 = vpack.i.bf16 %v4064_v60, %v4063_v18  ;;  %v5366_v60 = vsel %vm18475_vm12, %v3441_v37, %v9791_v14  ;;  %v9049_v14 = vpack.c.bf16 %v5723_v25, %v5722_v55  ;;  %vm18522_vm12 = vmmov %vm18516_vm0 }
 0x4fd   : > { %10218 = vrot.lane.b32.xlu0 %v10217_v12, %s10391_s14  ;;  %6198 = vmatprep.mubr.f32.mxu1 %v5462_v49  ;;  %v18470_v12 = vld [vmem:[#allocation141_spill] sm:$0xff]  ;;  %v5972_v49 = vpop.f32.mrb[61].mxu1  ;;  %v9820_v55 = vunpack.i.l.bf16 %v14449_v8 }
 0x4fe   : > { %v5561_v6 = vsel %vm5560_vm1, %v5512_v42, %v17451_v54  ;;  %v4015_v32 = vmul.f32 %v18470_v12, %v18469_v51  ;;  %10173 = vrot.lane.b32.xlu1 %v18471_v10, %s10393_s30  ;;  %v18473_v42 = vunpack.i.l.bf16 %v18472_v23  ;;  %v18476_v54 = vld [vmem:[#allocation151_spill] sm:$0xff]  ;;  %v9806_v51 = vunpack.i.h.bf16 %v14418_v43 }
 0x4ff   : > { %v9929_v53 = vpop.permute.xlu0 %9928  ;;  %6268 = vmatprep.mubr.f32.mxu0 %v5561_v6  ;;  %v4016_v12 = vmul.f32 %v18477_v34, %v18476_v54  ;;  %v18478_v49 = vunpack.i.l.bf16 %v14439_v5 }
 0x500   : > { %v5463_v18 = vsel %vm18474_vm4, %v18473_v42, %v9911_v56  ;;  %6199 = vmatmul.mubr.f32.gmra.mrb[152].mxu1 %v5366_v60  ;;  %v14723_v6 = vpop.permute.xlu1 %9933  ;;  %v9930_v2 = vunpack.i.l.bf16 %v9929_v53  ;;  %v18479_v56 = vunpack.i.h.bf16 %v14038_v38  ;;  %v5546_v43 = vsel %vm5511_vm11, %v9806_v51, %v9811_v57  ;;  %vm18519_vm4 = vmmov %vm18516_vm0 }
 0x501   : > { %6269 = vmatmul.mubr.f32.vlgmr.msra.gmra.mrb[96].mxu0 %v5463_v18  ;;  %v5594_v59 = vsel %vm5560_vm1, %v5545_v48, %v18478_v49  ;;  %10223 = vrot.lane.b32.xlu0 %v10222_v20, %s10392_s28  ;;  %v9925_v42 = vunpack.i.l.bf16 %v14689_v22  ;;  %v9931_v18 = vunpack.i.h.bf16 %v9929_v53  ;;  %v10227_v60 = vpack.i.bf16 %v4016_v12, %v4015_v32  ;;  %v18481_v49 = vld [vmem:[#allocation143_spill] sm:$0xff] }
 0x502   : > { %6433 = vmatprep.mubr.f32.mxu1 %v5594_v59  ;;  %v5496_v37 = vsel %vm18480_vm5, %v18479_v56, %v9805_v36  ;;  %10178 = vrot.lane.b32.xlu1 %v18471_v10, %s10390_s13  ;;  %v4065_v20 = vmul.f32 %v18481_v49, %v18376_v9  ;;  %v5724_v59 = vld [vmem:[%s16997_s7 + $0x210] sm:$0xff]  ;;  %v5725_v36 = vld [vmem:[%s16997_s7 + $0x218] sm:$0xff]  ;;  %v9825_v57 = vunpack.i.l.bf16 %v14460_v40  ;;  %v9926_v9 = vunpack.i.h.bf16 %v14689_v22  ;;  %vm18526_vm5 = vmmov %vm18516_vm0 }
 0x503   : > { %v14733_v48 = vpop.permute.xlu0 %9938  ;;  %v5513_v53 = vsel %vm5511_vm11, %v9925_v42, %v9930_v2  ;;  %v5595_v56 = vsel %vm5560_vm1, %v5546_v43, %v17452_v26  ;;  %v9052_v32 = vpack.c.bf16 %v5725_v36, %v5724_v59  ;;  %v9821_v2 = vunpack.i.h.bf16 %v14449_v8  ;;  %v14777_v8 = vpop.f32.mrb[62].mxu1 }
 0x504   : > { %v17453_v25 = vunpack.i.h.bf16 %v14733_v48  ;;  %v17454_v10 = vunpack.i.l.bf16 %v14733_v48  ;;  %6434 = vmatmul.mubr.f32.vlgmr.msra.gmra.mrb[124].mxu1 %v5496_v37  ;;  %v14749_v12 = vpop.permute.xlu1 %9943  ;;  %v18482_v37 = vunpack.i.l.bf16 %v14089_v28  ;;  %v18485_v26 = vunpack.i.h.bf16 %v18472_v23 }
 0x505   : > { %10228 = vrot.lane.b32.xlu0 %v10227_v60, %s10391_s14  ;;  %9050 = vmatpush1.bf16.msra.mxu1 %v9049_v14  ;;  %v9826_v60 = vunpack.i.h.bf16 %v14460_v40  ;;  %v18484_v14 = vld [vmem:[#allocation145_spill] sm:$0xff]  ;;  %v5727_v40 = vld [vmem:[%s16997_s7 + $0x228] sm:$0xff]  ;;  %v17456_v59 = vunpack.i.h.bf16 %v14473_v4 }
 0x506   : > { %v5562_v49 = vsel %vm5560_vm1, %v5513_v53, %v17454_v10  ;;  %6438 = vmatprep.mubr.f32.mxu1 %v5595_v56  ;;  %v5497_v22 = vsel %vm18483_vm2, %v18482_v37, %v9806_v51  ;;  %9051 = vmatprep.subr.bf16.mxu1 %v17889_v24  ;;  %v5464_v53 = vsel %vm18486_vm7, %v18485_v26, %v9925_v42  ;;  %v5726_v51 = vld [vmem:[%s16997_s7 + $0x220] sm:$0xff]  ;;  %v5977_v42 = vpop.f32.mrb[63].mxu1  ;;  %vm18530_vm2 = vmmov %vm18516_vm0 }
 0x507   : > { %5241 = vrot.lane.b32.xlu1 %v18484_v14, %s10393_s30  ;;  %v9949_v43 = vpop.permute.xlu0 %9948  ;;  %6273 = vmatprep.mubr.f32.mxu0 %v5562_v49  ;;  %v5514_v56 = vsel %vm5511_vm11, %v9926_v9, %v9931_v18  ;;  %v5547_v26 = vsel %vm5511_vm11, %v9820_v55, %v9825_v57  ;;  %v18487_v49 = vunpack.i.l.bf16 %v14473_v4  ;;  %v9840_v14 = vunpack.i.l.bf16 %v14490_v30  ;;  %vm18532_vm7 = vmmov %vm18516_vm0 }
 0x508   : > { %6274 = vmatmul.mubr.f32.gmra.mrb[98].mxu0 %v5464_v53  ;;  %v5563_v23 = vsel %vm5560_vm1, %v5514_v56, %v17453_v25  ;;  %6439 = vmatmul.mubr.f32.gmra.mrb[126].mxu1 %v5497_v22  ;;  %v14784_v18 = vpop.permute.xlu1 %9953  ;;  %v9950_v36 = vunpack.i.l.bf16 %v9949_v43  ;;  %v4066_v53 = vmul.f32 %v18341_v61, %v18386_v13  ;;  %v18488_v57 = vunpack.i.h.bf16 %v14089_v28  ;;  %v5728_v28 = vld [vmem:[%s16997_s7 + $0x230] sm:$0xff]  ;;  %v5729_v13 = vld [vmem:[%s16997_s7 + $0x238] sm:$0xff] }
 0x509   : > { %5099 = vrot.lane.b32.xlu0 %v4065_v20, %s10392_s28  ;;  %6278 = vmatprep.mubr.f32.mxu0 %v5563_v23  ;;  %v5596_v37 = vsel %vm5560_vm1, %v5547_v26, %v18487_v49  ;;  %v9055_v56 = vpack.c.bf16 %v5727_v40, %v5726_v51  ;;  %v9945_v42 = vunpack.i.l.bf16 %v14749_v12  ;;  %v9951_v20 = vunpack.i.h.bf16 %v9949_v43  ;;  %v18490_v23 = vld [vmem:[#allocation153_spill] sm:$0xff]  ;;  %v18491_v26 = vld [vmem:[#allocation176_spill] sm:$0xff] }
 0x50a   : > { %6443 = vmatprep.mubr.f32.mxu1 %v5596_v37  ;;  %9053 = vmatpush1.bf16.msra.mxu1 %v9052_v32  ;;  %v5498_v22 = vsel %vm18489_vm8, %v18488_v57, %v9820_v55  ;;  %v18492_v49 = vunpack.i.l.bf16 %v18491_v26  ;;  %v5548_v61 = vsel %vm5511_vm11, %v9821_v2, %v9826_v60  ;;  %v9835_v55 = vunpack.i.l.bf16 %v14482_v31  ;;  %vm18536_vm8 = vmmov %vm18516_vm0 }
 0x50b   : > { %5243 = vrot.lane.b32.xlu1 %v18490_v23, %s10393_s30  ;;  %v14799_v25 = vpop.permute.xlu0 %9958  ;;  %9054 = vmatprep.subr.bf16.mxu1 %v17889_v24  ;;  %v17455_v60 = vunpack.i.l.bf16 %v14503_v44  ;;  %v9841_v51 = vunpack.i.h.bf16 %v14490_v30  ;;  %v9946_v40 = vunpack.i.h.bf16 %v14749_v12  ;;  %v5515_v57 = vsel %vm5511_vm11, %v9945_v42, %v9950_v36  ;;  %v18494_v30 = vld [vmem:[#allocation155_spill] sm:$0xff] }
 0x50c   : > { %v5465_v10 = vsel %vm18493_vm14, %v18492_v49, %v9926_v9  ;;  %v17461_v32 = vunpack.i.h.bf16 %v14799_v25  ;;  %v17462_v43 = vunpack.i.l.bf16 %v14799_v25  ;;  %6444 = vmatmul.mubr.f32.gmra.mrb[128].mxu1 %v5498_v22  ;;  %v5597_v9 = vsel %vm5560_vm1, %v5548_v61, %v17456_v59  ;;  %v14821_v37 = vpop.permute.xlu1 %9963  ;;  %vm18539_vm14 = vmmov %vm18516_vm0 }
 0x50d   : > { %6279 = vmatmul.mubr.f32.gmra.mrb[100].mxu0 %v5465_v10  ;;  %5101 = vrot.lane.b32.xlu0 %v4066_v53, %s10392_s28  ;;  %v5549_v22 = vsel %vm5511_vm11, %v9835_v55, %v9840_v14  ;;  %v9058_v23 = vpack.c.bf16 %v5729_v13, %v5728_v28  ;;  %v9836_v49 = vunpack.i.h.bf16 %v14482_v31  ;;  %v18495_v53 = vunpack.i.h.bf16 %v18491_v26  ;;  %v5734_v31 = vld [vmem:[%s16997_s7 + $0x260] sm:$0xff] }
 0x50e   : > { %6448 = vmatprep.mubr.f32.mxu1 %v5597_v9  ;;  %v5564_v10 = vsel %vm5560_vm1, %v5515_v57, %v17462_v43  ;;  %9056 = vmatpush1.bf16.msra.mxu1 %v9055_v56  ;;  %v5516_v61 = vsel %vm5511_vm11, %v9946_v40, %v9951_v20  ;;  %v18497_v9 = vunpack.i.l.bf16 %v14142_v3  ;;  %v14839_v57 = vpop.f32.mrb[64].mxu1  ;;  %v17457_v14 = vunpack.i.h.bf16 %v14503_v44  ;;  %v18499_v20 = vld [vmem:[#allocation162_spill] sm:$0xff] }
 0x50f   : > { %5245 = vrot.lane.b32.xlu1 %v18494_v30, %s10393_s30  ;;  %v9969_v12 = vpop.permute.xlu0 %9968  ;;  %6283 = vmatprep.mubr.f32.mxu0 %v5564_v10  ;;  %v5466_v36 = vsel %vm18496_vm13, %v18495_v53, %v9945_v42  ;;  %v5565_v28 = vsel %vm5560_vm1, %v5516_v61, %v17461_v32  ;;  %v5982_v13 = vpop.f32.mrb[65].mxu1  ;;  %v5550_v10 = vsel %vm5511_vm11, %v9836_v49, %v9841_v51  ;;  %v5730_v30 = vld [vmem:[%s16997_s7 + $0x240] sm:$0xff]  ;;  %v5731_v53 = vld [vmem:[%s16997_s7 + $0x248] sm:$0xff]  ;;  %v9855_v59 = vunpack.i.l.bf16 %v14523_v27  ;;  %vm18542_vm13 = vmmov %vm18516_vm0 }
 0x510   : > { %v5499_v56 = vsel %vm18498_vm3, %v18497_v9, %v9821_v2  ;;  %v14845_v26 = vpop.permute.xlu1 %9973  ;;  %v9970_v42 = vunpack.i.l.bf16 %v9969_v12  ;;  %v5598_v2 = vsel %vm5560_vm1, %v5549_v22, %v17455_v60  ;;  %9057 = vmatprep.subr.bf16.mxu1 %v17889_v24  ;;  %v9971_v61 = vunpack.i.h.bf16 %v9969_v12  ;;  %v18500_v22 = vld [vmem:[#allocation163_spill] sm:$0xff]  ;;  %v18501_v51 = vld [vmem:[#allocation186_spill] sm:$0xff]  ;;  %vm18545_vm3 = vmmov %vm18516_vm0 }
 0x511   : > { %6284 = vmatmul.mubr.f32.gmra.mrb[102].mxu0 %v5466_v36  ;;  %6449 = vmatmul.mubr.f32.gmra.mrb[130].mxu1 %v5499_v56  ;;  %v9965_v36 = vunpack.i.l.bf16 %v14821_v37  ;;  %v18502_v56 = vunpack.i.l.bf16 %v18501_v51  ;;  %v18504_v13 = vunpack.i.h.bf16 %v14142_v3  ;;  %v5599_v12 = vsel %vm5560_vm1, %v5550_v10, %v17457_v14  ;;  %v5733_v10 = vld [vmem:[%s16997_s7 + $0x258] sm:$0xff] }
 0x512   : > { %5247 = vrot.lane.b32.xlu0 %v18499_v20, %s10393_s30  ;;  %6288 = vmatprep.mubr.f32.mxu0 %v5565_v28 }
 0x513   : > { %6453 = vmatprep.mubr.f32.mxu1 %v5598_v2  ;;  %5249 = vrot.lane.b32.xlu1 %v18500_v22, %s10393_s30  ;;  %v14865_v9 = vpop.permute.xlu0 %9978  ;;  %v5467_v28 = vsel %vm18503_vm6, %v18502_v56, %v9946_v40  ;;  %v5500_v20 = vsel %vm18505_vm10, %v18504_v13, %v9835_v55  ;;  %v9061_v22 = vpack.c.bf16 %v5731_v53, %v5730_v30  ;;  %v9850_v40 = vunpack.i.l.bf16 %v14512_v45  ;;  %v18506_v55 = vld [vmem:[#allocation171_spill] sm:$0xff]  ;;  %vm18548_vm6 = vmmov %vm18516_vm0 }
 0x514   : > { %9059 = vmatpush1.bf16.msra.mxu1 %v9058_v23  ;;  %v17460_v2 = vunpack.i.h.bf16 %v14865_v9  ;;  %v17458_v60 = vunpack.i.l.bf16 %v14865_v9  ;;  %v9966_v23 = vunpack.i.h.bf16 %v14821_v37  ;;  %v14881_v3 = vpop.permute.xlu1 %9983  ;;  %v5517_v56 = vsel %vm5511_vm11, %v9965_v36, %v9970_v42  ;;  %v18507_v53 = vld [vmem:[#allocation179_spill] sm:$0xff]  ;;  %vm18551_vm10 = vmmov %vm18516_vm0 }
 0x515   : > { %6289 = vmatmul.mubr.f32.gmra.mrb[104].mxu0 %v5467_v28  ;;  %6454 = vmatmul.mubr.f32.gmra.mrb[132].mxu1 %v5500_v20  ;;  %v5732_v28 = vld [vmem:[%s16997_s7 + $0x250] sm:$0xff]  ;;  %v17459_v30 = vunpack.i.l.bf16 %v14537_v15  ;;  %v18508_v13 = vunpack.i.h.bf16 %v18501_v51 }
 0x516   : > { %5251 = vrot.lane.b32.xlu0 %v18506_v55, %s10393_s30  ;;  %6458 = vmatprep.mubr.f32.mxu1 %v5599_v12  ;;  %v5566_v37 = vsel %vm5560_vm1, %v5517_v56, %v17458_v60  ;;  %v5518_v12 = vsel %vm5511_vm11, %v9966_v23, %v9971_v61  ;;  %v6863_v55 = vld [vmem:[%s16999_s9 + $0x8] sm:$0xff]  ;;  %v6866_v56 = vld [vmem:[%s16999_s9 + $0x20] sm:$0xff]  ;;  %v18510_v61 = vld [vmem:[#allocation188_spill] sm:$0xff]  ;;  %v9856_v60 = vunpack.i.h.bf16 %v14523_v27  ;;  %v17465_v27 = vunpack.i.h.bf16 %v14537_v15 }
 0x517   : > { %9060 = vmatprep.subr.bf16.mxu1 %v17889_v24  ;;  %5253 = vrot.lane.b32.xlu1 %v18507_v53, %s10393_s30  ;;  %v9989_v42 = vpop.permute.xlu0 %9988  ;;  %v5468_v20 = vsel %vm18509_vm15, %v18508_v13, %v9965_v36  ;;  %v5567_v53 = vsel %vm5560_vm1, %v5518_v12, %v17460_v2  ;;  %v18511_v13 = vunpack.i.l.bf16 %v14194_v29  ;;  %v18518_v2 = vunpack.i.h.bf16 %v14194_v29  ;;  %v18520_v29 = vld [vmem:[#allocation203_spill] sm:$0xff]  ;;  %vm18553_vm15 = vmmov %vm18516_vm0 }
 0x518   : > { %6293 = vmatprep.mubr.f32.mxu0 %v5566_v37  ;;  %9062 = vmatpush1.bf16.msra.mxu1 %v9061_v22  ;;  %v9064_v37 = vpack.c.bf16 %v5733_v10, %v5732_v28  ;;  %v14912_v51 = vpop.permute.xlu1 %9993  ;;  %v9990_v36 = vunpack.i.l.bf16 %v9989_v42  ;;  %v9851_v22 = vunpack.i.h.bf16 %v14512_v45  ;;  %v9985_v45 = vunpack.i.l.bf16 %v14881_v3  ;;  %v18513_v10 = vld [vmem:[#allocation190_spill] sm:$0xff] }
 0x519   : > { %6294 = vmatmul.mubr.f32.gmra.mrb[106].mxu0 %v5468_v20  ;;  %v5501_v14 = vsel %vm18512_vm9, %v18511_v13, %v9836_v49  ;;  %v5551_v20 = vsel %vm5511_vm11, %v9850_v40, %v9855_v59  ;;  %9063 = vmatprep.subr.bf16.mxu1 %v17889_v24  ;;  %v5735_v49 = vld [vmem:[%s16997_s7 + $0x268] sm:$0xff]  ;;  %v9087_v59 = vpack.c.bf16 %v6866_v56, %v6863_v55  ;;  %v6865_v55 = vld [vmem:[%s16999_s9 + $0x18] sm:$0xff]  ;;  %v9865_v56 = vunpack.i.l.bf16 %v14544_v35  ;;  %vm18555_vm9 = vmmov %vm18516_vm0 }
 0x51a   : > { %5255 = vrot.lane.b32.xlu0 %v18510_v61, %s10393_s30  ;;  %6298 = vmatprep.mubr.f32.mxu0 %v5567_v53  ;;  %v5600_v28 = vsel %vm5560_vm1, %v5551_v20, %v17459_v30  ;;  %v18514_v53 = vld [vmem:[#allocation191_spill] sm:$0xff]  ;;  %v6862_v20 = vld [vmem:[%s16999_s9] sm:$0xff]  ;;  %v9986_v30 = vunpack.i.h.bf16 %v14881_v3  ;;  %v5502_v32 = vsel %vm18519_vm4, %v18518_v2, %v9850_v40  ;;  %v9067_v43 = vpack.c.bf16 %v5735_v49, %v5734_v31  ;;  %vm18562_vm4 = vmmov %vm18516_vm0 }
 0x51b   : > { %6459 = vmatmul.mubr.f32.gmra.mrb[134].mxu1 %v5501_v14  ;;  %v9991_v14 = vunpack.i.h.bf16 %v9989_v42  ;;  %5257 = vrot.lane.b32.xlu1 %v18513_v10, %s10393_s30  ;;  %v14938_v12 = vpop.permute.xlu0 %9998  ;;  %v18515_v61 = vunpack.i.l.bf16 %v18514_v53  ;;  %v9870_v42 = vunpack.i.l.bf16 %v14553_v58  ;;  %v18521_v40 = vunpack.i.h.bf16 %v18514_v53 }
 0x51c   : > { %6463 = vmatprep.mubr.f32.mxu1 %v5600_v28  ;;  %v17468_v10 = vunpack.i.l.bf16 %v14938_v12  ;;  %9065 = vmatpush1.bf16.msra.mxu1 %v9064_v37  ;;  %v18517_v28 = vld [vmem:[#allocation202_spill] sm:$0xff]  ;;  %v5552_v37 = vsel %vm5511_vm11, %v9851_v22, %v9856_v60 }
 0x51d   : > { %v5469_v13 = vsel %vm18516_vm0, %v18515_v61, %v9966_v23  ;;  %v14953_v23 = vpop.permute.xlu1 %10003  ;;  %v5519_v61 = vsel %vm5511_vm11, %v9985_v45, %v9990_v36  ;;  %9066 = vmatprep.subr.bf16.mxu1 %v17889_v24  ;;  %9088 = vmatprep.subr.bf16.mxu0 %v9087_v59  ;;  %v17463_v36 = vunpack.i.l.bf16 %v14566_v1  ;;  %v5470_v31 = vsel %vm18522_vm12, %v18521_v40, %v9985_v45  ;;  %v14977_v60 = vpop.f32.mrb[66].mxu1 }
 0x51e   : > { %6299 = vmatmul.mubr.f32.gmra.mrb[108].mxu0 %v5469_v13  ;;  %5259 = vrot.lane.b32.xlu0 %v18517_v28, %s10393_s30  ;;  %v5568_v3 = vsel %vm5560_vm1, %v5519_v61, %v17468_v10  ;;  %v9089_v13 = vpack.c.bf16 %v6865_v55, %v6862_v20  ;;  %v5520_v49 = vsel %vm5511_vm11, %v9986_v30, %v9991_v14  ;;  %v9871_v59 = vunpack.i.h.bf16 %v14553_v58  ;;  %v5987_v28 = vpop.f32.mrb[67].mxu1  ;;  %v18524_v61 = vld [vmem:[#allocation215_spill] sm:$0xff]  ;;  %v18540_v10 = vld [vmem:[#allocation201_spill] sm:$0xff] }
 0x51f   : > { %6464 = vmatmul.mubr.f32.gmra.mrb[136].mxu1 %v5502_v32  ;;  %5261 = vrot.lane.b32.xlu1 %v18520_v29, %s10393_s30  ;;  %v10009_v2 = vpop.permute.xlu0 %10008  ;;  %v5601_v32 = vsel %vm5560_vm1, %v5552_v37, %v17465_v27  ;;  %v18523_v20 = vunpack.i.h.bf16 %v14938_v12  ;;  %v5553_v53 = vsel %vm5511_vm11, %v9865_v56, %v9870_v42  ;;  %v9866_v37 = vunpack.i.h.bf16 %v14544_v35 }
 0x520   : > { %6303 = vmatprep.mubr.f32.mxu0 %v5568_v3  ;;  %6468 = vmatprep.mubr.f32.mxu1 %v5601_v32  ;;  %v10010_v14 = vunpack.i.l.bf16 %v10009_v2  ;;  %v18525_v3 = vunpack.i.l.bf16 %v14246_v21  ;;  %v17464_v29 = vunpack.i.h.bf16 %v14566_v1  ;;  %v10005_v42 = vunpack.i.l.bf16 %v14953_v23  ;;  %v18528_v32 = vld [vmem:[#allocation196_spill] sm:$0xff] }
 0x521   : > { %v5569_v55 = vsel %vm5560_vm1, %v5520_v49, %v18523_v20  ;;  %v14984_v45 = vpop.permute.xlu1 %10013  ;;  %9090 = vmatpush1.bf16.msra.mxu0 %v9089_v13  ;;  %v10011_v40 = vunpack.i.h.bf16 %v10009_v2  ;;  %v18529_v20 = vunpack.i.l.bf16 %v18528_v32  ;;  %9068 = vmatpush1.bf16.msra.mxu1 %v9067_v43  ;;  %v5602_v35 = vsel %vm5560_vm1, %v5553_v53, %v17463_v36  ;;  %v5737_v13 = vld [vmem:[%s16997_s7 + $0x278] sm:$0xff] }
 0x522   : > { %6304 = vmatmul.mubr.f32.gmra.mrb[110].mxu0 %v5470_v31  ;;  %5263 = vrot.lane.b32.xlu0 %v18524_v61, %s10393_s30  ;;  %v5503_v58 = vsel %vm18526_vm5, %v18525_v3, %v9851_v22  ;;  %v18527_v31 = vld [vmem:[#allocation218_spill] sm:$0xff]  ;;  %v5736_v22 = vld [vmem:[%s16997_s7 + $0x270] sm:$0xff]  ;;  %v18531_v43 = vunpack.i.h.bf16 %v14246_v21  ;;  %v5554_v53 = vsel %vm5511_vm11, %v9866_v37, %v9871_v59  ;;  %v9885_v61 = vunpack.i.l.bf16 %v14588_v47 }
 0x523   : > { %6308 = vmatprep.mubr.f32.mxu0 %v5569_v55  ;;  %6469 = vmatmul.mubr.f32.gmra.mrb[138].mxu1 %v5503_v58  ;;  %v14996_v49 = vpop.permute.xlu0 %10018  ;;  %v5471_v55 = vsel %vm18530_vm2, %v18529_v20, %v9986_v30  ;;  %v9880_v3 = vunpack.i.l.bf16 %v14578_v62  ;;  %v10006_v58 = vunpack.i.h.bf16 %v14953_v23  ;;  %v18533_v20 = vld [vmem:[#allocation233_spill] sm:$0xff]  ;;  %v17470_v21 = vunpack.i.l.bf16 %v14599_v52  ;;  %vm18569_vm2 = vmmov %vm18516_vm0 }
 0x524   : > { %5265 = vrot.lane.b32.xlu1 %v18527_v31, %s10393_s30  ;;  %v17466_v2 = vunpack.i.h.bf16 %v14996_v49  ;;  %v17467_v28 = vunpack.i.l.bf16 %v14996_v49  ;;  %6473 = vmatprep.mubr.f32.mxu1 %v5602_v35  ;;  %v5504_v30 = vsel %vm18532_vm7, %v18531_v43, %v9865_v56  ;;  %v9070_v59 = vpack.c.bf16 %v5737_v13, %v5736_v22  ;;  %v18534_v35 = vld [vmem:[#allocation234_spill] sm:$0xff]  ;;  %v5739_v22 = vld [vmem:[%s16997_s7 + $0x288] sm:$0xff] }
 0x525   : > { %v15019_v31 = vpop.permute.xlu1 %10023  ;;  %9069 = vmatprep.subr.bf16.mxu1 %v17889_v24  ;;  %v18535_v43 = vunpack.i.h.bf16 %v18528_v32  ;;  %v5603_v36 = vsel %vm5560_vm1, %v5554_v53, %v17464_v29  ;;  %v18537_v53 = vmov 0.0   ;;  %v9900_v29 = vunpack.i.l.bf16 %v14629_v63 }
 0x526   : > { %6309 = vmatmul.mubr.f32.gmra.mrb[112].mxu0 %v5471_v55  ;;  %5267 = vrot.lane.b32.xlu0 %v18533_v20, %s10393_s30  ;;  %v5521_v55 = vsel %vm5511_vm11, %v10005_v42, %v10010_v14  ;;  %v5522_v14 = vsel %vm5511_vm11, %v10006_v58, %v10011_v40  ;;  %v10025_v27 = vunpack.i.l.bf16 %v15019_v31  ;;  %v9895_v63 = vunpack.i.l.bf16 %v14613_v17 }
 0x527   : > { %v5570_v56 = vsel %vm5560_vm1, %v5521_v55, %v17467_v28  ;;  %6474 = vmatmul.mubr.f32.gmra.mrb[140].mxu1 %v5504_v30  ;;  %v10029_v23 = vpop.permute.xlu0 %10028  ;;  %v5472_v20 = vsel %vm18536_vm8, %v18535_v43, %v10005_v42  ;;  %v5738_v30 = vld [vmem:[%s16997_s7 + $0x280] sm:$0xff]  ;;  %v5571_v32 = vsel %vm5560_vm1, %v5522_v14, %v17466_v2  ;;  %v9886_v42 = vunpack.i.h.bf16 %v14588_v47  ;;  %vm18575_vm8 = vmmov %vm18516_vm0 }
 0x528   : > { %5269 = vrot.lane.b32.xlu1 %v18534_v35, %s10393_s30  ;;  %6313 = vmatprep.mubr.f32.mxu0 %v5570_v56  ;;  %v10030_v13 = vunpack.i.l.bf16 %v10029_v23  ;;  %v5555_v55 = vsel %vm5511_vm11, %v9880_v3, %v9885_v61  ;;  %v5740_v35 = vld [vmem:[%s16997_s7 + $0x290] sm:$0xff]  ;;  %v18538_v43 = vunpack.i.l.bf16 %v14303_v41  ;;  %v9073_v14 = vpack.c.bf16 %v5739_v22, %v5738_v30 }
 0x529   : > { %6478 = vmatprep.mubr.f32.mxu1 %v5603_v36  ;;  %v15048_v40 = vpop.permute.xlu1 %10033  ;;  %v15053_v56 = vpop.f32.mrb[68].mxu1  ;;  %v5741_v36 = vld [vmem:[%s16997_s7 + $0x298] sm:$0xff]  ;;  %9071 = vmatpush1.bf16.msra.mxu1 %v9070_v59  ;;  %v5604_v61 = vsel %vm5560_vm1, %v5555_v55, %v17470_v21  ;;  %v10031_v2 = vunpack.i.h.bf16 %v10029_v23  ;;  %v18541_v47 = vunpack.i.l.bf16 %v18540_v10  ;;  %v10026_v23 = vunpack.i.h.bf16 %v15019_v31 }
 0x52a   : > { %6314 = vmatmul.mubr.f32.gmra.mrb[114].mxu0 %v5472_v20  ;;  %5271 = vrot.lane.b32.xlu0 %v18537_v53, %s10393_s30  ;;  %v5505_v20 = vsel %vm18539_vm14, %v18538_v43, %v9866_v37  ;;  %v9076_v30 = vpack.c.bf16 %v5741_v36, %v5740_v35  ;;  %v5523_v43 = vsel %vm5511_vm11, %v10025_v27, %v10030_v13  ;;  %v18544_v35 = vunpack.i.h.bf16 %v14303_v41  ;;  %v5742_v41 = vld [vmem:[%s16997_s7 + $0x2a0] sm:$0xff] }
 0x52b   : > { %6318 = vmatprep.mubr.f32.mxu0 %v5571_v32  ;;  %v5992_v32 = vpop.f32.mrb[69].mxu1  ;;  %v15070_v28 = vpop.permute.xlu0 %10038  ;;  %v5473_v59 = vsel %vm18542_vm13, %v18541_v47, %v10006_v58  ;;  %6479 = vmatmul.mubr.f32.gmra.mrb[142].mxu1 %v5505_v20  ;;  %v18543_v58 = vunpack.i.h.bf16 %v14578_v62  ;;  %v17469_v20 = vunpack.i.l.bf16 %v14639_v33  ;;  %v18546_v31 = vunpack.i.h.bf16 %v14599_v52  ;;  %vm18582_vm13 = vmmov %vm18516_vm0 }
 0x52c   : > { %9072 = vmatprep.subr.bf16.mxu1 %v17889_v24  ;;  %v17479_v37 = vunpack.i.h.bf16 %v15070_v28  ;;  %v17480_v55 = vunpack.i.l.bf16 %v15070_v28  ;;  %6483 = vmatprep.mubr.f32.mxu1 %v5604_v61  ;;  %v5506_v17 = vsel %vm18545_vm3, %v18544_v35, %v9880_v3  ;;  %v18547_v62 = vunpack.i.h.bf16 %v18540_v10  ;;  %v5743_v3 = vld [vmem:[%s16997_s7 + $0x2a8] sm:$0xff] }
 0x52d   : > { %v15080_v22 = vpop.permute.xlu1 %10043  ;;  %v5556_v47 = vsel %vm5511_vm11, %v18543_v58, %v9886_v42  ;;  %9074 = vmatpush1.bf16.msra.mxu1 %v9073_v14  ;;  %v5524_v14 = vsel %vm5511_vm11, %v10026_v23, %v10031_v2  ;;  %v6869_v2 = vld [vmem:[%s16999_s9 + $0x38] sm:$0xff]  ;;  %v6871_v35 = vld [vmem:[%s16999_s9 + $0x48] sm:$0xff]  ;;  %v9920_v21 = vunpack.i.l.bf16 %v14663_v0  ;;  %vm5609_vm12 = vcmask 392192  }
 0x52e   : > { %6319 = vmatmul.mubr.f32.gmra.mrb[116].mxu0 %v5473_v59  ;;  %v5572_v61 = vsel %vm5560_vm1, %v5523_v43, %v17480_v55  ;;  %v5605_v36 = vsel %vm5560_vm1, %v5556_v47, %v18546_v31  ;;  %v5474_v42 = vsel %vm18548_vm6, %v18547_v62, %v10025_v27  ;;  %v15100_v32 = vpop.f32.mrb[70].mxu1  ;;  %v5557_v59 = vsel %vm5511_vm11, %v9895_v63, %v9900_v29  ;;  %v6872_v29 = vld [vmem:[%s16999_s9 + $0x50] sm:$0xff]  ;;  %vm18589_vm6 = vmmov %vm18516_vm0 }
 0x52f   : > { %v10049_v13 = vpop.permute.xlu0 %10048  ;;  %6323 = vmatprep.mubr.f32.mxu0 %v5572_v61  ;;  %6484 = vmatmul.mubr.f32.gmra.mrb[144].mxu1 %v5506_v17  ;;  %v5573_v27 = vsel %vm5560_vm1, %v5524_v14, %v17479_v37  ;;  %v5997_v10 = vpop.f32.mrb[71].mxu1  ;;  %v6868_v43 = vld [vmem:[%s16999_s9 + $0x30] sm:$0xff]  ;;  %v9091_v61 = vpack.c.bf16 %v6872_v29, %v6869_v2  ;;  %v17472_v17 = vunpack.i.h.bf16 %v14639_v33  ;;  %v5606_v31 = vsel %vm5560_vm1, %v5557_v59, %v17469_v20 }
 0x530   : > { %6488 = vmatprep.mubr.f32.mxu1 %v5605_v36  ;;  %v10050_v47 = vunpack.i.l.bf16 %v10049_v13  ;;  %9075 = vmatprep.subr.bf16.mxu1 %v17889_v24  ;;  %v9079_v36 = vpack.c.bf16 %v5743_v3, %v5742_v41  ;;  %v10045_v62 = vunpack.i.l.bf16 %v15080_v22  ;;  %v9093_v59 = vpack.c.bf16 %v6871_v35, %v6868_v43 }
 0x531   : > { %v15121_v58 = vpop.permute.xlu1 %10053  ;;  %9077 = vmatpush1.bf16.msra.mxu1 %v9076_v30  ;;  %v5744_v30 = vld [vmem:[%s16997_s7 + $0x2b0] sm:$0xff]  ;;  %9092 = vmatprep.subr.bf16.mxu0 %v9091_v61  ;;  %v18552_v35 = vunpack.i.h.bf16 %v14360_v39  ;;  %v5607_v39 = vsel %vm5560_vm1, %v14647_v16, %v17472_v17  ;;  %vm18563_vm5 = vcmask 654336   ;;  %v18572_v17 = vld [vmem:[#allocation82_spill] sm:$0xff]  ;;  %v18587_v37 = vunpack.i.l.bf16 %v14799_v25 }
 0x532   : > { %6324 = vmatmul.mubr.f32.gmra.mrb[118].mxu0 %v5474_v42  ;;  %v10051_v42 = vunpack.i.h.bf16 %v10049_v13  ;;  %9078 = vmatprep.subr.bf16.mxu1 %v17889_v24  ;;  %v15139_v29 = vpop.f32.mrb[72].mxu1  ;;  %v5745_v13 = vld [vmem:[%s16997_s7 + $0x2b8] sm:$0xff]  ;;  %v5525_v20 = vsel %vm5511_vm11, %v10045_v62, %v10050_v47  ;;  %vm18570_vm7 = vmmov %vm18563_vm5 }
 0x533   : > { %6328 = vmatprep.mubr.f32.mxu0 %v5573_v27  ;;  %v15132_v14 = vpop.permute.xlu0 %10058  ;;  %v18549_v27 = vld [vmem:[#allocation214_spill] sm:$0xff]  ;;  %6489 = vmatmul.mubr.f32.gmra.mrb[146].mxu1 %v14609_v11  ;;  %v6002_v11 = vpop.f32.mrb[73].mxu1  ;;  %vm18576_vm14 = vmmov %vm18563_vm5 }
 0x534   : > { %v18550_v10 = vunpack.i.l.bf16 %v18549_v27  ;;  %v17477_v41 = vunpack.i.h.bf16 %v15132_v14  ;;  %v17478_v3 = vunpack.i.l.bf16 %v15132_v14  ;;  %6493 = vmatprep.mubr.f32.mxu1 %v5606_v31  ;;  %v9082_v31 = vpack.c.bf16 %v5745_v13, %v5744_v30  ;;  %9094 = vmatpush1.bf16.msra.mxu0 %v9093_v59  ;;  %vm18584_vm3 = vmmov %vm18563_vm5 }
 0x535   : > { %9080 = vmatpush1.bf16.msra.mxu1 %v9079_v36  ;;  %v18554_v47 = vunpack.i.h.bf16 %v18549_v27  ;;  %v5747_v36 = vld [vmem:[%s16997_s7 + $0x2c8] sm:$0xff]  ;;  %v18556_v30 = vunpack.i.l.bf16 %v14651_v19 }
 0x536   : > { %v5475_v2 = vsel %vm18551_vm10, %v18550_v10, %v10026_v23  ;;  %v10046_v23 = vunpack.i.h.bf16 %v15080_v22  ;;  %v15150_v10 = vpop.permute.xlu1 %10063  ;;  %v5574_v43 = vsel %vm5560_vm1, %v5525_v20, %v17478_v3  ;;  %v17471_v22 = vunpack.i.l.bf16 %v14682_v50  ;;  %v15169_v20 = vpop.f32.mrb[74].mxu1  ;;  %9081 = vmatprep.subr.bf16.mxu1 %v17889_v24  ;;  %vm18591_vm10 = vmmov %vm18584_vm3 }
 0x537   : > { %6329 = vmatmul.mubr.f32.gmra.mrb[120].mxu0 %v5475_v2  ;;  %v5508_v2 = vsel %vm18553_vm15, %v18552_v35, %v9895_v63  ;;  %v10069_v11 = vpop.permute.xlu0 %10068  ;;  %v5476_v61 = vsel %vm18555_vm9, %v18554_v47, %v10045_v62  ;;  %v5746_v63 = vld [vmem:[%s16997_s7 + $0x2c0] sm:$0xff]  ;;  %v5559_v13 = vsel %vm5511_vm11, %v18556_v30, %v9920_v21  ;;  %v18557_v47 = vld [vmem:[#allocation220_spill] sm:$0xff]  ;;  %vm18597_vm15 = vmmov %vm18516_vm0 }
 0x538   : > { %6333 = vmatprep.mubr.f32.mxu0 %v5574_v43  ;;  %6494 = vmatmul.mubr.f32.gmra.mrb[148].mxu1 %v5508_v2  ;;  %v5526_v0 = vsel %vm5511_vm11, %v10046_v23, %v10051_v42  ;;  %v6007_v42 = vpop.f32.mrb[75].mxu1  ;;  %v10070_v16 = vunpack.i.l.bf16 %v10069_v11  ;;  %v9085_v59 = vpack.c.bf16 %v5747_v36, %v5746_v63  ;;  %v10065_v43 = vunpack.i.l.bf16 %v15150_v10  ;;  %vm18598_vm9 = vmmov %vm18584_vm3 }
 0x539   : > { %v5575_v62 = vsel %vm5560_vm1, %v5526_v0, %v17477_v41  ;;  %6498 = vmatprep.mubr.f32.mxu1 %v5607_v39  ;;  %9083 = vmatpush1.bf16.msra.mxu1 %v9082_v31  ;;  %v10071_v35 = vunpack.i.h.bf16 %v10069_v11  ;;  %v5608_v31 = vsel %vm5560_vm1, %v5559_v13, %v17471_v22  ;;  %v10066_v63 = vunpack.i.h.bf16 %v15150_v10  ;;  %v18560_v42 = vld [vmem:[#allocation2_spill] sm:$0xff] }
 0x53a   : > { %v15180_v27 = vpop.permute.xlu1 %10073  ;;  %v15196_v39 = vpop.f32.mrb[76].mxu1  ;;  %9084 = vmatprep.subr.bf16.mxu1 %v17889_v24  ;;  %v9935_v36 = vunpack.i.l.bf16 %v14723_v6  ;;  %v18559_v24 = vld [vmem:[#allocation77_spill] sm:$0xff]  ;;  %v18586_v41 = vld [vmem:[#allocation14_spill] sm:$0xff] }
 0x53b   : > { %6334 = vmatmul.mubr.f32.gmra.mrb[122].mxu0 %v5476_v61  ;;  %v15187_v2 = vpop.permute.xlu0 %10078  ;;  %v18558_v61 = vunpack.i.l.bf16 %v18557_v47  ;;  %v6012_v11 = vpop.f32.mrb[77].mxu1  ;;  %v4082_v30 = vmul.f32 %v18560_v42, %v18559_v24  ;;  %v5528_v10 = vsel %vm5511_vm11, %v10066_v63, %v10071_v35  ;;  %v18565_v35 = vld [vmem:[#allocation78_spill] sm:$0xff] }
 0x53c   : > { %6338 = vmatprep.mubr.f32.mxu0 %v5575_v62  ;;  %6499 = vmatmul.mubr.f32.gmra.mrb[150].mxu1 %v14637_v7  ;;  %v17473_v19 = vunpack.i.h.bf16 %v15187_v2  ;;  %v17474_v21 = vunpack.i.l.bf16 %v15187_v2  ;;  %v5527_v7 = vsel %vm5511_vm11, %v10065_v43, %v10070_v16 }
 0x53d   : > { %v5477_v0 = vsel %vm18516_vm0, %v18558_v61, %v10046_v23  ;;  %6503 = vmatprep.mubr.f32.mxu1 %v5608_v31  ;;  %9086 = vmatpush1.bf16.msra.mxu1 %v9085_v59  ;;  %v18561_v61 = vunpack.i.h.bf16 %v18557_v47 }
 0x53e   : > { %v10084_v23 = vpop.permute.xlu1 %10083  ;;  %v5576_v62 = vsel %vm5560_vm1, %v5527_v7, %v17474_v21  ;;  %v15214_v16 = vpop.f32.mrb[78].mxu1  ;;  %v5577_v59 = vsel %vm5560_vm1, %v5528_v10, %v17473_v19  ;;  %v18566_v7 = vld [vmem:[#allocation3_spill] sm:$0xff] }
 0x53f   : > { %6339 = vmatmul.mubr.f32.gmra.mrb[124].mxu0 %v5477_v0  ;;  %v10089_v13 = vpop.permute.xlu0 %10088  ;;  %v5478_v0 = vsel %vm18562_vm4, %v18561_v61, %v10065_v43  ;;  %v6017_v31 = vpop.f32.mrb[79].mxu1  ;;  %v18564_v43 = vunpack.i.h.bf16 %v14682_v50  ;;  %v10085_v24 = vunpack.i.l.bf16 %v10084_v23  ;;  %vm18604_vm4 = vmmov %vm18584_vm3 }
 0x540   : > { %6343 = vmatprep.mubr.f32.mxu0 %v5576_v62  ;;  %6504 = vmatmul.mubr.f32.gmra.mrb[152].mxu1 %v14677_v46  ;;  %v10090_v47 = vunpack.i.l.bf16 %v10089_v13  ;;  %v4083_v62 = vmul.f32 %v18566_v7, %v18565_v35  ;;  %v10091_v42 = vunpack.i.h.bf16 %v10089_v13  ;;  %v10086_v13 = vunpack.i.h.bf16 %v10084_v23 }
 0x541   : > { %8358 = vmatprep.mubr.msk.f32.mxu1 %vm18563_vm5, %v4082_v30  ;;  %v5610_v46 = vsel %vm5609_vm12, %v18564_v43, %v9935_v36  ;;  %vm18610_vm5 = vmmov %vm18516_vm0 }
 0x542   : > { %v15220_v11 = vpop.permute.xlu1 %10093  ;;  %v15232_v31 = vpop.f32.mrb[80].mxu1  ;;  %v5529_v7 = vsel %vm5511_vm11, %v10085_v24, %v10090_v47  ;;  %v5530_v47 = vsel %vm5511_vm11, %v10086_v13, %v10091_v42  ;;  %v18579_v42 = vld [vmem:[#allocation8_spill] sm:$0xff] }
 0x543   : > { %6344 = vmatmul.mubr.f32.gmra.mrb[126].mxu0 %v5478_v0  ;;  %v15227_v61 = vpop.permute.xlu0 %10098  ;;  %v18567_v0 = vld [vmem:[#allocation226_spill] sm:$0xff]  ;;  %v6022_v43 = vpop.f32.mrb[81].mxu1 }
 0x544   : > { %6348 = vmatprep.mubr.f32.mxu0 %v5577_v59  ;;  %v18568_v10 = vunpack.i.l.bf16 %v18567_v0  ;;  %6574 = vmatmul.mubr.f32.vlgmr.msra.gmra.mrb[154].mxu1 %v5610_v46  ;;  %v9936_v59 = vunpack.i.h.bf16 %v14723_v6  ;;  %v17475_v22 = vunpack.i.h.bf16 %v15227_v61  ;;  %v17476_v36 = vunpack.i.l.bf16 %v15227_v61 }
 0x545   : > { %8359 = vmatprep.mubr.msk.f32.mxu1 %vm18570_vm7, %v4083_v62  ;;  %v18571_v6 = vunpack.i.l.bf16 %v14733_v48  ;;  %v18574_v23 = vunpack.i.h.bf16 %v18567_v0  ;;  %v18577_v0 = vunpack.i.h.bf16 %v14733_v48  ;;  %v6875_v48 = vld [vmem:[%s16999_s9 + $0x68] sm:$0xff]  ;;  %vm18617_vm7 = vmmov %vm18516_vm0 }
 0x546   : > { %v5479_v30 = vsel %vm18569_vm2, %v18568_v10, %v10066_v63  ;;  %v15238_v35 = vpop.permute.xlu1 %10103  ;;  %v9955_v63 = vunpack.i.l.bf16 %v14784_v18  ;;  %v5578_v46 = vsel %vm5560_vm1, %v5529_v7, %v17476_v36  ;;  %v15254_v21 = vpop.f32.mrb[82].mxu1  ;;  %v5579_v7 = vsel %vm5560_vm1, %v5530_v47, %v17475_v22  ;;  %v18580_v47 = vld [vmem:[#allocation235_spill] sm:$0xff]  ;;  %vm18612_vm2 = vmmov %vm18584_vm3 }
 0x547   : > { %6349 = vmatmul.mubr.f32.gmra.mrb[128].mxu0 %v5479_v30  ;;  %v5611_v10 = vsel %vm5609_vm12, %v18571_v6, %v9936_v59  ;;  %v18573_v30 = vld [vmem:[#allocation7_spill] sm:$0xff]  ;;  %v10109_v62 = vpop.permute.xlu0 %10108  ;;  %v5480_v43 = vsel %vm18575_vm8, %v18574_v23, %v10085_v24  ;;  %v6027_v59 = vpop.f32.mrb[83].mxu1  ;;  %v18581_v22 = vunpack.i.l.bf16 %v18580_v47  ;;  %vm18620_vm8 = vmmov %vm18612_vm2 }
 0x548   : > { %v4084_v19 = vmul.f32 %v18573_v30, %v18572_v17  ;;  %6353 = vmatprep.mubr.f32.mxu0 %v5578_v46  ;;  %6579 = vmatmul.mubr.f32.gmra.mrb[156].mxu1 %v5611_v10  ;;  %v10110_v46 = vunpack.i.l.bf16 %v10109_v62  ;;  %v5612_v24 = vsel %vm5609_vm12, %v18577_v0, %v9955_v63  ;;  %v18578_v6 = vld [vmem:[#allocation83_spill] sm:$0xff]  ;;  %v10105_v30 = vunpack.i.l.bf16 %v15238_v35  ;;  %v6878_v63 = vld [vmem:[%s16999_s9 + $0x80] sm:$0xff] }
 0x549   : > { %v4085_v10 = vmul.f32 %v18579_v42, %v18578_v6  ;;  %v10111_v23 = vunpack.i.h.bf16 %v10109_v62  ;;  %v10106_v6 = vunpack.i.h.bf16 %v15238_v35  ;;  %v18585_v36 = vld [vmem:[#allocation87_spill] sm:$0xff]  ;;  %v9095_v3 = vpack.c.bf16 %v6878_v63, %v6875_v48 }
 0x54a   : > { %8360 = vmatprep.mubr.msk.f32.mxu1 %vm18576_vm14, %v4084_v19  ;;  %v15260_v17 = vpop.permute.xlu1 %10113  ;;  %v5481_v19 = vsel %vm18582_vm13, %v18581_v22, %v10086_v13  ;;  %v15273_v59 = vpop.f32.mrb[84].mxu1  ;;  %v6874_v13 = vld [vmem:[%s16999_s9 + $0x60] sm:$0xff]  ;;  %vm18626_vm14 = vmmov %vm18516_vm0 }
 0x54b   : > { %6354 = vmatmul.mubr.f32.gmra.mrb[130].mxu0 %v5480_v43  ;;  %v15268_v43 = vpop.permute.xlu0 %10118  ;;  %18583 = vst [vmem:[#allocation85_spill] sm:$0xff] %v15273_v59  ;;  %v6032_v22 = vpop.f32.mrb[85].mxu1  ;;  %v18588_v59 = vunpack.i.h.bf16 %v18580_v47  ;;  %9096 = vmatprep.subr.bf16.mxu0 %v9095_v3  ;;  %v18594_v47 = vld [vmem:[#allocation15_spill] sm:$0xff]  ;;  %vm18628_vm13 = vmmov %vm18612_vm2 }
 0x54c   : > { %6358 = vmatprep.mubr.f32.mxu0 %v5579_v7  ;;  %6584 = vmatmul.mubr.f32.gmra.mrb[158].mxu1 %v5612_v24  ;;  %v9956_v7 = vunpack.i.h.bf16 %v14784_v18  ;;  %v17483_v0 = vunpack.i.l.bf16 %v15268_v43  ;;  %v6877_v24 = vld [vmem:[%s16999_s9 + $0x78] sm:$0xff]  ;;  %v5531_v18 = vsel %vm5511_vm11, %v10105_v30, %v10110_v46  ;;  %v18590_v48 = vunpack.i.h.bf16 %v15268_v43 }
 0x54d   : > { %8361 = vmatprep.mubr.msk.f32.mxu1 %vm18584_vm3, %v4085_v10  ;;  %v9975_v10 = vunpack.i.l.bf16 %v14845_v26  ;;  %v9097_v62 = vpack.c.bf16 %v6877_v24, %v6874_v13  ;;  %v5482_v46 = vsel %vm18589_vm6, %v18588_v59, %v10105_v30  ;;  %v18592_v30 = vunpack.i.h.bf16 %v14799_v25  ;;  %vm18633_vm3 = vmmov %vm18516_vm0 }
 0x54e   : > { %v15292_v42 = vpop.permute.xlu1 %10123  ;;  %v5580_v22 = vsel %vm5560_vm1, %v5531_v18, %v17483_v0  ;;  %v5613_v55 = vsel %vm5609_vm12, %v18587_v37, %v9956_v7  ;;  %v9976_v25 = vunpack.i.h.bf16 %v14845_v26  ;;  %v18599_v26 = vunpack.i.l.bf16 %v14865_v9  ;;  %vm18636_vm6 = vmmov %vm18612_vm2 }
 0x54f   : > { %6359 = vmatmul.mubr.f32.gmra.mrb[132].mxu0 %v5481_v19  ;;  %v4086_v19 = vmul.f32 %v18586_v41, %v18585_v36  ;;  %v10129_v35 = vpop.permute.xlu0 %10128  ;;  %v5532_v41 = vsel %vm5511_vm11, %v10106_v6, %v10111_v23  ;;  %v15308_v36 = vpop.f32.mrb[86].mxu1  ;;  %v18593_v23 = vld [vmem:[#allocation89_spill] sm:$0xff]  ;;  %v10125_v24 = vunpack.i.l.bf16 %v15292_v42 }
 0x550   : > { %6363 = vmatprep.mubr.f32.mxu0 %v5580_v22  ;;  %6589 = vmatmul.mubr.f32.gmra.mrb[160].mxu1 %v5613_v55  ;;  %v5581_v63 = vsel %vm5560_vm1, %v5532_v41, %v18590_v48  ;;  %v6037_v37 = vpop.f32.mrb[87].mxu1  ;;  %v10130_v13 = vunpack.i.l.bf16 %v10129_v35  ;;  %v5614_v55 = vsel %vm5609_vm12, %v18592_v30, %v9975_v10  ;;  %v4087_v59 = vmul.f32 %v18594_v47, %v18593_v23  ;;  %v18600_v23 = vld [vmem:[#allocation92_spill] sm:$0xff] }
 0x551   : > { %8362 = vmatprep.mubr.msk.f32.mxu1 %vm18591_vm10, %v4086_v19  ;;  %9098 = vmatpush1.bf16.msra.mxu0 %v9097_v62  ;;  %v10131_v18 = vunpack.i.h.bf16 %v10129_v35  ;;  %v18595_v19 = vld [vmem:[#allocation239_spill] sm:$0xff]  ;;  %v10126_v35 = vunpack.i.h.bf16 %v15292_v42  ;;  %v18601_v47 = vld [vmem:[#allocation16_spill] sm:$0xff]  ;;  %vm18642_vm10 = vmmov %vm18516_vm0 }
 0x552   : > { %v15314_v7 = vpop.permute.xlu1 %10133  ;;  %v5533_v37 = vsel %vm5511_vm11, %v10125_v24, %v10130_v13  ;;  %v18602_v42 = vunpack.i.h.bf16 %v18595_v19 }
 0x553   : > { %6364 = vmatmul.mubr.f32.gmra.mrb[134].mxu0 %v5482_v46  ;;  %v15322_v22 = vpop.permute.xlu0 %10183  ;;  %v18596_v46 = vunpack.i.l.bf16 %v18595_v19  ;;  %v15327_v48 = vpop.f32.mrb[88].mxu1  ;;  %v5534_v13 = vsel %vm5511_vm11, %v10126_v35, %v10131_v18  ;;  %v18605_v19 = vunpack.i.h.bf16 %v14865_v9  ;;  %v18607_v18 = vld [vmem:[#allocation17_spill] sm:$0xff] }
 0x554   : > { %6368 = vmatprep.mubr.f32.mxu0 %v5581_v63  ;;  %6594 = vmatmul.mubr.f32.gmra.mrb[162].mxu1 %v5614_v55  ;;  %v17482_v3 = vunpack.i.h.bf16 %v15322_v22  ;;  %v17481_v10 = vunpack.i.l.bf16 %v15322_v22  ;;  %v6042_v62 = vpop.f32.mrb[89].mxu1  ;;  %v5615_v55 = vsel %vm5609_vm12, %v18599_v26, %v9976_v25 }
 0x555   : > { %v5483_v41 = vsel %vm18597_vm15, %v18596_v46, %v10106_v6  ;;  %8363 = vmatprep.mubr.msk.f32.mxu1 %vm18598_vm9, %v4087_v59  ;;  %v9995_v6 = vunpack.i.l.bf16 %v14912_v51  ;;  %v4088_v46 = vmul.f32 %v18601_v47, %v18600_v23  ;;  %vm18643_vm15 = vmmov %vm18612_vm2 }
 0x556   : > { %v10139_v63 = vpop.permute.xlu1 %10138  ;;  %v5582_v30 = vsel %vm5560_vm1, %v5533_v37, %v17481_v10  ;;  %v5583_v37 = vsel %vm5560_vm1, %v5534_v13, %v17482_v3  ;;  %v18608_v10 = vld [vmem:[#allocation71_spill] sm:$0xff]  ;;  %v18614_v3 = vld [vmem:[#allocation96_spill] sm:$0xff]  ;;  %vm18648_vm9 = vmmov %vm18516_vm0 }
 0x557   : > { %6369 = vmatmul.mubr.f32.gmra.mrb[136].mxu0 %v5483_v41  ;;  %v10189_v59 = vpop.permute.xlu0 %10188  ;;  %v5484_v41 = vsel %vm18516_vm0, %v18602_v42, %v10125_v24  ;;  %v15348_v62 = vpop.f32.mrb[90].mxu1  ;;  %v5616_v24 = vsel %vm5609_vm12, %v18605_v19, %v9995_v6  ;;  %v10140_v47 = vunpack.i.l.bf16 %v10139_v63  ;;  %v18609_v13 = vunpack.i.l.bf16 %v18608_v10  ;;  %vm18650_vm0 = vmmov %vm18612_vm2 }
 0x558   : > { %6373 = vmatprep.mubr.f32.mxu0 %v5582_v30  ;;  %6599 = vmatmul.mubr.f32.gmra.mrb[164].mxu1 %v5615_v55  ;;  %18603 = vst [vmem:[#allocation224_spill] sm:$0xff] %v15348_v62  ;;  %v6047_v25 = vpop.f32.mrb[91].mxu1  ;;  %v10190_v30 = vunpack.i.l.bf16 %v10189_v59  ;;  %v18606_v55 = vld [vmem:[#allocation95_spill] sm:$0xff]  ;;  %v10191_v42 = vunpack.i.h.bf16 %v10189_v59  ;;  %v10141_v59 = vunpack.i.h.bf16 %v10139_v63  ;;  %v18616_v63 = vunpack.i.h.bf16 %v18608_v10 }
 0x559   : > { %8364 = vmatprep.mubr.msk.f32.mxu1 %vm18604_vm4, %v4088_v46  ;;  %v4089_v23 = vmul.f32 %v18607_v18, %v18606_v55  ;;  %v5485_v46 = vsel %vm18610_vm5, %v18609_v13, %v10126_v35  ;;  %v10015_v35 = vunpack.i.l.bf16 %v14984_v45  ;;  %v18621_v10 = vunpack.i.h.bf16 %v14938_v12  ;;  %vm18656_vm4 = vmmov %vm18633_vm3 }
 0x55a   : > { %v15354_v26 = vpop.permute.xlu1 %10143  ;;  %v5535_v18 = vsel %vm5511_vm11, %v10140_v47, %v10190_v30  ;;  %v5536_v30 = vsel %vm5511_vm11, %v10141_v59, %v10191_v42  ;;  %v18623_v42 = vld [vmem:[#allocation22_spill] sm:$0xff]  ;;  %vm18658_vm5 = vmmov %vm18650_vm0 }
 0x55b   : > { %6374 = vmatmul.mubr.f32.gmra.mrb[138].mxu0 %v5484_v41  ;;  %v15361_v41 = vpop.permute.xlu0 %10193  ;;  %v15366_v25 = vpop.f32.mrb[92].mxu1 }
 0x55c   : > { %6378 = vmatprep.mubr.f32.mxu0 %v5583_v37  ;;  %6604 = vmatmul.mubr.f32.gmra.mrb[166].mxu1 %v5616_v24  ;;  %18611 = vst [vmem:[#allocation86_spill] sm:$0xff] %v15366_v25  ;;  %v9996_v37 = vunpack.i.h.bf16 %v14912_v51  ;;  %v17484_v6 = vunpack.i.l.bf16 %v15361_v41  ;;  %v6052_v19 = vpop.f32.mrb[93].mxu1  ;;  %v18613_v51 = vunpack.i.l.bf16 %v14938_v12  ;;  %v18631_v12 = vld [vmem:[#allocation23_spill] sm:$0xff]  ;;  %v18640_v25 = vld [vmem:[#allocation18_spill] sm:$0xff] }
 0x55d   : > { %8365 = vmatprep.mubr.msk.f32.mxu1 %vm18612_vm2, %v4089_v23  ;;  %v5486_v19 = vsel %vm18617_vm7, %v18616_v63, %v10140_v47  ;;  %v5618_v47 = vsel %vm5609_vm12, %v18621_v10, %v10015_v35  ;;  %v18641_v62 = vunpack.i.l.bf16 %v18640_v25  ;;  %vm18663_vm2 = vmmov %vm18633_vm3 }
 0x55e   : > { %v15372_v55 = vpop.permute.xlu1 %10148  ;;  %v5584_v24 = vsel %vm5560_vm1, %v5535_v18, %v17484_v6  ;;  %v5617_v13 = vsel %vm5609_vm12, %v18613_v51, %v9996_v37  ;;  %v18619_v18 = vunpack.i.h.bf16 %v15361_v41  ;;  %v18622_v51 = vld [vmem:[#allocation98_spill] sm:$0xff]  ;;  %vm18666_vm7 = vmmov %vm18650_vm0 }
 0x55f   : > { %6379 = vmatmul.mubr.f32.gmra.mrb[140].mxu0 %v5485_v46  ;;  %v18615_v46 = vld [vmem:[#allocation21_spill] sm:$0xff]  ;;  %v10199_v23 = vpop.permute.xlu0 %10198  ;;  %v15388_v9 = vpop.f32.mrb[94].mxu1 }
 0x560   : > { %v4090_v0 = vmul.f32 %v18615_v46, %v18614_v3  ;;  %6383 = vmatprep.mubr.f32.mxu0 %v5584_v24  ;;  %6609 = vmatmul.mubr.f32.gmra.mrb[168].mxu1 %v5617_v13  ;;  %18618 = vst [vmem:[#allocation68_spill] sm:$0xff] %v15388_v9  ;;  %v5585_v6 = vsel %vm5560_vm1, %v5536_v30, %v18619_v18  ;;  %v6057_v37 = vpop.f32.mrb[95].mxu1  ;;  %v10200_v24 = vunpack.i.l.bf16 %v10199_v23  ;;  %v10150_v46 = vunpack.i.l.bf16 %v15372_v55  ;;  %v18624_v30 = vld [vmem:[#allocation72_spill] sm:$0xff] }
 0x561   : > { %v4091_v13 = vmul.f32 %v18623_v42, %v18622_v51  ;;  %v10201_v63 = vunpack.i.h.bf16 %v10199_v23  ;;  %v18625_v18 = vunpack.i.l.bf16 %v18624_v30  ;;  %v10151_v23 = vunpack.i.h.bf16 %v15372_v55 }
 0x562   : > { %8366 = vmatprep.mubr.msk.f32.mxu1 %vm18620_vm8, %v4090_v0  ;;  %v15394_v3 = vpop.permute.xlu1 %10153  ;;  %v5537_v42 = vsel %vm5511_vm11, %v10150_v46, %v10200_v24  ;;  %v18632_v55 = vunpack.i.h.bf16 %v18624_v30  ;;  %vm18672_vm8 = vmmov %vm18663_vm2 }
 0x563   : > { %6384 = vmatmul.mubr.f32.gmra.mrb[142].mxu0 %v5486_v19  ;;  %v15402_v19 = vpop.permute.xlu0 %10203  ;;  %v5487_v0 = vsel %vm18626_vm14, %v18625_v18, %v10141_v59  ;;  %v15407_v37 = vpop.f32.mrb[96].mxu1  ;;  %v10035_v59 = vunpack.i.l.bf16 %v15048_v40  ;;  %v5538_v24 = vsel %vm5511_vm11, %v10151_v23, %v10201_v63  ;;  %v6880_v63 = vld [vmem:[%s16999_s9 + $0x90] sm:$0xff]  ;;  %vm18673_vm14 = vmmov %vm18650_vm0 }
 0x564   : > { %6388 = vmatprep.mubr.f32.mxu0 %v5585_v6  ;;  %6614 = vmatmul.mubr.f32.gmra.mrb[170].mxu1 %v5618_v47  ;;  %18627 = vst [vmem:[#allocation216_spill] sm:$0xff] %v15407_v37  ;;  %v10016_v6 = vunpack.i.h.bf16 %v14984_v45  ;;  %v17485_v35 = vunpack.i.l.bf16 %v15402_v19  ;;  %v6062_v10 = vpop.f32.mrb[97].mxu1  ;;  %v18629_v47 = vunpack.i.l.bf16 %v14996_v49  ;;  %v5488_v37 = vsel %vm18633_vm3, %v18632_v55, %v10150_v46  ;;  %v6884_v46 = vld [vmem:[%s16999_s9 + $0xb0] sm:$0xff]  ;;  %v18639_v55 = vld [vmem:[#allocation25_spill] sm:$0xff]  ;;  %vm18679_vm3 = vmmov %vm18650_vm0 }
 0x565   : > { %8367 = vmatprep.mubr.msk.f32.mxu1 %vm18628_vm13, %v4091_v13  ;;  %vm18678_vm13 = vmmov %vm18663_vm2 }
 0x566   : > { %v15414_v51 = vpop.permute.xlu1 %10158  ;;  %v5586_v45 = vsel %vm5560_vm1, %v5537_v42, %v17485_v35  ;;  %v5619_v18 = vsel %vm5609_vm12, %v18629_v47, %v10016_v6  ;;  %v18635_v42 = vunpack.i.h.bf16 %v15402_v19  ;;  %v6883_v47 = vld [vmem:[%s16999_s9 + $0xa8] sm:$0xff] }
 0x567   : > { %6389 = vmatmul.mubr.f32.gmra.mrb[144].mxu0 %v5487_v0  ;;  %v18630_v0 = vld [vmem:[#allocation102_spill] sm:$0xff]  ;;  %v10209_v10 = vpop.permute.xlu0 %10208  ;;  %v15430_v9 = vpop.f32.mrb[98].mxu1 }
 0x568   : > { %v4092_v13 = vmul.f32 %v18631_v12, %v18630_v0  ;;  %6393 = vmatprep.mubr.f32.mxu0 %v5586_v45  ;;  %6619 = vmatmul.mubr.f32.gmra.mrb[172].mxu1 %v5619_v18  ;;  %18634 = vst [vmem:[#allocation217_spill] sm:$0xff] %v15430_v9  ;;  %v5587_v35 = vsel %vm5560_vm1, %v5538_v24, %v18635_v42  ;;  %v6067_v6 = vpop.f32.mrb[99].mxu1  ;;  %v6881_v12 = vld [vmem:[%s16999_s9 + $0x98] sm:$0xff]  ;;  %v18637_v18 = vunpack.i.h.bf16 %v14996_v49  ;;  %v10160_v42 = vunpack.i.l.bf16 %v15414_v51 }
 0x569   : > { %v9099_v45 = vpack.c.bf16 %v6884_v46, %v6881_v12  ;;  %v10211_v6 = vunpack.i.h.bf16 %v10209_v10  ;;  %v9101_v46 = vpack.c.bf16 %v6883_v47, %v6880_v63  ;;  %v10036_v49 = vunpack.i.h.bf16 %v15048_v40  ;;  %v18645_v47 = vld [vmem:[#allocation105_spill] sm:$0xff] }
 0x56a   : > { %8368 = vmatprep.mubr.msk.f32.mxu1 %vm18636_vm6, %v4092_v13  ;;  %v15445_v30 = vpop.permute.xlu1 %10163  ;;  %v5620_v0 = vsel %vm5609_vm12, %v18637_v18, %v10035_v59  ;;  %v18638_v13 = vld [vmem:[#allocation104_spill] sm:$0xff]  ;;  %v18644_v63 = vunpack.i.l.bf16 %v15070_v28  ;;  %vm18689_vm6 = vmmov %vm18650_vm0 }
 0x56b   : > { %6394 = vmatmul.mubr.f32.gmra.mrb[146].mxu0 %v5488_v37  ;;  %v10210_v37 = vunpack.i.l.bf16 %v10209_v10  ;;  %v4093_v24 = vmul.f32 %v18639_v55, %v18638_v13  ;;  %v15456_v9 = vpop.permute.xlu0 %10213  ;;  %v15461_v12 = vpop.f32.mrb[100].mxu1  ;;  %9100 = vmatprep.subr.bf16.mxu0 %v9099_v45  ;;  %v10161_v13 = vunpack.i.h.bf16 %v15414_v51  ;;  %v18647_v51 = vunpack.i.h.bf16 %v18640_v25 }
 0x56c   : > { %6398 = vmatprep.mubr.f32.mxu0 %v5587_v35  ;;  %v5489_v35 = vsel %vm18642_vm10, %v18641_v62, %v10151_v23  ;;  %6624 = vmatmul.mubr.f32.gmra.mrb[174].mxu1 %v5620_v0  ;;  %v17487_v59 = vunpack.i.h.bf16 %v15456_v9  ;;  %v17486_v18 = vunpack.i.l.bf16 %v15456_v9  ;;  %v6072_v10 = vpop.f32.mrb[101].mxu1  ;;  %v10055_v23 = vunpack.i.l.bf16 %v15121_v58  ;;  %v18646_v0 = vld [vmem:[#allocation29_spill] sm:$0xff]  ;;  %vm18693_vm10 = vmmov %vm18650_vm0 }
 0x56d   : > { %8369 = vmatprep.mubr.msk.f32.mxu1 %vm18643_vm15, %v4093_v24  ;;  %v5539_v62 = vsel %vm5511_vm11, %v10160_v42, %v10210_v37  ;;  %9102 = vmatpush1.bf16.msra.mxu0 %v9101_v46  ;;  %v5621_v45 = vsel %vm5609_vm12, %v18644_v63, %v10036_v49  ;;  %v4094_v24 = vmul.f32 %v18646_v0, %v18645_v47  ;;  %v18651_v25 = vunpack.i.h.bf16 %v15070_v28  ;;  %v18661_v28 = vld [vmem:[#allocation31_spill] sm:$0xff]  ;;  %vm18697_vm15 = vmmov %vm18650_vm0 }
 0x56e   : > { %v10169_v55 = vpop.permute.xlu1 %10168  ;;  %v5588_v40 = vsel %vm5560_vm1, %v5539_v62, %v17486_v18  ;;  %v5490_v37 = vsel %vm18648_vm9, %v18647_v51, %v10160_v42  ;;  %v5540_v46 = vsel %vm5511_vm11, %v10161_v13, %v10211_v6  ;;  %v18653_v6 = vld [vmem:[#allocation30_spill] sm:$0xff]  ;;  %v18654_v18 = vld [vmem:[#allocation80_spill] sm:$0xff]  ;;  %vm18701_vm9 = vmmov %vm18650_vm0 }
 0x56f   : > { %6399 = vmatmul.mubr.f32.gmra.mrb[148].mxu0 %v5489_v35  ;;  %v10219_v35 = vpop.permute.xlu0 %10218  ;;  %v15482_v10 = vpop.f32.mrb[102].mxu1  ;;  %v5589_v62 = vsel %vm5560_vm1, %v5540_v46, %v17487_v59  ;;  %v5622_v42 = vsel %vm5609_vm12, %v18651_v25, %v10055_v23  ;;  %v10170_v0 = vunpack.i.l.bf16 %v10169_v55  ;;  %v18655_v46 = vunpack.i.l.bf16 %v18654_v18 }
 0x570   : > { %6403 = vmatprep.mubr.f32.mxu0 %v5588_v40  ;;  %6629 = vmatmul.mubr.f32.gmra.mrb[176].mxu1 %v5621_v45  ;;  %18649 = vst [vmem:[#allocation91_spill] sm:$0xff] %v15482_v10  ;;  %v6077_v49 = vpop.f32.mrb[103].mxu1  ;;  %v10220_v40 = vunpack.i.l.bf16 %v10219_v35  ;;  %v18652_v45 = vld [vmem:[#allocation109_spill] sm:$0xff]  ;;  %v10221_v51 = vunpack.i.h.bf16 %v10219_v35  ;;  %v10171_v35 = vunpack.i.h.bf16 %v10169_v55  ;;  %v10075_v59 = vunpack.i.l.bf16 %v15180_v27 }
 0x571   : > { %8370 = vmatprep.mubr.msk.f32.mxu1 %vm18650_vm0, %v4094_v24  ;;  %v4095_v47 = vmul.f32 %v18653_v6, %v18652_v45  ;;  %v5491_v24 = vsel %vm18656_vm4, %v18655_v46, %v10161_v13  ;;  %v18660_v46 = vld [vmem:[#allocation112_spill] sm:$0xff]  ;;  %v18662_v55 = vunpack.i.h.bf16 %v18654_v18  ;;  %v18667_v18 = vunpack.i.h.bf16 %v15132_v14  ;;  %vm18708_vm4 = vmmov %vm18650_vm0 }
 0x572   : > { %v15488_v63 = vpop.permute.xlu1 %10173  ;;  %v5541_v6 = vsel %vm5511_vm11, %v10170_v0, %v10220_v40  ;;  %v5542_v40 = vsel %vm5511_vm11, %v10171_v35, %v10221_v51  ;;  %v18668_v51 = vld [vmem:[#allocation114_spill] sm:$0xff] }
 0x573   : > { %6404 = vmatmul.mubr.f32.gmra.mrb[150].mxu0 %v5490_v37  ;;  %v15495_v37 = vpop.permute.xlu0 %10223  ;;  %v15500_v49 = vpop.f32.mrb[104].mxu1 }
 0x574   : > { %6408 = vmatprep.mubr.f32.mxu0 %v5589_v62  ;;  %6634 = vmatmul.mubr.f32.gmra.mrb[178].mxu1 %v5622_v42  ;;  %18657 = vst [vmem:[#allocation225_spill] sm:$0xff] %v15500_v49  ;;  %v10056_v62 = vunpack.i.h.bf16 %v15121_v58  ;;  %v17488_v23 = vunpack.i.l.bf16 %v15495_v37  ;;  %v6082_v25 = vpop.f32.mrb[105].mxu1  ;;  %v18659_v58 = vunpack.i.l.bf16 %v15132_v14 }
 0x575   : > { %8371 = vmatprep.mubr.msk.f32.mxu1 %vm18658_vm5, %v4095_v47  ;;  %v5492_v47 = vsel %vm18663_vm2, %v18662_v55, %v10170_v0  ;;  %v5624_v0 = vsel %vm5609_vm12, %v18667_v18, %v10075_v59  ;;  %vm18712_vm5 = vmmov %vm18650_vm0 }
 0x576   : > { %v10179_v45 = vpop.permute.xlu1 %10178  ;;  %v5590_v13 = vsel %vm5560_vm1, %v5541_v6, %v17488_v23  ;;  %v5623_v42 = vsel %vm5609_vm12, %v18659_v58, %v10056_v62  ;;  %v18665_v23 = vunpack.i.h.bf16 %v15495_v37  ;;  %v18669_v58 = vld [vmem:[#allocation32_spill] sm:$0xff] }
 0x577   : > { %6409 = vmatmul.mubr.f32.gmra.mrb[152].mxu0 %v5491_v24  ;;  %v4096_v24 = vmul.f32 %v18661_v28, %v18660_v46  ;;  %v10229_v49 = vpop.permute.xlu0 %10228  ;;  %v15520_v25 = vpop.f32.mrb[106].mxu1  ;;  %v10180_v10 = vunpack.i.l.bf16 %v10179_v45 }
 0x578   : > { %6413 = vmatprep.mubr.f32.mxu0 %v5590_v13  ;;  %6639 = vmatmul.mubr.f32.gmra.mrb[180].mxu1 %v5623_v42  ;;  %18664 = vst [vmem:[#allocation93_spill] sm:$0xff] %v15520_v25  ;;  %v10230_v6 = vunpack.i.l.bf16 %v10229_v49  ;;  %v5591_v62 = vsel %vm5560_vm1, %v5542_v40, %v18665_v23  ;;  %v6087_v28 = vpop.f32.mrb[107].mxu1  ;;  %v4097_v42 = vmul.f32 %v18669_v58, %v18668_v51  ;;  %v10231_v46 = vunpack.i.h.bf16 %v10229_v49 }
 0x579   : > { %8372 = vmatprep.mubr.msk.f32.mxu1 %vm18666_vm7, %v4096_v24  ;;  %v10076_v40 = vunpack.i.h.bf16 %v15180_v27  ;;  %v10095_v49 = vunpack.i.l.bf16 %v15220_v11  ;;  %v18676_v28 = vld [vmem:[#allocation37_spill] sm:$0xff]  ;;  %vm18720_vm7 = vmmov %vm18650_vm0 }
 0x57a   : > { %v5543_v13 = vsel %vm5511_vm11, %v10180_v10, %v10230_v6  ;;  %v10181_v6 = vunpack.i.h.bf16 %v10179_v45 }
 0x57b   : > { %6414 = vmatmul.mubr.f32.gmra.mrb[154].mxu0 %v5492_v47  ;;  %v15532_v55 = vpop.permute.xlu0 %5099  ;;  %v18670_v47 = vld [vmem:[#allocation81_spill] sm:$0xff]  ;;  %v15537_v24 = vpop.f32.mrb[108].mxu1 }
 0x57c   : > { %6418 = vmatprep.mubr.f32.mxu0 %v5591_v62  ;;  %v18671_v25 = vunpack.i.l.bf16 %v18670_v47  ;;  %6644 = vmatmul.mubr.f32.gmra.mrb[182].mxu1 %v5624_v0  ;;  %v5592_v14 = vsel %vm5560_vm1, %v5543_v13, %v15532_v55  ;;  %v6092_v59 = vpop.f32.mrb[109].mxu1  ;;  %v18674_v62 = vunpack.i.l.bf16 %v15187_v2  ;;  %v18677_v27 = vunpack.i.h.bf16 %v18670_v47 }
 0x57d   : > { %8373 = vmatprep.mubr.msk.f32.mxu1 %vm18673_vm14, %v4097_v42  ;;  %v5544_v51 = vsel %vm5511_vm11, %v10181_v6, %v10231_v46  ;;  %v6886_v46 = vld [vmem:[%s16999_s9 + $0xc0] sm:$0xff]  ;;  %vm18684_vm11 = vmmov %vm18663_vm2 }
 0x57e   : > { %v5493_v23 = vsel %vm18672_vm8, %v18671_v25, %v10171_v35  ;;  %v5625_v35 = vsel %vm5609_vm12, %v18674_v62, %v10076_v40  ;;  %v18675_v25 = vld [vmem:[#allocation117_spill] sm:$0xff]  ;;  %v5494_v13 = vsel %vm18678_vm13, %v18677_v27, %v10180_v10  ;;  %v6890_v10 = vld [vmem:[%s16999_s9 + $0xe0] sm:$0xff]  ;;  %vm18716_vm2 = vmmov %vm18650_vm0 }
 0x57f   : > { %6419 = vmatmul.mubr.f32.gmra.mrb[156].mxu0 %v5493_v23  ;;  %v4098_v18 = vmul.f32 %v18676_v28, %v18675_v25  ;;  %v15549_v0 = vpop.permute.xlu0 %5101  ;;  %v15555_v45 = vpop.f32.mrb[110].mxu1  ;;  %v6887_v23 = vld [vmem:[%s16999_s9 + $0xc8] sm:$0xff]  ;;  %v6889_v40 = vld [vmem:[%s16999_s9 + $0xd8] sm:$0xff]  ;;  %v18681_v62 = vld [vmem:[#allocation118_spill] sm:$0xff] }
 0x580   : > { %6423 = vmatprep.mubr.f32.mxu0 %v5592_v14  ;;  %6649 = vmatmul.mubr.f32.gmra.mrb[184].mxu1 %v5625_v35  ;;  %v5593_v58 = vsel %vm5560_vm1, %v5544_v51, %v15549_v0  ;;  %v6097_v42 = vpop.f32.mrb[111].mxu1  ;;  %v9103_v47 = vpack.c.bf16 %v6890_v10, %v6887_v23  ;;  %v18680_v14 = vunpack.i.h.bf16 %v15187_v2  ;;  %v18682_v35 = vld [vmem:[#allocation38_spill] sm:$0xff]  ;;  %v9105_v28 = vpack.c.bf16 %v6889_v40, %v6886_v46  ;;  %vm18685_vm1 = vmmov %vm18650_vm0  ;;  %v18691_v40 = vld [vmem:[#allocation123_spill] sm:$0xff] }
 0x581   : > { %8374 = vmatprep.mubr.msk.f32.mxu1 %vm18679_vm3, %v4098_v18  ;;  %v4099_v25 = vmul.f32 %v18682_v35, %v18681_v62  ;;  %v18683_v18 = vunpack.i.l.bf16 %v14038_v38  ;;  %v10096_v51 = vunpack.i.h.bf16 %v15220_v11  ;;  %v18688_v42 = vld [vmem:[#allocation39_spill] sm:$0xff]  ;;  %v18690_v46 = vunpack.i.h.bf16 %v15227_v61  ;;  %vm18724_vm8 = vmmov %vm18650_vm0 }
 0x582   : > { %v5626_v59 = vsel %vm5609_vm12, %v18680_v14, %v10095_v49  ;;  %9104 = vmatprep.subr.bf16.mxu0 %v9103_v47  ;;  %v10115_v49 = vunpack.i.l.bf16 %v15260_v17  ;;  %v18692_v14 = vld [vmem:[#allocation40_spill] sm:$0xff]  ;;  %v10116_v35 = vunpack.i.h.bf16 %v15260_v17  ;;  %v18698_v17 = vunpack.i.h.bf16 %v15268_v43  ;;  %vm18728_vm14 = vmmov %vm18650_vm0 }
 0x583   : > { %6424 = vmatmul.mubr.f32.gmra.mrb[158].mxu0 %v5494_v13  ;;  %v5495_v27 = vsel %vm18684_vm11, %v18683_v18, %v10181_v6  ;;  %v15580_v13 = vpop.f32.mrb[112].mxu1  ;;  %v18687_v6 = vld [vmem:[#allocation121_spill] sm:$0xff]  ;;  %v18694_v18 = vunpack.i.l.bf16 %v15268_v43  ;;  %v18703_v43 = vld [vmem:[#allocation134_spill] sm:$0xff]  ;;  %vm18731_vm13 = vmmov %vm18650_vm0 }
 0x584   : > { %6428 = vmatprep.mubr.f32.mxu0 %v5593_v58  ;;  %6654 = vmatmul.mubr.f32.gmra.mrb[186].mxu1 %v5626_v59  ;;  %v6102_v2 = vpop.f32.mrb[113].mxu1  ;;  %v18686_v58 = vunpack.i.l.bf16 %v15227_v61  ;;  %v4100_v23 = vmul.f32 %v18688_v42, %v18687_v6  ;;  %v5628_v47 = vsel %vm5609_vm12, %v18690_v46, %v10115_v49  ;;  %v4101_v59 = vmul.f32 %v18692_v14, %v18691_v40  ;;  %v18695_v61 = vld [vmem:[#allocation130_spill] sm:$0xff]  ;;  %v18699_v6 = vld [vmem:[#allocation131_spill] sm:$0xff]  ;;  %vm18735_vm3 = vmmov %vm18650_vm0 }
 0x585   : > { %8375 = vmatprep.mubr.msk.f32.mxu1 %vm18685_vm1, %v4099_v25  ;;  %9106 = vmatpush1.bf16.msra.mxu0 %v9105_v28  ;;  %v10135_v28 = vunpack.i.l.bf16 %v15314_v7  ;;  %v18700_v42 = vld [vmem:[#allocation46_spill] sm:$0xff]  ;;  %v10136_v46 = vunpack.i.h.bf16 %v15314_v7  ;;  %v10145_v40 = vunpack.i.l.bf16 %v15354_v26  ;;  %v18702_v14 = vunpack.i.l.bf16 %v15322_v22  ;;  %vm18739_vm11 = vmmov %vm18650_vm0 }
 0x586   : > { %v5627_v38 = vsel %vm5609_vm12, %v18686_v58, %v10096_v51  ;;  %v18696_v51 = vld [vmem:[#allocation44_spill] sm:$0xff]  ;;  %v18705_v7 = vunpack.i.h.bf16 %v15322_v22  ;;  %v10155_v22 = vunpack.i.l.bf16 %v15394_v3  ;;  %vm18741_vm1 = vmmov %vm18650_vm0 }
 0x587   : > { %6429 = vmatmul.mubr.f32.gmra.mrb[160].mxu0 %v5495_v27  ;;  %v15591_v10 = vpop.f32.mrb[114].mxu1  ;;  %v5629_v27 = vsel %vm5609_vm12, %v18694_v18, %v10116_v35  ;;  %v4102_v2 = vmul.f32 %v18696_v51, %v18695_v61  ;;  %v18704_v35 = vld [vmem:[#allocation47_spill] sm:$0xff]  ;;  %v18707_v51 = vld [vmem:[#allocation50_spill] sm:$0xff] }
 0x588   : > { %7117 = vmatprep.mubr.f32.mxu0 %v18537_v53  ;;  %6659 = vmatmul.mubr.f32.gmra.mrb[188].mxu1 %v5627_v38  ;;  %v6107_v11 = vpop.f32.mrb[115].mxu1  ;;  %v5630_v38 = vsel %vm5609_vm12, %v18698_v17, %v10135_v28  ;;  %v18706_v61 = vld [vmem:[#allocation135_spill] sm:$0xff]  ;;  %v6864_v17 = vld [vmem:[%s16999_s9 + $0x10] sm:$0xff] }
 0x589   : > { %8376 = vmatprep.mubr.msk.f32.mxu1 %vm18689_vm6, %v4100_v23  ;;  %v4103_v23 = vmul.f32 %v18700_v42, %v18699_v6  ;;  %v18709_v6 = vunpack.i.l.bf16 %v15361_v41  ;;  %vm18744_vm6 = vmmov %vm18650_vm0 }
 0x58b   : > { %v15599_v62 = vpop.f32.mrb[116].mxu1 }
 0x58c   : > { %6664 = vmatmul.mubr.f32.gmra.mrb[190].mxu1 %v5628_v47  ;;  %v6112_v25 = vpop.f32.mrb[117].mxu1 }
 0x58d   : > { %8377 = vmatprep.mubr.msk.f32.mxu1 %vm18693_vm10, %v4101_v59  ;;  %v5631_v59 = vsel %vm5609_vm12, %v18702_v14, %v10136_v46  ;;  %v4104_v25 = vmul.f32 %v18704_v35, %v18703_v43  ;;  %v18711_v46 = vld [vmem:[#allocation56_spill] sm:$0xff]  ;;  %v18715_v43 = vld [vmem:[#allocation57_spill] sm:$0xff]  ;;  %vm18748_vm10 = vmmov %vm18650_vm0 }
 0x58f   : > { %v15609_v49 = vpop.f32.mrb[118].mxu1 }
 0x590   : > { %6669 = vmatmul.mubr.f32.gmra.mrb[192].mxu1 %v5629_v27  ;;  %v6117_v58 = vpop.f32.mrb[119].mxu1  ;;  %v5632_v27 = vsel %vm5609_vm12, %v18705_v7, %v10145_v40  ;;  %v18713_v40 = vunpack.i.h.bf16 %v15361_v41  ;;  %v18717_v7 = vunpack.i.l.bf16 %v15402_v19  ;;  %v18721_v41 = vunpack.i.h.bf16 %v15402_v19 }
 0x591   : > { %8378 = vmatprep.mubr.msk.f32.mxu1 %vm18697_vm15, %v4102_v2  ;;  %v4105_v2 = vmul.f32 %v18707_v51, %v18706_v61  ;;  %v10146_v58 = vunpack.i.h.bf16 %v15354_v26  ;;  %v18718_v61 = vld [vmem:[#allocation59_spill] sm:$0xff]  ;;  %v18719_v51 = vld [vmem:[#allocation58_spill] sm:$0xff]  ;;  %v18729_v19 = vunpack.i.h.bf16 %v15456_v9  ;;  %vm18752_vm15 = vmmov %vm18650_vm0 }
 0x592   : > { %v5634_v14 = vsel %vm5609_vm12, %v18713_v40, %v10155_v22  ;;  %v10166_v22 = vunpack.i.h.bf16 %v15445_v30 }
 0x593   : > { %v15617_v11 = vpop.f32.mrb[120].mxu1  ;;  %v5633_v42 = vsel %vm5609_vm12, %v18709_v6, %v10146_v58  ;;  %v10175_v6 = vunpack.i.l.bf16 %v15488_v63 }
 0x594   : > { %6674 = vmatmul.mubr.f32.gmra.mrb[194].mxu1 %v5630_v38  ;;  %v6122_v47 = vpop.f32.mrb[121].mxu1  ;;  %v6867_v38 = vld [vmem:[%s16999_s9 + $0x28] sm:$0xff] }
 0x595   : > { %8379 = vmatprep.mubr.msk.f32.mxu1 %vm18701_vm9, %v4103_v23  ;;  %v18710_v23 = vld [vmem:[#allocation137_spill] sm:$0xff]  ;;  %v15649_v26 = vpack.c.bf16 %v6867_v38, %v6864_v17  ;;  %v18722_v17 = vld [vmem:[#allocation148_spill] sm:$0xff]  ;;  %vm18756_vm9 = vmmov %vm18650_vm0 }
 0x596   : > { %v4106_v47 = vmul.f32 %v18711_v46, %v18710_v23  ;;  %v18726_v46 = vld [vmem:[#allocation149_spill] sm:$0xff] }
 0x597   : > { %v15627_v28 = vpop.f32.mrb[122].mxu1  ;;  %9108 = vmatprep.subr.bf16.mxu0 %v15649_v26 }
 0x598   : > { %6679 = vmatmul.mubr.f32.gmra.mrb[196].mxu1 %v5631_v59  ;;  %v6127_v18 = vpop.f32.mrb[123].mxu1  ;;  %v18714_v59 = vld [vmem:[#allocation138_spill] sm:$0xff] }
 0x599   : > { %8380 = vmatprep.mubr.msk.f32.mxu1 %vm18650_vm0, %v4104_v25  ;;  %v4107_v35 = vmul.f32 %v18715_v43, %v18714_v59  ;;  %v10156_v25 = vunpack.i.h.bf16 %v15394_v3  ;;  %v10165_v18 = vunpack.i.l.bf16 %v15445_v30  ;;  %v18723_v3 = vld [vmem:[#allocation126_spill] sm:$0xff]  ;;  %v18730_v30 = vld [vmem:[#allocation49_spill] sm:$0xff]  ;;  %v5242_v43 = vpop.permute.xlu1 %5241 }
 0x59a   : > { %v4109_v38 = vmul.f32 %v18723_v3, %v18722_v17  ;;  %v4111_v59 = vmul.f32 %v18730_v30, %v18476_v54  ;;  %v18740_v17 = vld [vmem:[#allocation174_spill] sm:$0xff] }
 0x59b   : > { %v5636_v58 = vsel %vm5609_vm12, %v18721_v41, %v10165_v18  ;;  %v18738_v41 = vld [vmem:[#allocation141_spill] sm:$0xff]  ;;  %v4114_v3 = vmul.f32 %v18477_v34, %v18740_v17  ;;  %v18747_v34 = vld [vmem:[#allocation159_spill] sm:$0xff]  ;;  %v18750_v30 = vld [vmem:[#allocation194_spill] sm:$0xff] }
 0x59c   : > { %6684 = vmatmul.mubr.f32.gmra.mrb[198].mxu1 %v5632_v27  ;;  %v5635_v27 = vsel %vm5609_vm12, %v18717_v7, %v10156_v25  ;;  %v18732_v25 = vunpack.i.l.bf16 %v15495_v37  ;;  %v18733_v7 = vld [vmem:[#allocation168_spill] sm:$0xff] }
 0x59d   : > { %8381 = vmatprep.mubr.msk.f32.mxu1 %vm18708_vm4, %v4105_v2  ;;  %v4108_v2 = vmul.f32 %v18719_v51, %v18718_v61  ;;  %v18736_v51 = vunpack.i.h.bf16 %v15495_v37  ;;  %vm18764_vm4 = vmmov %vm18650_vm0 }
 0x59f   : > { %v5640_v54 = vsel %vm5609_vm12, %v18736_v51, %v5242_v43  ;;  %v18757_v51 = vld [vmem:[#allocation206_spill] sm:$0xff] }
 0x5a0   : > { %6689 = vmatmul.mubr.f32.gmra.mrb[200].mxu1 %v5633_v42  ;;  %v18725_v42 = vunpack.i.l.bf16 %v15456_v9  ;;  %v5244_v9 = vpop.permute.xlu1 %5243 }
 0x5a1   : > { %8382 = vmatprep.mubr.msk.f32.mxu1 %vm18712_vm5, %v4106_v47  ;;  %v18727_v47 = vld [vmem:[#allocation65_spill] sm:$0xff]  ;;  %vm18769_vm5 = vmmov %vm18650_vm0 }
 0x5a2   : > { %v5637_v23 = vsel %vm5609_vm12, %v18725_v42, %v10166_v22  ;;  %v4110_v40 = vmul.f32 %v18727_v47, %v18726_v46  ;;  %v18742_v22 = vld [vmem:[#allocation178_spill] sm:$0xff]  ;;  %v18745_v46 = vunpack.i.l.bf16 %v14439_v5  ;;  %v18746_v47 = vld [vmem:[#allocation192_spill] sm:$0xff] }
 0x5a4   : > { %6694 = vmatmul.mubr.f32.gmra.mrb[202].mxu1 %v5634_v14  ;;  %v5638_v14 = vsel %vm5609_vm12, %v18729_v19, %v10175_v6  ;;  %v18743_v6 = vld [vmem:[#allocation157_spill] sm:$0xff] }
 0x5a5   : > { %8383 = vmatprep.mubr.msk.f32.mxu1 %vm18716_vm2, %v4107_v35  ;;  %v10176_v35 = vunpack.i.h.bf16 %v15488_v63  ;;  %v4115_v42 = vmul.f32 %v18743_v6, %v18742_v22  ;;  %v18761_v6 = vunpack.i.l.bf16 %v14503_v44  ;;  %vm18773_vm2 = vmmov %vm18650_vm0 }
 0x5a7   : > { %v5639_v18 = vsel %vm5609_vm12, %v18732_v25, %v10176_v35  ;;  %v18753_v25 = vunpack.i.l.bf16 %v14473_v4 }
 0x5a8   : > { %6699 = vmatmul.mubr.f32.gmra.mrb[204].mxu1 %v5635_v27  ;;  %v18734_v27 = vld [vmem:[#allocation139_spill] sm:$0xff] }
 0x5a9   : > { %8384 = vmatprep.mubr.msk.f32.mxu1 %vm18720_vm7, %v4108_v2  ;;  %v4112_v61 = vmul.f32 %v18734_v27, %v18733_v7  ;;  %v18737_v2 = vld [vmem:[#allocation169_spill] sm:$0xff]  ;;  %v18754_v7 = vld [vmem:[#allocation204_spill] sm:$0xff]  ;;  %v18755_v27 = vld [vmem:[#allocation175_spill] sm:$0xff] }
 0x5aa   : > { %v4113_v63 = vmul.f32 %v18738_v41, %v18737_v2  ;;  %v18758_v2 = vunpack.i.h.bf16 %v14473_v4  ;;  %vm18777_vm7 = vmmov %vm18650_vm0 }
 0x5ac   : > { %6704 = vmatmul.mubr.f32.gmra.mrb[206].mxu1 %v5636_v58  ;;  %v5641_v58 = vsel %vm5609_vm12, %v15532_v55, %v5244_v9 }
 0x5ad   : > { %8385 = vmatprep.mubr.msk.f32.mxu1 %vm18724_vm8, %v4109_v38  ;;  %v5246_v38 = vpop.permute.xlu1 %5245  ;;  %vm18781_vm8 = vmmov %vm18650_vm0 }
 0x5ae   : > { %v5642_v37 = vsel %vm5609_vm12, %v15549_v0, %v5246_v38  ;;  %v18749_v0 = vunpack.i.h.bf16 %v14439_v5  ;;  %v15730_v5 = vld [vmem:[%s16998_s8] ss:$0 sm:$0xff] }
 0x5b0   : > { %6709 = vmatmul.mubr.f32.gmra.mrb[208].mxu1 %v5637_v23  ;;  %v5248_v23 = vpop.permute.xlu0 %5247 }
 0x5b1   : > { %8386 = vmatprep.mubr.msk.f32.mxu1 %vm18728_vm14, %v4110_v40  ;;  %v5643_v55 = vsel %vm5609_vm12, %v18745_v46, %v5248_v23  ;;  %v4116_v40 = vmul.f32 %v18747_v34, %v18746_v47  ;;  %v5250_v19 = vpop.permute.xlu1 %5249  ;;  %v18762_v23 = vld [vmem:[#allocation219_spill] sm:$0xff]  ;;  %v18763_v46 = vld [vmem:[#allocation180_spill] sm:$0xff]  ;;  %v18765_v47 = vld [vmem:[#allocation205_spill] sm:$0xff] }
 0x5b2   : > { %v4120_v4 = vmul.f32 %v18763_v46, %v18762_v23  ;;  %v5971_v34 = vadd.f32 %v15730_v5, %v18765_v47  ;;  %v5986_v46 = vadd.f32 %v15730_v5, %v14977_v60  ;;  %v18782_v60 = vunpack.i.h.bf16 %v14566_v1  ;;  %vm18785_vm14 = vmmov %vm18650_vm0 }
 0x5b4   : > { %6714 = vmatmul.mubr.f32.gmra.mrb[210].mxu1 %v5638_v14  ;;  %v5644_v14 = vsel %vm5609_vm12, %v18749_v0, %v5250_v19  ;;  %v5252_v35 = vpop.permute.xlu0 %5251  ;;  %v18767_v0 = vld [vmem:[#allocation222_spill] sm:$0xff] }
 0x5b5   : > { %8387 = vmatprep.mubr.msk.f32.mxu1 %vm18731_vm13, %v4111_v59  ;;  %v18751_v59 = vld [vmem:[#allocation161_spill] sm:$0xff]  ;;  %v5254_v9 = vpop.permute.xlu1 %5253  ;;  %vm18789_vm13 = vmmov %vm18650_vm0 }
 0x5b6   : > { %v4117_v43 = vmul.f32 %v18751_v59, %v18750_v30  ;;  %v5646_v41 = vsel %vm5609_vm12, %v18758_v2, %v5254_v9 }
 0x5b8   : > { %6719 = vmatmul.mubr.f32.gmra.mrb[212].mxu1 %v5639_v18  ;;  %v5645_v18 = vsel %vm5609_vm12, %v18753_v25, %v5252_v35 }
 0x5b9   : > { %8388 = vmatprep.mubr.msk.f32.mxu1 %vm18735_vm3, %v4112_v61  ;;  %v4118_v61 = vmul.f32 %v18755_v27, %v18754_v7  ;;  %v18770_v7 = vunpack.i.l.bf16 %v14537_v15  ;;  %v18771_v27 = vld [vmem:[#allocation228_spill] sm:$0xff]  ;;  %vm18792_vm3 = vmmov %vm18650_vm0 }
 0x5bc   : > { %6724 = vmatmul.mubr.f32.gmra.mrb[214].mxu1 %v5640_v54  ;;  %v5966_v54 = vadd.f32 %v15730_v5, %v18757_v51 }
 0x5bd   : > { %8389 = vmatprep.mubr.msk.f32.mxu1 %vm18739_vm11, %v4113_v63  ;;  %v18759_v63 = vld [vmem:[#allocation207_spill] sm:$0xff]  ;;  %vm18795_vm11 = vmmov %vm18650_vm0 }
 0x5c0   : > { %6729 = vmatmul.mubr.f32.gmra.mrb[216].mxu1 %v5641_v58  ;;  %v18760_v58 = vld [vmem:[#allocation177_spill] sm:$0xff] }
 0x5c1   : > { %8390 = vmatprep.mubr.msk.f32.mxu1 %vm18741_vm1, %v4114_v3  ;;  %v4119_v17 = vmul.f32 %v18760_v58, %v18759_v63  ;;  %v5256_v3 = vpop.permute.xlu0 %5255  ;;  %v5981_v63 = vadd.f32 %v15730_v5, %v14839_v57  ;;  %v18778_v57 = vunpack.i.l.bf16 %v14566_v1  ;;  %vm18798_vm1 = vmmov %vm18650_vm0 }
 0x5c4   : > { %6734 = vmatmul.mubr.f32.gmra.mrb[218].mxu1 %v5642_v37 }
 0x5c5   : > { %8391 = vmatprep.mubr.msk.f32.mxu1 %vm18744_vm6, %v4115_v42  ;;  %v5647_v42 = vsel %vm5609_vm12, %v18761_v6, %v5256_v3  ;;  %v5260_v59 = vpop.permute.xlu0 %5259  ;;  %v18776_v3 = vld [vmem:[#allocation200_spill] sm:$0xff]  ;;  %vm18805_vm6 = vmmov %vm18650_vm0 }
 0x5c8   : > { %6739 = vmatmul.mubr.f32.gmra.mrb[124].mxu1 %v5643_v55  ;;  %v5258_v55 = vpop.permute.xlu1 %5257 }
 0x5c9   : > { %8392 = vmatprep.mubr.msk.f32.mxu1 %vm18748_vm10, %v4116_v40  ;;  %v18766_v40 = vunpack.i.h.bf16 %v14503_v44  ;;  %v5649_v44 = vsel %vm5609_vm12, %v18770_v7, %v5260_v59  ;;  %v18783_v59 = vld [vmem:[#allocation73_spill] sm:$0xff]  ;;  %vm18807_vm10 = vmmov %vm18650_vm0 }
 0x5cb   : > { %v5648_v19 = vsel %vm5609_vm12, %v18766_v40, %v5258_v55  ;;  %v18780_v55 = vld [vmem:[#allocation208_spill] sm:$0xff] }
 0x5cc   : > { %6744 = vmatmul.mubr.f32.gmra.mrb[126].mxu1 %v5644_v14  ;;  %v18768_v14 = vld [vmem:[#allocation182_spill] sm:$0xff]  ;;  %v5262_v51 = vpop.permute.xlu1 %5261 }
 0x5cd   : > { %8393 = vmatprep.mubr.msk.f32.mxu1 %vm18752_vm15, %v4117_v43  ;;  %v4121_v30 = vmul.f32 %v18768_v14, %v18767_v0  ;;  %v5991_v14 = vadd.f32 %v15730_v5, %v15053_v56  ;;  %v18786_v56 = vunpack.i.l.bf16 %v14599_v52  ;;  %vm18809_vm15 = vmmov %vm18650_vm0 }
 0x5d0   : > { %6749 = vmatmul.mubr.f32.gmra.mrb[128].mxu1 %v5645_v18  ;;  %v5976_v18 = vadd.f32 %v15730_v5, %v14777_v8  ;;  %v18774_v8 = vunpack.i.h.bf16 %v14537_v15 }
 0x5d1   : > { %8394 = vmatprep.mubr.msk.f32.mxu1 %vm18756_vm9, %v4118_v61  ;;  %v18772_v61 = vld [vmem:[#allocation199_spill] sm:$0xff]  ;;  %vm18810_vm9 = vmmov %vm18650_vm0 }
 0x5d2   : > { %v4122_v9 = vmul.f32 %v18772_v61, %v18771_v27  ;;  %v5650_v58 = vsel %vm5609_vm12, %v18774_v8, %v5262_v51  ;;  %v5996_v61 = vadd.f32 %v15730_v5, %v15100_v32  ;;  %v18788_v51 = vld [vmem:[#allocation69_spill] sm:$0xff]  ;;  %v6001_v32 = vadd.f32 %v15730_v5, %v15139_v29 }
 0x5d4   : > { %v6270_v38 = vpop.f32.mrb[96].mxu0  ;;  %6754 = vmatmul.mubr.f32.gmra.mrb[130].mxu1 %v5646_v41 }
 0x5d5   : > { %v15740_v37 = vadd.f32 %v6270_v38, %v5966_v54  ;;  %v6272_v22 = vpop.f32.mrb[97].mxu0  ;;  %8395 = vmatprep.mubr.msk.f32.mxu1 %vm18650_vm0, %v4119_v17  ;;  %v18775_v17 = vld [vmem:[#allocation230_spill] sm:$0xff] }
 0x5d6   : > { %v4123_v38 = vmul.f32 %v18776_v3, %v18775_v17  ;;  %v5264_v22 = vpop.permute.xlu0 %5263  ;;  %v18790_v17 = vld [vmem:[#allocation232_spill] sm:$0xff] }
 0x5d7   : > { %v5651_v15 = vsel %vm5609_vm12, %v18778_v57, %v5264_v22  ;;  %v4127_v3 = vmul.f32 0.0, %v18790_v17 }
 0x5d8   : > { %6759 = vmatmul.mubr.f32.gmra.mrb[132].mxu1 %v5647_v42 }
 0x5d9   : > { %8396 = vmatprep.mubr.msk.f32.mxu1 %vm18764_vm4, %v4120_v4  ;;  %v18779_v4 = vld [vmem:[#allocation183_spill] sm:$0xff]  ;;  %vm18813_vm4 = vmmov %vm18650_vm0 }
 0x5da   : > { %v4124_v47 = vmul.f32 %v18780_v55, %v18779_v4  ;;  %v6006_v55 = vadd.f32 %v15730_v5, %v15169_v20 }
 0x5db   : > { %v6275_v43 = vpop.f32.mrb[98].mxu0 }
 0x5dc   : > { %6764 = vmatmul.mubr.f32.gmra.mrb[134].mxu1 %v5648_v19  ;;  %v15756_v35 = vadd.f32 %v6275_v43, %v5971_v34  ;;  %v6277_v25 = vpop.f32.mrb[99].mxu0  ;;  %v5266_v34 = vpop.permute.xlu1 %5265  ;;  %v18784_v43 = vld [vmem:[#allocation209_spill] sm:$0xff] }
 0x5dd   : > { %8397 = vmatprep.mubr.msk.f32.mxu1 %vm18769_vm5, %v4121_v30  ;;  %v5652_v30 = vsel %vm5609_vm12, %v18782_v60, %v5266_v34  ;;  %v4125_v25 = vmul.f32 %v18784_v43, %v18783_v59  ;;  %v6011_v60 = vadd.f32 %v15730_v5, %v15196_v39  ;;  %vm18815_vm5 = vmmov %vm18650_vm0 }
 0x5e0   : > { %v6280_v54 = vpop.f32.mrb[100].mxu0  ;;  %6769 = vmatmul.mubr.f32.gmra.mrb[136].mxu1 %v5649_v44 }
 0x5e1   : > { %v15766_v2 = vadd.f32 %v6280_v54, %v5976_v18  ;;  %v6282_v41 = vpop.f32.mrb[101].mxu0  ;;  %8398 = vmatprep.mubr.msk.f32.mxu1 %vm18773_vm2, %v4122_v9  ;;  %v5268_v18 = vpop.permute.xlu0 %5267  ;;  %v18787_v9 = vld [vmem:[#allocation189_spill] sm:$0xff]  ;;  %vm18816_vm2 = vmmov %vm18650_vm0 }
 0x5e2   : > { %v5653_v1 = vsel %vm5609_vm12, %v18786_v56, %v5268_v18  ;;  %v4126_v54 = vmul.f32 %v18788_v51, %v18787_v9  ;;  %v5270_v41 = vpop.permute.xlu1 %5269  ;;  %v6016_v18 = vadd.f32 %v15730_v5, %v15214_v16  ;;  %v6021_v56 = vadd.f32 %v15730_v5, %v15232_v31 }
 0x5e3   : > { %v6036_v31 = vadd.f32 %v15730_v5, %v15308_v36  ;;  %v6873_v36 = vld [vmem:[%s16999_s9 + $0x58] sm:$0xff] }
 0x5e4   : > { %v6285_v6 = vpop.f32.mrb[102].mxu0  ;;  %6774 = vmatmul.mubr.f32.gmra.mrb[138].mxu1 %v5650_v58 }
 0x5e5   : > { %v15776_v42 = vadd.f32 %v6285_v6, %v5981_v63  ;;  %v6287_v23 = vpop.f32.mrb[103].mxu0  ;;  %8399 = vmatprep.mubr.msk.f32.mxu1 %vm18777_vm7, %v4123_v38  ;;  %v18791_v38 = vunpack.i.h.bf16 %v14599_v52  ;;  %v5272_v6 = vpop.permute.xlu0 %5271  ;;  %vm18817_vm7 = vmmov %vm18650_vm0 }
 0x5e7   : > { %v5654_v22 = vsel %vm5609_vm12, %v18791_v38, %v5270_v41 }
 0x5e8   : > { %v6290_v40 = vpop.f32.mrb[104].mxu0  ;;  %6779 = vmatmul.mubr.f32.gmra.mrb[140].mxu1 %v5651_v15  ;;  %v18793_v15 = vld [vmem:[#allocation236_spill] sm:$0xff] }
 0x5e9   : > { %v15786_v19 = vadd.f32 %v6290_v40, %v5986_v46  ;;  %v6292_v0 = vpop.f32.mrb[105].mxu0  ;;  %8400 = vmatprep.mubr.msk.f32.mxu1 %vm18781_vm8, %v4124_v47  ;;  %v4128_v4 = vmul.f32 0.0, %v18793_v15  ;;  %v18794_v47 = vunpack.i.l.bf16 %v14639_v33  ;;  %vm18818_vm8 = vmmov %vm18650_vm0 }
 0x5ea   : > { %v18796_v0 = vld [vmem:[#allocation237_spill] sm:$0xff] }
 0x5eb   : > { %v5655_v29 = vsel %vm5609_vm12, %v18794_v47, %v5272_v6 }
 0x5ec   : > { %v6295_v7 = vpop.f32.mrb[106].mxu0  ;;  %6784 = vmatmul.mubr.f32.gmra.mrb[142].mxu1 %v5652_v30  ;;  %v18797_v30 = vunpack.i.h.bf16 %v14639_v33 }
 0x5ed   : > { %v15796_v44 = vadd.f32 %v6295_v7, %v5991_v14  ;;  %v6297_v27 = vpop.f32.mrb[107].mxu0  ;;  %8401 = vmatprep.mubr.msk.f32.mxu1 %vm18785_vm14, %v4125_v25  ;;  %v4129_v14 = vmul.f32 0.0, %v18796_v0  ;;  %v18799_v7 = vunpack.i.l.bf16 %v14682_v50  ;;  %vm18819_vm14 = vmmov %vm18650_vm0 }
 0x5ee   : > { %v5656_v20 = vsel %vm5609_vm12, %v18797_v30, %v5272_v6 }
 0x5ef   : > { %v5657_v27 = vsel %vm5609_vm12, %v18799_v7, %v5272_v6  ;;  %vm18803_vm12 = vmmov %vm18650_vm0 }
 0x5f0   : > { %6789 = vmatmul.mubr.f32.gmra.mrb[144].mxu1 %v5653_v1 }
 0x5f1   : > { %v6300_v63 = vpop.f32.mrb[108].mxu0  ;;  %8402 = vmatprep.mubr.msk.f32.mxu1 %vm18789_vm13, %v4126_v54  ;;  %v6026_v54 = vadd.f32 %v15730_v5, %v15254_v21  ;;  %v6041_v21 = vadd.f32 %v15730_v5, %v15327_v48  ;;  %vm18820_vm13 = vmmov %vm18650_vm0 }
 0x5f2   : > { %v15806_v8 = vadd.f32 %v6300_v63, %v5996_v61  ;;  %v6302_v58 = vpop.f32.mrb[109].mxu0  ;;  %v18800_v63 = vld [vmem:[#allocation85_spill] sm:$0xff] }
 0x5f3   : > { %v6031_v58 = vadd.f32 %v15730_v5, %v18800_v63  ;;  %v6885_v63 = vld [vmem:[%s16999_s9 + $0xb8] sm:$0xff] }
 0x5f4   : > { %6794 = vmatmul.mubr.f32.gmra.mrb[146].mxu1 %v5654_v22 }
 0x5f5   : > { %v6305_v23 = vpop.f32.mrb[110].mxu0  ;;  %8403 = vmatprep.mubr.msk.f32.mxu1 %vm18792_vm3, %v4127_v3  ;;  %vm18821_vm3 = vmmov %vm18650_vm0 }
 0x5f6   : > { %v15815_v46 = vadd.f32 %v6305_v23, %v6001_v32  ;;  %v6307_v57 = vpop.f32.mrb[111].mxu0 }
 0x5f8   : > { %6799 = vmatmul.mubr.f32.gmra.mrb[148].mxu1 %v5655_v29  ;;  %v6870_v29 = vld [vmem:[%s16999_s9 + $0x40] sm:$0xff] }
 0x5f9   : > { %v6310_v52 = vpop.f32.mrb[112].mxu0  ;;  %8404 = vmatprep.mubr.msk.f32.mxu1 %vm18795_vm11, %v4128_v4  ;;  %v18801_v4 = vld [vmem:[#allocation224_spill] sm:$0xff]  ;;  %v9111_v30 = vpack.c.bf16 %v6873_v36, %v6870_v29  ;;  %vm18822_vm11 = vmmov %vm18650_vm0 }
 0x5fa   : > { %v15824_v34 = vadd.f32 %v6310_v52, %v6006_v55  ;;  %v6312_v40 = vpop.f32.mrb[113].mxu0  ;;  %v6046_v55 = vadd.f32 %v15730_v5, %v18801_v4 }
 0x5fc   : > { %6804 = vmatmul.mubr.f32.gmra.mrb[150].mxu1 %v5656_v20  ;;  %v18802_v20 = vld [vmem:[#allocation86_spill] sm:$0xff] }
 0x5fd   : > { %v6315_v59 = vpop.f32.mrb[114].mxu0  ;;  %8405 = vmatprep.mubr.msk.f32.mxu1 %vm18798_vm1, %v4129_v14  ;;  %vm18823_vm1 = vmmov %vm18650_vm0 }
 0x5fe   : > { %v15833_v43 = vadd.f32 %v6315_v59, %v6011_v60  ;;  %v6317_v25 = vpop.f32.mrb[115].mxu0  ;;  %v6051_v59 = vadd.f32 %v15730_v5, %v18802_v20 }
 0x600   : > { %6809 = vmatmul.mubr.f32.gmra.mrb[152].mxu1 %v5657_v27 }
 0x601   : > { %v6320_v61 = vpop.f32.mrb[116].mxu0 }
 0x602   : > { %v15841_v39 = vadd.f32 %v6320_v61, %v6016_v18  ;;  %v6322_v33 = vpop.f32.mrb[117].mxu0  ;;  %v6876_v18 = vld [vmem:[%s16999_s9 + $0x70] sm:$0xff] }
 0x605   : > { %v6325_v1 = vpop.f32.mrb[118].mxu0 }
 0x606   : > { %v15845_v9 = vadd.f32 %v6325_v1, %v6021_v56  ;;  %v6327_v51 = vpop.f32.mrb[119].mxu0 }
 0x60a   : > { %v6330_v16 = vpop.f32.mrb[120].mxu0 }
 0x60b   : > { %v15849_v41 = vadd.f32 %v6330_v16, %v6026_v54  ;;  %v6332_v50 = vpop.f32.mrb[121].mxu0  ;;  %v18804_v54 = vld [vmem:[#allocation68_spill] sm:$0xff] }
 0x60c   : > { %v6882_v50 = vld [vmem:[%s16999_s9 + $0xa0] sm:$0xff] }
 0x60e   : > { %v6335_v17 = vpop.f32.mrb[122].mxu0 }
 0x60f   : > { %v15853_v3 = vadd.f32 %v6335_v17, %v6031_v58  ;;  %v6337_v32 = vpop.f32.mrb[123].mxu0 }
 0x612   : > { %v6340_v38 = vpop.f32.mrb[124].mxu0 }
 0x613   : > { %v15857_v22 = vadd.f32 %v6340_v38, %v6036_v31  ;;  %v6342_v6 = vpop.f32.mrb[125].mxu0 }
 0x614   : > { %v9119_v6 = vpack.c.bf16 %v6885_v63, %v6882_v50 }
 0x616   : > { %v6345_v23 = vpop.f32.mrb[126].mxu0 }
 0x617   : > { %v15861_v57 = vadd.f32 %v6345_v23, %v6041_v21  ;;  %v6347_v15 = vpop.f32.mrb[127].mxu0  ;;  %v6575_v47 = vpop.f32.mrb[154].mxu1  ;;  %v18806_v21 = vld [vmem:[#allocation216_spill] sm:$0xff] }
 0x618   : > { %v15872_v40 = vadd.f32 %v6575_v47, %v15740_v37  ;;  %v6577_v48 = vpop.f32.mrb[155].mxu1  ;;  %v6879_v37 = vld [vmem:[%s16999_s9 + $0x88] sm:$0xff]  ;;  %v6061_v23 = vadd.f32 %v15730_v5, %v18806_v21  ;;  %v18812_v21 = vld [vmem:[#allocation225_spill] sm:$0xff] }
 0x619   : > { %v9115_v51 = vpack.c.bf16 %v6879_v37, %v6876_v18  ;;  %v6071_v37 = vadd.f32 %v15730_v5, %v15461_v12 }
 0x61a   : > { %v6350_v52 = vpop.f32.mrb[128].mxu0  ;;  %v6814_v60 = vmax.f32 %v15872_v40, 0.0 }
 0x61b   : > { %v15874_v0 = vadd.f32 %v6350_v52, %v6046_v55  ;;  %v6352_v14 = vpop.f32.mrb[129].mxu0  ;;  %v6580_v25 = vpop.f32.mrb[156].mxu1  ;;  %v18808_v52 = vld [vmem:[#allocation217_spill] sm:$0xff] }
 0x61c   : > { %v15886_v27 = vadd.f32 %v6580_v25, %v15756_v35  ;;  %v6582_v61 = vpop.f32.mrb[157].mxu1  ;;  %8406 = vmatmul.mubr.msk.f32.vlgmr.msra.gmra.mrb[162].mxu0 %vm18803_vm12, %v6814_v60  ;;  %v6056_v35 = vadd.f32 %v15730_v5, %v18804_v54  ;;  %v6066_v48 = vadd.f32 %v15730_v5, %v18808_v52  ;;  %vm18824_vm12 = vmmov %vm18650_vm0 }
 0x61d   : > { %9110 = vmatpush3.bf16.msra.mxu0 %v15649_v26  ;;  %7123 = vmatprep.mubr.f32.mxu0 %v18537_v53 }
 0x61e   : > { %v6355_v7 = vpop.f32.mrb[130].mxu0  ;;  %v6815_v1 = vmax.f32 %v15886_v27, 0.0  ;;  %9112 = vmatprep.subr.bf16.mxu0 %v9111_v30 }
 0x61f   : > { %v15891_v33 = vadd.f32 %v6355_v7, %v6051_v59  ;;  %v6357_v56 = vpop.f32.mrb[131].mxu0  ;;  %v6585_v16 = vpop.f32.mrb[158].mxu1 }
 0x620   : > { %v15905_v26 = vadd.f32 %v6585_v16, %v15766_v2  ;;  %v6587_v17 = vpop.f32.mrb[159].mxu1  ;;  %8407 = vmatmul.mubr.msk.f32.gmra.mrb[164].mxu0 %vm18805_vm6, %v6815_v1  ;;  %v18811_v16 = vld [vmem:[#allocation91_spill] sm:$0xff]  ;;  %vm18825_vm6 = vmmov %vm18650_vm0 }
 0x621   : > { %7129 = vmatprep.mubr.f32.mxu0 %v18537_v53  ;;  %9114 = vmatpush3.bf16.msra.mxu0 %v9111_v30  ;;  %v6076_v12 = vadd.f32 %v15730_v5, %v18811_v16 }
 0x622   : > { %v6360_v58 = vpop.f32.mrb[132].mxu0  ;;  %v6816_v38 = vmax.f32 %v15905_v26, 0.0  ;;  %9116 = vmatprep.subr.bf16.mxu0 %v9115_v51  ;;  %v18868_v26 = vld [vmem:[#allocation5_spill] sm:$0xff] }
 0x623   : > { %v15910_v32 = vadd.f32 %v6360_v58, %v6056_v35  ;;  %v6362_v31 = vpop.f32.mrb[133].mxu0  ;;  %v6590_v2 = vpop.f32.mrb[160].mxu1 }
 0x624   : > { %v15917_v4 = vadd.f32 %v6590_v2, %v15776_v42  ;;  %v6592_v55 = vpop.f32.mrb[161].mxu1  ;;  %8408 = vmatmul.mubr.msk.f32.gmra.mrb[166].mxu0 %vm18807_vm10, %v6816_v38  ;;  %vm18826_vm10 = vmmov %vm18650_vm0 }
 0x625   : > { %7135 = vmatprep.mubr.f32.mxu0 %v18537_v53  ;;  %9118 = vmatpush3.bf16.msra.mxu0 %v9115_v51 }
 0x626   : > { %v6365_v15 = vpop.f32.mrb[134].mxu0  ;;  %v6817_v36 = vmax.f32 %v15917_v4, 0.0  ;;  %9120 = vmatprep.subr.bf16.mxu0 %v9119_v6 }
 0x627   : > { %v15922_v47 = vadd.f32 %v6365_v15, %v6061_v23  ;;  %v6367_v29 = vpop.f32.mrb[135].mxu0  ;;  %v6595_v14 = vpop.f32.mrb[162].mxu1  ;;  %v6081_v23 = vadd.f32 %v15730_v5, %v18812_v21 }
 0x628   : > { %v15929_v30 = vadd.f32 %v6595_v14, %v15786_v19  ;;  %v6597_v20 = vpop.f32.mrb[163].mxu1  ;;  %8409 = vmatmul.mubr.msk.f32.gmra.mrb[168].mxu0 %vm18809_vm15, %v6817_v36  ;;  %v6888_v14 = vld [vmem:[%s16999_s9 + $0xd0] sm:$0xff]  ;;  %vm18827_vm15 = vmmov %vm18650_vm0 }
 0x629   : > { %7141 = vmatprep.mubr.f32.mxu0 %v18537_v53  ;;  %9122 = vmatpush3.bf16.msra.mxu0 %v9119_v6 }
 0x62a   : > { %v6370_v42 = vpop.f32.mrb[136].mxu0  ;;  %v6818_v18 = vmax.f32 %v15929_v30, 0.0 }
 0x62b   : > { %v15934_v59 = vadd.f32 %v6370_v42, %v6066_v48  ;;  %v6372_v25 = vpop.f32.mrb[137].mxu0  ;;  %v6600_v7 = vpop.f32.mrb[164].mxu1  ;;  %v18814_v42 = vld [vmem:[#allocation93_spill] sm:$0xff] }
 0x62c   : > { %v15941_v19 = vadd.f32 %v6600_v7, %v15796_v44  ;;  %v6602_v56 = vpop.f32.mrb[165].mxu1  ;;  %8410 = vmatmul.mubr.msk.f32.gmra.mrb[170].mxu0 %vm18810_vm9, %v6818_v18  ;;  %v6086_v20 = vadd.f32 %v15730_v5, %v18814_v42  ;;  %vm18828_vm9 = vmmov %vm18650_vm0 }
 0x62d   : > { %7147 = vmatprep.mubr.f32.mxu0 %v18537_v53 }
 0x62e   : > { %v6375_v61 = vpop.f32.mrb[138].mxu0  ;;  %v6819_v35 = vmax.f32 %v15941_v19, 0.0 }
 0x62f   : > { %v15946_v51 = vadd.f32 %v6375_v61, %v6071_v37  ;;  %v6377_v54 = vpop.f32.mrb[139].mxu0  ;;  %v6605_v50 = vpop.f32.mrb[166].mxu1 }
 0x630   : > { %v15953_v44 = vadd.f32 %v6605_v50, %v15806_v8  ;;  %v6607_v58 = vpop.f32.mrb[167].mxu1  ;;  %8411 = vmatmul.mubr.msk.f32.gmra.mrb[172].mxu0 %vm18650_vm0, %v6819_v35  ;;  %v6091_v50 = vadd.f32 %v15730_v5, %v15537_v24  ;;  %v6096_v24 = vadd.f32 %v15730_v5, %v15555_v45  ;;  %v6101_v45 = vadd.f32 %v15730_v5, %v15580_v13 }
 0x631   : > { %7153 = vmatprep.mubr.f32.mxu0 %v18537_v53  ;;  %v6106_v13 = vadd.f32 %v15730_v5, %v15591_v10  ;;  %v6111_v10 = vadd.f32 %v15730_v5, %v15599_v62  ;;  %v6116_v62 = vadd.f32 %v15730_v5, %v15609_v49  ;;  %v6121_v49 = vadd.f32 %v15730_v5, %v15617_v11 }
 0x632   : > { %v6380_v63 = vpop.f32.mrb[140].mxu0  ;;  %v6820_v6 = vmax.f32 %v15953_v44, 0.0  ;;  %v6126_v11 = vadd.f32 %v15730_v5, %v15627_v28  ;;  %v10233_v44 = vld [vmem:[%s10509_s29] sm:$0xff] }
 0x633   : > { %v15958_v17 = vadd.f32 %v6380_v63, %v6076_v12  ;;  %v6382_v31 = vpop.f32.mrb[141].mxu0  ;;  %v6610_v2 = vpop.f32.mrb[168].mxu1 }
 0x634   : > { %v15965_v8 = vadd.f32 %v6610_v2, %v15815_v46  ;;  %v6612_v55 = vpop.f32.mrb[169].mxu1  ;;  %8412 = vmatmul.mubr.msk.f32.gmra.mrb[174].mxu0 %vm18813_vm4, %v6820_v6  ;;  %v6891_v46 = vld [vmem:[%s16999_s9 + $0xe8] sm:$0xff]  ;;  %vm18829_vm4 = vmmov %vm18650_vm0 }
 0x635   : > { %7159 = vmatprep.mubr.f32.mxu0 %v18537_v53  ;;  %v9123_v37 = vpack.c.bf16 %v6891_v46, %v6888_v14 }
 0x636   : > { %v6385_v15 = vpop.f32.mrb[142].mxu0  ;;  %v6821_v48 = vmax.f32 %v15965_v8, 0.0  ;;  %v10234_v8 = vld [vmem:[%s10509_s29 + $0x8] sm:$0xff] }
 0x637   : > { %v15970_v29 = vadd.f32 %v6385_v15, %v6081_v23  ;;  %v6387_v52 = vpop.f32.mrb[143].mxu0  ;;  %v6615_v25 = vpop.f32.mrb[170].mxu1  ;;  %9124 = vmatprep.subr.bf16.mxu0 %v9123_v37 }
 0x638   : > { %v15983_v61 = vadd.f32 %v6615_v25, %v15824_v34  ;;  %v6617_v56 = vpop.f32.mrb[171].mxu1  ;;  %8413 = vmatmul.mubr.msk.f32.gmra.mrb[176].mxu0 %vm18815_vm5, %v6821_v48  ;;  %vm18830_vm5 = vmmov %vm18650_vm0 }
 0x639   : > { %7165 = vmatprep.mubr.f32.mxu0 %v18537_v53  ;;  %9126 = vmatpush3.bf16.msra.mxu0 %v9123_v37 }
 0x63a   : > { %v6390_v7 = vpop.f32.mrb[144].mxu0  ;;  %v17525_v12 = vmax.f32 %v15983_v61, 0.0 }
 0x63b   : > { %v15988_v54 = vadd.f32 %v6390_v7, %v6086_v20  ;;  %v6392_v16 = vpop.f32.mrb[145].mxu0  ;;  %v6620_v63 = vpop.f32.mrb[172].mxu1 }
 0x63c   : > { %v15995_v58 = vadd.f32 %v6620_v63, %v15833_v43  ;;  %v6622_v31 = vpop.f32.mrb[173].mxu1  ;;  %8414 = vmatmul.mubr.msk.f32.gmra.mrb[178].mxu0 %vm18816_vm2, %v17525_v12  ;;  %vm18831_vm2 = vmmov %vm18650_vm0 }
 0x63d   : > { %7171 = vmatprep.mubr.f32.mxu0 %v18537_v53 }
 0x63e   : > { %v6395_v34 = vpop.f32.mrb[146].mxu0  ;;  %v17523_v2 = vmax.f32 %v15995_v58, 0.0  ;;  %v18863_v40 = vmax.f32 %v15995_v58, 0.0 }
 0x63f   : > { %v16000_v21 = vadd.f32 %v6395_v34, %v6091_v50  ;;  %v6397_v23 = vpop.f32.mrb[147].mxu0  ;;  %v6625_v15 = vpop.f32.mrb[174].mxu1 }
 0x640   : > { %v16007_v43 = vadd.f32 %v6625_v15, %v15841_v39  ;;  %v6627_v52 = vpop.f32.mrb[175].mxu1  ;;  %8415 = vmatmul.mubr.msk.f32.gmra.mrb[180].mxu0 %vm18817_vm7, %v17523_v2  ;;  %vm18832_vm7 = vmmov %vm18650_vm0 }
 0x641   : > { %7177 = vmatprep.mubr.f32.mxu0 %v18537_v53 }
 0x642   : > { %v6400_v55 = vpop.f32.mrb[148].mxu0  ;;  %v17521_v42 = vmax.f32 %v16007_v43, 0.0 }
 0x643   : > { %v16012_v14 = vadd.f32 %v6400_v55, %v6096_v24  ;;  %v6402_v46 = vpop.f32.mrb[149].mxu0  ;;  %v6630_v20 = vpop.f32.mrb[176].mxu1 }
 0x644   : > { %v16019_v39 = vadd.f32 %v6630_v20, %v15845_v9  ;;  %v6632_v37 = vpop.f32.mrb[177].mxu1  ;;  %8416 = vmatmul.mubr.msk.f32.gmra.mrb[182].mxu0 %vm18818_vm8, %v17521_v42  ;;  %vm18833_vm8 = vmmov %vm18650_vm0 }
 0x645   : > { %7183 = vmatprep.mubr.f32.mxu0 %v18537_v53 }
 0x646   : > { %v6405_v25 = vpop.f32.mrb[150].mxu0  ;;  %v17519_v16 = vmax.f32 %v16019_v39, 0.0 }
 0x647   : > { %v16024_v7 = vadd.f32 %v6405_v25, %v6101_v45  ;;  %v6407_v56 = vpop.f32.mrb[151].mxu0  ;;  %v6635_v50 = vpop.f32.mrb[178].mxu1 }
 0x648   : > { %v16031_v9 = vadd.f32 %v6635_v50, %v15849_v41  ;;  %v6637_v34 = vpop.f32.mrb[179].mxu1  ;;  %8417 = vmatmul.mubr.msk.f32.gmra.mrb[184].mxu0 %vm18819_vm14, %v17519_v16  ;;  %vm18834_vm14 = vmmov %vm18650_vm0 }
 0x649   : > { %7189 = vmatprep.mubr.f32.mxu0 %v18537_v53 }
 0x64a   : > { %v6410_v63 = vpop.f32.mrb[152].mxu0  ;;  %v17517_v24 = vmax.f32 %v16031_v9, 0.0 }
 0x64b   : > { %v16036_v31 = vadd.f32 %v6410_v63, %v6106_v13  ;;  %v6412_v23 = vpop.f32.mrb[153].mxu0  ;;  %v6640_v15 = vpop.f32.mrb[180].mxu1 }
 0x64c   : > { %v16043_v41 = vadd.f32 %v6640_v15, %v15853_v3  ;;  %v6642_v52 = vpop.f32.mrb[181].mxu1  ;;  %8418 = vmatmul.mubr.msk.f32.gmra.mrb[186].mxu0 %vm18820_vm13, %v17517_v24  ;;  %vm18835_vm13 = vmmov %vm18650_vm0 }
 0x64d   : > { %7195 = vmatprep.mubr.f32.mxu0 %v18537_v53 }
 0x64e   : > { %v6415_v55 = vpop.f32.mrb[154].mxu0  ;;  %v17515_v20 = vmax.f32 %v16043_v41, 0.0 }
 0x64f   : > { %v16048_v46 = vadd.f32 %v6415_v55, %v6111_v10  ;;  %v6417_v45 = vpop.f32.mrb[155].mxu0  ;;  %v6645_v25 = vpop.f32.mrb[182].mxu1 }
 0x650   : > { %v16055_v3 = vadd.f32 %v6645_v25, %v15857_v22  ;;  %v6647_v56 = vpop.f32.mrb[183].mxu1  ;;  %8419 = vmatmul.mubr.msk.f32.gmra.mrb[188].mxu0 %vm18821_vm3, %v17515_v20  ;;  %vm18836_vm3 = vmmov %vm18650_vm0 }
 0x651   : > { %7201 = vmatprep.mubr.f32.mxu0 %v18537_v53 }
 0x652   : > { %v6420_v37 = vpop.f32.mrb[156].mxu0  ;;  %v17513_v63 = vmax.f32 %v16055_v3, 0.0 }
 0x653   : > { %v16060_v13 = vadd.f32 %v6420_v37, %v6116_v62  ;;  %v6422_v50 = vpop.f32.mrb[157].mxu0  ;;  %v6650_v34 = vpop.f32.mrb[184].mxu1 }
 0x654   : > { %v16067_v22 = vadd.f32 %v6650_v34, %v15861_v57  ;;  %v6652_v10 = vpop.f32.mrb[185].mxu1  ;;  %8420 = vmatmul.mubr.msk.f32.gmra.mrb[190].mxu0 %vm18822_vm11, %v17513_v63  ;;  %vm18837_vm11 = vmmov %vm18650_vm0 }
 0x655   : > { %7207 = vmatprep.mubr.f32.mxu0 %v18537_v53 }
 0x656   : > { %v6425_v23 = vpop.f32.mrb[158].mxu0  ;;  %v17511_v52 = vmax.f32 %v16067_v22, 0.0 }
 0x657   : > { %v16072_v15 = vadd.f32 %v6425_v23, %v6121_v49  ;;  %v6427_v55 = vpop.f32.mrb[159].mxu0  ;;  %v6655_v45 = vpop.f32.mrb[186].mxu1 }
 0x658   : > { %v16079_v57 = vadd.f32 %v6655_v45, %v15874_v0  ;;  %v6657_v25 = vpop.f32.mrb[187].mxu1  ;;  %8421 = vmatmul.mubr.msk.f32.gmra.mrb[192].mxu0 %vm18823_vm1, %v17511_v52  ;;  %vm18838_vm1 = vmmov %vm18650_vm0 }
 0x659   : > { %7213 = vmatprep.mubr.f32.mxu0 %v18537_v53 }
 0x65a   : > { %v6430_v62 = vpop.f32.mrb[160].mxu0  ;;  %v17509_v50 = vmax.f32 %v16079_v57, 0.0 }
 0x65b   : > { %v16084_v37 = vadd.f32 %v6430_v62, %v6126_v11  ;;  %v6432_v56 = vpop.f32.mrb[161].mxu0  ;;  %v6660_v49 = vpop.f32.mrb[188].mxu1 }
 0x65c   : > { %v16089_v28 = vadd.f32 %v6660_v49, %v15891_v33  ;;  %v6662_v34 = vpop.f32.mrb[189].mxu1  ;;  %8422 = vmatmul.mubr.msk.f32.gmra.mrb[194].mxu0 %vm18824_vm12, %v17509_v50  ;;  %vm18839_vm12 = vmmov %vm18650_vm0 }
 0x65d   : > { %7219 = vmatprep.mubr.f32.mxu0 %v18537_v53 }
 0x65e   : > { %v17507_v0 = vmax.f32 %v16089_v28, 0.0 }
 0x65f   : > { %v6665_v23 = vpop.f32.mrb[190].mxu1 }
 0x660   : > { %v16097_v10 = vadd.f32 %v6665_v23, %v15910_v32  ;;  %v6667_v55 = vpop.f32.mrb[191].mxu1  ;;  %8423 = vmatmul.mubr.msk.f32.gmra.mrb[196].mxu0 %vm18825_vm6, %v17507_v0  ;;  %vm18840_vm6 = vmmov %vm18650_vm0 }
 0x661   : > { %7225 = vmatprep.mubr.f32.mxu0 %v18537_v53 }
 0x662   : > { %v17505_v33 = vmax.f32 %v16097_v10, 0.0 }
 0x663   : > { %v6670_v11 = vpop.f32.mrb[192].mxu1 }
 0x664   : > { %v16105_v45 = vadd.f32 %v6670_v11, %v15922_v47  ;;  %v6672_v62 = vpop.f32.mrb[193].mxu1  ;;  %8424 = vmatmul.mubr.msk.f32.gmra.mrb[198].mxu0 %vm18826_vm10, %v17505_v33  ;;  %vm18841_vm10 = vmmov %vm18650_vm0 }
 0x665   : > { %7231 = vmatprep.mubr.f32.mxu0 %v18537_v53 }
 0x666   : > { %v17503_v32 = vmax.f32 %v16105_v45, 0.0 }
 0x667   : > { %v6675_v25 = vpop.f32.mrb[194].mxu1 }
 0x668   : > { %v16113_v56 = vadd.f32 %v6675_v25, %v15934_v59  ;;  %v6677_v49 = vpop.f32.mrb[195].mxu1  ;;  %8425 = vmatmul.mubr.msk.f32.gmra.mrb[200].mxu0 %vm18827_vm15, %v17503_v32  ;;  %vm18842_vm15 = vmmov %vm18650_vm0 }
 0x669   : > { %7237 = vmatprep.mubr.f32.mxu0 %v18537_v53 }
 0x66a   : > { %v17501_v47 = vmax.f32 %v16113_v56, 0.0 }
 0x66b   : > { %v6680_v34 = vpop.f32.mrb[196].mxu1 }
 0x66c   : > { %v16121_v23 = vadd.f32 %v6680_v34, %v15946_v51  ;;  %v6682_v55 = vpop.f32.mrb[197].mxu1  ;;  %8426 = vmatmul.mubr.msk.f32.gmra.mrb[202].mxu0 %vm18828_vm9, %v17501_v47  ;;  %vm18843_vm9 = vmmov %vm18650_vm0 }
 0x66d   : > { %7243 = vmatprep.mubr.f32.mxu0 %v18537_v53 }
 0x66e   : > { %v17489_v59 = vmax.f32 %v16121_v23, 0.0 }
 0x66f   : > { %v6685_v11 = vpop.f32.mrb[198].mxu1 }
 0x670   : > { %v16129_v62 = vadd.f32 %v6685_v11, %v15958_v17  ;;  %v6687_v25 = vpop.f32.mrb[199].mxu1  ;;  %8427 = vmatmul.mubr.msk.f32.gmra.mrb[204].mxu0 %vm18650_vm0, %v17489_v59 }
 0x671   : > { %7249 = vmatprep.mubr.f32.mxu0 %v18537_v53 }
 0x672   : > { %v17490_v51 = vmax.f32 %v16129_v62, 0.0 }
 0x673   : > { %v6690_v49 = vpop.f32.mrb[200].mxu1 }
 0x674   : > { %v16137_v34 = vadd.f32 %v6690_v49, %v15970_v29  ;;  %v6692_v55 = vpop.f32.mrb[201].mxu1  ;;  %8428 = vmatmul.mubr.msk.f32.gmra.mrb[206].mxu0 %vm18829_vm4, %v17490_v51  ;;  %vm18844_vm4 = vmmov %vm18650_vm0 }
 0x675   : > { %7255 = vmatprep.mubr.f32.mxu0 %v18537_v53 }
 0x676   : > { %v17491_v17 = vmax.f32 %v16137_v34, 0.0 }
 0x677   : > { %v6695_v11 = vpop.f32.mrb[202].mxu1 }
 0x678   : > { %v16145_v25 = vadd.f32 %v6695_v11, %v15988_v54  ;;  %v6697_v59 = vpop.f32.mrb[203].mxu1  ;;  %8429 = vmatmul.mubr.msk.f32.gmra.mrb[208].mxu0 %vm18830_vm5, %v17491_v17  ;;  %vm18845_vm5 = vmmov %vm18650_vm0 }
 0x679   : > { %7261 = vmatprep.mubr.f32.mxu0 %v18537_v53 }
 0x67a   : > { %v17492_v29 = vmax.f32 %v16145_v25, 0.0 }
 0x67b   : > { %v6700_v49 = vpop.f32.mrb[204].mxu1 }
 0x67c   : > { %v16153_v55 = vadd.f32 %v6700_v49, %v16000_v21  ;;  %v6702_v51 = vpop.f32.mrb[205].mxu1  ;;  %8430 = vmatmul.mubr.msk.f32.gmra.mrb[210].mxu0 %vm18831_vm2, %v17492_v29  ;;  %vm18846_vm2 = vmmov %vm18650_vm0 }
 0x67d   : > { %7267 = vmatprep.mubr.f32.mxu0 %v18537_v53 }
 0x67e   : > { %v17493_v54 = vmax.f32 %v16153_v55, 0.0 }
 0x67f   : > { %v6705_v59 = vpop.f32.mrb[206].mxu1 }
 0x680   : > { %v16161_v11 = vadd.f32 %v6705_v59, %v16012_v14  ;;  %v6707_v17 = vpop.f32.mrb[207].mxu1  ;;  %8431 = vmatmul.mubr.msk.f32.gmra.mrb[212].mxu0 %vm18832_vm7, %v17493_v54  ;;  %vm18847_vm7 = vmmov %vm18650_vm0 }
 0x681   : > { %7273 = vmatprep.mubr.f32.mxu0 %v18537_v53 }
 0x682   : > { %v17494_v21 = vmax.f32 %v16161_v11, 0.0 }
 0x683   : > { %v6710_v51 = vpop.f32.mrb[208].mxu1 }
 0x684   : > { %v16169_v49 = vadd.f32 %v6710_v51, %v16024_v7  ;;  %v6712_v29 = vpop.f32.mrb[209].mxu1  ;;  %8432 = vmatmul.mubr.msk.f32.gmra.mrb[214].mxu0 %vm18833_vm8, %v17494_v21  ;;  %vm18848_vm8 = vmmov %vm18650_vm0 }
 0x685   : > { %7279 = vmatprep.mubr.f32.mxu0 %v18537_v53 }
 0x686   : > { %v17495_v14 = vmax.f32 %v16169_v49, 0.0 }
 0x687   : > { %v6715_v17 = vpop.f32.mrb[210].mxu1 }
 0x688   : > { %v16177_v59 = vadd.f32 %v6715_v17, %v16036_v31  ;;  %v6717_v54 = vpop.f32.mrb[211].mxu1  ;;  %8433 = vmatmul.mubr.msk.f32.gmra.mrb[216].mxu0 %vm18834_vm14, %v17495_v14  ;;  %vm18849_vm14 = vmmov %vm18650_vm0 }
 0x689   : > { %7285 = vmatprep.mubr.f32.mxu0 %v18537_v53 }
 0x68a   : > { %v17496_v7 = vmax.f32 %v16177_v59, 0.0 }
 0x68b   : > { %v6720_v29 = vpop.f32.mrb[212].mxu1 }
 0x68c   : > { %v16185_v51 = vadd.f32 %v6720_v29, %v16048_v46  ;;  %v6722_v21 = vpop.f32.mrb[213].mxu1  ;;  %8434 = vmatmul.mubr.msk.f32.gmra.mrb[218].mxu0 %vm18835_vm13, %v17496_v7  ;;  %vm18850_vm13 = vmmov %vm18650_vm0 }
 0x68d   : > { %7291 = vmatprep.mubr.f32.mxu0 %v18537_v53 }
 0x68e   : > { %v17497_v31 = vmax.f32 %v16185_v51, 0.0 }
 0x68f   : > { %v6725_v54 = vpop.f32.mrb[214].mxu1 }
 0x690   : > { %v16193_v17 = vadd.f32 %v6725_v54, %v16060_v13  ;;  %v6727_v14 = vpop.f32.mrb[215].mxu1  ;;  %8435 = vmatmul.mubr.msk.f32.gmra.mrb[220].mxu0 %vm18836_vm3, %v17497_v31  ;;  %vm18851_vm3 = vmmov %vm18650_vm0 }
 0x691   : > { %7297 = vmatprep.mubr.f32.mxu0 %v18537_v53 }
 0x692   : > { %v17498_v46 = vmax.f32 %v16193_v17, 0.0 }
 0x693   : > { %v6730_v21 = vpop.f32.mrb[216].mxu1 }
 0x694   : > { %v16201_v29 = vadd.f32 %v6730_v21, %v16072_v15  ;;  %v6732_v7 = vpop.f32.mrb[217].mxu1  ;;  %8436 = vmatmul.mubr.msk.f32.gmra.mrb[222].mxu0 %vm18837_vm11, %v17498_v46  ;;  %vm18852_vm11 = vmmov %vm18650_vm0 }
 0x695   : > { %7303 = vmatprep.mubr.f32.mxu0 %v18537_v53 }
 0x696   : > { %v17499_v13 = vmax.f32 %v16201_v29, 0.0 }
 0x697   : > { %v6735_v14 = vpop.f32.mrb[218].mxu1 }
 0x698   : > { %v16209_v54 = vadd.f32 %v6735_v14, %v16084_v37  ;;  %v6737_v31 = vpop.f32.mrb[219].mxu1  ;;  %8437 = vmatmul.mubr.msk.f32.gmra.mrb[224].mxu0 %vm18838_vm1, %v17499_v13  ;;  %vm18853_vm1 = vmmov %vm18650_vm0 }
 0x699   : > { %7309 = vmatprep.mubr.f32.mxu0 %v18537_v53 }
 0x69a   : > { %v17500_v15 = vmax.f32 %v16209_v54, 0.0 }
 0x69b   : > { %v6740_v7 = vpop.f32.mrb[124].mxu1 }
 0x69c   : > { %v16217_v21 = vadd.f32 %v15730_v5, %v6740_v7  ;;  %v6742_v46 = vpop.f32.mrb[125].mxu1  ;;  %8438 = vmatmul.mubr.msk.f32.gmra.mrb[226].mxu0 %vm18839_vm12, %v17500_v15  ;;  %vm18854_vm12 = vmmov %vm18650_vm0 }
 0x69d   : > { %7315 = vmatprep.mubr.f32.mxu0 %v18537_v53 }
 0x69e   : > { %v17502_v37 = vmax.f32 %v16217_v21, 0.0 }
 0x69f   : > { %v6745_v31 = vpop.f32.mrb[126].mxu1 }
 0x6a0   : > { %v16225_v14 = vadd.f32 %v15730_v5, %v6745_v31  ;;  %v6747_v13 = vpop.f32.mrb[127].mxu1  ;;  %8439 = vmatmul.mubr.msk.f32.gmra.mrb[228].mxu0 %vm18840_vm6, %v17502_v37  ;;  %vm18855_vm6 = vmmov %vm18650_vm0 }
 0x6a1   : > { %7321 = vmatprep.mubr.f32.mxu0 %v18537_v53 }
 0x6a2   : > { %v17504_v46 = vmax.f32 %v16225_v14, 0.0 }
 0x6a3   : > { %v6750_v7 = vpop.f32.mrb[128].mxu1 }
 0x6a4   : > { %v16233_v15 = vadd.f32 %v15730_v5, %v6750_v7  ;;  %v6752_v47 = vpop.f32.mrb[129].mxu1  ;;  %8440 = vmatmul.mubr.msk.f32.gmra.mrb[230].mxu0 %vm18841_vm10, %v17504_v46  ;;  %vm18856_vm10 = vmmov %vm18650_vm0 }
 0x6a5   : > { %7327 = vmatprep.mubr.f32.mxu0 %v18537_v53 }
 0x6a6   : > { %v17506_v13 = vmax.f32 %v16233_v15, 0.0 }
 0x6a7   : > { %v6755_v31 = vpop.f32.mrb[130].mxu1 }
 0x6a8   : > { %v16241_v37 = vadd.f32 %v15730_v5, %v6755_v31  ;;  %v6757_v32 = vpop.f32.mrb[131].mxu1  ;;  %8441 = vmatmul.mubr.msk.f32.gmra.mrb[232].mxu0 %vm18842_vm15, %v17506_v13  ;;  %vm18857_vm15 = vmmov %vm18650_vm0 }
 0x6a9   : > { %7333 = vmatprep.mubr.f32.mxu0 %v18537_v53 }
 0x6aa   : > { %v17508_v47 = vmax.f32 %v16241_v37, 0.0 }
 0x6ab   : > { %v6760_v7 = vpop.f32.mrb[132].mxu1 }
 0x6ac   : > { %v16249_v46 = vadd.f32 %v15730_v5, %v6760_v7  ;;  %v6762_v33 = vpop.f32.mrb[133].mxu1  ;;  %8442 = vmatmul.mubr.msk.f32.gmra.mrb[234].mxu0 %vm18843_vm9, %v17508_v47  ;;  %vm18858_vm9 = vmmov %vm18650_vm0 }
 0x6ad   : > { %7339 = vmatprep.mubr.f32.mxu0 %v18537_v53 }
 0x6ae   : > { %v17510_v32 = vmax.f32 %v16249_v46, 0.0 }
 0x6af   : > { %v6765_v31 = vpop.f32.mrb[134].mxu1 }
 0x6b0   : > { %v16257_v13 = vadd.f32 %v15730_v5, %v6765_v31  ;;  %v6767_v0 = vpop.f32.mrb[135].mxu1  ;;  %8443 = vmatmul.mubr.msk.f32.gmra.mrb[236].mxu0 %vm18650_vm0, %v17510_v32 }
 0x6b1   : > { %7345 = vmatprep.mubr.f32.mxu0 %v18537_v53 }
 0x6b2   : > { %v17512_v33 = vmax.f32 %v16257_v13, 0.0 }
 0x6b3   : > { %v6770_v7 = vpop.f32.mrb[136].mxu1 }
 0x6b4   : > { %v16265_v47 = vadd.f32 %v15730_v5, %v6770_v7  ;;  %v6772_v50 = vpop.f32.mrb[137].mxu1  ;;  %8444 = vmatmul.mubr.msk.f32.gmra.mrb[238].mxu0 %vm18844_vm4, %v17512_v33  ;;  %vm18859_vm4 = vmmov %vm18650_vm0 }
 0x6b5   : > { %7351 = vmatprep.mubr.f32.mxu0 %v18537_v53 }
 0x6b6   : > { %v17514_v0 = vmax.f32 %v16265_v47, 0.0 }
 0x6b7   : > { %v6775_v31 = vpop.f32.mrb[138].mxu1 }
 0x6b8   : > { %v16273_v32 = vadd.f32 %v15730_v5, %v6775_v31  ;;  %v6777_v52 = vpop.f32.mrb[139].mxu1  ;;  %8445 = vmatmul.mubr.msk.f32.gmra.mrb[240].mxu0 %vm18845_vm5, %v17514_v0  ;;  %vm18860_vm5 = vmmov %vm18650_vm0 }
 0x6b9   : > { %7357 = vmatprep.mubr.f32.mxu0 %v18537_v53 }
 0x6ba   : > { %v17516_v50 = vmax.f32 %v16273_v32, 0.0 }
 0x6bb   : > { %v6780_v7 = vpop.f32.mrb[140].mxu1 }
 0x6bc   : > { %v16281_v33 = vadd.f32 %v15730_v5, %v6780_v7  ;;  %v6782_v63 = vpop.f32.mrb[141].mxu1  ;;  %8446 = vmatmul.mubr.msk.f32.gmra.mrb[242].mxu0 %vm18846_vm2, %v17516_v50  ;;  %vm18862_vm2 = vmmov %vm18650_vm0 }
 0x6bd   : > { %7363 = vmatprep.mubr.f32.mxu0 %v18537_v53 }
 0x6be   : > { %v17518_v52 = vmax.f32 %v16281_v33, 0.0 }
 0x6bf   : > { %v6785_v31 = vpop.f32.mrb[142].mxu1 }
 0x6c0   : > { %v16289_v0 = vadd.f32 %v15730_v5, %v6785_v31  ;;  %v6787_v20 = vpop.f32.mrb[143].mxu1  ;;  %8447 = vmatmul.mubr.msk.f32.gmra.mrb[244].mxu0 %vm18847_vm7, %v17518_v52  ;;  %vm18864_vm7 = vmmov %vm18650_vm0 }
 0x6c1   : > { %7369 = vmatprep.mubr.f32.mxu0 %v18537_v53 }
 0x6c2   : > { %v17520_v63 = vmax.f32 %v16289_v0, 0.0 }
 0x6c3   : > { %v6790_v7 = vpop.f32.mrb[144].mxu1 }
 0x6c4   : > { %v16297_v50 = vadd.f32 %v15730_v5, %v6790_v7  ;;  %v6792_v24 = vpop.f32.mrb[145].mxu1  ;;  %8448 = vmatmul.mubr.msk.f32.gmra.mrb[246].mxu0 %vm18848_vm8, %v17520_v63  ;;  %vm18867_vm8 = vmmov %vm18650_vm0 }
 0x6c5   : > { %7375 = vmatprep.mubr.f32.mxu0 %v18537_v53 }
 0x6c6   : > { %v17522_v20 = vmax.f32 %v16297_v50, 0.0 }
 0x6c7   : > { %v6795_v31 = vpop.f32.mrb[146].mxu1 }
 0x6c8   : > { %v16305_v52 = vadd.f32 %v15730_v5, %v6795_v31  ;;  %v6797_v16 = vpop.f32.mrb[147].mxu1  ;;  %8449 = vmatmul.mubr.msk.f32.gmra.mrb[248].mxu0 %vm18849_vm14, %v17522_v20  ;;  %vm18870_vm14 = vmmov %vm18650_vm0 }
 0x6c9   : > { %7381 = vmatprep.mubr.f32.mxu0 %v18537_v53 }
 0x6ca   : > { %v17524_v24 = vmax.f32 %v16305_v52, 0.0 }
 0x6cb   : > { %v6800_v7 = vpop.f32.mrb[148].mxu1 }
 0x6cc   : > { %v16313_v63 = vadd.f32 %v15730_v5, %v6800_v7  ;;  %v6802_v42 = vpop.f32.mrb[149].mxu1  ;;  %8450 = vmatmul.mubr.msk.f32.gmra.mrb[250].mxu0 %vm18850_vm13, %v17524_v24  ;;  %vm18872_vm13 = vmmov %vm18650_vm0 }
 0x6cd   : > { %7387 = vmatprep.mubr.f32.mxu0 %v18537_v53 }
 0x6ce   : > { %v6859_v16 = vmax.f32 %v16313_v63, 0.0 }
 0x6cf   : > { %v6805_v31 = vpop.f32.mrb[150].mxu1 }
 0x6d0   : > { %v16321_v20 = vadd.f32 %v15730_v5, %v6805_v31  ;;  %v6807_v2 = vpop.f32.mrb[151].mxu1  ;;  %8451 = vmatmul.mubr.msk.f32.gmra.mrb[252].mxu0 %vm18851_vm3, %v6859_v16  ;;  %vm18874_vm3 = vmmov %vm18650_vm0 }
 0x6d1   : > { %7393 = vmatprep.mubr.f32.mxu0 %v18537_v53 }
 0x6d2   : > { %v6860_v42 = vmax.f32 %v16321_v20, 0.0 }
 0x6d3   : > { %v6810_v7 = vpop.f32.mrb[152].mxu1 }
 0x6d4   : > { %v16329_v24 = vadd.f32 %v15730_v5, %v6810_v7  ;;  %v6812_v12 = vpop.f32.mrb[153].mxu1  ;;  %8452 = vmatmul.mubr.msk.f32.gmra.mrb[254].mxu0 %vm18852_vm11, %v6860_v42  ;;  %v18861_v5 = vmax.f32 %v15983_v61, 0.0  ;;  %v18875_v7 = vmax.f32 %v16055_v3, 0.0  ;;  %vm18876_vm11 = vmmov %vm18650_vm0 }
 0x6d5   : > { %7399 = vmatprep.mubr.f32.mxu0 %v18537_v53  ;;  %v16366_v53 = vld [vmem:[%s17000_s10] sm:$0x7] }
 0x6d6   : > { %v6861_v2 = vmax.f32 %v16329_v24, 0.0 }
 0x6d8   : > { %8453 = vmatmul.mubr.msk.f32.gmra.mrb[0].mxu0 %vm18853_vm1, %v6861_v2  ;;  %vm18878_vm1 = vmmov %vm18650_vm0 }
 0x6d9   : > { %8726 = vmatprep.mubr.msk.f32.mxu0 %vm18854_vm12, %v6814_v60  ;;  %v18865_v60 = vld [vmem:[#allocation4_spill] sm:$0xff]  ;;  %vm18880_vm12 = vmmov %vm18650_vm0 }
 0x6da   : > { %v16376_v27 = vrot.slane %v16366_v53, %v18865_v60  ;;  %v10236_v60 = vld [vmem:[%s10509_s29 + $0x20] sm:$0xff] }
 0x6dc   : > { %8727 = vmatmul.mubr.msk.f32.vlgmr.msra.gmra.mrb[2].mxu0 %vm18855_vm6, %v6815_v1  ;;  %v18866_v1 = vmax.f32 %v16007_v43, 0.0  ;;  %vm18882_vm6 = vmmov %vm18650_vm0 }
 0x6dd   : > { %8729 = vmatprep.mubr.msk.f32.mxu0 %vm18856_vm10, %v6816_v38  ;;  %v16383_v38 = vrot.slane %v16366_v53, %v18868_v26  ;;  %vm18884_vm10 = vmmov %vm18650_vm0 }
 0x6e0   : > { %8730 = vmatmul.mubr.msk.f32.gmra.mrb[4].mxu0 %vm18857_vm15, %v6817_v36  ;;  %vm18886_vm15 = vmmov %vm18650_vm0 }
 0x6e1   : > { %8732 = vmatprep.mubr.msk.f32.mxu0 %vm18858_vm9, %v6818_v18  ;;  %v18869_v18 = vmax.f32 %v16019_v39, 0.0  ;;  %v18873_v39 = vmax.f32 %v16043_v41, 0.0  ;;  %vm18888_vm9 = vmmov %vm18650_vm0 }
 0x6e4   : > { %8733 = vmatmul.mubr.msk.f32.gmra.mrb[6].mxu0 %vm18650_vm0, %v6819_v35  ;;  %v18871_v35 = vmax.f32 %v16031_v9, 0.0 }
 0x6e5   : > { %8735 = vmatprep.mubr.msk.f32.mxu0 %vm18859_vm4, %v6820_v6  ;;  %vm18891_vm4 = vmmov %vm18650_vm0 }
 0x6e8   : > { %8736 = vmatmul.mubr.msk.f32.gmra.mrb[8].mxu0 %vm18860_vm5, %v6821_v48  ;;  %vm18893_vm5 = vmmov %vm18650_vm0 }
 0x6e9   : > { %8738 = vmatprep.mubr.msk.f32.mxu0 %vm18862_vm2, %v18861_v5  ;;  %v10235_v5 = vld [vmem:[%s10509_s29 + $0x18] sm:$0xff]  ;;  %vm18895_vm2 = vmmov %vm18650_vm0 }
 0x6ec   : > { %8739 = vmatmul.mubr.msk.f32.gmra.mrb[10].mxu0 %vm18864_vm7, %v18863_v40  ;;  %vm18897_vm7 = vmmov %vm18650_vm0 }
 0x6ed   : > { %8741 = vmatprep.mubr.msk.f32.mxu0 %vm18867_vm8, %v18866_v1  ;;  %vm18899_vm8 = vmmov %vm18650_vm0 }
 0x6ef   : > { %v7119_v4 = vpop.f32.mrb[162].mxu0 }
 0x6f0   : > { %v7120_v36 = vadd.f32 %v7119_v4, %v16376_v27  ;;  %v7121_v30 = vpop.f32.mrb[163].mxu0  ;;  %8742 = vmatmul.mubr.msk.f32.gmra.mrb[12].mxu0 %vm18870_vm14, %v18869_v18  ;;  %vm18901_vm14 = vmmov %vm18650_vm0 }
 0x6f1   : > { %v7122_v19 = vadd.f32 %v7121_v30, %v16383_v38  ;;  %8744 = vmatprep.mubr.msk.f32.mxu0 %vm18872_vm13, %v18871_v35  ;;  %v18877_v30 = vmax.f32 %v16067_v22, 0.0  ;;  %v10237_v35 = vld [vmem:[%s10509_s29 + $0x30] sm:$0xff]  ;;  %vm18903_vm13 = vmmov %vm18650_vm0 }
 0x6f2   : > { %v7711_v6 = vadd.f32 %v10233_v44, %v7120_v36 }
 0x6f3   : > { %v7712_v48 = vadd.f32 %v10234_v8, %v7122_v19  ;;  %v7125_v61 = vpop.f32.mrb[164].mxu0  ;;  %v18879_v19 = vmax.f32 %v16079_v57, 0.0 }
 0x6f4   : > { %v7855_v12 = vmax.f32 %v7711_v6, 0.0  ;;  %v7126_v58 = vadd.f32 %v7125_v61, %v16376_v27  ;;  %v7127_v43 = vpop.f32.mrb[165].mxu0  ;;  %8745 = vmatmul.mubr.msk.f32.gmra.mrb[14].mxu0 %vm18874_vm3, %v18873_v39  ;;  %v10238_v6 = vld [vmem:[%s10509_s29 + $0x38] sm:$0xff]  ;;  %v18883_v39 = vmax.f32 %v16097_v10, 0.0  ;;  %vm18905_vm3 = vmmov %vm18650_vm0 }
 0x6f5   : > { %v7856_v9 = vmax.f32 %v7712_v48, 0.0  ;;  %v7128_v31 = vadd.f32 %v7127_v43, %v16383_v38  ;;  %8747 = vmatprep.mubr.msk.f32.mxu0 %vm18876_vm11, %v18875_v7  ;;  %v10240_v7 = vld [vmem:[%s10509_s29 + $0x50] sm:$0xff]  ;;  %vm18907_vm11 = vmmov %vm18650_vm0 }
 0x6f6   : > { %7999 = vst [vmem:[%s16399_s26] sm:$0xff] %v7855_v12  ;;  %v7714_v40 = vadd.f32 %v10235_v5, %v7126_v58  ;;  %v18881_v58 = vmax.f32 %v16089_v28, 0.0 }
 0x6f7   : > { %8000 = vst [vmem:[%s16399_s26 + $0x8] sm:$0xff] %v7856_v9  ;;  %v7715_v1 = vadd.f32 %v10236_v60, %v7128_v31  ;;  %v7131_v41 = vpop.f32.mrb[166].mxu0  ;;  %v10239_v9 = vld [vmem:[%s10509_s29 + $0x48] sm:$0xff] }
 0x6f8   : > { %v7858_v26 = vmax.f32 %v7714_v40, 0.0  ;;  %v7132_v4 = vadd.f32 %v7131_v41, %v16376_v27  ;;  %v7133_v36 = vpop.f32.mrb[167].mxu0  ;;  %8748 = vmatmul.mubr.msk.f32.gmra.mrb[16].mxu0 %vm18878_vm1, %v18877_v30  ;;  %v18885_v41 = vmax.f32 %v16105_v45, 0.0  ;;  %vm18909_vm1 = vmmov %vm18650_vm0 }
 0x6f9   : > { %v7859_v3 = vmax.f32 %v7715_v1, 0.0  ;;  %v7134_v18 = vadd.f32 %v7133_v36, %v16383_v38  ;;  %8750 = vmatprep.mubr.msk.f32.mxu0 %vm18880_vm12, %v18879_v19  ;;  %v10241_v36 = vld [vmem:[%s10509_s29 + $0x60] sm:$0xff]  ;;  %vm18911_vm12 = vmmov %vm18650_vm0 }
 0x6fa   : > { %8002 = vst [vmem:[%s16399_s26 + $0x18] sm:$0xff] %v7858_v26  ;;  %v7717_v44 = vadd.f32 %v10237_v35, %v7132_v4  ;;  %v18887_v4 = vmax.f32 %v16113_v56, 0.0 }
 0x6fb   : > { %8003 = vst [vmem:[%s16399_s26 + $0x20] sm:$0xff] %v7859_v3  ;;  %v7718_v8 = vadd.f32 %v10238_v6, %v7134_v18  ;;  %v7137_v22 = vpop.f32.mrb[168].mxu0  ;;  %v10242_v3 = vld [vmem:[%s10509_s29 + $0x68] sm:$0xff]  ;;  %v18889_v6 = vmax.f32 %v16121_v23, 0.0 }
 0x6fc   : > { %v7861_v48 = vmax.f32 %v7717_v44, 0.0  ;;  %v7138_v61 = vadd.f32 %v7137_v22, %v16376_v27  ;;  %v7139_v12 = vpop.f32.mrb[169].mxu0  ;;  %8751 = vmatmul.mubr.msk.f32.gmra.mrb[18].mxu0 %vm18882_vm6, %v18881_v58  ;;  %v18890_v22 = vmax.f32 %v16129_v62, 0.0  ;;  %vm18913_vm6 = vmmov %vm18650_vm0 }
 0x6fd   : > { %v7862_v57 = vmax.f32 %v7718_v8, 0.0  ;;  %v7140_v43 = vadd.f32 %v7139_v12, %v16383_v38  ;;  %8753 = vmatprep.mubr.msk.f32.mxu0 %vm18884_vm10, %v18883_v39  ;;  %v10244_v12 = vld [vmem:[%s10509_s29 + $0x80] sm:$0xff]  ;;  %vm18915_vm10 = vmmov %vm18650_vm0 }
 0x6fe   : > { %8005 = vst [vmem:[%s16399_s26 + $0x30] sm:$0xff] %v7861_v48  ;;  %v7720_v31 = vadd.f32 %v10239_v9, %v7138_v61  ;;  %v10243_v48 = vld [vmem:[%s10509_s29 + $0x78] sm:$0xff]  ;;  %v18892_v9 = vmax.f32 %v16137_v34, 0.0 }
 0x6ff   : > { %8006 = vst [vmem:[%s16399_s26 + $0x38] sm:$0xff] %v7862_v57  ;;  %v7721_v5 = vadd.f32 %v10240_v7, %v7140_v43  ;;  %v7143_v28 = vpop.f32.mrb[170].mxu0  ;;  %v18894_v7 = vmax.f32 %v16145_v25, 0.0 }
 0x700   : > { %v7864_v40 = vmax.f32 %v7720_v31, 0.0  ;;  %v7144_v60 = vadd.f32 %v7143_v28, %v16376_v27  ;;  %v7145_v1 = vpop.f32.mrb[171].mxu0  ;;  %8754 = vmatmul.mubr.msk.f32.gmra.mrb[20].mxu0 %vm18886_vm15, %v18885_v41  ;;  %vm18917_vm15 = vmmov %vm18650_vm0 }
 0x701   : > { %v7865_v10 = vmax.f32 %v7721_v5, 0.0  ;;  %v7146_v26 = vadd.f32 %v7145_v1, %v16383_v38  ;;  %8756 = vmatprep.mubr.msk.f32.mxu0 %vm18888_vm9, %v18887_v4  ;;  %v10245_v5 = vld [vmem:[%s10509_s29 + $0x90] sm:$0xff]  ;;  %vm18919_vm9 = vmmov %vm18650_vm0 }
 0x702   : > { %8008 = vst [vmem:[%s16399_s26 + $0x48] sm:$0xff] %v7864_v40  ;;  %v7723_v30 = vadd.f32 %v10241_v36, %v7144_v60  ;;  %v10246_v40 = vld [vmem:[%s10509_s29 + $0x98] sm:$0xff]  ;;  %v18898_v36 = vmax.f32 %v16161_v11, 0.0 }
 0x703   : > { %8009 = vst [vmem:[%s16399_s26 + $0x50] sm:$0xff] %v7865_v10  ;;  %v7724_v18 = vadd.f32 %v10242_v3, %v7146_v26  ;;  %v7149_v45 = vpop.f32.mrb[172].mxu0  ;;  %v18896_v26 = vmax.f32 %v16153_v55, 0.0 }
 0x704   : > { %v7867_v19 = vmax.f32 %v7723_v30, 0.0  ;;  %v7150_v35 = vadd.f32 %v7149_v45, %v16376_v27  ;;  %v7151_v44 = vpop.f32.mrb[173].mxu0  ;;  %8757 = vmatmul.mubr.msk.f32.gmra.mrb[22].mxu0 %vm18650_vm0, %v18889_v6  ;;  %v10247_v30 = vld [vmem:[%s10509_s29 + $0xa8] sm:$0xff]  ;;  %v18900_v6 = vmax.f32 %v16169_v49, 0.0 }
 0x705   : > { %v7868_v56 = vmax.f32 %v7724_v18, 0.0  ;;  %v7152_v8 = vadd.f32 %v7151_v44, %v16383_v38  ;;  %8759 = vmatprep.mubr.msk.f32.mxu0 %vm18891_vm4, %v18890_v22  ;;  %v10248_v18 = vld [vmem:[%s10509_s29 + $0xb0] sm:$0xff]  ;;  %v10249_v22 = vld [vmem:[%s10509_s29 + $0xc0] sm:$0xff]  ;;  %vm18922_vm4 = vmmov %vm18650_vm0 }
 0x706   : > { %8011 = vst [vmem:[%s16399_s26 + $0x60] sm:$0xff] %v7867_v19  ;;  %v7726_v61 = vadd.f32 %v10243_v48, %v7150_v35 }
 0x707   : > { %8012 = vst [vmem:[%s16399_s26 + $0x68] sm:$0xff] %v7868_v56  ;;  %v7727_v58 = vadd.f32 %v10244_v12, %v7152_v8  ;;  %v7155_v23 = vpop.f32.mrb[174].mxu0  ;;  %v18902_v8 = vmax.f32 %v16177_v59, 0.0 }
 0x708   : > { %v7870_v57 = vmax.f32 %v7726_v61, 0.0  ;;  %v7156_v43 = vadd.f32 %v7155_v23, %v16376_v27  ;;  %v7157_v39 = vpop.f32.mrb[175].mxu0  ;;  %8760 = vmatmul.mubr.msk.f32.gmra.mrb[24].mxu0 %vm18893_vm5, %v18892_v9  ;;  %v10250_v61 = vld [vmem:[%s10509_s29 + $0xc8] sm:$0xff]  ;;  %v18906_v9 = vmax.f32 %v16193_v17, 0.0  ;;  %vm18924_vm5 = vmmov %vm18650_vm0 }
 0x709   : > { %v7871_v62 = vmax.f32 %v7727_v58, 0.0  ;;  %v7158_v31 = vadd.f32 %v7157_v39, %v16383_v38  ;;  %8762 = vmatprep.mubr.msk.f32.mxu0 %vm18895_vm2, %v18894_v7  ;;  %v10252_v7 = vld [vmem:[%s10509_s29 + $0xe0] sm:$0xff]  ;;  %vm18926_vm2 = vmmov %vm18650_vm0 }
 0x70a   : > { %8014 = vst [vmem:[%s16399_s26 + $0x78] sm:$0xff] %v7870_v57  ;;  %v7729_v28 = vadd.f32 %v10245_v5, %v7156_v43  ;;  %v18904_v43 = vmax.f32 %v16185_v51, 0.0 }
 0x70b   : > { %8015 = vst [vmem:[%s16399_s26 + $0x80] sm:$0xff] %v7871_v62  ;;  %v7730_v60 = vadd.f32 %v10246_v40, %v7158_v31  ;;  %v7161_v34 = vpop.f32.mrb[176].mxu0  ;;  %v10251_v62 = vld [vmem:[%s10509_s29 + $0xd8] sm:$0xff] }
 0x70c   : > { %v7873_v1 = vmax.f32 %v7729_v28, 0.0  ;;  %v7162_v41 = vadd.f32 %v7161_v34, %v16376_v27  ;;  %v7163_v10 = vpop.f32.mrb[177].mxu0  ;;  %8763 = vmatmul.mubr.msk.f32.gmra.mrb[26].mxu0 %vm18897_vm7, %v18896_v26  ;;  %v18908_v34 = vmax.f32 %v16201_v29, 0.0  ;;  %vm18928_vm7 = vmmov %vm18650_vm0 }
 0x70d   : > { %v7874_v25 = vmax.f32 %v7730_v60, 0.0  ;;  %v7164_v4 = vadd.f32 %v7163_v10, %v16383_v38  ;;  %8765 = vmatprep.mubr.msk.f32.mxu0 %vm18899_vm8, %v18898_v36  ;;  %v10253_v10 = vld [vmem:[%s10509_s29 + $0xf0] sm:$0xff]  ;;  %vm18930_vm8 = vmmov %vm18650_vm0 }
 0x70e   : > { %8017 = vst [vmem:[%s16399_s26 + $0x90] sm:$0xff] %v7873_v1  ;;  %v7732_v3 = vadd.f32 %v10247_v30, %v7162_v41  ;;  %v18910_v41 = vmax.f32 %v16209_v54, 0.0 }
 0x70f   : > { %8018 = vst [vmem:[%s16399_s26 + $0x98] sm:$0xff] %v7874_v25  ;;  %v7733_v45 = vadd.f32 %v10248_v18, %v7164_v4  ;;  %v7167_v55 = vpop.f32.mrb[178].mxu0  ;;  %v10254_v25 = vld [vmem:[%s10509_s29 + $0xf8] sm:$0xff]  ;;  %v18912_v18 = vmax.f32 %v16217_v21, 0.0 }
 0x710   : > { %v7876_v19 = vmax.f32 %v7732_v3, 0.0  ;;  %v7168_v35 = vadd.f32 %v7167_v55, %v16376_v27  ;;  %v7169_v44 = vpop.f32.mrb[179].mxu0  ;;  %8766 = vmatmul.mubr.msk.f32.gmra.mrb[28].mxu0 %vm18901_vm14, %v18900_v6  ;;  %v18914_v55 = vmax.f32 %v16225_v14, 0.0  ;;  %vm18932_vm14 = vmmov %vm18650_vm0 }
 0x711   : > { %v7877_v11 = vmax.f32 %v7733_v45, 0.0  ;;  %v7170_v56 = vadd.f32 %v7169_v44, %v16383_v38  ;;  %8768 = vmatprep.mubr.msk.f32.mxu0 %vm18903_vm13, %v18902_v8  ;;  %v10256_v44 = vld [vmem:[%s10509_s29 + $0x110] sm:$0xff]  ;;  %vm18934_vm13 = vmmov %vm18650_vm0 }
 0x712   : > { %8020 = vst [vmem:[%s16399_s26 + $0xa8] sm:$0xff] %v7876_v19  ;;  %v7735_v48 = vadd.f32 %v10249_v22, %v7168_v35  ;;  %v10255_v19 = vld [vmem:[%s10509_s29 + $0x108] sm:$0xff]  ;;  %v18916_v22 = vmax.f32 %v16233_v15, 0.0 }
 0x713   : > { %8021 = vst [vmem:[%s16399_s26 + $0xb0] sm:$0xff] %v7877_v11  ;;  %v7736_v12 = vadd.f32 %v10250_v61, %v7170_v56  ;;  %v7173_v49 = vpop.f32.mrb[180].mxu0  ;;  %v18918_v61 = vmax.f32 %v16241_v37, 0.0 }
 0x714   : > { %v7879_v58 = vmax.f32 %v7735_v48, 0.0  ;;  %v7174_v23 = vadd.f32 %v7173_v49, %v16376_v27  ;;  %v7175_v57 = vpop.f32.mrb[181].mxu0  ;;  %8769 = vmatmul.mubr.msk.f32.gmra.mrb[30].mxu0 %vm18905_vm3, %v18904_v43  ;;  %vm18935_vm3 = vmmov %vm18650_vm0 }
 0x715   : > { %v7880_v59 = vmax.f32 %v7736_v12, 0.0  ;;  %v7176_v39 = vadd.f32 %v7175_v57, %v16383_v38  ;;  %8771 = vmatprep.mubr.msk.f32.mxu0 %vm18907_vm11, %v18906_v9  ;;  %v10257_v12 = vld [vmem:[%s10509_s29 + $0x120] sm:$0xff]  ;;  %vm18936_vm11 = vmmov %vm18650_vm0 }
 0x716   : > { %8023 = vst [vmem:[%s16399_s26 + $0xc0] sm:$0xff] %v7879_v58  ;;  %v7738_v31 = vadd.f32 %v10251_v62, %v7174_v23  ;;  %v10258_v58 = vld [vmem:[%s10509_s29 + $0x128] sm:$0xff]  ;;  %v18921_v62 = vmax.f32 %v16257_v13, 0.0 }
 0x717   : > { %8024 = vst [vmem:[%s16399_s26 + $0xc8] sm:$0xff] %v7880_v59  ;;  %v7739_v5 = vadd.f32 %v10252_v7, %v7176_v39  ;;  %v7179_v51 = vpop.f32.mrb[182].mxu0  ;;  %v18920_v39 = vmax.f32 %v16249_v46, 0.0 }
 0x718   : > { %v7882_v28 = vmax.f32 %v7738_v31, 0.0  ;;  %v7180_v40 = vadd.f32 %v7179_v51, %v16376_v27  ;;  %v7181_v60 = vpop.f32.mrb[183].mxu0  ;;  %8772 = vmatmul.mubr.msk.f32.gmra.mrb[32].mxu0 %vm18909_vm1, %v18908_v34  ;;  %v10259_v31 = vld [vmem:[%s10509_s29 + $0x138] sm:$0xff]  ;;  %v18923_v34 = vmax.f32 %v16265_v47, 0.0  ;;  %vm18937_vm1 = vmmov %vm18650_vm0 }
 0x719   : > { %v7883_v17 = vmax.f32 %v7739_v5, 0.0  ;;  %v7182_v1 = vadd.f32 %v7181_v60, %v16383_v38  ;;  %8774 = vmatprep.mubr.msk.f32.mxu0 %vm18911_vm12, %v18910_v41  ;;  %v10260_v5 = vld [vmem:[%s10509_s29 + $0x140] sm:$0xff]  ;;  %v10261_v41 = vld [vmem:[%s10509_s29 + $0x150] sm:$0xff]  ;;  %vm18939_vm12 = vcmask 523264  }
 0x71a   : > { %8026 = vst [vmem:[%s16399_s26 + $0xd8] sm:$0xff] %v7882_v28  ;;  %v7741_v26 = vadd.f32 %v10253_v10, %v7180_v40 }
 0x71b   : > { %8027 = vst [vmem:[%s16399_s26 + $0xe0] sm:$0xff] %v7883_v17  ;;  %v7742_v4 = vadd.f32 %v10254_v25, %v7182_v1  ;;  %v7185_v29 = vpop.f32.mrb[184].mxu0  ;;  %v18925_v1 = vmax.f32 %v16273_v32, 0.0 }
 0x71c   : > { %v7885_v36 = vmax.f32 %v7741_v26, 0.0  ;;  %v7186_v30 = vadd.f32 %v7185_v29, %v16376_v27  ;;  %v7187_v3 = vpop.f32.mrb[185].mxu0  ;;  %8775 = vmatmul.mubr.msk.f32.gmra.mrb[34].mxu0 %vm18913_vm6, %v18912_v18  ;;  %v10262_v26 = vld [vmem:[%s10509_s29 + $0x158] sm:$0xff]  ;;  %v18929_v18 = vmax.f32 %v16289_v0, 0.0  ;;  %vm18940_vm6 = vmmov %vm18939_vm12 }
 0x71d   : > { %v7886_v54 = vmax.f32 %v7742_v4, 0.0  ;;  %v7188_v45 = vadd.f32 %v7187_v3, %v16383_v38  ;;  %8777 = vmatprep.mubr.msk.f32.mxu0 %vm18915_vm10, %v18914_v55  ;;  %v10264_v55 = vld [vmem:[%s10509_s29 + $0x170] sm:$0xff]  ;;  %vm18941_vm10 = vmmov %vm18940_vm6 }
 0x71e   : > { %8029 = vst [vmem:[%s16399_s26 + $0xf0] sm:$0xff] %v7885_v36  ;;  %v7744_v35 = vadd.f32 %v10255_v19, %v7186_v30  ;;  %v18927_v30 = vmax.f32 %v16281_v33, 0.0 }
 0x71f   : > { %8030 = vst [vmem:[%s16399_s26 + $0xf8] sm:$0xff] %v7886_v54  ;;  %v7745_v6 = vadd.f32 %v10256_v44, %v7188_v45  ;;  %v7191_v21 = vpop.f32.mrb[186].mxu0  ;;  %v10263_v54 = vld [vmem:[%s10509_s29 + $0x168] sm:$0xff] }
 0x720   : > { %v7888_v11 = vmax.f32 %v7744_v35, 0.0  ;;  %v7192_v56 = vadd.f32 %v7191_v21, %v16376_v27  ;;  %v7193_v8 = vpop.f32.mrb[187].mxu0  ;;  %8778 = vmatmul.mubr.msk.f32.gmra.mrb[36].mxu0 %vm18917_vm15, %v18916_v22  ;;  %v18931_v21 = vmax.f32 %v16297_v50, 0.0  ;;  %vm18942_vm15 = vmmov %vm18940_vm6 }
 0x721   : > { %v7889_v14 = vmax.f32 %v7745_v6, 0.0  ;;  %v7194_v48 = vadd.f32 %v7193_v8, %v16383_v38  ;;  %8780 = vmatprep.mubr.msk.f32.mxu0 %vm18919_vm9, %v18918_v61  ;;  %v10265_v8 = vld [vmem:[%s10509_s29 + $0x180] sm:$0xff]  ;;  %vm18943_vm9 = vmmov %vm18940_vm6 }
 0x722   : > { %8032 = vst [vmem:[%s16399_s26 + $0x108] sm:$0xff] %v7888_v11  ;;  %v7747_v49 = vadd.f32 %v10257_v12, %v7192_v56  ;;  %v18933_v56 = vmax.f32 %v16305_v52, 0.0 }
 0x723   : > { %8033 = vst [vmem:[%s16399_s26 + $0x110] sm:$0xff] %v7889_v14  ;;  %v7748_v23 = vadd.f32 %v10258_v58, %v7194_v48  ;;  %v7197_v15 = vpop.f32.mrb[188].mxu0  ;;  %v10266_v14 = vld [vmem:[%s10509_s29 + $0x188] sm:$0xff] }
 0x724   : > { %v7891_v57 = vmax.f32 %v7747_v49, 0.0  ;;  %v7198_v43 = vadd.f32 %v7197_v15, %v16376_v27  ;;  %v7199_v59 = vpop.f32.mrb[189].mxu0  ;;  %8781 = vmatmul.mubr.msk.f32.gmra.mrb[38].mxu0 %vm18650_vm0, %v18920_v39  ;;  %vm18944_vm0 = vmmov %vm18940_vm6 }
 0x725   : > { %v7892_v37 = vmax.f32 %v7748_v23, 0.0  ;;  %v7200_v9 = vadd.f32 %v7199_v59, %v16383_v38  ;;  %8783 = vmatprep.mubr.msk.f32.mxu0 %vm18922_vm4, %v18921_v62  ;;  %v10267_v23 = vld [vmem:[%s10509_s29 + $0x198] sm:$0xff]  ;;  %vm18945_vm4 = vmmov %vm18944_vm0 }
 0x726   : > { %8035 = vst [vmem:[%s16399_s26 + $0x120] sm:$0xff] %v7891_v57  ;;  %v7750_v7 = vadd.f32 %v10259_v31, %v7198_v43  ;;  %v10268_v57 = vld [vmem:[%s10509_s29 + $0x1a0] sm:$0xff]  ;;  %v10270_v62 = vld [vmem:[%s10509_s29 + $0x1b8] sm:$0xff] }
 0x727   : > { %8036 = vst [vmem:[%s16399_s26 + $0x128] sm:$0xff] %v7892_v37  ;;  %v7751_v51 = vadd.f32 %v10260_v5, %v7200_v9  ;;  %v7203_v46 = vpop.f32.mrb[190].mxu0  ;;  %v10269_v37 = vld [vmem:[%s10509_s29 + $0x1b0] sm:$0xff] }
 0x728   : > { %v7894_v28 = vmax.f32 %v7750_v7, 0.0  ;;  %v7204_v40 = vadd.f32 %v7203_v46, %v16376_v27  ;;  %v7205_v60 = vpop.f32.mrb[191].mxu0  ;;  %8784 = vmatmul.mubr.msk.f32.gmra.mrb[40].mxu0 %vm18924_vm5, %v18923_v34  ;;  %vm18946_vm5 = vmmov %vm18944_vm0 }
 0x729   : > { %v7895_v13 = vmax.f32 %v7751_v51, 0.0  ;;  %v7206_v17 = vadd.f32 %v7205_v60, %v16383_v38  ;;  %8786 = vmatprep.mubr.msk.f32.mxu0 %vm18926_vm2, %v18925_v1  ;;  %v10272_v60 = vld [vmem:[%s10509_s29 + $0x1d0] sm:$0xff]  ;;  %vm18947_vm2 = vmmov %vm18944_vm0 }
 0x72a   : > { %8038 = vst [vmem:[%s16399_s26 + $0x138] sm:$0xff] %v7894_v28  ;;  %v7753_v10 = vadd.f32 %v10261_v41, %v7204_v40  ;;  %v10271_v28 = vld [vmem:[%s10509_s29 + $0x1c8] sm:$0xff] }
 0x72b   : > { %8039 = vst [vmem:[%s16399_s26 + $0x140] sm:$0xff] %v7895_v13  ;;  %v7754_v25 = vadd.f32 %v10262_v26, %v7206_v17  ;;  %v7209_v47 = vpop.f32.mrb[192].mxu0 }
 0x72c   : > { %v7897_v4 = vmax.f32 %v7753_v10, 0.0  ;;  %v7210_v29 = vadd.f32 %v7209_v47, %v16376_v27  ;;  %v7211_v36 = vpop.f32.mrb[193].mxu0  ;;  %8787 = vmatmul.mubr.msk.f32.gmra.mrb[42].mxu0 %vm18928_vm7, %v18927_v30  ;;  %vm18948_vm7 = vmmov %vm18944_vm0 }
 0x72d   : > { %v7898_v32 = vmax.f32 %v7754_v25, 0.0  ;;  %v7212_v3 = vadd.f32 %v7211_v36, %v16383_v38  ;;  %8789 = vmatprep.mubr.msk.f32.mxu0 %vm18930_vm8, %v18929_v18  ;;  %v10273_v25 = vld [vmem:[%s10509_s29 + $0x1e0] sm:$0xff]  ;;  %vm18949_vm8 = vmmov %vm18944_vm0 }
 0x72e   : > { %8041 = vst [vmem:[%s16399_s26 + $0x150] sm:$0xff] %v7897_v4  ;;  %v7756_v45 = vadd.f32 %v10263_v54, %v7210_v29  ;;  %v10274_v4 = vld [vmem:[%s10509_s29 + $0x1e8] sm:$0xff] }
 0x72f   : > { %8042 = vst [vmem:[%s16399_s26 + $0x158] sm:$0xff] %v7898_v32  ;;  %v7757_v19 = vadd.f32 %v10264_v55, %v7212_v3  ;;  %v7215_v33 = vpop.f32.mrb[194].mxu0 }
 0x730   : > { %v7900_v35 = vmax.f32 %v7756_v45, 0.0  ;;  %v7216_v44 = vadd.f32 %v7215_v33, %v16376_v27  ;;  %v7217_v6 = vpop.f32.mrb[195].mxu0  ;;  %8790 = vmatmul.mubr.msk.f32.gmra.mrb[44].mxu0 %vm18932_vm14, %v18931_v21  ;;  %v10275_v45 = vld [vmem:[%s10509_s29 + $0x1f8] sm:$0xff]  ;;  %vm18950_vm14 = vmmov %vm18944_vm0 }
 0x731   : > { %v7901_v0 = vmax.f32 %v7757_v19, 0.0  ;;  %v7218_v11 = vadd.f32 %v7217_v6, %v16383_v38  ;;  %8792 = vmatprep.mubr.msk.f32.mxu0 %vm18934_vm13, %v18933_v56  ;;  %v10276_v19 = vld [vmem:[%s10509_s29 + $0x200] sm:$0xff]  ;;  %v10277_v56 = vld [vmem:[%s10509_s29 + $0x210] sm:$0xff]  ;;  %vm18951_vm13 = vmmov %vm18944_vm0 }
 0x732   : > { %8044 = vst [vmem:[%s16399_s26 + $0x168] sm:$0xff] %v7900_v35  ;;  %v7759_v22 = vadd.f32 %v10265_v8, %v7216_v44 }
 0x733   : > { %8045 = vst [vmem:[%s16399_s26 + $0x170] sm:$0xff] %v7901_v0  ;;  %v7760_v48 = vadd.f32 %v10266_v14, %v7218_v11  ;;  %v7221_v50 = vpop.f32.mrb[196].mxu0 }
 0x734   : > { %v7903_v61 = vmax.f32 %v7759_v22, 0.0  ;;  %v7222_v12 = vadd.f32 %v7221_v50, %v16376_v27  ;;  %v7223_v49 = vpop.f32.mrb[197].mxu0  ;;  %8793 = vmatmul.mubr.msk.f32.gmra.mrb[46].mxu0 %vm18935_vm3, %v6859_v16  ;;  %v10278_v22 = vld [vmem:[%s10509_s29 + $0x218] sm:$0xff]  ;;  %vm18952_vm3 = vmmov %vm18944_vm0 }
 0x735   : > { %v7904_v52 = vmax.f32 %v7760_v48, 0.0  ;;  %v7224_v58 = vadd.f32 %v7223_v49, %v16383_v38  ;;  %8795 = vmatprep.mubr.msk.f32.mxu0 %vm18936_vm11, %v6860_v42  ;;  %vm18953_vm11 = vmmov %vm18944_vm0 }
 0x736   : > { %8047 = vst [vmem:[%s16399_s26 + $0x180] sm:$0xff] %v7903_v61  ;;  %v7762_v15 = vadd.f32 %v10267_v23, %v7222_v12 }
 0x737   : > { %8048 = vst [vmem:[%s16399_s26 + $0x188] sm:$0xff] %v7904_v52  ;;  %v7763_v43 = vadd.f32 %v10268_v57, %v7224_v58  ;;  %v7227_v63 = vpop.f32.mrb[198].mxu0  ;;  %v10279_v58 = vld [vmem:[%s10509_s29 + $0x228] sm:$0xff] }
 0x738   : > { %v7906_v59 = vmax.f32 %v7762_v15, 0.0  ;;  %v7228_v16 = vadd.f32 %v7227_v63, %v16376_v27  ;;  %v7229_v39 = vpop.f32.mrb[199].mxu0  ;;  %8796 = vmatmul.mubr.msk.f32.gmra.mrb[48].mxu0 %vm18937_vm1, %v6861_v2  ;;  %v10280_v15 = vld [vmem:[%s10509_s29 + $0x230] sm:$0xff]  ;;  %vm18954_vm1 = vmmov %vm18944_vm0 }
 0x739   : > { %v7907_v20 = vmax.f32 %v7763_v43, 0.0  ;;  %v7230_v42 = vadd.f32 %v7229_v39, %v16383_v38 }
 0x73a   : > { %8050 = vst [vmem:[%s16399_s26 + $0x198] sm:$0xff] %v7906_v59  ;;  %v7765_v9 = vadd.f32 %v10269_v37, %v7228_v16 }
 0x73b   : > { %8051 = vst [vmem:[%s16399_s26 + $0x1a0] sm:$0xff] %v7907_v20  ;;  %v7766_v31 = vadd.f32 %v10270_v62, %v7230_v42  ;;  %v7233_v7 = vpop.f32.mrb[200].mxu0  ;;  %v10281_v42 = vld [vmem:[%s10509_s29 + $0x240] sm:$0xff] }
 0x73c   : > { %v7909_v5 = vmax.f32 %v7765_v9, 0.0  ;;  %v7234_v51 = vadd.f32 %v7233_v7, %v16376_v27  ;;  %v7235_v24 = vpop.f32.mrb[201].mxu0  ;;  %v10282_v9 = vld [vmem:[%s10509_s29 + $0x248] sm:$0xff] }
 0x73d   : > { %v7910_v2 = vmax.f32 %v7766_v31, 0.0  ;;  %v7236_v46 = vadd.f32 %v7235_v24, %v16383_v38 }
 0x73e   : > { %8053 = vst [vmem:[%s16399_s26 + $0x1b0] sm:$0xff] %v7909_v5  ;;  %v7768_v40 = vadd.f32 %v10271_v28, %v7234_v51 }
 0x73f   : > { %8054 = vst [vmem:[%s16399_s26 + $0x1b8] sm:$0xff] %v7910_v2  ;;  %v7769_v34 = vadd.f32 %v10272_v60, %v7236_v46  ;;  %v7239_v13 = vpop.f32.mrb[202].mxu0  ;;  %v10283_v46 = vld [vmem:[%s10509_s29 + $0x258] sm:$0xff] }
 0x740   : > { %v7912_v17 = vmax.f32 %v7768_v40, 0.0  ;;  %v7240_v1 = vadd.f32 %v7239_v13, %v16376_v27  ;;  %v7241_v41 = vpop.f32.mrb[203].mxu0  ;;  %v10284_v40 = vld [vmem:[%s10509_s29 + $0x260] sm:$0xff] }
 0x741   : > { %v7913_v10 = vmax.f32 %v7769_v34, 0.0  ;;  %v7242_v26 = vadd.f32 %v7241_v41, %v16383_v38 }
 0x742   : > { %8056 = vst [vmem:[%s16399_s26 + $0x1c8] sm:$0xff] %v7912_v17  ;;  %v7771_v47 = vadd.f32 %v10273_v25, %v7240_v1 }
 0x743   : > { %8057 = vst [vmem:[%s16399_s26 + $0x1d0] sm:$0xff] %v7913_v10  ;;  %v7772_v29 = vadd.f32 %v10274_v4, %v7242_v26  ;;  %v7245_v36 = vpop.f32.mrb[204].mxu0  ;;  %v10285_v26 = vld [vmem:[%s10509_s29 + $0x270] sm:$0xff] }
 0x744   : > { %v7915_v30 = vmax.f32 %v7771_v47, 0.0  ;;  %v7246_v32 = vadd.f32 %v7245_v36, %v16376_v27  ;;  %v7247_v3 = vpop.f32.mrb[205].mxu0  ;;  %v10286_v47 = vld [vmem:[%s10509_s29 + $0x278] sm:$0xff] }
 0x745   : > { %v7916_v18 = vmax.f32 %v7772_v29, 0.0  ;;  %v7248_v54 = vadd.f32 %v7247_v3, %v16383_v38 }
 0x746   : > { %8059 = vst [vmem:[%s16399_s26 + $0x1e0] sm:$0xff] %v7915_v30  ;;  %v7774_v55 = vadd.f32 %v10275_v45, %v7246_v32 }
 0x747   : > { %8060 = vst [vmem:[%s16399_s26 + $0x1e8] sm:$0xff] %v7916_v18  ;;  %v7775_v33 = vadd.f32 %v10276_v19, %v7248_v54  ;;  %v7251_v35 = vpop.f32.mrb[206].mxu0  ;;  %v10287_v54 = vld [vmem:[%s10509_s29 + $0x288] sm:$0xff] }
 0x748   : > { %v7918_v44 = vmax.f32 %v7774_v55, 0.0  ;;  %v7252_v6 = vadd.f32 %v7251_v35, %v16376_v27  ;;  %v7253_v21 = vpop.f32.mrb[207].mxu0  ;;  %v10288_v55 = vld [vmem:[%s10509_s29 + $0x290] sm:$0xff] }
 0x749   : > { %v7919_v0 = vmax.f32 %v7775_v33, 0.0  ;;  %v7254_v11 = vadd.f32 %v7253_v21, %v16383_v38 }
 0x74a   : > { %8062 = vst [vmem:[%s16399_s26 + $0x1f8] sm:$0xff] %v7918_v44  ;;  %v7777_v8 = vadd.f32 %v10277_v56, %v7252_v6 }
 0x74b   : > { %8063 = vst [vmem:[%s16399_s26 + $0x200] sm:$0xff] %v7919_v0  ;;  %v7778_v14 = vadd.f32 %v10278_v22, %v7254_v11  ;;  %v7257_v48 = vpop.f32.mrb[208].mxu0  ;;  %v10289_v11 = vld [vmem:[%s10509_s29 + $0x2a0] sm:$0xff] }
 0x74c   : > { %v7921_v50 = vmax.f32 %v7777_v8, 0.0  ;;  %v7258_v61 = vadd.f32 %v7257_v48, %v16376_v27  ;;  %v7259_v12 = vpop.f32.mrb[209].mxu0  ;;  %v10290_v8 = vld [vmem:[%s10509_s29 + $0x2a8] sm:$0xff] }
 0x74d   : > { %v7922_v49 = vmax.f32 %v7778_v14, 0.0  ;;  %v7260_v52 = vadd.f32 %v7259_v12, %v16383_v38 }
 0x74e   : > { %8065 = vst [vmem:[%s16399_s26 + $0x210] sm:$0xff] %v7921_v50  ;;  %v7780_v23 = vadd.f32 %v10279_v58, %v7258_v61 }
 0x74f   : > { %8066 = vst [vmem:[%s16399_s26 + $0x218] sm:$0xff] %v7922_v49  ;;  %v7781_v57 = vadd.f32 %v10280_v15, %v7260_v52  ;;  %v7263_v43 = vpop.f32.mrb[210].mxu0  ;;  %v10291_v52 = vld [vmem:[%s10509_s29 + $0x2b8] sm:$0xff] }
 0x750   : > { %v7924_v63 = vmax.f32 %v7780_v23, 0.0  ;;  %v7264_v59 = vadd.f32 %v7263_v43, %v16376_v27  ;;  %v7265_v16 = vpop.f32.mrb[211].mxu0  ;;  %v10292_v23 = vld [vmem:[%s10509_s29 + $0x2c0] sm:$0xff] }
 0x751   : > { %v7925_v39 = vmax.f32 %v7781_v57, 0.0  ;;  %v7266_v20 = vadd.f32 %v7265_v16, %v16383_v38 }
 0x752   : > { %8068 = vst [vmem:[%s16399_s26 + $0x228] sm:$0xff] %v7924_v63  ;;  %v7783_v37 = vadd.f32 %v10281_v42, %v7264_v59 }
 0x753   : > { %8069 = vst [vmem:[%s16399_s26 + $0x230] sm:$0xff] %v7925_v39  ;;  %v7784_v62 = vadd.f32 %v10282_v9, %v7266_v20  ;;  %v7269_v31 = vpop.f32.mrb[212].mxu0  ;;  %v10293_v20 = vld [vmem:[%s10509_s29 + $0x2d0] sm:$0xff] }
 0x754   : > { %v7927_v7 = vmax.f32 %v7783_v37, 0.0  ;;  %v7270_v5 = vadd.f32 %v7269_v31, %v16376_v27  ;;  %v7271_v51 = vpop.f32.mrb[213].mxu0  ;;  %v10294_v37 = vld [vmem:[%s10509_s29 + $0x2d8] sm:$0xff] }
 0x755   : > { %v7928_v24 = vmax.f32 %v7784_v62, 0.0  ;;  %v7272_v2 = vadd.f32 %v7271_v51, %v16383_v38 }
 0x756   : > { %8071 = vst [vmem:[%s16399_s26 + $0x240] sm:$0xff] %v7927_v7  ;;  %v7786_v28 = vadd.f32 %v10283_v46, %v7270_v5 }
 0x757   : > { %8072 = vst [vmem:[%s16399_s26 + $0x248] sm:$0xff] %v7928_v24  ;;  %v7787_v60 = vadd.f32 %v10284_v40, %v7272_v2  ;;  %v7275_v34 = vpop.f32.mrb[214].mxu0  ;;  %v10295_v2 = vld [vmem:[%s10509_s29 + $0x2e8] sm:$0xff] }
 0x758   : > { %v7930_v13 = vmax.f32 %v7786_v28, 0.0  ;;  %v7276_v17 = vadd.f32 %v7275_v34, %v16376_v27  ;;  %v7277_v1 = vpop.f32.mrb[215].mxu0  ;;  %v10296_v28 = vld [vmem:[%s10509_s29 + $0x2f0] sm:$0xff] }
 0x759   : > { %v7931_v41 = vmax.f32 %v7787_v60, 0.0  ;;  %v7278_v10 = vadd.f32 %v7277_v1, %v16383_v38 }
 0x75a   : > { %8074 = vst [vmem:[%s16399_s26 + $0x258] sm:$0xff] %v7930_v13  ;;  %v7789_v25 = vadd.f32 %v10285_v26, %v7276_v17 }
 0x75b   : > { %8075 = vst [vmem:[%s16399_s26 + $0x260] sm:$0xff] %v7931_v41  ;;  %v7790_v4 = vadd.f32 %v10286_v47, %v7278_v10  ;;  %v7281_v29 = vpop.f32.mrb[216].mxu0  ;;  %v10297_v10 = vld [vmem:[%s10509_s29 + $0x300] sm:$0xff] }
 0x75c   : > { %v7933_v36 = vmax.f32 %v7789_v25, 0.0  ;;  %v7282_v30 = vadd.f32 %v7281_v29, %v16376_v27  ;;  %v7283_v32 = vpop.f32.mrb[217].mxu0  ;;  %v10298_v25 = vld [vmem:[%s10509_s29 + $0x308] sm:$0xff] }
 0x75d   : > { %v7934_v3 = vmax.f32 %v7790_v4, 0.0  ;;  %v7284_v18 = vadd.f32 %v7283_v32, %v16383_v38 }
 0x75e   : > { %8077 = vst [vmem:[%s16399_s26 + $0x270] sm:$0xff] %v7933_v36  ;;  %v7792_v45 = vadd.f32 %v10287_v54, %v7282_v30 }
 0x75f   : > { %8078 = vst [vmem:[%s16399_s26 + $0x278] sm:$0xff] %v7934_v3  ;;  %v7793_v19 = vadd.f32 %v10288_v55, %v7284_v18  ;;  %v7287_v33 = vpop.f32.mrb[218].mxu0  ;;  %v10299_v18 = vld [vmem:[%s10509_s29 + $0x318] sm:$0xff] }
 0x760   : > { %v7936_v35 = vmax.f32 %v7792_v45, 0.0  ;;  %v7288_v44 = vadd.f32 %v7287_v33, %v16376_v27  ;;  %v7289_v6 = vpop.f32.mrb[219].mxu0  ;;  %v10300_v45 = vld [vmem:[%s10509_s29 + $0x320] sm:$0xff] }
 0x761   : > { %v7937_v21 = vmax.f32 %v7793_v19, 0.0  ;;  %v7290_v0 = vadd.f32 %v7289_v6, %v16383_v38 }
 0x762   : > { %8080 = vst [vmem:[%s16399_s26 + $0x288] sm:$0xff] %v7936_v35  ;;  %v7795_v56 = vadd.f32 %v10289_v11, %v7288_v44 }
 0x763   : > { %8081 = vst [vmem:[%s16399_s26 + $0x290] sm:$0xff] %v7937_v21  ;;  %v7796_v22 = vadd.f32 %v10290_v8, %v7290_v0  ;;  %v7293_v14 = vpop.f32.mrb[220].mxu0  ;;  %v10301_v0 = vld [vmem:[%s10509_s29 + $0x330] sm:$0xff] }
 0x764   : > { %v7939_v48 = vmax.f32 %v7795_v56, 0.0  ;;  %v7294_v50 = vadd.f32 %v7293_v14, %v16376_v27  ;;  %v7295_v61 = vpop.f32.mrb[221].mxu0  ;;  %v10302_v56 = vld [vmem:[%s10509_s29 + $0x338] sm:$0xff] }
 0x765   : > { %v7940_v12 = vmax.f32 %v7796_v22, 0.0  ;;  %v7296_v49 = vadd.f32 %v7295_v61, %v16383_v38 }
 0x766   : > { %8083 = vst [vmem:[%s16399_s26 + $0x2a0] sm:$0xff] %v7939_v48  ;;  %v7798_v58 = vadd.f32 %v10291_v52, %v7294_v50 }
 0x767   : > { %8084 = vst [vmem:[%s16399_s26 + $0x2a8] sm:$0xff] %v7940_v12  ;;  %v7799_v15 = vadd.f32 %v10292_v23, %v7296_v49  ;;  %v7299_v57 = vpop.f32.mrb[222].mxu0  ;;  %v10303_v49 = vld [vmem:[%s10509_s29 + $0x348] sm:$0xff] }
 0x768   : > { %v7942_v43 = vmax.f32 %v7798_v58, 0.0  ;;  %v7300_v63 = vadd.f32 %v7299_v57, %v16376_v27  ;;  %v7301_v59 = vpop.f32.mrb[223].mxu0  ;;  %v10304_v58 = vld [vmem:[%s10509_s29 + $0x350] sm:$0xff] }
 0x769   : > { %v7943_v16 = vmax.f32 %v7799_v15, 0.0  ;;  %v7302_v39 = vadd.f32 %v7301_v59, %v16383_v38 }
 0x76a   : > { %8086 = vst [vmem:[%s16399_s26 + $0x2b8] sm:$0xff] %v7942_v43  ;;  %v7801_v42 = vadd.f32 %v10293_v20, %v7300_v63 }
 0x76b   : > { %8087 = vst [vmem:[%s16399_s26 + $0x2c0] sm:$0xff] %v7943_v16  ;;  %v7802_v9 = vadd.f32 %v10294_v37, %v7302_v39  ;;  %v7305_v62 = vpop.f32.mrb[224].mxu0  ;;  %v10305_v39 = vld [vmem:[%s10509_s29 + $0x360] sm:$0xff] }
 0x76c   : > { %v7945_v31 = vmax.f32 %v7801_v42, 0.0  ;;  %v7306_v7 = vadd.f32 %v7305_v62, %v16376_v27  ;;  %v7307_v5 = vpop.f32.mrb[225].mxu0  ;;  %v10306_v42 = vld [vmem:[%s10509_s29 + $0x368] sm:$0xff] }
 0x76d   : > { %v7946_v51 = vmax.f32 %v7802_v9, 0.0  ;;  %v7308_v24 = vadd.f32 %v7307_v5, %v16383_v38 }
 0x76e   : > { %8089 = vst [vmem:[%s16399_s26 + $0x2d0] sm:$0xff] %v7945_v31  ;;  %v7804_v46 = vadd.f32 %v10295_v2, %v7306_v7 }
 0x76f   : > { %8090 = vst [vmem:[%s16399_s26 + $0x2d8] sm:$0xff] %v7946_v51  ;;  %v7805_v40 = vadd.f32 %v10296_v28, %v7308_v24  ;;  %v7311_v60 = vpop.f32.mrb[226].mxu0  ;;  %v10307_v24 = vld [vmem:[%s10509_s29 + $0x378] sm:$0xff] }
 0x770   : > { %v7948_v34 = vmax.f32 %v7804_v46, 0.0  ;;  %v7312_v13 = vadd.f32 %v7311_v60, %v16376_v27  ;;  %v7313_v17 = vpop.f32.mrb[227].mxu0  ;;  %v10308_v46 = vld [vmem:[%s10509_s29 + $0x380] sm:$0xff] }
 0x771   : > { %v7949_v1 = vmax.f32 %v7805_v40, 0.0  ;;  %v7314_v41 = vadd.f32 %v7313_v17, %v16383_v38 }
 0x772   : > { %8092 = vst [vmem:[%s16399_s26 + $0x2e8] sm:$0xff] %v7948_v34  ;;  %v7807_v26 = vadd.f32 %v10297_v10, %v7312_v13 }
 0x773   : > { %8093 = vst [vmem:[%s16399_s26 + $0x2f0] sm:$0xff] %v7949_v1  ;;  %v7808_v47 = vadd.f32 %v10298_v25, %v7314_v41  ;;  %v7317_v4 = vpop.f32.mrb[228].mxu0  ;;  %v10309_v41 = vld [vmem:[%s10509_s29 + $0x390] sm:$0xff] }
 0x774   : > { %v7951_v29 = vmax.f32 %v7807_v26, 0.0  ;;  %v7318_v36 = vadd.f32 %v7317_v4, %v16376_v27  ;;  %v7319_v30 = vpop.f32.mrb[229].mxu0  ;;  %v10310_v26 = vld [vmem:[%s10509_s29 + $0x398] sm:$0xff] }
 0x775   : > { %v7952_v32 = vmax.f32 %v7808_v47, 0.0  ;;  %v7320_v3 = vadd.f32 %v7319_v30, %v16383_v38 }
 0x776   : > { %8095 = vst [vmem:[%s16399_s26 + $0x300] sm:$0xff] %v7951_v29  ;;  %v7810_v54 = vadd.f32 %v10299_v18, %v7318_v36 }
 0x777   : > { %8096 = vst [vmem:[%s16399_s26 + $0x308] sm:$0xff] %v7952_v32  ;;  %v7811_v55 = vadd.f32 %v10300_v45, %v7320_v3  ;;  %v7323_v19 = vpop.f32.mrb[230].mxu0  ;;  %v10311_v3 = vld [vmem:[%s10509_s29 + $0x3a8] sm:$0xff] }
 0x778   : > { %v7954_v33 = vmax.f32 %v7810_v54, 0.0  ;;  %v7324_v35 = vadd.f32 %v7323_v19, %v16376_v27  ;;  %v7325_v44 = vpop.f32.mrb[231].mxu0  ;;  %v10312_v54 = vld [vmem:[%s10509_s29 + $0x3b0] sm:$0xff] }
 0x779   : > { %v7955_v6 = vmax.f32 %v7811_v55, 0.0  ;;  %v7326_v21 = vadd.f32 %v7325_v44, %v16383_v38 }
 0x77a   : > { %8098 = vst [vmem:[%s16399_s26 + $0x318] sm:$0xff] %v7954_v33  ;;  %v7813_v11 = vadd.f32 %v10301_v0, %v7324_v35 }
 0x77b   : > { %8099 = vst [vmem:[%s16399_s26 + $0x320] sm:$0xff] %v7955_v6  ;;  %v7814_v8 = vadd.f32 %v10302_v56, %v7326_v21  ;;  %v7329_v22 = vpop.f32.mrb[232].mxu0  ;;  %v10313_v21 = vld [vmem:[%s10509_s29 + $0x3c0] sm:$0xff] }
 0x77c   : > { %v7957_v14 = vmax.f32 %v7813_v11, 0.0  ;;  %v7330_v48 = vadd.f32 %v7329_v22, %v16376_v27  ;;  %v7331_v50 = vpop.f32.mrb[233].mxu0  ;;  %v10314_v11 = vld [vmem:[%s10509_s29 + $0x3c8] sm:$0xff] }
 0x77d   : > { %v7958_v61 = vmax.f32 %v7814_v8, 0.0  ;;  %v7332_v12 = vadd.f32 %v7331_v50, %v16383_v38 }
 0x77e   : > { %8101 = vst [vmem:[%s16399_s26 + $0x330] sm:$0xff] %v7957_v14  ;;  %v7816_v52 = vadd.f32 %v10303_v49, %v7330_v48 }
 0x77f   : > { %8102 = vst [vmem:[%s16399_s26 + $0x338] sm:$0xff] %v7958_v61  ;;  %v7817_v23 = vadd.f32 %v10304_v58, %v7332_v12  ;;  %v7335_v15 = vpop.f32.mrb[234].mxu0  ;;  %v10315_v12 = vld [vmem:[%s10509_s29 + $0x3d8] sm:$0xff] }
 0x780   : > { %v7960_v57 = vmax.f32 %v7816_v52, 0.0  ;;  %v7336_v43 = vadd.f32 %v7335_v15, %v16376_v27  ;;  %v7337_v63 = vpop.f32.mrb[235].mxu0  ;;  %v10316_v52 = vld [vmem:[%s10509_s29 + $0x3e0] sm:$0xff] }
 0x781   : > { %v7961_v59 = vmax.f32 %v7817_v23, 0.0  ;;  %v7338_v16 = vadd.f32 %v7337_v63, %v16383_v38 }
 0x782   : > { %8104 = vst [vmem:[%s16399_s26 + $0x348] sm:$0xff] %v7960_v57  ;;  %v7819_v20 = vadd.f32 %v10305_v39, %v7336_v43 }
 0x783   : > { %8105 = vst [vmem:[%s16399_s26 + $0x350] sm:$0xff] %v7961_v59  ;;  %v7820_v37 = vadd.f32 %v10306_v42, %v7338_v16  ;;  %v7341_v9 = vpop.f32.mrb[236].mxu0  ;;  %v10317_v16 = vld [vmem:[%s10509_s29 + $0x3f0] sm:$0xff] }
 0x784   : > { %v7963_v62 = vmax.f32 %v7819_v20, 0.0  ;;  %v7342_v31 = vadd.f32 %v7341_v9, %v16376_v27  ;;  %v7343_v7 = vpop.f32.mrb[237].mxu0  ;;  %v10318_v20 = vld [vmem:[%s10509_s29 + $0x3f8] sm:$0xff] }
 0x785   : > { %v7964_v5 = vmax.f32 %v7820_v37, 0.0  ;;  %v7344_v51 = vadd.f32 %v7343_v7, %v16383_v38 }
 0x786   : > { %8107 = vst [vmem:[%s16399_s26 + $0x360] sm:$0xff] %v7963_v62  ;;  %v7822_v2 = vadd.f32 %v10307_v24, %v7342_v31 }
 0x787   : > { %8108 = vst [vmem:[%s16399_s26 + $0x368] sm:$0xff] %v7964_v5  ;;  %v7823_v28 = vadd.f32 %v10308_v46, %v7344_v51  ;;  %v7347_v40 = vpop.f32.mrb[238].mxu0  ;;  %v10319_v51 = vld [vmem:[%s10509_s29 + $0x408] sm:$0xff] }
 0x788   : > { %v7966_v60 = vmax.f32 %v7822_v2, 0.0  ;;  %v7348_v34 = vadd.f32 %v7347_v40, %v16376_v27  ;;  %v7349_v13 = vpop.f32.mrb[239].mxu0  ;;  %v10320_v2 = vld [vmem:[%s10509_s29 + $0x410] sm:$0xff] }
 0x789   : > { %v7967_v17 = vmax.f32 %v7823_v28, 0.0  ;;  %v7350_v1 = vadd.f32 %v7349_v13, %v16383_v38 }
 0x78a   : > { %8110 = vst [vmem:[%s16399_s26 + $0x378] sm:$0xff] %v7966_v60  ;;  %v7825_v10 = vadd.f32 %v10309_v41, %v7348_v34 }
 0x78b   : > { %8111 = vst [vmem:[%s16399_s26 + $0x380] sm:$0xff] %v7967_v17  ;;  %v7826_v25 = vadd.f32 %v10310_v26, %v7350_v1  ;;  %v7353_v47 = vpop.f32.mrb[240].mxu0  ;;  %v10321_v1 = vld [vmem:[%s10509_s29 + $0x420] sm:$0xff] }
 0x78c   : > { %v7969_v4 = vmax.f32 %v7825_v10, 0.0  ;;  %v7354_v29 = vadd.f32 %v7353_v47, %v16376_v27  ;;  %v7355_v36 = vpop.f32.mrb[241].mxu0  ;;  %v10322_v10 = vld [vmem:[%s10509_s29 + $0x428] sm:$0xff] }
 0x78d   : > { %v7970_v30 = vmax.f32 %v7826_v25, 0.0  ;;  %v7356_v32 = vadd.f32 %v7355_v36, %v16383_v38 }
 0x78e   : > { %8113 = vst [vmem:[%s16399_s26 + $0x390] sm:$0xff] %v7969_v4  ;;  %v7828_v18 = vadd.f32 %v10311_v3, %v7354_v29 }
 0x78f   : > { %8114 = vst [vmem:[%s16399_s26 + $0x398] sm:$0xff] %v7970_v30  ;;  %v7829_v45 = vadd.f32 %v10312_v54, %v7356_v32  ;;  %v7359_v55 = vpop.f32.mrb[242].mxu0  ;;  %v10323_v32 = vld [vmem:[%s10509_s29 + $0x438] sm:$0xff] }
 0x790   : > { %v7972_v19 = vmax.f32 %v7828_v18, 0.0  ;;  %v7360_v33 = vadd.f32 %v7359_v55, %v16376_v27  ;;  %v7361_v35 = vpop.f32.mrb[243].mxu0  ;;  %v10324_v18 = vld [vmem:[%s10509_s29 + $0x440] sm:$0xff] }
 0x791   : > { %v7973_v44 = vmax.f32 %v7829_v45, 0.0  ;;  %v7362_v6 = vadd.f32 %v7361_v35, %v16383_v38 }
 0x792   : > { %8116 = vst [vmem:[%s16399_s26 + $0x3a8] sm:$0xff] %v7972_v19  ;;  %v7831_v0 = vadd.f32 %v10313_v21, %v7360_v33 }
 0x793   : > { %8117 = vst [vmem:[%s16399_s26 + $0x3b0] sm:$0xff] %v7973_v44  ;;  %v7832_v56 = vadd.f32 %v10314_v11, %v7362_v6  ;;  %v7365_v8 = vpop.f32.mrb[244].mxu0  ;;  %v10325_v6 = vld [vmem:[%s10509_s29 + $0x450] sm:$0xff] }
 0x794   : > { %v7975_v22 = vmax.f32 %v7831_v0, 0.0  ;;  %v7366_v14 = vadd.f32 %v7365_v8, %v16376_v27  ;;  %v7367_v48 = vpop.f32.mrb[245].mxu0  ;;  %v10326_v0 = vld [vmem:[%s10509_s29 + $0x458] sm:$0xff]  ;;  %v18938_v8 = vld [vmem:[#allocation11_spill] sm:$0xff] }
 0x795   : > { %v7976_v50 = vmax.f32 %v7832_v56, 0.0  ;;  %v7368_v61 = vadd.f32 %v7367_v48, %v16383_v38 }
 0x796   : > { %8119 = vst [vmem:[%s16399_s26 + $0x3c0] sm:$0xff] %v7975_v22  ;;  %v7834_v49 = vadd.f32 %v10315_v12, %v7366_v14  ;;  %v16785_v22 = vrot.slane %v16366_v53, %v18938_v8 }
 0x797   : > { %8120 = vst [vmem:[%s16399_s26 + $0x3c8] sm:$0xff] %v7976_v50  ;;  %v7835_v58 = vadd.f32 %v10316_v52, %v7368_v61  ;;  %v7371_v23 = vpop.f32.mrb[246].mxu0 }
 0x798   : > { %v7978_v15 = vmax.f32 %v7834_v49, 0.0  ;;  %v7372_v57 = vadd.f32 %v7371_v23, %v16376_v27  ;;  %v7373_v43 = vpop.f32.mrb[247].mxu0  ;;  %v10327_v49 = vld [vmem:[%s10509_s29 + $0x468] sm:$0xff] }
 0x799   : > { %v7979_v63 = vmax.f32 %v7835_v58, 0.0  ;;  %v7374_v59 = vadd.f32 %v7373_v43, %v16383_v38  ;;  %v10328_v58 = vld [vmem:[%s10509_s29 + $0x470] sm:$0xff] }
 0x79a   : > { %8122 = vst [vmem:[%s16399_s26 + $0x3d8] sm:$0xff] %v7978_v15  ;;  %v7837_v39 = vadd.f32 %v10317_v16, %v7372_v57  ;;  %v10330_v16 = vld [vmem:[%s10509_s29 + $0x10] sm:$0xff] }
 0x79b   : > { %8123 = vst [vmem:[%s16399_s26 + $0x3e0] sm:$0xff] %v7979_v63  ;;  %v7838_v42 = vadd.f32 %v10318_v20, %v7374_v59  ;;  %v7377_v37 = vpop.f32.mrb[248].mxu0 }
 0x79c   : > { %v7981_v9 = vmax.f32 %v7837_v39, 0.0  ;;  %v7378_v62 = vadd.f32 %v7377_v37, %v16376_v27  ;;  %v7379_v31 = vpop.f32.mrb[249].mxu0 }
 0x79d   : > { %v7982_v7 = vmax.f32 %v7838_v42, 0.0  ;;  %v7380_v5 = vadd.f32 %v7379_v31, %v16383_v38 }
 0x79e   : > { %8125 = vst [vmem:[%s16399_s26 + $0x3f0] sm:$0xff] %v7981_v9  ;;  %v7840_v24 = vadd.f32 %v10319_v51, %v7378_v62  ;;  %v10332_v51 = vld [vmem:[%s10509_s29 + $0x40] sm:$0xff] }
 0x79f   : > { %8126 = vst [vmem:[%s16399_s26 + $0x3f8] sm:$0xff] %v7982_v7  ;;  %v7841_v46 = vadd.f32 %v10320_v2, %v7380_v5  ;;  %v7383_v28 = vpop.f32.mrb[250].mxu0  ;;  %v10331_v7 = vld [vmem:[%s10509_s29 + $0x58] sm:$0xff] }
 0x7a0   : > { %v7984_v40 = vmax.f32 %v7840_v24, 0.0  ;;  %v7384_v60 = vadd.f32 %v7383_v28, %v16376_v27  ;;  %v7385_v34 = vpop.f32.mrb[251].mxu0 }
 0x7a1   : > { %v7985_v13 = vmax.f32 %v7841_v46, 0.0  ;;  %v7386_v17 = vadd.f32 %v7385_v34, %v16383_v38 }
 0x7a2   : > { %8128 = vst [vmem:[%s16399_s26 + $0x408] sm:$0xff] %v7984_v40  ;;  %v7843_v41 = vadd.f32 %v10321_v1, %v7384_v60  ;;  %v10334_v1 = vld [vmem:[%s10509_s29 + $0x70] sm:$0xff] }
 0x7a3   : > { %8129 = vst [vmem:[%s16399_s26 + $0x410] sm:$0xff] %v7985_v13  ;;  %v7844_v26 = vadd.f32 %v10322_v10, %v7386_v17  ;;  %v7389_v25 = vpop.f32.mrb[252].mxu0  ;;  %v10333_v13 = vld [vmem:[%s10509_s29 + $0x88] sm:$0xff] }
 0x7a4   : > { %v7987_v47 = vmax.f32 %v7843_v41, 0.0  ;;  %v7390_v4 = vadd.f32 %v7389_v25, %v16376_v27  ;;  %v7391_v29 = vpop.f32.mrb[253].mxu0 }
 0x7a5   : > { %v7988_v36 = vmax.f32 %v7844_v26, 0.0  ;;  %v7392_v30 = vadd.f32 %v7391_v29, %v16383_v38 }
 0x7a6   : > { %8131 = vst [vmem:[%s16399_s26 + $0x420] sm:$0xff] %v7987_v47  ;;  %v7846_v3 = vadd.f32 %v10323_v32, %v7390_v4  ;;  %v10336_v32 = vld [vmem:[%s10509_s29 + $0xa0] sm:$0xff] }
 0x7a7   : > { %8132 = vst [vmem:[%s16399_s26 + $0x428] sm:$0xff] %v7988_v36  ;;  %v7847_v54 = vadd.f32 %v10324_v18, %v7392_v30  ;;  %v7395_v45 = vpop.f32.mrb[254].mxu0  ;;  %v10335_v36 = vld [vmem:[%s10509_s29 + $0xb8] sm:$0xff] }
 0x7a8   : > { %v7990_v55 = vmax.f32 %v7846_v3, 0.0  ;;  %v7396_v19 = vadd.f32 %v7395_v45, %v16376_v27  ;;  %v7397_v33 = vpop.f32.mrb[255].mxu0 }
 0x7a9   : > { %v7991_v35 = vmax.f32 %v7847_v54, 0.0  ;;  %v7398_v44 = vadd.f32 %v7397_v33, %v16383_v38 }
 0x7aa   : > { %8134 = vst [vmem:[%s16399_s26 + $0x438] sm:$0xff] %v7990_v55  ;;  %v7849_v21 = vadd.f32 %v10325_v6, %v7396_v19  ;;  %v10338_v6 = vld [vmem:[%s10509_s29 + $0xd0] sm:$0xff] }
 0x7ab   : > { %8135 = vst [vmem:[%s16399_s26 + $0x440] sm:$0xff] %v7991_v35  ;;  %v7850_v11 = vadd.f32 %v10326_v0, %v7398_v44  ;;  %v7401_v56 = vpop.f32.mrb[0].mxu0  ;;  %v10337_v35 = vld [vmem:[%s10509_s29 + $0xe8] sm:$0xff] }
 0x7ac   : > { %v7993_v14 = vmax.f32 %v7849_v21, 0.0  ;;  %v7402_v48 = vadd.f32 %v7401_v56, %v16376_v27  ;;  %v7403_v50 = vpop.f32.mrb[1].mxu0 }
 0x7ad   : > { %v7994_v61 = vmax.f32 %v7850_v11, 0.0  ;;  %v7404_v12 = vadd.f32 %v7403_v50, %v16383_v38  ;;  %v10329_v38 = vld [vmem:[%s10509_s29 + $0x28] sm:$0xff]  ;;  %v10339_v50 = vld [vmem:[%s10509_s29 + $0x118] sm:$0xff] }
 0x7ae   : > { %8137 = vst [vmem:[%s16399_s26 + $0x450] sm:$0xff] %v7993_v14  ;;  %v7852_v52 = vadd.f32 %v10327_v49, %v7402_v48 }
 0x7af   : > { %8138 = vst [vmem:[%s16399_s26 + $0x458] sm:$0xff] %v7994_v61  ;;  %v7853_v23 = vadd.f32 %v10328_v58, %v7404_v12  ;;  %v8728_v15 = vpop.f32.mrb[2].mxu0  ;;  %v10340_v12 = vld [vmem:[%s10509_s29 + $0x100] sm:$0xff] }
 0x7b0   : > { %v7996_v53 = vmax.f32 %v7852_v52, 0.0  ;;  %v7478_v57 = vadd.f32 %v8728_v15, %v16785_v22  ;;  %v7472_v27 = vpop.f32.mrb[3].mxu0 }
 0x7b1   : > { %v7997_v43 = vmax.f32 %v7853_v23, 0.0  ;;  %v7473_v63 = vadd.f32 %v7472_v27, %v16785_v22  ;;  %v10341_v27 = vld [vmem:[%s10509_s29 + $0x148] sm:$0xff] }
 0x7b2   : > { %8140 = vst [vmem:[%s16399_s26 + $0x468] sm:$0xff] %v7996_v53  ;;  %v7716_v59 = vadd.f32 %v10329_v38, %v7478_v57 }
 0x7b3   : > { %8141 = vst [vmem:[%s16399_s26 + $0x470] sm:$0xff] %v7997_v43  ;;  %v7713_v39 = vadd.f32 %v10330_v16, %v7473_v63  ;;  %v8731_v20 = vpop.f32.mrb[4].mxu0  ;;  %v10342_v63 = vld [vmem:[%s10509_s29 + $0x130] sm:$0xff] }
 0x7b4   : > { %v7860_v42 = vmax.f32 %v7716_v59, 0.0  ;;  %v7488_v37 = vadd.f32 %v8731_v20, %v16785_v22  ;;  %v7482_v9 = vpop.f32.mrb[5].mxu0 }
 0x7b5   : > { %v7857_v62 = vmax.f32 %v7713_v39, 0.0  ;;  %v7483_v31 = vadd.f32 %v7482_v9, %v16785_v22  ;;  %v10343_v9 = vld [vmem:[%s10509_s29 + $0x178] sm:$0xff] }
 0x7b6   : > { %8004 = vst.msk [vmem:[%s16399_s26 + $0x28] sm:$0xff] %vm18939_vm12, %v7860_v42  ;;  %v7722_v5 = vadd.f32 %v10331_v7, %v7488_v37  ;;  %vm18955_vm12 = vmmov %vm18944_vm0 }
 0x7b7   : > { %8001 = vst.msk [vmem:[%s16399_s26 + $0x10] sm:$0xff] %vm18940_vm6, %v7857_v62  ;;  %v7719_v24 = vadd.f32 %v10332_v51, %v7483_v31  ;;  %v8734_v2 = vpop.f32.mrb[6].mxu0  ;;  %v10344_v31 = vld [vmem:[%s10509_s29 + $0x160] sm:$0xff]  ;;  %vm18956_vm6 = vmmov %vm18944_vm0 }
 0x7b8   : > { %v7866_v46 = vmax.f32 %v7722_v5, 0.0  ;;  %v7498_v28 = vadd.f32 %v8734_v2, %v16785_v22  ;;  %v7492_v40 = vpop.f32.mrb[7].mxu0 }
 0x7b9   : > { %v7863_v60 = vmax.f32 %v7719_v24, 0.0  ;;  %v7493_v34 = vadd.f32 %v7492_v40, %v16785_v22  ;;  %v10345_v40 = vld [vmem:[%s10509_s29 + $0x1a8] sm:$0xff] }
 0x7ba   : > { %8010 = vst.msk [vmem:[%s16399_s26 + $0x58] sm:$0xff] %vm18941_vm10, %v7866_v46  ;;  %v7728_v17 = vadd.f32 %v10333_v13, %v7498_v28  ;;  %vm18957_vm10 = vmmov %vm18944_vm0 }
 0x7bb   : > { %8007 = vst.msk [vmem:[%s16399_s26 + $0x40] sm:$0xff] %vm18942_vm15, %v7863_v60  ;;  %v7725_v41 = vadd.f32 %v10334_v1, %v7493_v34  ;;  %v8737_v10 = vpop.f32.mrb[8].mxu0  ;;  %v10346_v34 = vld [vmem:[%s10509_s29 + $0x190] sm:$0xff]  ;;  %vm18958_vm15 = vmmov %vm18944_vm0 }
 0x7bc   : > { %v7872_v26 = vmax.f32 %v7728_v17, 0.0  ;;  %v7508_v25 = vadd.f32 %v8737_v10, %v16785_v22  ;;  %v7502_v47 = vpop.f32.mrb[9].mxu0 }
 0x7bd   : > { %v7869_v4 = vmax.f32 %v7725_v41, 0.0  ;;  %v7503_v29 = vadd.f32 %v7502_v47, %v16785_v22  ;;  %v10347_v47 = vld [vmem:[%s10509_s29 + $0x1d8] sm:$0xff] }
 0x7be   : > { %8016 = vst.msk [vmem:[%s16399_s26 + $0x88] sm:$0xff] %vm18943_vm9, %v7872_v26  ;;  %v7734_v30 = vadd.f32 %v10335_v36, %v7508_v25  ;;  %vm18959_vm9 = vmmov %vm18944_vm0 }
 0x7bf   : > { %8013 = vst.msk [vmem:[%s16399_s26 + $0x70] sm:$0xff] %vm18944_vm0, %v7869_v4  ;;  %v7731_v3 = vadd.f32 %v10336_v32, %v7503_v29  ;;  %v8740_v18 = vpop.f32.mrb[10].mxu0  ;;  %v10348_v29 = vld [vmem:[%s10509_s29 + $0x1c0] sm:$0xff] }
 0x7c0   : > { %v7878_v54 = vmax.f32 %v7734_v30, 0.0  ;;  %v7518_v45 = vadd.f32 %v8740_v18, %v16785_v22  ;;  %v7512_v55 = vpop.f32.mrb[11].mxu0 }
 0x7c1   : > { %v7875_v19 = vmax.f32 %v7731_v3, 0.0  ;;  %v7513_v33 = vadd.f32 %v7512_v55, %v16785_v22  ;;  %v10349_v55 = vld [vmem:[%s10509_s29 + $0x208] sm:$0xff] }
 0x7c2   : > { %8022 = vst.msk [vmem:[%s16399_s26 + $0xb8] sm:$0xff] %vm18945_vm4, %v7878_v54  ;;  %v7740_v44 = vadd.f32 %v10337_v35, %v7518_v45  ;;  %vm18960_vm4 = vmmov %vm18944_vm0 }
 0x7c3   : > { %8019 = vst.msk [vmem:[%s16399_s26 + $0xa0] sm:$0xff] %vm18946_vm5, %v7875_v19  ;;  %v7737_v21 = vadd.f32 %v10338_v6, %v7513_v33  ;;  %v8743_v0 = vpop.f32.mrb[12].mxu0  ;;  %v10350_v33 = vld [vmem:[%s10509_s29 + $0x1f0] sm:$0xff]  ;;  %vm18961_vm5 = vmmov %vm18944_vm0 }
 0x7c4   : > { %v7884_v11 = vmax.f32 %v7740_v44, 0.0  ;;  %v7528_v56 = vadd.f32 %v8743_v0, %v16785_v22  ;;  %v7522_v8 = vpop.f32.mrb[13].mxu0 }
 0x7c5   : > { %v7881_v14 = vmax.f32 %v7737_v21, 0.0  ;;  %v7523_v48 = vadd.f32 %v7522_v8, %v16785_v22  ;;  %v10351_v8 = vld [vmem:[%s10509_s29 + $0x238] sm:$0xff] }
 0x7c6   : > { %8028 = vst.msk [vmem:[%s16399_s26 + $0xe8] sm:$0xff] %vm18947_vm2, %v7884_v11  ;;  %v7746_v61 = vadd.f32 %v10339_v50, %v7528_v56  ;;  %vm18962_vm2 = vmmov %vm18944_vm0 }
 0x7c7   : > { %8025 = vst.msk [vmem:[%s16399_s26 + $0xd0] sm:$0xff] %vm18948_vm7, %v7881_v14  ;;  %v7743_v49 = vadd.f32 %v10340_v12, %v7523_v48  ;;  %v8746_v52 = vpop.f32.mrb[14].mxu0  ;;  %v10352_v48 = vld [vmem:[%s10509_s29 + $0x220] sm:$0xff]  ;;  %vm18963_vm7 = vmmov %vm18944_vm0 }
 0x7c8   : > { %v7890_v58 = vmax.f32 %v7746_v61, 0.0  ;;  %v7538_v23 = vadd.f32 %v8746_v52, %v16785_v22  ;;  %v7532_v15 = vpop.f32.mrb[15].mxu0 }
 0x7c9   : > { %v7887_v53 = vmax.f32 %v7743_v49, 0.0  ;;  %v7533_v57 = vadd.f32 %v7532_v15, %v16785_v22  ;;  %v10353_v15 = vld [vmem:[%s10509_s29 + $0x268] sm:$0xff] }
 0x7ca   : > { %8034 = vst.msk [vmem:[%s16399_s26 + $0x118] sm:$0xff] %vm18949_vm8, %v7890_v58  ;;  %v7752_v43 = vadd.f32 %v10341_v27, %v7538_v23  ;;  %vm18964_vm8 = vmmov %vm18944_vm0 }
 0x7cb   : > { %8031 = vst.msk [vmem:[%s16399_s26 + $0x100] sm:$0xff] %vm18950_vm14, %v7887_v53  ;;  %v7749_v38 = vadd.f32 %v10342_v63, %v7533_v57  ;;  %v8749_v59 = vpop.f32.mrb[16].mxu0  ;;  %v10354_v57 = vld [vmem:[%s10509_s29 + $0x250] sm:$0xff]  ;;  %vm18965_vm14 = vmmov %vm18944_vm0 }
 0x7cc   : > { %v7896_v16 = vmax.f32 %v7752_v43, 0.0  ;;  %v7548_v39 = vadd.f32 %v8749_v59, %v16785_v22  ;;  %v7542_v20 = vpop.f32.mrb[17].mxu0 }
 0x7cd   : > { %v7893_v42 = vmax.f32 %v7749_v38, 0.0  ;;  %v7543_v37 = vadd.f32 %v7542_v20, %v16785_v22  ;;  %v10355_v20 = vld [vmem:[%s10509_s29 + $0x298] sm:$0xff] }
 0x7ce   : > { %8040 = vst.msk [vmem:[%s16399_s26 + $0x148] sm:$0xff] %vm18951_vm13, %v7896_v16  ;;  %v7758_v62 = vadd.f32 %v10343_v9, %v7548_v39  ;;  %vm18966_vm13 = vmmov %vm18944_vm0 }
 0x7cf   : > { %8037 = vst.msk [vmem:[%s16399_s26 + $0x130] sm:$0xff] %vm18952_vm3, %v7893_v42  ;;  %v7755_v7 = vadd.f32 %v10344_v31, %v7543_v37  ;;  %v8752_v5 = vpop.f32.mrb[18].mxu0  ;;  %v10356_v37 = vld [vmem:[%s10509_s29 + $0x280] sm:$0xff]  ;;  %vm18967_vm3 = vmmov %vm18944_vm0 }
 0x7d0   : > { %v7902_v51 = vmax.f32 %v7758_v62, 0.0  ;;  %v7558_v24 = vadd.f32 %v8752_v5, %v16785_v22  ;;  %v7552_v2 = vpop.f32.mrb[19].mxu0 }
 0x7d1   : > { %v7899_v46 = vmax.f32 %v7755_v7, 0.0  ;;  %v7553_v28 = vadd.f32 %v7552_v2, %v16785_v22  ;;  %v10357_v2 = vld [vmem:[%s10509_s29 + $0x2c8] sm:$0xff] }
 0x7d2   : > { %8046 = vst.msk [vmem:[%s16399_s26 + $0x178] sm:$0xff] %vm18953_vm11, %v7902_v51  ;;  %v7764_v60 = vadd.f32 %v10345_v40, %v7558_v24  ;;  %vm18968_vm11 = vmmov %vm18944_vm0 }
 0x7d3   : > { %8043 = vst.msk [vmem:[%s16399_s26 + $0x160] sm:$0xff] %vm18954_vm1, %v7899_v46  ;;  %v7761_v13 = vadd.f32 %v10346_v34, %v7553_v28  ;;  %v8755_v17 = vpop.f32.mrb[20].mxu0  ;;  %v10358_v28 = vld [vmem:[%s10509_s29 + $0x2b0] sm:$0xff]  ;;  %vm18969_vm1 = vmmov %vm18944_vm0 }
 0x7d4   : > { %v7908_v1 = vmax.f32 %v7764_v60, 0.0  ;;  %v7568_v41 = vadd.f32 %v8755_v17, %v16785_v22  ;;  %v7562_v10 = vpop.f32.mrb[21].mxu0 }
 0x7d5   : > { %v7905_v26 = vmax.f32 %v7761_v13, 0.0  ;;  %v7563_v25 = vadd.f32 %v7562_v10, %v16785_v22  ;;  %v10359_v10 = vld [vmem:[%s10509_s29 + $0x2f8] sm:$0xff] }
 0x7d6   : > { %8052 = vst.msk [vmem:[%s16399_s26 + $0x1a8] sm:$0xff] %vm18955_vm12, %v7908_v1  ;;  %v7770_v4 = vadd.f32 %v10347_v47, %v7568_v41  ;;  %vm18970_vm12 = vmmov %vm18944_vm0 }
 0x7d7   : > { %8049 = vst.msk [vmem:[%s16399_s26 + $0x190] sm:$0xff] %vm18956_vm6, %v7905_v26  ;;  %v7767_v36 = vadd.f32 %v10348_v29, %v7563_v25  ;;  %v8758_v30 = vpop.f32.mrb[22].mxu0  ;;  %v10360_v25 = vld [vmem:[%s10509_s29 + $0x2e0] sm:$0xff]  ;;  %vm18971_vm6 = vmmov %vm18944_vm0 }
 0x7d8   : > { %v7914_v32 = vmax.f32 %v7770_v4, 0.0  ;;  %v7578_v3 = vadd.f32 %v8758_v30, %v16785_v22  ;;  %v7572_v18 = vpop.f32.mrb[23].mxu0 }
 0x7d9   : > { %v7911_v54 = vmax.f32 %v7767_v36, 0.0  ;;  %v7573_v45 = vadd.f32 %v7572_v18, %v16785_v22  ;;  %v10361_v18 = vld [vmem:[%s10509_s29 + $0x328] sm:$0xff] }
 0x7da   : > { %8058 = vst.msk [vmem:[%s16399_s26 + $0x1d8] sm:$0xff] %vm18957_vm10, %v7914_v32  ;;  %v7776_v19 = vadd.f32 %v10349_v55, %v7578_v3  ;;  %vm18972_vm10 = vmmov %vm18944_vm0 }
 0x7db   : > { %8055 = vst.msk [vmem:[%s16399_s26 + $0x1c0] sm:$0xff] %vm18958_vm15, %v7911_v54  ;;  %v7773_v35 = vadd.f32 %v10350_v33, %v7573_v45  ;;  %v8761_v44 = vpop.f32.mrb[24].mxu0  ;;  %v10362_v45 = vld [vmem:[%s10509_s29 + $0x310] sm:$0xff]  ;;  %vm18973_vm15 = vmmov %vm18944_vm0 }
 0x7dc   : > { %v7920_v6 = vmax.f32 %v7776_v19, 0.0  ;;  %v7588_v21 = vadd.f32 %v8761_v44, %v16785_v22  ;;  %v7582_v0 = vpop.f32.mrb[25].mxu0 }
 0x7dd   : > { %v7917_v11 = vmax.f32 %v7773_v35, 0.0  ;;  %v7583_v56 = vadd.f32 %v7582_v0, %v16785_v22  ;;  %v10363_v0 = vld [vmem:[%s10509_s29 + $0x358] sm:$0xff] }
 0x7de   : > { %8064 = vst.msk [vmem:[%s16399_s26 + $0x208] sm:$0xff] %vm18959_vm9, %v7920_v6  ;;  %v7782_v14 = vadd.f32 %v10351_v8, %v7588_v21  ;;  %vm18974_vm9 = vmmov %vm18944_vm0 }
 0x7df   : > { %8061 = vst.msk [vmem:[%s16399_s26 + $0x1f0] sm:$0xff] %vm18944_vm0, %v7917_v11  ;;  %v7779_v50 = vadd.f32 %v10352_v48, %v7583_v56  ;;  %v8764_v61 = vpop.f32.mrb[26].mxu0  ;;  %v10364_v56 = vld [vmem:[%s10509_s29 + $0x340] sm:$0xff] }
 0x7e0   : > { %v7926_v12 = vmax.f32 %v7782_v14, 0.0  ;;  %v7598_v49 = vadd.f32 %v8764_v61, %v16785_v22  ;;  %v7592_v52 = vpop.f32.mrb[27].mxu0 }
 0x7e1   : > { %v7923_v58 = vmax.f32 %v7779_v50, 0.0  ;;  %v7593_v23 = vadd.f32 %v7592_v52, %v16785_v22  ;;  %v10365_v52 = vld [vmem:[%s10509_s29 + $0x388] sm:$0xff] }
 0x7e2   : > { %8070 = vst.msk [vmem:[%s16399_s26 + $0x238] sm:$0xff] %vm18960_vm4, %v7926_v12  ;;  %v7788_v53 = vadd.f32 %v10353_v15, %v7598_v49  ;;  %vm18975_vm4 = vmmov %vm18944_vm0 }
 0x7e3   : > { %8067 = vst.msk [vmem:[%s16399_s26 + $0x220] sm:$0xff] %vm18961_vm5, %v7923_v58  ;;  %v7785_v27 = vadd.f32 %v10354_v57, %v7593_v23  ;;  %v8767_v43 = vpop.f32.mrb[28].mxu0  ;;  %v10366_v23 = vld [vmem:[%s10509_s29 + $0x370] sm:$0xff]  ;;  %vm18976_vm5 = vmmov %vm18944_vm0 }
 0x7e4   : > { %v7932_v63 = vmax.f32 %v7788_v53, 0.0  ;;  %v7608_v38 = vadd.f32 %v8767_v43, %v16785_v22  ;;  %v7602_v59 = vpop.f32.mrb[29].mxu0 }
 0x7e5   : > { %v7929_v16 = vmax.f32 %v7785_v27, 0.0  ;;  %v7603_v39 = vadd.f32 %v7602_v59, %v16785_v22  ;;  %v10367_v59 = vld [vmem:[%s10509_s29 + $0x3b8] sm:$0xff] }
 0x7e6   : > { %8076 = vst.msk [vmem:[%s16399_s26 + $0x268] sm:$0xff] %vm18962_vm2, %v7932_v63  ;;  %v7794_v42 = vadd.f32 %v10355_v20, %v7608_v38  ;;  %vm18977_vm2 = vmmov %vm18944_vm0 }
 0x7e7   : > { %8073 = vst.msk [vmem:[%s16399_s26 + $0x250] sm:$0xff] %vm18963_vm7, %v7929_v16  ;;  %v7791_v9 = vadd.f32 %v10356_v37, %v7603_v39  ;;  %v8770_v62 = vpop.f32.mrb[30].mxu0  ;;  %v10368_v39 = vld [vmem:[%s10509_s29 + $0x3a0] sm:$0xff]  ;;  %vm18978_vm7 = vmmov %vm18944_vm0 }
 0x7e8   : > { %v7938_v31 = vmax.f32 %v7794_v42, 0.0  ;;  %v7618_v7 = vadd.f32 %v8770_v62, %v16785_v22  ;;  %v7612_v5 = vpop.f32.mrb[31].mxu0 }
 0x7e9   : > { %v7935_v51 = vmax.f32 %v7791_v9, 0.0  ;;  %v7613_v24 = vadd.f32 %v7612_v5, %v16785_v22  ;;  %v10369_v5 = vld [vmem:[%s10509_s29 + $0x3e8] sm:$0xff] }
 0x7ea   : > { %8082 = vst.msk [vmem:[%s16399_s26 + $0x298] sm:$0xff] %vm18964_vm8, %v7938_v31  ;;  %v7800_v46 = vadd.f32 %v10357_v2, %v7618_v7  ;;  %vm18979_vm8 = vmmov %vm18944_vm0 }
 0x7eb   : > { %8079 = vst.msk [vmem:[%s16399_s26 + $0x280] sm:$0xff] %vm18965_vm14, %v7935_v51  ;;  %v7797_v40 = vadd.f32 %v10358_v28, %v7613_v24  ;;  %v8773_v60 = vpop.f32.mrb[32].mxu0  ;;  %v10370_v24 = vld [vmem:[%s10509_s29 + $0x3d0] sm:$0xff]  ;;  %vm18980_vm14 = vmmov %vm18944_vm0 }
 0x7ec   : > { %v7944_v34 = vmax.f32 %v7800_v46, 0.0  ;;  %v7628_v13 = vadd.f32 %v8773_v60, %v16785_v22  ;;  %v7622_v17 = vpop.f32.mrb[33].mxu0 }
 0x7ed   : > { %v7941_v1 = vmax.f32 %v7797_v40, 0.0  ;;  %v7623_v41 = vadd.f32 %v7622_v17, %v16785_v22  ;;  %v10371_v17 = vld [vmem:[%s10509_s29 + $0x418] sm:$0xff] }
 0x7ee   : > { %8088 = vst.msk [vmem:[%s16399_s26 + $0x2c8] sm:$0xff] %vm18966_vm13, %v7944_v34  ;;  %v7806_v26 = vadd.f32 %v10359_v10, %v7628_v13  ;;  %vm18981_vm13 = vmmov %vm18944_vm0 }
 0x7ef   : > { %8085 = vst.msk [vmem:[%s16399_s26 + $0x2b0] sm:$0xff] %vm18967_vm3, %v7941_v1  ;;  %v7803_v47 = vadd.f32 %v10360_v25, %v7623_v41  ;;  %v8776_v4 = vpop.f32.mrb[34].mxu0  ;;  %v10372_v41 = vld [vmem:[%s10509_s29 + $0x400] sm:$0xff]  ;;  %vm18982_vm3 = vmmov %vm18944_vm0 }
 0x7f0   : > { %v7950_v29 = vmax.f32 %v7806_v26, 0.0  ;;  %v7638_v36 = vadd.f32 %v8776_v4, %v16785_v22  ;;  %v7632_v30 = vpop.f32.mrb[35].mxu0 }
 0x7f1   : > { %v7947_v32 = vmax.f32 %v7803_v47, 0.0  ;;  %v7633_v3 = vadd.f32 %v7632_v30, %v16785_v22  ;;  %v10373_v30 = vld [vmem:[%s10509_s29 + $0x448] sm:$0xff] }
 0x7f2   : > { %8094 = vst.msk [vmem:[%s16399_s26 + $0x2f8] sm:$0xff] %vm18968_vm11, %v7950_v29  ;;  %v7812_v54 = vadd.f32 %v10361_v18, %v7638_v36  ;;  %vm18983_vm11 = vmmov %vm18944_vm0 }
 0x7f3   : > { %8091 = vst.msk [vmem:[%s16399_s26 + $0x2e0] sm:$0xff] %vm18969_vm1, %v7947_v32  ;;  %v7809_v55 = vadd.f32 %v10362_v45, %v7633_v3  ;;  %v8779_v19 = vpop.f32.mrb[36].mxu0  ;;  %v10374_v3 = vld [vmem:[%s10509_s29 + $0x430] sm:$0xff]  ;;  %vm18984_vm1 = vmmov %vm18944_vm0 }
 0x7f4   : > { %v7956_v33 = vmax.f32 %v7812_v54, 0.0  ;;  %v7648_v35 = vadd.f32 %v8779_v19, %v16785_v22  ;;  %v7642_v44 = vpop.f32.mrb[37].mxu0 }
 0x7f5   : > { %v7953_v6 = vmax.f32 %v7809_v55, 0.0  ;;  %v7643_v21 = vadd.f32 %v7642_v44, %v16785_v22  ;;  %v10375_v44 = vld [vmem:[%s10509_s29 + $0x478] sm:$0xff] }
 0x7f6   : > { %8100 = vst.msk [vmem:[%s16399_s26 + $0x328] sm:$0xff] %vm18970_vm12, %v7956_v33  ;;  %v7818_v11 = vadd.f32 %v10363_v0, %v7648_v35 }
 0x7f7   : > { %8097 = vst.msk [vmem:[%s16399_s26 + $0x310] sm:$0xff] %vm18971_vm6, %v7953_v6  ;;  %v7815_v8 = vadd.f32 %v10364_v56, %v7643_v21  ;;  %v8782_v14 = vpop.f32.mrb[38].mxu0  ;;  %v10376_v21 = vld [vmem:[%s10509_s29 + $0x460] sm:$0xff] }
 0x7f8   : > { %v7962_v48 = vmax.f32 %v7818_v11, 0.0  ;;  %v7658_v50 = vadd.f32 %v8782_v14, %v16785_v22  ;;  %v7652_v61 = vpop.f32.mrb[39].mxu0 }
 0x7f9   : > { %v7959_v12 = vmax.f32 %v7815_v8, 0.0  ;;  %v7653_v49 = vadd.f32 %v7652_v61, %v16785_v22 }
 0x7fa   : > { %8106 = vst.msk [vmem:[%s16399_s26 + $0x358] sm:$0xff] %vm18972_vm10, %v7962_v48  ;;  %v7824_v58 = vadd.f32 %v10365_v52, %v7658_v50 }
 0x7fb   : > { %8103 = vst.msk [vmem:[%s16399_s26 + $0x340] sm:$0xff] %vm18973_vm15, %v7959_v12  ;;  %v7821_v15 = vadd.f32 %v10366_v23, %v7653_v49  ;;  %v8785_v53 = vpop.f32.mrb[40].mxu0 }
 0x7fc   : > { %v7968_v57 = vmax.f32 %v7824_v58, 0.0  ;;  %v7668_v27 = vadd.f32 %v8785_v53, %v16785_v22  ;;  %v7662_v43 = vpop.f32.mrb[41].mxu0 }
 0x7fd   : > { %v7965_v63 = vmax.f32 %v7821_v15, 0.0  ;;  %v7663_v38 = vadd.f32 %v7662_v43, %v16785_v22 }
 0x7fe   : > { %8112 = vst.msk [vmem:[%s16399_s26 + $0x388] sm:$0xff] %vm18974_vm9, %v7968_v57  ;;  %v7830_v16 = vadd.f32 %v10367_v59, %v7668_v27 }
 0x7ff   : > { %8109 = vst.msk [vmem:[%s16399_s26 + $0x370] sm:$0xff] %vm18944_vm0, %v7965_v63  ;;  %v7827_v20 = vadd.f32 %v10368_v39, %v7663_v38  ;;  %v8788_v42 = vpop.f32.mrb[42].mxu0 }
 0x800   : > { %v7974_v37 = vmax.f32 %v7830_v16, 0.0  ;;  %v7678_v9 = vadd.f32 %v8788_v42, %v16785_v22  ;;  %v7672_v62 = vpop.f32.mrb[43].mxu0 }
 0x801   : > { %v7971_v31 = vmax.f32 %v7827_v20, 0.0  ;;  %v7673_v7 = vadd.f32 %v7672_v62, %v16785_v22 }
 0x802   : > { %8118 = vst.msk [vmem:[%s16399_s26 + $0x3b8] sm:$0xff] %vm18975_vm4, %v7974_v37  ;;  %v7836_v51 = vadd.f32 %v10369_v5, %v7678_v9 }
 0x803   : > { %8115 = vst.msk [vmem:[%s16399_s26 + $0x3a0] sm:$0xff] %vm18976_vm5, %v7971_v31  ;;  %v7833_v2 = vadd.f32 %v10370_v24, %v7673_v7  ;;  %v8791_v46 = vpop.f32.mrb[44].mxu0 }
 0x804   : > { %v7980_v28 = vmax.f32 %v7836_v51, 0.0  ;;  %v7688_v40 = vadd.f32 %v8791_v46, %v16785_v22  ;;  %v7682_v60 = vpop.f32.mrb[45].mxu0 }
 0x805   : > { %v7977_v34 = vmax.f32 %v7833_v2, 0.0  ;;  %v7683_v13 = vadd.f32 %v7682_v60, %v16785_v22 }
 0x806   : > { %8124 = vst.msk [vmem:[%s16399_s26 + $0x3e8] sm:$0xff] %vm18977_vm2, %v7980_v28  ;;  %v7842_v1 = vadd.f32 %v10371_v17, %v7688_v40 }
 0x807   : > { %8121 = vst.msk [vmem:[%s16399_s26 + $0x3d0] sm:$0xff] %vm18978_vm7, %v7977_v34  ;;  %v7839_v10 = vadd.f32 %v10372_v41, %v7683_v13  ;;  %v8794_v26 = vpop.f32.mrb[46].mxu0 }
 0x808   : > { %v7986_v25 = vmax.f32 %v7842_v1, 0.0  ;;  %v7698_v47 = vadd.f32 %v8794_v26, %v16785_v22  ;;  %v7692_v4 = vpop.f32.mrb[47].mxu0 }
 0x809   : > { %v7983_v29 = vmax.f32 %v7839_v10, 0.0  ;;  %v7693_v36 = vadd.f32 %v7692_v4, %v16785_v22 }
 0x80a   : > { %8130 = vst.msk [vmem:[%s16399_s26 + $0x418] sm:$0xff] %vm18979_vm8, %v7986_v25  ;;  %v7848_v32 = vadd.f32 %v10373_v30, %v7698_v47 }
 0x80b   : > { %8127 = vst.msk [vmem:[%s16399_s26 + $0x400] sm:$0xff] %vm18980_vm14, %v7983_v29  ;;  %v7845_v18 = vadd.f32 %v10374_v3, %v7693_v36  ;;  %v8797_v54 = vpop.f32.mrb[48].mxu0 }
 0x80c   : > { %v7992_v45 = vmax.f32 %v7848_v32, 0.0  ;;  %v7708_v55 = vadd.f32 %v8797_v54, %v16785_v22  ;;  %v7702_v19 = vpop.f32.mrb[49].mxu0 }
 0x80d   : > { %v7989_v33 = vmax.f32 %v7845_v18, 0.0  ;;  %v7703_v35 = vadd.f32 %v7702_v19, %v16785_v22 }
 0x80e   : > { %8136 = vst.msk [vmem:[%s16399_s26 + $0x448] sm:$0xff] %vm18981_vm13, %v7992_v45  ;;  %v7854_v6 = vadd.f32 %v10375_v44, %v7708_v55 }
 0x80f   : > { %8133 = vst.msk [vmem:[%s16399_s26 + $0x430] sm:$0xff] %vm18982_vm3, %v7989_v33  ;;  %v7851_v0 = vadd.f32 %v10376_v21, %v7703_v35 }
 0x810   : > { %v7998_v11 = vmax.f32 %v7854_v6, 0.0 }
 0x811   : > { %v7995_v56 = vmax.f32 %v7851_v0, 0.0 }
 0x812   : > { %8142 = vst.msk [vmem:[%s16399_s26 + $0x478] sm:$0xff] %vm18983_vm11, %v7998_v11 }
 0x813   : > { %8139 = vst.msk [vmem:[%s16399_s26 + $0x460] sm:$0xff] %vm18984_vm1, %v7995_v56 }
 0x814 PF: > { %s21_s17 = sadd.s32 1, %s10383_s17  }
 0x815   : > { %p18_p4 = scmp.ge.s32.totalorder %s21_s17, 4  }
 0x817   :  { %20 = sbr.rel (!%p18_p4) target bundleno = 1 (0x1), region = 94 }

</bundles_post_ra>
